<compile_context>
chip_gen: v7x
topology: tpu7x:2x2x1
jax: 0.10.0
libtpu: 0.0.40
codegen_flags: <defaults>
</compile_context>

<pallas_src>
import functools

import jax
import jax.numpy as jnp
from jax.experimental import pallas as pl
from jax.experimental.pallas import tpu as pltpu


def _embed_kernel(ids_ref, tbl_ref, o_ref, *, scale, bt, n_tok):
    """Gather `bt` embedding rows for one grid step.

    ids_ref: (n_tok,) int32 in SMEM (scalar prefetch).
    tbl_ref: (V, Dp) embedding table, VMEM resident (constant index_map).
    o_ref:   (bt, Dp) output block.
    """
    base = pl.program_id(0) * bt
    # Static loop over groups of 8 tokens: store offsets are static, stores are
    # full (8, Dp) lane-dense tiles. Only the table row loads are dynamic
    # (inherent to a gather).
    for g in range(bt // 8):
        rows = []
        for r in range(8):
            # Clamp so the ragged last block never reads past the id array.
            idx = jnp.minimum(base + g * 8 + r, n_tok - 1)
            tok = ids_ref[idx]                       # scalar read from SMEM
            rows.append(tbl_ref[pl.ds(tok, 1), :])   # (1, Dp) dynamic row load
        tile = jnp.concatenate(rows, axis=0)         # (8, Dp)
        o_ref[pl.ds(g * 8, 8), :] = (tile * scale).astype(o_ref.dtype)


@functools.partial(jax.jit, static_argnames=("block_tokens",))
def input_embeddings(token_ids, table, *, block_tokens=256):
    """token_ids: (B, S) int; table: (V, D) -> (B, S, D) = table[ids]*sqrt(D)."""
    B, S = token_ids.shape
    V, D = table.shape
    out_dtype = table.dtype
    scale = float(D) ** 0.5

    # Lane-dense output: pad d_model up to a multiple of 128 (zero columns).
    Dp = ((D + 127) // 128) * 128
    if Dp != D:
        table = jnp.pad(table, ((0, 0), (0, Dp - D)))

    # Flatten tokens; pad the token count up to a multiple of 8 (sublane group).
    N = B * S
    Np = ((N + 7) // 8) * 8
    ids = token_ids.reshape(N).astype(jnp.int32)
    # Policy: clamp out-of-range / negative ids (torch would raise; we clamp).
    ids = jnp.clip(ids, 0, V - 1)
    if Np != N:
        ids = jnp.pad(ids, (0, Np - N))

    # Token-block size: multiple of 8, large enough to amortize per-step
    # overhead and fill the output DMA.
    bt = min(block_tokens, Np)
    bt = max(8, (bt // 8) * 8)
    grid = (pl.cdiv(Np, bt),)

    # Explicit VMEM budget: resident table (possibly double-buffered) +
    # double-buffered output block + headroom; capped at 64 MiB (v7x physical).
    itemsize = jnp.dtype(out_dtype).itemsize
    tbl_bytes = V * Dp * itemsize
    out_blk_bytes = bt * Dp * itemsize
    vmem_limit = int(min(max(2 * tbl_bytes + 2 * out_blk_bytes + (8 << 20),
                             32 << 20), 64 << 20))

    out2d = pl.pallas_call(
        functools.partial(_embed_kernel, scale=scale, bt=bt, n_tok=Np),
        out_shape=jax.ShapeDtypeStruct((Np, Dp), out_dtype),
        grid_spec=pltpu.PrefetchScalarGridSpec(
            num_scalar_prefetch=1,          # ids -> SMEM, passed to index_maps
            grid=grid,
            in_specs=[
                # Embedding table: whole-array block, constant index -> fetched
                # once and kept VMEM resident across grid steps.
                pl.BlockSpec((V, Dp), lambda i, _ids: (0, 0)),
            ],
            out_specs=pl.BlockSpec((bt, Dp), lambda i, _ids: (i, 0)),
        ),
        compiler_params=pltpu.CompilerParams(
            dimension_semantics=("parallel",),
            vmem_limit_bytes=vmem_limit,
        ),
    )(ids, table)

    return out2d[:N, :D].reshape(B, S, D)


if __name__ == "__main__":
    # (batch_size, seq_len) int ids -> (batch_size, seq_len, d_model)
    batch, seq, d_model, vocab_size = 4, 96, 128, 1000

    key = jax.random.PRNGKey(0)
    kids, ktbl = jax.random.split(key)

    # nn.Embedding default init ~ N(0, 1)
    table = jax.random.normal(ktbl, (vocab_size, d_model), jnp.float32)
    token_ids = jax.random.randint(kids, (batch, seq), 0, vocab_size,
                                   dtype=jnp.int32)

    out = input_embeddings(token_ids, table)
    out = jax.block_until_ready(out)

    # Pure-JAX reference: embedding lookup scaled by sqrt(d_model).
    ref = table[token_ids] * (float(d_model) ** 0.5)
    assert out.shape == (batch, seq, d_model)
    assert jnp.allclose(out, ref, atol=1e-5, rtol=1e-5)

    print("KERNEL_OK")
</pallas_src>

<mosaic_0001>
module attributes {stable_mosaic.version = 11 : i64} {
  func.func @_embed_kernel(%arg0: i32, %arg1: memref<384xi32, #tpu.memory_space<smem>>, %arg2: memref<1000x128xf32, #tpu.memory_space<vmem>>, %arg3: memref<256x128xf32, #tpu.memory_space<vmem>>) attributes {dimension_semantics = [#tpu.dimension_semantics<parallel>], iteration_bounds = array<i64: 2>, scalar_prefetch = 1 : i64, scratch_operands = 0 : i64, tpu.core_type = #tpu.core_type<tc>, window_params = [{pipeline_mode = #tpu.pipeline_mode<synchronous>, transform_indices = @transform_0, window_bounds = array<i64: 1000, 128>}, {transform_indices = @transform_1, window_bounds = array<i64: 256, 128>}]} {
    %c256_i32 = arith.constant 256 : i32
    %0 = arith.muli %arg0, %c256_i32 : i32
    %c0_i32 = arith.constant 0 : i32
    %1 = arith.addi %0, %c0_i32 : i32
    %c0_i32_0 = arith.constant 0 : i32
    %2 = arith.addi %1, %c0_i32_0 : i32
    %c383_i32 = arith.constant 383 : i32
    %3 = arith.minsi %2, %c383_i32 : i32
    %4 = arith.index_cast %3 : i32 to index
    %5 = memref.load %arg1[%4] : memref<384xi32, #tpu.memory_space<smem>>
    %6 = arith.index_cast %5 : i32 to index
    %c0 = arith.constant 0 : index
    %7 = vector.load %arg2[%6, %c0] : memref<1000x128xf32, #tpu.memory_space<vmem>>, vector<1x128xf32>
    %c0_i32_1 = arith.constant 0 : i32
    %8 = arith.addi %0, %c0_i32_1 : i32
    %c1_i32 = arith.constant 1 : i32
    %9 = arith.addi %8, %c1_i32 : i32
    %c383_i32_2 = arith.constant 383 : i32
    %10 = arith.minsi %9, %c383_i32_2 : i32
    %11 = arith.index_cast %10 : i32 to index
    %12 = memref.load %arg1[%11] : memref<384xi32, #tpu.memory_space<smem>>
    %13 = arith.index_cast %12 : i32 to index
    %c0_3 = arith.constant 0 : index
    %14 = vector.load %arg2[%13, %c0_3] : memref<1000x128xf32, #tpu.memory_space<vmem>>, vector<1x128xf32>
    %c0_i32_4 = arith.constant 0 : i32
    %15 = arith.addi %0, %c0_i32_4 : i32
    %c2_i32 = arith.constant 2 : i32
    %16 = arith.addi %15, %c2_i32 : i32
    %c383_i32_5 = arith.constant 383 : i32
    %17 = arith.minsi %16, %c383_i32_5 : i32
    %18 = arith.index_cast %17 : i32 to index
    %19 = memref.load %arg1[%18] : memref<384xi32, #tpu.memory_space<smem>>
    %20 = arith.index_cast %19 : i32 to index
    %c0_6 = arith.constant 0 : index
    %21 = vector.load %arg2[%20, %c0_6] : memref<1000x128xf32, #tpu.memory_space<vmem>>, vector<1x128xf32>
    %c0_i32_7 = arith.constant 0 : i32
    %22 = arith.addi %0, %c0_i32_7 : i32
    %c3_i32 = arith.constant 3 : i32
    %23 = arith.addi %22, %c3_i32 : i32
    %c383_i32_8 = arith.constant 383 : i32
    %24 = arith.minsi %23, %c383_i32_8 : i32
    %25 = arith.index_cast %24 : i32 to index
    %26 = memref.load %arg1[%25] : memref<384xi32, #tpu.memory_space<smem>>
    %27 = arith.index_cast %26 : i32 to index
    %c0_9 = arith.constant 0 : index
    %28 = vector.load %arg2[%27, %c0_9] : memref<1000x128xf32, #tpu.memory_space<vmem>>, vector<1x128xf32>
    %c0_i32_10 = arith.constant 0 : i32
    %29 = arith.addi %0, %c0_i32_10 : i32
    %c4_i32 = arith.constant 4 : i32
    %30 = arith.addi %29, %c4_i32 : i32
    %c383_i32_11 = arith.constant 383 : i32
    %31 = arith.minsi %30, %c383_i32_11 : i32
    %32 = arith.index_cast %31 : i32 to index
    %33 = memref.load %arg1[%32] : memref<384xi32, #tpu.memory_space<smem>>
    %34 = arith.index_cast %33 : i32 to index
    %c0_12 = arith.constant 0 : index
    %35 = vector.load %arg2[%34, %c0_12] : memref<1000x128xf32, #tpu.memory_space<vmem>>, vector<1x128xf32>
    %c0_i32_13 = arith.constant 0 : i32
    %36 = arith.addi %0, %c0_i32_13 : i32
    %c5_i32 = arith.constant 5 : i32
    %37 = arith.addi %36, %c5_i32 : i32
    %c383_i32_14 = arith.constant 383 : i32
    %38 = arith.minsi %37, %c383_i32_14 : i32
    %39 = arith.index_cast %38 : i32 to index
    %40 = memref.load %arg1[%39] : memref<384xi32, #tpu.memory_space<smem>>
    %41 = arith.index_cast %40 : i32 to index
    %c0_15 = arith.constant 0 : index
    %42 = vector.load %arg2[%41, %c0_15] : memref<1000x128xf32, #tpu.memory_space<vmem>>, vector<1x128xf32>
    %c0_i32_16 = arith.constant 0 : i32
    %43 = arith.addi %0, %c0_i32_16 : i32
    %c6_i32 = arith.constant 6 : i32
    %44 = arith.addi %43, %c6_i32 : i32
    %c383_i32_17 = arith.constant 383 : i32
    %45 = arith.minsi %44, %c383_i32_17 : i32
    %46 = arith.index_cast %45 : i32 to index
    %47 = memref.load %arg1[%46] : memref<384xi32, #tpu.memory_space<smem>>
    %48 = arith.index_cast %47 : i32 to index
    %c0_18 = arith.constant 0 : index
    %49 = vector.load %arg2[%48, %c0_18] : memref<1000x128xf32, #tpu.memory_space<vmem>>, vector<1x128xf32>
    %c0_i32_19 = arith.constant 0 : i32
    %50 = arith.addi %0, %c0_i32_19 : i32
    %c7_i32 = arith.constant 7 : i32
    %51 = arith.addi %50, %c7_i32 : i32
    %c383_i32_20 = arith.constant 383 : i32
    %52 = arith.minsi %51, %c383_i32_20 : i32
    %53 = arith.index_cast %52 : i32 to index
    %54 = memref.load %arg1[%53] : memref<384xi32, #tpu.memory_space<smem>>
    %55 = arith.index_cast %54 : i32 to index
    %c0_21 = arith.constant 0 : index
    %56 = vector.load %arg2[%55, %c0_21] : memref<1000x128xf32, #tpu.memory_space<vmem>>, vector<1x128xf32>
    %57 = tpu.concatenate %7, %14, %21, %28, %35, %42, %49, %56 in 0 : vector<1x128xf32>, vector<1x128xf32>, vector<1x128xf32>, vector<1x128xf32>, vector<1x128xf32>, vector<1x128xf32>, vector<1x128xf32>, vector<1x128xf32> -> vector<8x128xf32>
    %cst = arith.constant 11.3137083 : f32
    %58 = vector.broadcast %cst : f32 to vector<8x128xf32>
    %59 = arith.mulf %57, %58 : vector<8x128xf32>
    %c0_22 = arith.constant 0 : index
    %c0_23 = arith.constant 0 : index
    %60 = vector.load %arg3[%c0_22, %c0_23] : memref<256x128xf32, #tpu.memory_space<vmem>>, vector<8x128xf32>
    tpu.vector_store %arg3[%c0_22, %c0_23], %59 {strides = array<i32>} : memref<256x128xf32, #tpu.memory_space<vmem>>, vector<8x128xf32>,
    %c8_i32 = arith.constant 8 : i32
    %61 = arith.addi %0, %c8_i32 : i32
    %c0_i32_24 = arith.constant 0 : i32
    %62 = arith.addi %61, %c0_i32_24 : i32
    %c383_i32_25 = arith.constant 383 : i32
    %63 = arith.minsi %62, %c383_i32_25 : i32
    %64 = arith.index_cast %63 : i32 to index
    %65 = memref.load %arg1[%64] : memref<384xi32, #tpu.memory_space<smem>>
    %66 = arith.index_cast %65 : i32 to index
    %c0_26 = arith.constant 0 : index
    %67 = vector.load %arg2[%66, %c0_26] : memref<1000x128xf32, #tpu.memory_space<vmem>>, vector<1x128xf32>
    %c8_i32_27 = arith.constant 8 : i32
    %68 = arith.addi %0, %c8_i32_27 : i32
    %c1_i32_28 = arith.constant 1 : i32
    %69 = arith.addi %68, %c1_i32_28 : i32
    %c383_i32_29 = arith.constant 383 : i32
    %70 = arith.minsi %69, %c383_i32_29 : i32
    %71 = arith.index_cast %70 : i32 to index
    %72 = memref.load %arg1[%71] : memref<384xi32, #tpu.memory_space<smem>>
    %73 = arith.index_cast %72 : i32 to index
    %c0_30 = arith.constant 0 : index
    %74 = vector.load %arg2[%73, %c0_30] : memref<1000x128xf32, #tpu.memory_space<vmem>>, vector<1x128xf32>
    %c8_i32_31 = arith.constant 8 : i32
    %75 = arith.addi %0, %c8_i32_31 : i32
    %c2_i32_32 = arith.constant 2 : i32
    %76 = arith.addi %75, %c2_i32_32 : i32
    %c383_i32_33 = arith.constant 383 : i32
    %77 = arith.minsi %76, %c383_i32_33 : i32
    %78 = arith.index_cast %77 : i32 to index
    %79 = memref.load %arg1[%78] : memref<384xi32, #tpu.memory_space<smem>>
    %80 = arith.index_cast %79 : i32 to index
    %c0_34 = arith.constant 0 : index
    %81 = vector.load %arg2[%80, %c0_34] : memref<1000x128xf32, #tpu.memory_space<vmem>>, vector<1x128xf32>
    %c8_i32_35 = arith.constant 8 : i32
    %82 = arith.addi %0, %c8_i32_35 : i32
    %c3_i32_36 = arith.constant 3 : i32
    %83 = arith.addi %82, %c3_i32_36 : i32
    %c383_i32_37 = arith.constant 383 : i32
    %84 = arith.minsi %83, %c383_i32_37 : i32
    %85 = arith.index_cast %84 : i32 to index
    %86 = memref.load %arg1[%85] : memref<384xi32, #tpu.memory_space<smem>>
    %87 = arith.index_cast %86 : i32 to index
    %c0_38 = arith.constant 0 : index
    %88 = vector.load %arg2[%87, %c0_38] : memref<1000x128xf32, #tpu.memory_space<vmem>>, vector<1x128xf32>
    %c8_i32_39 = arith.constant 8 : i32
    %89 = arith.addi %0, %c8_i32_39 : i32
    %c4_i32_40 = arith.constant 4 : i32
    %90 = arith.addi %89, %c4_i32_40 : i32
    %c383_i32_41 = arith.constant 383 : i32
    %91 = arith.minsi %90, %c383_i32_41 : i32
    %92 = arith.index_cast %91 : i32 to index
    %93 = memref.load %arg1[%92] : memref<384xi32, #tpu.memory_space<smem>>
    %94 = arith.index_cast %93 : i32 to index
    %c0_42 = arith.constant 0 : index
    %95 = vector.load %arg2[%94, %c0_42] : memref<1000x128xf32, #tpu.memory_space<vmem>>, vector<1x128xf32>
    %c8_i32_43 = arith.constant 8 : i32
    %96 = arith.addi %0, %c8_i32_43 : i32
    %c5_i32_44 = arith.constant 5 : i32
    %97 = arith.addi %96, %c5_i32_44 : i32
    %c383_i32_45 = arith.constant 383 : i32
    %98 = arith.minsi %97, %c383_i32_45 : i32
    %99 = arith.index_cast %98 : i32 to index
    %100 = memref.load %arg1[%99] : memref<384xi32, #tpu.memory_space<smem>>
    %101 = arith.index_cast %100 : i32 to index
    %c0_46 = arith.constant 0 : index
    %102 = vector.load %arg2[%101, %c0_46] : memref<1000x128xf32, #tpu.memory_space<vmem>>, vector<1x128xf32>
    %c8_i32_47 = arith.constant 8 : i32
    %103 = arith.addi %0, %c8_i32_47 : i32
    %c6_i32_48 = arith.constant 6 : i32
    %104 = arith.addi %103, %c6_i32_48 : i32
    %c383_i32_49 = arith.constant 383 : i32
    %105 = arith.minsi %104, %c383_i32_49 : i32
    %106 = arith.index_cast %105 : i32 to index
    %107 = memref.load %arg1[%106] : memref<384xi32, #tpu.memory_space<smem>>
    %108 = arith.index_cast %107 : i32 to index
    %c0_50 = arith.constant 0 : index
    %109 = vector.load %arg2[%108, %c0_50] : memref<1000x128xf32, #tpu.memory_space<vmem>>, vector<1x128xf32>
    %c8_i32_51 = arith.constant 8 : i32
    %110 = arith.addi %0, %c8_i32_51 : i32
    %c7_i32_52 = arith.constant 7 : i32
    %111 = arith.addi %110, %c7_i32_52 : i32
    %c383_i32_53 = arith.constant 383 : i32
    %112 = arith.minsi %111, %c383_i32_53 : i32
    %113 = arith.index_cast %112 : i32 to index
    %114 = memref.load %arg1[%113] : memref<384xi32, #tpu.memory_space<smem>>
    %115 = arith.index_cast %114 : i32 to index
    %c0_54 = arith.constant 0 : index
    %116 = vector.load %arg2[%115, %c0_54] : memref<1000x128xf32, #tpu.memory_space<vmem>>, vector<1x128xf32>
    %117 = tpu.concatenate %67, %74, %81, %88, %95, %102, %109, %116 in 0 : vector<1x128xf32>, vector<1x128xf32>, vector<1x128xf32>, vector<1x128xf32>, vector<1x128xf32>, vector<1x128xf32>, vector<1x128xf32>, vector<1x128xf32> -> vector<8x128xf32>
    %cst_55 = arith.constant 11.3137083 : f32
    %118 = vector.broadcast %cst_55 : f32 to vector<8x128xf32>
    %119 = arith.mulf %117, %118 : vector<8x128xf32>
    %c8 = arith.constant 8 : index
    %c0_56 = arith.constant 0 : index
    %120 = vector.load %arg3[%c8, %c0_56] : memref<256x128xf32, #tpu.memory_space<vmem>>, vector<8x128xf32>
    tpu.vector_store %arg3[%c8, %c0_56], %119 {strides = array<i32>} : memref<256x128xf32, #tpu.memory_space<vmem>>, vector<8x128xf32>,
    %c16_i32 = arith.constant 16 : i32
    %121 = arith.addi %0, %c16_i32 : i32
    %c0_i32_57 = arith.constant 0 : i32
    %122 = arith.addi %121, %c0_i32_57 : i32
    %c383_i32_58 = arith.constant 383 : i32
    %123 = arith.minsi %122, %c383_i32_58 : i32
    %124 = arith.index_cast %123 : i32 to index
    %125 = memref.load %arg1[%124] : memref<384xi32, #tpu.memory_space<smem>>
    %126 = arith.index_cast %125 : i32 to index
    %c0_59 = arith.constant 0 : index
    %127 = vector.load %arg2[%126, %c0_59] : memref<1000x128xf32, #tpu.memory_space<vmem>>, vector<1x128xf32>
    %c16_i32_60 = arith.constant 16 : i32
    %128 = arith.addi %0, %c16_i32_60 : i32
    %c1_i32_61 = arith.constant 1 : i32
    %129 = arith.addi %128, %c1_i32_61 : i32
    %c383_i32_62 = arith.constant 383 : i32
    %130 = arith.minsi %129, %c383_i32_62 : i32
    %131 = arith.index_cast %130 : i32 to index
    %132 = memref.load %arg1[%131] : memref<384xi32, #tpu.memory_space<smem>>
    %133 = arith.index_cast %132 : i32 to index
    %c0_63 = arith.constant 0 : index
    %134 = vector.load %arg2[%133, %c0_63] : memref<1000x128xf32, #tpu.memory_space<vmem>>, vector<1x128xf32>
    %c16_i32_64 = arith.constant 16 : i32
    %135 = arith.addi %0, %c16_i32_64 : i32
    %c2_i32_65 = arith.constant 2 : i32
    %136 = arith.addi %135, %c2_i32_65 : i32
    %c383_i32_66 = arith.constant 383 : i32
    %137 = arith.minsi %136, %c383_i32_66 : i32
    %138 = arith.index_cast %137 : i32 to index
    %139 = memref.load %arg1[%138] : memref<384xi32, #tpu.memory_space<smem>>
    %140 = arith.index_cast %139 : i32 to index
    %c0_67 = arith.constant 0 : index
    %141 = vector.load %arg2[%140, %c0_67] : memref<1000x128xf32, #tpu.memory_space<vmem>>, vector<1x128xf32>
    %c16_i32_68 = arith.constant 16 : i32
    %142 = arith.addi %0, %c16_i32_68 : i32
    %c3_i32_69 = arith.constant 3 : i32
    %143 = arith.addi %142, %c3_i32_69 : i32
    %c383_i32_70 = arith.constant 383 : i32
    %144 = arith.minsi %143, %c383_i32_70 : i32
    %145 = arith.index_cast %144 : i32 to index
    %146 = memref.load %arg1[%145] : memref<384xi32, #tpu.memory_space<smem>>
    %147 = arith.index_cast %146 : i32 to index
    %c0_71 = arith.constant 0 : index
    %148 = vector.load %arg2[%147, %c0_71] : memref<1000x128xf32, #tpu.memory_space<vmem>>, vector<1x128xf32>
    %c16_i32_72 = arith.constant 16 : i32
    %149 = arith.addi %0, %c16_i32_72 : i32
    %c4_i32_73 = arith.constant 4 : i32
    %150 = arith.addi %149, %c4_i32_73 : i32
    %c383_i32_74 = arith.constant 383 : i32
    %151 = arith.minsi %150, %c383_i32_74 : i32
    %152 = arith.index_cast %151 : i32 to index
    %153 = memref.load %arg1[%152] : memref<384xi32, #tpu.memory_space<smem>>
    %154 = arith.index_cast %153 : i32 to index
    %c0_75 = arith.constant 0 : index
    %155 = vector.load %arg2[%154, %c0_75] : memref<1000x128xf32, #tpu.memory_space<vmem>>, vector<1x128xf32>
    %c16_i32_76 = arith.constant 16 : i32
    %156 = arith.addi %0, %c16_i32_76 : i32
    %c5_i32_77 = arith.constant 5 : i32
    %157 = arith.addi %156, %c5_i32_77 : i32
    %c383_i32_78 = arith.constant 383 : i32
    %158 = arith.minsi %157, %c383_i32_78 : i32
    %159 = arith.index_cast %158 : i32 to index
    %160 = memref.load %arg1[%159] : memref<384xi32, #tpu.memory_space<smem>>
    %161 = arith.index_cast %160 : i32 to index
    %c0_79 = arith.constant 0 : index
    %162 = vector.load %arg2[%161, %c0_79] : memref<1000x128xf32, #tpu.memory_space<vmem>>, vector<1x128xf32>
    %c16_i32_80 = arith.constant 16 : i32
    %163 = arith.addi %0, %c16_i32_80 : i32
    %c6_i32_81 = arith.constant 6 : i32
    %164 = arith.addi %163, %c6_i32_81 : i32
    %c383_i32_82 = arith.constant 383 : i32
    %165 = arith.minsi %164, %c383_i32_82 : i32
    %166 = arith.index_cast %165 : i32 to index
    %167 = memref.load %arg1[%166] : memref<384xi32, #tpu.memory_space<smem>>
    %168 = arith.index_cast %167 : i32 to index
    %c0_83 = arith.constant 0 : index
    %169 = vector.load %arg2[%168, %c0_83] : memref<1000x128xf32, #tpu.memory_space<vmem>>, vector<1x128xf32>
    %c16_i32_84 = arith.constant 16 : i32
    %170 = arith.addi %0, %c16_i32_84 : i32
    %c7_i32_85 = arith.constant 7 : i32
    %171 = arith.addi %170, %c7_i32_85 : i32
    %c383_i32_86 = arith.constant 383 : i32
    %172 = arith.minsi %171, %c383_i32_86 : i32
    %173 = arith.index_cast %172 : i32 to index
    %174 = memref.load %arg1[%173] : memref<384xi32, #tpu.memory_space<smem>>
    %175 = arith.index_cast %174 : i32 to index
    %c0_87 = arith.constant 0 : index
    %176 = vector.load %arg2[%175, %c0_87] : memref<1000x128xf32, #tpu.memory_space<vmem>>, vector<1x128xf32>
    %177 = tpu.concatenate %127, %134, %141, %148, %155, %162, %169, %176 in 0 : vector<1x128xf32>, vector<1x128xf32>, vector<1x128xf32>, vector<1x128xf32>, vector<1x128xf32>, vector<1x128xf32>, vector<1x128xf32>, vector<1x128xf32> -> vector<8x128xf32>
    %cst_88 = arith.constant 11.3137083 : f32
    %178 = vector.broadcast %cst_88 : f32 to vector<8x128xf32>
    %179 = arith.mulf %177, %178 : vector<8x128xf32>
    %c16 = arith.constant 16 : index
    %c0_89 = arith.constant 0 : index
    %180 = vector.load %arg3[%c16, %c0_89] : memref<256x128xf32, #tpu.memory_space<vmem>>, vector<8x128xf32>
    tpu.vector_store %arg3[%c16, %c0_89], %179 {strides = array<i32>} : memref<256x128xf32, #tpu.memory_space<vmem>>, vector<8x128xf32>,
    %c24_i32 = arith.constant 24 : i32
    %181 = arith.addi %0, %c24_i32 : i32
    %c0_i32_90 = arith.constant 0 : i32
    %182 = arith.addi %181, %c0_i32_90 : i32
    %c383_i32_91 = arith.constant 383 : i32
    %183 = arith.minsi %182, %c383_i32_91 : i32
    %184 = arith.index_cast %183 : i32 to index
    %185 = memref.load %arg1[%184] : memref<384xi32, #tpu.memory_space<smem>>
    %186 = arith.index_cast %185 : i32 to index
    %c0_92 = arith.constant 0 : index
    %187 = vector.load %arg2[%186, %c0_92] : memref<1000x128xf32, #tpu.memory_space<vmem>>, vector<1x128xf32>
    %c24_i32_93 = arith.constant 24 : i32
    %188 = arith.addi %0, %c24_i32_93 : i32
    %c1_i32_94 = arith.constant 1 : i32
    %189 = arith.addi %188, %c1_i32_94 : i32
    %c383_i32_95 = arith.constant 383 : i32
    %190 = arith.minsi %189, %c383_i32_95 : i32
    %191 = arith.index_cast %190 : i32 to index
    %192 = memref.load %arg1[%191] : memref<384xi32, #tpu.memory_space<smem>>
    %193 = arith.index_cast %192 : i32 to index
    %c0_96 = arith.constant 0 : index
    %194 = vector.load %arg2[%193, %c0_96] : memref<1000x128xf32, #tpu.memory_space<vmem>>, vector<1x128xf32>
    %c24_i32_97 = arith.constant 24 : i32
    %195 = arith.addi %0, %c24_i32_97 : i32
    %c2_i32_98 = arith.constant 2 : i32
    %196 = arith.addi %195, %c2_i32_98 : i32
    %c383_i32_99 = arith.constant 383 : i32
    %197 = arith.minsi %196, %c383_i32_99 : i32
    %198 = arith.index_cast %197 : i32 to index
    %199 = memref.load %arg1[%198] : memref<384xi32, #tpu.memory_space<smem>>
    %200 = arith.index_cast %199 : i32 to index
    %c0_100 = arith.constant 0 : index
    %201 = vector.load %arg2[%200, %c0_100] : memref<1000x128xf32, #tpu.memory_space<vmem>>, vector<1x128xf32>
    %c24_i32_101 = arith.constant 24 : i32
    %202 = arith.addi %0, %c24_i32_101 : i32
    %c3_i32_102 = arith.constant 3 : i32
    %203 = arith.addi %202, %c3_i32_102 : i32
    %c383_i32_103 = arith.constant 383 : i32
    %204 = arith.minsi %203, %c383_i32_103 : i32
    %205 = arith.index_cast %204 : i32 to index
    %206 = memref.load %arg1[%205] : memref<384xi32, #tpu.memory_space<smem>>
    %207 = arith.index_cast %206 : i32 to index
    %c0_104 = arith.constant 0 : index
    %208 = vector.load %arg2[%207, %c0_104] : memref<1000x128xf32, #tpu.memory_space<vmem>>, vector<1x128xf32>
    %c24_i32_105 = arith.constant 24 : i32
    %209 = arith.addi %0, %c24_i32_105 : i32
    %c4_i32_106 = arith.constant 4 : i32
    %210 = arith.addi %209, %c4_i32_106 : i32
    %c383_i32_107 = arith.constant 383 : i32
    %211 = arith.minsi %210, %c383_i32_107 : i32
    %212 = arith.index_cast %211 : i32 to index
    %213 = memref.load %arg1[%212] : memref<384xi32, #tpu.memory_space<smem>>
    %214 = arith.index_cast %213 : i32 to index
    %c0_108 = arith.constant 0 : index
    %215 = vector.load %arg2[%214, %c0_108] : memref<1000x128xf32, #tpu.memory_space<vmem>>, vector<1x128xf32>
    %c24_i32_109 = arith.constant 24 : i32
    %216 = arith.addi %0, %c24_i32_109 : i32
    %c5_i32_110 = arith.constant 5 : i32
    %217 = arith.addi %216, %c5_i32_110 : i32
    %c383_i32_111 = arith.constant 383 : i32
    %218 = arith.minsi %217, %c383_i32_111 : i32
    %219 = arith.index_cast %218 : i32 to index
    %220 = memref.load %arg1[%219] : memref<384xi32, #tpu.memory_space<smem>>
    %221 = arith.index_cast %220 : i32 to index
    %c0_112 = arith.constant 0 : index
    %222 = vector.load %arg2[%221, %c0_112] : memref<1000x128xf32, #tpu.memory_space<vmem>>, vector<1x128xf32>
    %c24_i32_113 = arith.constant 24 : i32
    %223 = arith.addi %0, %c24_i32_113 : i32
    %c6_i32_114 = arith.constant 6 : i32
    %224 = arith.addi %223, %c6_i32_114 : i32
    %c383_i32_115 = arith.constant 383 : i32
    %225 = arith.minsi %224, %c383_i32_115 : i32
    %226 = arith.index_cast %225 : i32 to index
    %227 = memref.load %arg1[%226] : memref<384xi32, #tpu.memory_space<smem>>
    %228 = arith.index_cast %227 : i32 to index
    %c0_116 = arith.constant 0 : index
    %229 = vector.load %arg2[%228, %c0_116] : memref<1000x128xf32, #tpu.memory_space<vmem>>, vector<1x128xf32>
    %c24_i32_117 = arith.constant 24 : i32
    %230 = arith.addi %0, %c24_i32_117 : i32
    %c7_i32_118 = arith.constant 7 : i32
    %231 = arith.addi %230, %c7_i32_118 : i32
    %c383_i32_119 = arith.constant 383 : i32
    %232 = arith.minsi %231, %c383_i32_119 : i32
    %233 = arith.index_cast %232 : i32 to index
    %234 = memref.load %arg1[%233] : memref<384xi32, #tpu.memory_space<smem>>
    %235 = arith.index_cast %234 : i32 to index
    %c0_120 = arith.constant 0 : index
    %236 = vector.load %arg2[%235, %c0_120] : memref<1000x128xf32, #tpu.memory_space<vmem>>, vector<1x128xf32>
    %237 = tpu.concatenate %187, %194, %201, %208, %215, %222, %229, %236 in 0 : vector<1x128xf32>, vector<1x128xf32>, vector<1x128xf32>, vector<1x128xf32>, vector<1x128xf32>, vector<1x128xf32>, vector<1x128xf32>, vector<1x128xf32> -> vector<8x128xf32>
    %cst_121 = arith.constant 11.3137083 : f32
    %238 = vector.broadcast %cst_121 : f32 to vector<8x128xf32>
    %239 = arith.mulf %237, %238 : vector<8x128xf32>
    %c24 = arith.constant 24 : index
    %c0_122 = arith.constant 0 : index
    %240 = vector.load %arg3[%c24, %c0_122] : memref<256x128xf32, #tpu.memory_space<vmem>>, vector<8x128xf32>
    tpu.vector_store %arg3[%c24, %c0_122], %239 {strides = array<i32>} : memref<256x128xf32, #tpu.memory_space<vmem>>, vector<8x128xf32>,
    %c32_i32 = arith.constant 32 : i32
    %241 = arith.addi %0, %c32_i32 : i32
    %c0_i32_123 = arith.constant 0 : i32
    %242 = arith.addi %241, %c0_i32_123 : i32
    %c383_i32_124 = arith.constant 383 : i32
    %243 = arith.minsi %242, %c383_i32_124 : i32
    %244 = arith.index_cast %243 : i32 to index
    %245 = memref.load %arg1[%244] : memref<384xi32, #tpu.memory_space<smem>>
    %246 = arith.index_cast %245 : i32 to index
    %c0_125 = arith.constant 0 : index
    %247 = vector.load %arg2[%246, %c0_125] : memref<1000x128xf32, #tpu.memory_space<vmem>>, vector<1x128xf32>
    %c32_i32_126 = arith.constant 32 : i32
    %248 = arith.addi %0, %c32_i32_126 : i32
    %c1_i32_127 = arith.constant 1 : i32
    %249 = arith.addi %248, %c1_i32_127 : i32
    %c383_i32_128 = arith.constant 383 : i32
    %250 = arith.minsi %249, %c383_i32_128 : i32
    %251 = arith.index_cast %250 : i32 to index
    %252 = memref.load %arg1[%251] : memref<384xi32, #tpu.memory_space<smem>>
    %253 = arith.index_cast %252 : i32 to index
    %c0_129 = arith.constant 0 : index
    %254 = vector.load %arg2[%253, %c0_129] : memref<1000x128xf32, #tpu.memory_space<vmem>>, vector<1x128xf32>
    %c32_i32_130 = arith.constant 32 : i32
    %255 = arith.addi %0, %c32_i32_130 : i32
    %c2_i32_131 = arith.constant 2 : i32
    %256 = arith.addi %255, %c2_i32_131 : i32
    %c383_i32_132 = arith.constant 383 : i32
    %257 = arith.minsi %256, %c383_i32_132 : i32
    %258 = arith.index_cast %257 : i32 to index
    %259 = memref.load %arg1[%258] : memref<384xi32, #tpu.memory_space<smem>>
    %260 = arith.index_cast %259 : i32 to index
    %c0_133 = arith.constant 0 : index
    %261 = vector.load %arg2[%260, %c0_133] : memref<1000x128xf32, #tpu.memory_space<vmem>>, vector<1x128xf32>
    %c32_i32_134 = arith.constant 32 : i32
    %262 = arith.addi %0, %c32_i32_134 : i32
    %c3_i32_135 = arith.constant 3 : i32
    %263 = arith.addi %262, %c3_i32_135 : i32
    %c383_i32_136 = arith.constant 383 : i32
    %264 = arith.minsi %263, %c383_i32_136 : i32
    %265 = arith.index_cast %264 : i32 to index
    %266 = memref.load %arg1[%265] : memref<384xi32, #tpu.memory_space<smem>>
    %267 = arith.index_cast %266 : i32 to index
    %c0_137 = arith.constant 0 : index
    %268 = vector.load %arg2[%267, %c0_137] : memref<1000x128xf32, #tpu.memory_space<vmem>>, vector<1x128xf32>
    %c32_i32_138 = arith.constant 32 : i32
    %269 = arith.addi %0, %c32_i32_138 : i32
    %c4_i32_139 = arith.constant 4 : i32
    %270 = arith.addi %269, %c4_i32_139 : i32
    %c383_i32_140 = arith.constant 383 : i32
    %271 = arith.minsi %270, %c383_i32_140 : i32
    %272 = arith.index_cast %271 : i32 to index
    %273 = memref.load %arg1[%272] : memref<384xi32, #tpu.memory_space<smem>>
    %274 = arith.index_cast %273 : i32 to index
    %c0_141 = arith.constant 0 : index
    %275 = vector.load %arg2[%274, %c0_141] : memref<1000x128xf32, #tpu.memory_space<vmem>>, vector<1x128xf32>
    %c32_i32_142 = arith.constant 32 : i32
    %276 = arith.addi %0, %c32_i32_142 : i32
    %c5_i32_143 = arith.constant 5 : i32
    %277 = arith.addi %276, %c5_i32_143 : i32
    %c383_i32_144 = arith.constant 383 : i32
    %278 = arith.minsi %277, %c383_i32_144 : i32
    %279 = arith.index_cast %278 : i32 to index
    %280 = memref.load %arg1[%279] : memref<384xi32, #tpu.memory_space<smem>>
    %281 = arith.index_cast %280 : i32 to index
    %c0_145 = arith.constant 0 : index
    %282 = vector.load %arg2[%281, %c0_145] : memref<1000x128xf32, #tpu.memory_space<vmem>>, vector<1x128xf32>
    %c32_i32_146 = arith.constant 32 : i32
    %283 = arith.addi %0, %c32_i32_146 : i32
    %c6_i32_147 = arith.constant 6 : i32
    %284 = arith.addi %283, %c6_i32_147 : i32
    %c383_i32_148 = arith.constant 383 : i32
    %285 = arith.minsi %284, %c383_i32_148 : i32
    %286 = arith.index_cast %285 : i32 to index
    %287 = memref.load %arg1[%286] : memref<384xi32, #tpu.memory_space<smem>>
    %288 = arith.index_cast %287 : i32 to index
    %c0_149 = arith.constant 0 : index
    %289 = vector.load %arg2[%288, %c0_149] : memref<1000x128xf32, #tpu.memory_space<vmem>>, vector<1x128xf32>
    %c32_i32_150 = arith.constant 32 : i32
    %290 = arith.addi %0, %c32_i32_150 : i32
    %c7_i32_151 = arith.constant 7 : i32
    %291 = arith.addi %290, %c7_i32_151 : i32
    %c383_i32_152 = arith.constant 383 : i32
    %292 = arith.minsi %291, %c383_i32_152 : i32
    %293 = arith.index_cast %292 : i32 to index
    %294 = memref.load %arg1[%293] : memref<384xi32, #tpu.memory_space<smem>>
    %295 = arith.index_cast %294 : i32 to index
    %c0_153 = arith.constant 0 : index
    %296 = vector.load %arg2[%295, %c0_153] : memref<1000x128xf32, #tpu.memory_space<vmem>>, vector<1x128xf32>
    %297 = tpu.concatenate %247, %254, %261, %268, %275, %282, %289, %296 in 0 : vector<1x128xf32>, vector<1x128xf32>, vector<1x128xf32>, vector<1x128xf32>, vector<1x128xf32>, vector<1x128xf32>, vector<1x128xf32>, vector<1x128xf32> -> vector<8x128xf32>
    %cst_154 = arith.constant 11.3137083 : f32
    %298 = vector.broadcast %cst_154 : f32 to vector<8x128xf32>
    %299 = arith.mulf %297, %298 : vector<8x128xf32>
    %c32 = arith.constant 32 : index
    %c0_155 = arith.constant 0 : index
    %300 = vector.load %arg3[%c32, %c0_155] : memref<256x128xf32, #tpu.memory_space<vmem>>, vector<8x128xf32>
    tpu.vector_store %arg3[%c32, %c0_155], %299 {strides = array<i32>} : memref<256x128xf32, #tpu.memory_space<vmem>>, vector<8x128xf32>,
    %c40_i32 = arith.constant 40 : i32
    %301 = arith.addi %0, %c40_i32 : i32
    %c0_i32_156 = arith.constant 0 : i32
    %302 = arith.addi %301, %c0_i32_156 : i32
    %c383_i32_157 = arith.constant 383 : i32
    %303 = arith.minsi %302, %c383_i32_157 : i32
    %304 = arith.index_cast %303 : i32 to index
    %305 = memref.load %arg1[%304] : memref<384xi32, #tpu.memory_space<smem>>
    %306 = arith.index_cast %305 : i32 to index
    %c0_158 = arith.constant 0 : index
    %307 = vector.load %arg2[%306, %c0_158] : memref<1000x128xf32, #tpu.memory_space<vmem>>, vector<1x128xf32>
    %c40_i32_159 = arith.constant 40 : i32
    %308 = arith.addi %0, %c40_i32_159 : i32
    %c1_i32_160 = arith.constant 1 : i32
    %309 = arith.addi %308, %c1_i32_160 : i32
    %c383_i32_161 = arith.constant 383 : i32
    %310 = arith.minsi %309, %c383_i32_161 : i32
    %311 = arith.index_cast %310 : i32 to index
    %312 = memref.load %arg1[%311] : memref<384xi32, #tpu.memory_space<smem>>
    %313 = arith.index_cast %312 : i32 to index
    %c0_162 = arith.constant 0 : index
    %314 = vector.load %arg2[%313, %c0_162] : memref<1000x128xf32, #tpu.memory_space<vmem>>, vector<1x128xf32>
    %c40_i32_163 = arith.constant 40 : i32
    %315 = arith.addi %0, %c40_i32_163 : i32
    %c2_i32_164 = arith.constant 2 : i32
    %316 = arith.addi %315, %c2_i32_164 : i32
    %c383_i32_165 = arith.constant 383 : i32
    %317 = arith.minsi %316, %c383_i32_165 : i32
    %318 = arith.index_cast %317 : i32 to index
    %319 = memref.load %arg1[%318] : memref<384xi32, #tpu.memory_space<smem>>
    %320 = arith.index_cast %319 : i32 to index
    %c0_166 = arith.constant 0 : index
    %321 = vector.load %arg2[%320, %c0_166] : memref<1000x128xf32, #tpu.memory_space<vmem>>, vector<1x128xf32>
    %c40_i32_167 = arith.constant 40 : i32
    %322 = arith.addi %0, %c40_i32_167 : i32
    %c3_i32_168 = arith.constant 3 : i32
    %323 = arith.addi %322, %c3_i32_168 : i32
    %c383_i32_169 = arith.constant 383 : i32
    %324 = arith.minsi %323, %c383_i32_169 : i32
    %325 = arith.index_cast %324 : i32 to index
    %326 = memref.load %arg1[%325] : memref<384xi32, #tpu.memory_space<smem>>
    %327 = arith.index_cast %326 : i32 to index
    %c0_170 = arith.constant 0 : index
    %328 = vector.load %arg2[%327, %c0_170] : memref<1000x128xf32, #tpu.memory_space<vmem>>, vector<1x128xf32>
    %c40_i32_171 = arith.constant 40 : i32
    %329 = arith.addi %0, %c40_i32_171 : i32
    %c4_i32_172 = arith.constant 4 : i32
    %330 = arith.addi %329, %c4_i32_172 : i32
    %c383_i32_173 = arith.constant 383 : i32
    %331 = arith.minsi %330, %c383_i32_173 : i32
    %332 = arith.index_cast %331 : i32 to index
    %333 = memref.load %arg1[%332] : memref<384xi32, #tpu.memory_space<smem>>
    %334 = arith.index_cast %333 : i32 to index
    %c0_174 = arith.constant 0 : index
    %335 = vector.load %arg2[%334, %c0_174] : memref<1000x128xf32, #tpu.memory_space<vmem>>, vector<1x128xf32>
    %c40_i32_175 = arith.constant 40 : i32
    %336 = arith.addi %0, %c40_i32_175 : i32
    %c5_i32_176 = arith.constant 5 : i32
    %337 = arith.addi %336, %c5_i32_176 : i32
    %c383_i32_177 = arith.constant 383 : i32
    %338 = arith.minsi %337, %c383_i32_177 : i32
    %339 = arith.index_cast %338 : i32 to index
    %340 = memref.load %arg1[%339] : memref<384xi32, #tpu.memory_space<smem>>
    %341 = arith.index_cast %340 : i32 to index
    %c0_178 = arith.constant 0 : index
    %342 = vector.load %arg2[%341, %c0_178] : memref<1000x128xf32, #tpu.memory_space<vmem>>, vector<1x128xf32>
    %c40_i32_179 = arith.constant 40 : i32
    %343 = arith.addi %0, %c40_i32_179 : i32
    %c6_i32_180 = arith.constant 6 : i32
    %344 = arith.addi %343, %c6_i32_180 : i32
    %c383_i32_181 = arith.constant 383 : i32
    %345 = arith.minsi %344, %c383_i32_181 : i32
    %346 = arith.index_cast %345 : i32 to index
    %347 = memref.load %arg1[%346] : memref<384xi32, #tpu.memory_space<smem>>
    %348 = arith.index_cast %347 : i32 to index
    %c0_182 = arith.constant 0 : index
    %349 = vector.load %arg2[%348, %c0_182] : memref<1000x128xf32, #tpu.memory_space<vmem>>, vector<1x128xf32>
    %c40_i32_183 = arith.constant 40 : i32
    %350 = arith.addi %0, %c40_i32_183 : i32
    %c7_i32_184 = arith.constant 7 : i32
    %351 = arith.addi %350, %c7_i32_184 : i32
    %c383_i32_185 = arith.constant 383 : i32
    %352 = arith.minsi %351, %c383_i32_185 : i32
    %353 = arith.index_cast %352 : i32 to index
    %354 = memref.load %arg1[%353] : memref<384xi32, #tpu.memory_space<smem>>
    %355 = arith.index_cast %354 : i32 to index
    %c0_186 = arith.constant 0 : index
    %356 = vector.load %arg2[%355, %c0_186] : memref<1000x128xf32, #tpu.memory_space<vmem>>, vector<1x128xf32>
    %357 = tpu.concatenate %307, %314, %321, %328, %335, %342, %349, %356 in 0 : vector<1x128xf32>, vector<1x128xf32>, vector<1x128xf32>, vector<1x128xf32>, vector<1x128xf32>, vector<1x128xf32>, vector<1x128xf32>, vector<1x128xf32> -> vector<8x128xf32>
    %cst_187 = arith.constant 11.3137083 : f32
    %358 = vector.broadcast %cst_187 : f32 to vector<8x128xf32>
    %359 = arith.mulf %357, %358 : vector<8x128xf32>
    %c40 = arith.constant 40 : index
    %c0_188 = arith.constant 0 : index
    %360 = vector.load %arg3[%c40, %c0_188] : memref<256x128xf32, #tpu.memory_space<vmem>>, vector<8x128xf32>
    tpu.vector_store %arg3[%c40, %c0_188], %359 {strides = array<i32>} : memref<256x128xf32, #tpu.memory_space<vmem>>, vector<8x128xf32>,
    %c48_i32 = arith.constant 48 : i32
    %361 = arith.addi %0, %c48_i32 : i32
    %c0_i32_189 = arith.constant 0 : i32
    %362 = arith.addi %361, %c0_i32_189 : i32
    %c383_i32_190 = arith.constant 383 : i32
    %363 = arith.minsi %362, %c383_i32_190 : i32
    %364 = arith.index_cast %363 : i32 to index
    %365 = memref.load %arg1[%364] : memref<384xi32, #tpu.memory_space<smem>>
    %366 = arith.index_cast %365 : i32 to index
    %c0_191 = arith.constant 0 : index
    %367 = vector.load %arg2[%366, %c0_191] : memref<1000x128xf32, #tpu.memory_space<vmem>>, vector<1x128xf32>
    %c48_i32_192 = arith.constant 48 : i32
    %368 = arith.addi %0, %c48_i32_192 : i32
    %c1_i32_193 = arith.constant 1 : i32
    %369 = arith.addi %368, %c1_i32_193 : i32
    %c383_i32_194 = arith.constant 383 : i32
    %370 = arith.minsi %369, %c383_i32_194 : i32
    %371 = arith.index_cast %370 : i32 to index
    %372 = memref.load %arg1[%371] : memref<384xi32, #tpu.memory_space<smem>>
    %373 = arith.index_cast %372 : i32 to index
    %c0_195 = arith.constant 0 : index
    %374 = vector.load %arg2[%373, %c0_195] : memref<1000x128xf32, #tpu.memory_space<vmem>>, vector<1x128xf32>
    %c48_i32_196 = arith.constant 48 : i32
    %375 = arith.addi %0, %c48_i32_196 : i32
    %c2_i32_197 = arith.constant 2 : i32
    %376 = arith.addi %375, %c2_i32_197 : i32
    %c383_i32_198 = arith.constant 383 : i32
    %377 = arith.minsi %376, %c383_i32_198 : i32
    %378 = arith.index_cast %377 : i32 to index
    %379 = memref.load %arg1[%378] : memref<384xi32, #tpu.memory_space<smem>>
    %380 = arith.index_cast %379 : i32 to index
    %c0_199 = arith.constant 0 : index
    %381 = vector.load %arg2[%380, %c0_199] : memref<1000x128xf32, #tpu.memory_space<vmem>>, vector<1x128xf32>
    %c48_i32_200 = arith.constant 48 : i32
    %382 = arith.addi %0, %c48_i32_200 : i32
    %c3_i32_201 = arith.constant 3 : i32
    %383 = arith.addi %382, %c3_i32_201 : i32
    %c383_i32_202 = arith.constant 383 : i32
    %384 = arith.minsi %383, %c383_i32_202 : i32
    %385 = arith.index_cast %384 : i32 to index
    %386 = memref.load %arg1[%385] : memref<384xi32, #tpu.memory_space<smem>>
    %387 = arith.index_cast %386 : i32 to index
    %c0_203 = arith.constant 0 : index
    %388 = vector.load %arg2[%387, %c0_203] : memref<1000x128xf32, #tpu.memory_space<vmem>>, vector<1x128xf32>
    %c48_i32_204 = arith.constant 48 : i32
    %389 = arith.addi %0, %c48_i32_204 : i32
    %c4_i32_205 = arith.constant 4 : i32
    %390 = arith.addi %389, %c4_i32_205 : i32
    %c383_i32_206 = arith.constant 383 : i32
    %391 = arith.minsi %390, %c383_i32_206 : i32
    %392 = arith.index_cast %391 : i32 to index
    %393 = memref.load %arg1[%392] : memref<384xi32, #tpu.memory_space<smem>>
    %394 = arith.index_cast %393 : i32 to index
    %c0_207 = arith.constant 0 : index
    %395 = vector.load %arg2[%394, %c0_207] : memref<1000x128xf32, #tpu.memory_space<vmem>>, vector<1x128xf32>
    %c48_i32_208 = arith.constant 48 : i32
    %396 = arith.addi %0, %c48_i32_208 : i32
    %c5_i32_209 = arith.constant 5 : i32
    %397 = arith.addi %396, %c5_i32_209 : i32
    %c383_i32_210 = arith.constant 383 : i32
    %398 = arith.minsi %397, %c383_i32_210 : i32
    %399 = arith.index_cast %398 : i32 to index
    %400 = memref.load %arg1[%399] : memref<384xi32, #tpu.memory_space<smem>>
    %401 = arith.index_cast %400 : i32 to index
    %c0_211 = arith.constant 0 : index
    %402 = vector.load %arg2[%401, %c0_211] : memref<1000x128xf32, #tpu.memory_space<vmem>>, vector<1x128xf32>
    %c48_i32_212 = arith.constant 48 : i32
    %403 = arith.addi %0, %c48_i32_212 : i32
    %c6_i32_213 = arith.constant 6 : i32
    %404 = arith.addi %403, %c6_i32_213 : i32
    %c383_i32_214 = arith.constant 383 : i32
    %405 = arith.minsi %404, %c383_i32_214 : i32
    %406 = arith.index_cast %405 : i32 to index
    %407 = memref.load %arg1[%406] : memref<384xi32, #tpu.memory_space<smem>>
    %408 = arith.index_cast %407 : i32 to index
    %c0_215 = arith.constant 0 : index
    %409 = vector.load %arg2[%408, %c0_215] : memref<1000x128xf32, #tpu.memory_space<vmem>>, vector<1x128xf32>
    %c48_i32_216 = arith.constant 48 : i32
    %410 = arith.addi %0, %c48_i32_216 : i32
    %c7_i32_217 = arith.constant 7 : i32
    %411 = arith.addi %410, %c7_i32_217 : i32
    %c383_i32_218 = arith.constant 383 : i32
    %412 = arith.minsi %411, %c383_i32_218 : i32
    %413 = arith.index_cast %412 : i32 to index
    %414 = memref.load %arg1[%413] : memref<384xi32, #tpu.memory_space<smem>>
    %415 = arith.index_cast %414 : i32 to index
    %c0_219 = arith.constant 0 : index
    %416 = vector.load %arg2[%415, %c0_219] : memref<1000x128xf32, #tpu.memory_space<vmem>>, vector<1x128xf32>
    %417 = tpu.concatenate %367, %374, %381, %388, %395, %402, %409, %416 in 0 : vector<1x128xf32>, vector<1x128xf32>, vector<1x128xf32>, vector<1x128xf32>, vector<1x128xf32>, vector<1x128xf32>, vector<1x128xf32>, vector<1x128xf32> -> vector<8x128xf32>
    %cst_220 = arith.constant 11.3137083 : f32
    %418 = vector.broadcast %cst_220 : f32 to vector<8x128xf32>
    %419 = arith.mulf %417, %418 : vector<8x128xf32>
    %c48 = arith.constant 48 : index
    %c0_221 = arith.constant 0 : index
    %420 = vector.load %arg3[%c48, %c0_221] : memref<256x128xf32, #tpu.memory_space<vmem>>, vector<8x128xf32>
    tpu.vector_store %arg3[%c48, %c0_221], %419 {strides = array<i32>} : memref<256x128xf32, #tpu.memory_space<vmem>>, vector<8x128xf32>,
    %c56_i32 = arith.constant 56 : i32
    %421 = arith.addi %0, %c56_i32 : i32
    %c0_i32_222 = arith.constant 0 : i32
    %422 = arith.addi %421, %c0_i32_222 : i32
    %c383_i32_223 = arith.constant 383 : i32
    %423 = arith.minsi %422, %c383_i32_223 : i32
    %424 = arith.index_cast %423 : i32 to index
    %425 = memref.load %arg1[%424] : memref<384xi32, #tpu.memory_space<smem>>
    %426 = arith.index_cast %425 : i32 to index
    %c0_224 = arith.constant 0 : index
    %427 = vector.load %arg2[%426, %c0_224] : memref<1000x128xf32, #tpu.memory_space<vmem>>, vector<1x128xf32>
    %c56_i32_225 = arith.constant 56 : i32
    %428 = arith.addi %0, %c56_i32_225 : i32
    %c1_i32_226 = arith.constant 1 : i32
    %429 = arith.addi %428, %c1_i32_226 : i32
    %c383_i32_227 = arith.constant 383 : i32
    %430 = arith.minsi %429, %c383_i32_227 : i32
    %431 = arith.index_cast %430 : i32 to index
    %432 = memref.load %arg1[%431] : memref<384xi32, #tpu.memory_space<smem>>
    %433 = arith.index_cast %432 : i32 to index
    %c0_228 = arith.constant 0 : index
    %434 = vector.load %arg2[%433, %c0_228] : memref<1000x128xf32, #tpu.memory_space<vmem>>, vector<1x128xf32>
    %c56_i32_229 = arith.constant 56 : i32
    %435 = arith.addi %0, %c56_i32_229 : i32
    %c2_i32_230 = arith.constant 2 : i32
    %436 = arith.addi %435, %c2_i32_230 : i32
    %c383_i32_231 = arith.constant 383 : i32
    %437 = arith.minsi %436, %c383_i32_231 : i32
    %438 = arith.index_cast %437 : i32 to index
    %439 = memref.load %arg1[%438] : memref<384xi32, #tpu.memory_space<smem>>
    %440 = arith.index_cast %439 : i32 to index
    %c0_232 = arith.constant 0 : index
    %441 = vector.load %arg2[%440, %c0_232] : memref<1000x128xf32, #tpu.memory_space<vmem>>, vector<1x128xf32>
    %c56_i32_233 = arith.constant 56 : i32
    %442 = arith.addi %0, %c56_i32_233 : i32
    %c3_i32_234 = arith.constant 3 : i32
    %443 = arith.addi %442, %c3_i32_234 : i32
    %c383_i32_235 = arith.constant 383 : i32
    %444 = arith.minsi %443, %c383_i32_235 : i32
    %445 = arith.index_cast %444 : i32 to index
    %446 = memref.load %arg1[%445] : memref<384xi32, #tpu.memory_space<smem>>
    %447 = arith.index_cast %446 : i32 to index
    %c0_236 = arith.constant 0 : index
    %448 = vector.load %arg2[%447, %c0_236] : memref<1000x128xf32, #tpu.memory_space<vmem>>, vector<1x128xf32>
    %c56_i32_237 = arith.constant 56 : i32
    %449 = arith.addi %0, %c56_i32_237 : i32
    %c4_i32_238 = arith.constant 4 : i32
    %450 = arith.addi %449, %c4_i32_238 : i32
    %c383_i32_239 = arith.constant 383 : i32
    %451 = arith.minsi %450, %c383_i32_239 : i32
    %452 = arith.index_cast %451 : i32 to index
    %453 = memref.load %arg1[%452] : memref<384xi32, #tpu.memory_space<smem>>
    %454 = arith.index_cast %453 : i32 to index
    %c0_240 = arith.constant 0 : index
    %455 = vector.load %arg2[%454, %c0_240] : memref<1000x128xf32, #tpu.memory_space<vmem>>, vector<1x128xf32>
    %c56_i32_241 = arith.constant 56 : i32
    %456 = arith.addi %0, %c56_i32_241 : i32
    %c5_i32_242 = arith.constant 5 : i32
    %457 = arith.addi %456, %c5_i32_242 : i32
    %c383_i32_243 = arith.constant 383 : i32
    %458 = arith.minsi %457, %c383_i32_243 : i32
    %459 = arith.index_cast %458 : i32 to index
    %460 = memref.load %arg1[%459] : memref<384xi32, #tpu.memory_space<smem>>
    %461 = arith.index_cast %460 : i32 to index
    %c0_244 = arith.constant 0 : index
    %462 = vector.load %arg2[%461, %c0_244] : memref<1000x128xf32, #tpu.memory_space<vmem>>, vector<1x128xf32>
    %c56_i32_245 = arith.constant 56 : i32
    %463 = arith.addi %0, %c56_i32_245 : i32
    %c6_i32_246 = arith.constant 6 : i32
    %464 = arith.addi %463, %c6_i32_246 : i32
    %c383_i32_247 = arith.constant 383 : i32
    %465 = arith.minsi %464, %c383_i32_247 : i32
    %466 = arith.index_cast %465 : i32 to index
    %467 = memref.load %arg1[%466] : memref<384xi32, #tpu.memory_space<smem>>
    %468 = arith.index_cast %467 : i32 to index
    %c0_248 = arith.constant 0 : index
    %469 = vector.load %arg2[%468, %c0_248] : memref<1000x128xf32, #tpu.memory_space<vmem>>, vector<1x128xf32>
    %c56_i32_249 = arith.constant 56 : i32
    %470 = arith.addi %0, %c56_i32_249 : i32
    %c7_i32_250 = arith.constant 7 : i32
    %471 = arith.addi %470, %c7_i32_250 : i32
    %c383_i32_251 = arith.constant 383 : i32
    %472 = arith.minsi %471, %c383_i32_251 : i32
    %473 = arith.index_cast %472 : i32 to index
    %474 = memref.load %arg1[%473] : memref<384xi32, #tpu.memory_space<smem>>
    %475 = arith.index_cast %474 : i32 to index
    %c0_252 = arith.constant 0 : index
    %476 = vector.load %arg2[%475, %c0_252] : memref<1000x128xf32, #tpu.memory_space<vmem>>, vector<1x128xf32>
    %477 = tpu.concatenate %427, %434, %441, %448, %455, %462, %469, %476 in 0 : vector<1x128xf32>, vector<1x128xf32>, vector<1x128xf32>, vector<1x128xf32>, vector<1x128xf32>, vector<1x128xf32>, vector<1x128xf32>, vector<1x128xf32> -> vector<8x128xf32>
    %cst_253 = arith.constant 11.3137083 : f32
    %478 = vector.broadcast %cst_253 : f32 to vector<8x128xf32>
    %479 = arith.mulf %477, %478 : vector<8x128xf32>
    %c56 = arith.constant 56 : index
    %c0_254 = arith.constant 0 : index
    %480 = vector.load %arg3[%c56, %c0_254] : memref<256x128xf32, #tpu.memory_space<vmem>>, vector<8x128xf32>
    tpu.vector_store %arg3[%c56, %c0_254], %479 {strides = array<i32>} : memref<256x128xf32, #tpu.memory_space<vmem>>, vector<8x128xf32>,
    %c64_i32 = arith.constant 64 : i32
    %481 = arith.addi %0, %c64_i32 : i32
    %c0_i32_255 = arith.constant 0 : i32
    %482 = arith.addi %481, %c0_i32_255 : i32
    %c383_i32_256 = arith.constant 383 : i32
    %483 = arith.minsi %482, %c383_i32_256 : i32
    %484 = arith.index_cast %483 : i32 to index
    %485 = memref.load %arg1[%484] : memref<384xi32, #tpu.memory_space<smem>>
    %486 = arith.index_cast %485 : i32 to index
    %c0_257 = arith.constant 0 : index
    %487 = vector.load %arg2[%486, %c0_257] : memref<1000x128xf32, #tpu.memory_space<vmem>>, vector<1x128xf32>
    %c64_i32_258 = arith.constant 64 : i32
    %488 = arith.addi %0, %c64_i32_258 : i32
    %c1_i32_259 = arith.constant 1 : i32
    %489 = arith.addi %488, %c1_i32_259 : i32
    %c383_i32_260 = arith.constant 383 : i32
    %490 = arith.minsi %489, %c383_i32_260 : i32
    %491 = arith.index_cast %490 : i32 to index
    %492 = memref.load %arg1[%491] : memref<384xi32, #tpu.memory_space<smem>>
    %493 = arith.index_cast %492 : i32 to index
    %c0_261 = arith.constant 0 : index
    %494 = vector.load %arg2[%493, %c0_261] : memref<1000x128xf32, #tpu.memory_space<vmem>>, vector<1x128xf32>
    %c64_i32_262 = arith.constant 64 : i32
    %495 = arith.addi %0, %c64_i32_262 : i32
    %c2_i32_263 = arith.constant 2 : i32
    %496 = arith.addi %495, %c2_i32_263 : i32
    %c383_i32_264 = arith.constant 383 : i32
    %497 = arith.minsi %496, %c383_i32_264 : i32
    %498 = arith.index_cast %497 : i32 to index
    %499 = memref.load %arg1[%498] : memref<384xi32, #tpu.memory_space<smem>>
    %500 = arith.index_cast %499 : i32 to index
    %c0_265 = arith.constant 0 : index
    %501 = vector.load %arg2[%500, %c0_265] : memref<1000x128xf32, #tpu.memory_space<vmem>>, vector<1x128xf32>
    %c64_i32_266 = arith.constant 64 : i32
    %502 = arith.addi %0, %c64_i32_266 : i32
    %c3_i32_267 = arith.constant 3 : i32
    %503 = arith.addi %502, %c3_i32_267 : i32
    %c383_i32_268 = arith.constant 383 : i32
    %504 = arith.minsi %503, %c383_i32_268 : i32
    %505 = arith.index_cast %504 : i32 to index
    %506 = memref.load %arg1[%505] : memref<384xi32, #tpu.memory_space<smem>>
    %507 = arith.index_cast %506 : i32 to index
    %c0_269 = arith.constant 0 : index
    %508 = vector.load %arg2[%507, %c0_269] : memref<1000x128xf32, #tpu.memory_space<vmem>>, vector<1x128xf32>
    %c64_i32_270 = arith.constant 64 : i32
    %509 = arith.addi %0, %c64_i32_270 : i32
    %c4_i32_271 = arith.constant 4 : i32
    %510 = arith.addi %509, %c4_i32_271 : i32
    %c383_i32_272 = arith.constant 383 : i32
    %511 = arith.minsi %510, %c383_i32_272 : i32
    %512 = arith.index_cast %511 : i32 to index
    %513 = memref.load %arg1[%512] : memref<384xi32, #tpu.memory_space<smem>>
    %514 = arith.index_cast %513 : i32 to index
    %c0_273 = arith.constant 0 : index
    %515 = vector.load %arg2[%514, %c0_273] : memref<1000x128xf32, #tpu.memory_space<vmem>>, vector<1x128xf32>
    %c64_i32_274 = arith.constant 64 : i32
    %516 = arith.addi %0, %c64_i32_274 : i32
    %c5_i32_275 = arith.constant 5 : i32
    %517 = arith.addi %516, %c5_i32_275 : i32
    %c383_i32_276 = arith.constant 383 : i32
    %518 = arith.minsi %517, %c383_i32_276 : i32
    %519 = arith.index_cast %518 : i32 to index
    %520 = memref.load %arg1[%519] : memref<384xi32, #tpu.memory_space<smem>>
    %521 = arith.index_cast %520 : i32 to index
    %c0_277 = arith.constant 0 : index
    %522 = vector.load %arg2[%521, %c0_277] : memref<1000x128xf32, #tpu.memory_space<vmem>>, vector<1x128xf32>
    %c64_i32_278 = arith.constant 64 : i32
    %523 = arith.addi %0, %c64_i32_278 : i32
    %c6_i32_279 = arith.constant 6 : i32
    %524 = arith.addi %523, %c6_i32_279 : i32
    %c383_i32_280 = arith.constant 383 : i32
    %525 = arith.minsi %524, %c383_i32_280 : i32
    %526 = arith.index_cast %525 : i32 to index
    %527 = memref.load %arg1[%526] : memref<384xi32, #tpu.memory_space<smem>>
    %528 = arith.index_cast %527 : i32 to index
    %c0_281 = arith.constant 0 : index
    %529 = vector.load %arg2[%528, %c0_281] : memref<1000x128xf32, #tpu.memory_space<vmem>>, vector<1x128xf32>
    %c64_i32_282 = arith.constant 64 : i32
    %530 = arith.addi %0, %c64_i32_282 : i32
    %c7_i32_283 = arith.constant 7 : i32
    %531 = arith.addi %530, %c7_i32_283 : i32
    %c383_i32_284 = arith.constant 383 : i32
    %532 = arith.minsi %531, %c383_i32_284 : i32
    %533 = arith.index_cast %532 : i32 to index
    %534 = memref.load %arg1[%533] : memref<384xi32, #tpu.memory_space<smem>>
    %535 = arith.index_cast %534 : i32 to index
    %c0_285 = arith.constant 0 : index
    %536 = vector.load %arg2[%535, %c0_285] : memref<1000x128xf32, #tpu.memory_space<vmem>>, vector<1x128xf32>
    %537 = tpu.concatenate %487, %494, %501, %508, %515, %522, %529, %536 in 0 : vector<1x128xf32>, vector<1x128xf32>, vector<1x128xf32>, vector<1x128xf32>, vector<1x128xf32>, vector<1x128xf32>, vector<1x128xf32>, vector<1x128xf32> -> vector<8x128xf32>
    %cst_286 = arith.constant 11.3137083 : f32
    %538 = vector.broadcast %cst_286 : f32 to vector<8x128xf32>
    %539 = arith.mulf %537, %538 : vector<8x128xf32>
    %c64 = arith.constant 64 : index
    %c0_287 = arith.constant 0 : index
    %540 = vector.load %arg3[%c64, %c0_287] : memref<256x128xf32, #tpu.memory_space<vmem>>, vector<8x128xf32>
    tpu.vector_store %arg3[%c64, %c0_287], %539 {strides = array<i32>} : memref<256x128xf32, #tpu.memory_space<vmem>>, vector<8x128xf32>,
    %c72_i32 = arith.constant 72 : i32
    %541 = arith.addi %0, %c72_i32 : i32
    %c0_i32_288 = arith.constant 0 : i32
    %542 = arith.addi %541, %c0_i32_288 : i32
    %c383_i32_289 = arith.constant 383 : i32
    %543 = arith.minsi %542, %c383_i32_289 : i32
    %544 = arith.index_cast %543 : i32 to index
    %545 = memref.load %arg1[%544] : memref<384xi32, #tpu.memory_space<smem>>
    %546 = arith.index_cast %545 : i32 to index
    %c0_290 = arith.constant 0 : index
    %547 = vector.load %arg2[%546, %c0_290] : memref<1000x128xf32, #tpu.memory_space<vmem>>, vector<1x128xf32>
    %c72_i32_291 = arith.constant 72 : i32
    %548 = arith.addi %0, %c72_i32_291 : i32
    %c1_i32_292 = arith.constant 1 : i32
    %549 = arith.addi %548, %c1_i32_292 : i32
    %c383_i32_293 = arith.constant 383 : i32
    %550 = arith.minsi %549, %c383_i32_293 : i32
    %551 = arith.index_cast %550 : i32 to index
    %552 = memref.load %arg1[%551] : memref<384xi32, #tpu.memory_space<smem>>
    %553 = arith.index_cast %552 : i32 to index
    %c0_294 = arith.constant 0 : index
    %554 = vector.load %arg2[%553, %c0_294] : memref<1000x128xf32, #tpu.memory_space<vmem>>, vector<1x128xf32>
    %c72_i32_295 = arith.constant 72 : i32
    %555 = arith.addi %0, %c72_i32_295 : i32
    %c2_i32_296 = arith.constant 2 : i32
    %556 = arith.addi %555, %c2_i32_296 : i32
    %c383_i32_297 = arith.constant 383 : i32
    %557 = arith.minsi %556, %c383_i32_297 : i32
    %558 = arith.index_cast %557 : i32 to index
    %559 = memref.load %arg1[%558] : memref<384xi32, #tpu.memory_space<smem>>
    %560 = arith.index_cast %559 : i32 to index
    %c0_298 = arith.constant 0 : index
    %561 = vector.load %arg2[%560, %c0_298] : memref<1000x128xf32, #tpu.memory_space<vmem>>, vector<1x128xf32>
    %c72_i32_299 = arith.constant 72 : i32
    %562 = arith.addi %0, %c72_i32_299 : i32
    %c3_i32_300 = arith.constant 3 : i32
    %563 = arith.addi %562, %c3_i32_300 : i32
    %c383_i32_301 = arith.constant 383 : i32
    %564 = arith.minsi %563, %c383_i32_301 : i32
    %565 = arith.index_cast %564 : i32 to index
    %566 = memref.load %arg1[%565] : memref<384xi32, #tpu.memory_space<smem>>
    %567 = arith.index_cast %566 : i32 to index
    %c0_302 = arith.constant 0 : index
    %568 = vector.load %arg2[%567, %c0_302] : memref<1000x128xf32, #tpu.memory_space<vmem>>, vector<1x128xf32>
    %c72_i32_303 = arith.constant 72 : i32
    %569 = arith.addi %0, %c72_i32_303 : i32
    %c4_i32_304 = arith.constant 4 : i32
    %570 = arith.addi %569, %c4_i32_304 : i32
    %c383_i32_305 = arith.constant 383 : i32
    %571 = arith.minsi %570, %c383_i32_305 : i32
    %572 = arith.index_cast %571 : i32 to index
    %573 = memref.load %arg1[%572] : memref<384xi32, #tpu.memory_space<smem>>
    %574 = arith.index_cast %573 : i32 to index
    %c0_306 = arith.constant 0 : index
    %575 = vector.load %arg2[%574, %c0_306] : memref<1000x128xf32, #tpu.memory_space<vmem>>, vector<1x128xf32>
    %c72_i32_307 = arith.constant 72 : i32
    %576 = arith.addi %0, %c72_i32_307 : i32
    %c5_i32_308 = arith.constant 5 : i32
    %577 = arith.addi %576, %c5_i32_308 : i32
    %c383_i32_309 = arith.constant 383 : i32
    %578 = arith.minsi %577, %c383_i32_309 : i32
    %579 = arith.index_cast %578 : i32 to index
    %580 = memref.load %arg1[%579] : memref<384xi32, #tpu.memory_space<smem>>
    %581 = arith.index_cast %580 : i32 to index
    %c0_310 = arith.constant 0 : index
    %582 = vector.load %arg2[%581, %c0_310] : memref<1000x128xf32, #tpu.memory_space<vmem>>, vector<1x128xf32>
    %c72_i32_311 = arith.constant 72 : i32
    %583 = arith.addi %0, %c72_i32_311 : i32
    %c6_i32_312 = arith.constant 6 : i32
    %584 = arith.addi %583, %c6_i32_312 : i32
    %c383_i32_313 = arith.constant 383 : i32
    %585 = arith.minsi %584, %c383_i32_313 : i32
    %586 = arith.index_cast %585 : i32 to index
    %587 = memref.load %arg1[%586] : memref<384xi32, #tpu.memory_space<smem>>
    %588 = arith.index_cast %587 : i32 to index
    %c0_314 = arith.constant 0 : index
    %589 = vector.load %arg2[%588, %c0_314] : memref<1000x128xf32, #tpu.memory_space<vmem>>, vector<1x128xf32>
    %c72_i32_315 = arith.constant 72 : i32
    %590 = arith.addi %0, %c72_i32_315 : i32
    %c7_i32_316 = arith.constant 7 : i32
    %591 = arith.addi %590, %c7_i32_316 : i32
    %c383_i32_317 = arith.constant 383 : i32
    %592 = arith.minsi %591, %c383_i32_317 : i32
    %593 = arith.index_cast %592 : i32 to index
    %594 = memref.load %arg1[%593] : memref<384xi32, #tpu.memory_space<smem>>
    %595 = arith.index_cast %594 : i32 to index
    %c0_318 = arith.constant 0 : index
    %596 = vector.load %arg2[%595, %c0_318] : memref<1000x128xf32, #tpu.memory_space<vmem>>, vector<1x128xf32>
    %597 = tpu.concatenate %547, %554, %561, %568, %575, %582, %589, %596 in 0 : vector<1x128xf32>, vector<1x128xf32>, vector<1x128xf32>, vector<1x128xf32>, vector<1x128xf32>, vector<1x128xf32>, vector<1x128xf32>, vector<1x128xf32> -> vector<8x128xf32>
    %cst_319 = arith.constant 11.3137083 : f32
    %598 = vector.broadcast %cst_319 : f32 to vector<8x128xf32>
    %599 = arith.mulf %597, %598 : vector<8x128xf32>
    %c72 = arith.constant 72 : index
    %c0_320 = arith.constant 0 : index
    %600 = vector.load %arg3[%c72, %c0_320] : memref<256x128xf32, #tpu.memory_space<vmem>>, vector<8x128xf32>
    tpu.vector_store %arg3[%c72, %c0_320], %599 {strides = array<i32>} : memref<256x128xf32, #tpu.memory_space<vmem>>, vector<8x128xf32>,
    %c80_i32 = arith.constant 80 : i32
    %601 = arith.addi %0, %c80_i32 : i32
    %c0_i32_321 = arith.constant 0 : i32
    %602 = arith.addi %601, %c0_i32_321 : i32
    %c383_i32_322 = arith.constant 383 : i32
    %603 = arith.minsi %602, %c383_i32_322 : i32
    %604 = arith.index_cast %603 : i32 to index
    %605 = memref.load %arg1[%604] : memref<384xi32, #tpu.memory_space<smem>>
    %606 = arith.index_cast %605 : i32 to index
    %c0_323 = arith.constant 0 : index
    %607 = vector.load %arg2[%606, %c0_323] : memref<1000x128xf32, #tpu.memory_space<vmem>>, vector<1x128xf32>
    %c80_i32_324 = arith.constant 80 : i32
    %608 = arith.addi %0, %c80_i32_324 : i32
    %c1_i32_325 = arith.constant 1 : i32
    %609 = arith.addi %608, %c1_i32_325 : i32
    %c383_i32_326 = arith.constant 383 : i32
    %610 = arith.minsi %609, %c383_i32_326 : i32
    %611 = arith.index_cast %610 : i32 to index
    %612 = memref.load %arg1[%611] : memref<384xi32, #tpu.memory_space<smem>>
    %613 = arith.index_cast %612 : i32 to index
    %c0_327 = arith.constant 0 : index
    %614 = vector.load %arg2[%613, %c0_327] : memref<1000x128xf32, #tpu.memory_space<vmem>>, vector<1x128xf32>
    %c80_i32_328 = arith.constant 80 : i32
    %615 = arith.addi %0, %c80_i32_328 : i32
    %c2_i32_329 = arith.constant 2 : i32
    %616 = arith.addi %615, %c2_i32_329 : i32
    %c383_i32_330 = arith.constant 383 : i32
    %617 = arith.minsi %616, %c383_i32_330 : i32
    %618 = arith.index_cast %617 : i32 to index
    %619 = memref.load %arg1[%618] : memref<384xi32, #tpu.memory_space<smem>>
    %620 = arith.index_cast %619 : i32 to index
    %c0_331 = arith.constant 0 : index
    %621 = vector.load %arg2[%620, %c0_331] : memref<1000x128xf32, #tpu.memory_space<vmem>>, vector<1x128xf32>
    %c80_i32_332 = arith.constant 80 : i32
    %622 = arith.addi %0, %c80_i32_332 : i32
    %c3_i32_333 = arith.constant 3 : i32
    %623 = arith.addi %622, %c3_i32_333 : i32
    %c383_i32_334 = arith.constant 383 : i32
    %624 = arith.minsi %623, %c383_i32_334 : i32
    %625 = arith.index_cast %624 : i32 to index
    %626 = memref.load %arg1[%625] : memref<384xi32, #tpu.memory_space<smem>>
    %627 = arith.index_cast %626 : i32 to index
    %c0_335 = arith.constant 0 : index
    %628 = vector.load %arg2[%627, %c0_335] : memref<1000x128xf32, #tpu.memory_space<vmem>>, vector<1x128xf32>
    %c80_i32_336 = arith.constant 80 : i32
    %629 = arith.addi %0, %c80_i32_336 : i32
    %c4_i32_337 = arith.constant 4 : i32
    %630 = arith.addi %629, %c4_i32_337 : i32
    %c383_i32_338 = arith.constant 383 : i32
    %631 = arith.minsi %630, %c383_i32_338 : i32
    %632 = arith.index_cast %631 : i32 to index
    %633 = memref.load %arg1[%632] : memref<384xi32, #tpu.memory_space<smem>>
    %634 = arith.index_cast %633 : i32 to index
    %c0_339 = arith.constant 0 : index
    %635 = vector.load %arg2[%634, %c0_339] : memref<1000x128xf32, #tpu.memory_space<vmem>>, vector<1x128xf32>
    %c80_i32_340 = arith.constant 80 : i32
    %636 = arith.addi %0, %c80_i32_340 : i32
    %c5_i32_341 = arith.constant 5 : i32
    %637 = arith.addi %636, %c5_i32_341 : i32
    %c383_i32_342 = arith.constant 383 : i32
    %638 = arith.minsi %637, %c383_i32_342 : i32
    %639 = arith.index_cast %638 : i32 to index
    %640 = memref.load %arg1[%639] : memref<384xi32, #tpu.memory_space<smem>>
    %641 = arith.index_cast %640 : i32 to index
    %c0_343 = arith.constant 0 : index
    %642 = vector.load %arg2[%641, %c0_343] : memref<1000x128xf32, #tpu.memory_space<vmem>>, vector<1x128xf32>
    %c80_i32_344 = arith.constant 80 : i32
    %643 = arith.addi %0, %c80_i32_344 : i32
    %c6_i32_345 = arith.constant 6 : i32
    %644 = arith.addi %643, %c6_i32_345 : i32
    %c383_i32_346 = arith.constant 383 : i32
    %645 = arith.minsi %644, %c383_i32_346 : i32
    %646 = arith.index_cast %645 : i32 to index
    %647 = memref.load %arg1[%646] : memref<384xi32, #tpu.memory_space<smem>>
    %648 = arith.index_cast %647 : i32 to index
    %c0_347 = arith.constant 0 : index
    %649 = vector.load %arg2[%648, %c0_347] : memref<1000x128xf32, #tpu.memory_space<vmem>>, vector<1x128xf32>
    %c80_i32_348 = arith.constant 80 : i32
    %650 = arith.addi %0, %c80_i32_348 : i32
    %c7_i32_349 = arith.constant 7 : i32
    %651 = arith.addi %650, %c7_i32_349 : i32
    %c383_i32_350 = arith.constant 383 : i32
    %652 = arith.minsi %651, %c383_i32_350 : i32
    %653 = arith.index_cast %652 : i32 to index
    %654 = memref.load %arg1[%653] : memref<384xi32, #tpu.memory_space<smem>>
    %655 = arith.index_cast %654 : i32 to index
    %c0_351 = arith.constant 0 : index
    %656 = vector.load %arg2[%655, %c0_351] : memref<1000x128xf32, #tpu.memory_space<vmem>>, vector<1x128xf32>
    %657 = tpu.concatenate %607, %614, %621, %628, %635, %642, %649, %656 in 0 : vector<1x128xf32>, vector<1x128xf32>, vector<1x128xf32>, vector<1x128xf32>, vector<1x128xf32>, vector<1x128xf32>, vector<1x128xf32>, vector<1x128xf32> -> vector<8x128xf32>
    %cst_352 = arith.constant 11.3137083 : f32
    %658 = vector.broadcast %cst_352 : f32 to vector<8x128xf32>
    %659 = arith.mulf %657, %658 : vector<8x128xf32>
    %c80 = arith.constant 80 : index
    %c0_353 = arith.constant 0 : index
    %660 = vector.load %arg3[%c80, %c0_353] : memref<256x128xf32, #tpu.memory_space<vmem>>, vector<8x128xf32>
    tpu.vector_store %arg3[%c80, %c0_353], %659 {strides = array<i32>} : memref<256x128xf32, #tpu.memory_space<vmem>>, vector<8x128xf32>,
    %c88_i32 = arith.constant 88 : i32
    %661 = arith.addi %0, %c88_i32 : i32
    %c0_i32_354 = arith.constant 0 : i32
    %662 = arith.addi %661, %c0_i32_354 : i32
    %c383_i32_355 = arith.constant 383 : i32
    %663 = arith.minsi %662, %c383_i32_355 : i32
    %664 = arith.index_cast %663 : i32 to index
    %665 = memref.load %arg1[%664] : memref<384xi32, #tpu.memory_space<smem>>
    %666 = arith.index_cast %665 : i32 to index
    %c0_356 = arith.constant 0 : index
    %667 = vector.load %arg2[%666, %c0_356] : memref<1000x128xf32, #tpu.memory_space<vmem>>, vector<1x128xf32>
    %c88_i32_357 = arith.constant 88 : i32
    %668 = arith.addi %0, %c88_i32_357 : i32
    %c1_i32_358 = arith.constant 1 : i32
    %669 = arith.addi %668, %c1_i32_358 : i32
    %c383_i32_359 = arith.constant 383 : i32
    %670 = arith.minsi %669, %c383_i32_359 : i32
    %671 = arith.index_cast %670 : i32 to index
    %672 = memref.load %arg1[%671] : memref<384xi32, #tpu.memory_space<smem>>
    %673 = arith.index_cast %672 : i32 to index
    %c0_360 = arith.constant 0 : index
    %674 = vector.load %arg2[%673, %c0_360] : memref<1000x128xf32, #tpu.memory_space<vmem>>, vector<1x128xf32>
    %c88_i32_361 = arith.constant 88 : i32
    %675 = arith.addi %0, %c88_i32_361 : i32
    %c2_i32_362 = arith.constant 2 : i32
    %676 = arith.addi %675, %c2_i32_362 : i32
    %c383_i32_363 = arith.constant 383 : i32
    %677 = arith.minsi %676, %c383_i32_363 : i32
    %678 = arith.index_cast %677 : i32 to index
    %679 = memref.load %arg1[%678] : memref<384xi32, #tpu.memory_space<smem>>
    %680 = arith.index_cast %679 : i32 to index
    %c0_364 = arith.constant 0 : index
    %681 = vector.load %arg2[%680, %c0_364] : memref<1000x128xf32, #tpu.memory_space<vmem>>, vector<1x128xf32>
    %c88_i32_365 = arith.constant 88 : i32
    %682 = arith.addi %0, %c88_i32_365 : i32
    %c3_i32_366 = arith.constant 3 : i32
    %683 = arith.addi %682, %c3_i32_366 : i32
    %c383_i32_367 = arith.constant 383 : i32
    %684 = arith.minsi %683, %c383_i32_367 : i32
    %685 = arith.index_cast %684 : i32 to index
    %686 = memref.load %arg1[%685] : memref<384xi32, #tpu.memory_space<smem>>
    %687 = arith.index_cast %686 : i32 to index
    %c0_368 = arith.constant 0 : index
    %688 = vector.load %arg2[%687, %c0_368] : memref<1000x128xf32, #tpu.memory_space<vmem>>, vector<1x128xf32>
    %c88_i32_369 = arith.constant 88 : i32
    %689 = arith.addi %0, %c88_i32_369 : i32
    %c4_i32_370 = arith.constant 4 : i32
    %690 = arith.addi %689, %c4_i32_370 : i32
    %c383_i32_371 = arith.constant 383 : i32
    %691 = arith.minsi %690, %c383_i32_371 : i32
    %692 = arith.index_cast %691 : i32 to index
    %693 = memref.load %arg1[%692] : memref<384xi32, #tpu.memory_space<smem>>
    %694 = arith.index_cast %693 : i32 to index
    %c0_372 = arith.constant 0 : index
    %695 = vector.load %arg2[%694, %c0_372] : memref<1000x128xf32, #tpu.memory_space<vmem>>, vector<1x128xf32>
    %c88_i32_373 = arith.constant 88 : i32
    %696 = arith.addi %0, %c88_i32_373 : i32
    %c5_i32_374 = arith.constant 5 : i32
    %697 = arith.addi %696, %c5_i32_374 : i32
    %c383_i32_375 = arith.constant 383 : i32
    %698 = arith.minsi %697, %c383_i32_375 : i32
    %699 = arith.index_cast %698 : i32 to index
    %700 = memref.load %arg1[%699] : memref<384xi32, #tpu.memory_space<smem>>
    %701 = arith.index_cast %700 : i32 to index
    %c0_376 = arith.constant 0 : index
    %702 = vector.load %arg2[%701, %c0_376] : memref<1000x128xf32, #tpu.memory_space<vmem>>, vector<1x128xf32>
    %c88_i32_377 = arith.constant 88 : i32
    %703 = arith.addi %0, %c88_i32_377 : i32
    %c6_i32_378 = arith.constant 6 : i32
    %704 = arith.addi %703, %c6_i32_378 : i32
    %c383_i32_379 = arith.constant 383 : i32
    %705 = arith.minsi %704, %c383_i32_379 : i32
    %706 = arith.index_cast %705 : i32 to index
    %707 = memref.load %arg1[%706] : memref<384xi32, #tpu.memory_space<smem>>
    %708 = arith.index_cast %707 : i32 to index
    %c0_380 = arith.constant 0 : index
    %709 = vector.load %arg2[%708, %c0_380] : memref<1000x128xf32, #tpu.memory_space<vmem>>, vector<1x128xf32>
    %c88_i32_381 = arith.constant 88 : i32
    %710 = arith.addi %0, %c88_i32_381 : i32
    %c7_i32_382 = arith.constant 7 : i32
    %711 = arith.addi %710, %c7_i32_382 : i32
    %c383_i32_383 = arith.constant 383 : i32
    %712 = arith.minsi %711, %c383_i32_383 : i32
    %713 = arith.index_cast %712 : i32 to index
    %714 = memref.load %arg1[%713] : memref<384xi32, #tpu.memory_space<smem>>
    %715 = arith.index_cast %714 : i32 to index
    %c0_384 = arith.constant 0 : index
    %716 = vector.load %arg2[%715, %c0_384] : memref<1000x128xf32, #tpu.memory_space<vmem>>, vector<1x128xf32>
    %717 = tpu.concatenate %667, %674, %681, %688, %695, %702, %709, %716 in 0 : vector<1x128xf32>, vector<1x128xf32>, vector<1x128xf32>, vector<1x128xf32>, vector<1x128xf32>, vector<1x128xf32>, vector<1x128xf32>, vector<1x128xf32> -> vector<8x128xf32>
    %cst_385 = arith.constant 11.3137083 : f32
    %718 = vector.broadcast %cst_385 : f32 to vector<8x128xf32>
    %719 = arith.mulf %717, %718 : vector<8x128xf32>
    %c88 = arith.constant 88 : index
    %c0_386 = arith.constant 0 : index
    %720 = vector.load %arg3[%c88, %c0_386] : memref<256x128xf32, #tpu.memory_space<vmem>>, vector<8x128xf32>
    tpu.vector_store %arg3[%c88, %c0_386], %719 {strides = array<i32>} : memref<256x128xf32, #tpu.memory_space<vmem>>, vector<8x128xf32>,
    %c96_i32 = arith.constant 96 : i32
    %721 = arith.addi %0, %c96_i32 : i32
    %c0_i32_387 = arith.constant 0 : i32
    %722 = arith.addi %721, %c0_i32_387 : i32
    %c383_i32_388 = arith.constant 383 : i32
    %723 = arith.minsi %722, %c383_i32_388 : i32
    %724 = arith.index_cast %723 : i32 to index
    %725 = memref.load %arg1[%724] : memref<384xi32, #tpu.memory_space<smem>>
    %726 = arith.index_cast %725 : i32 to index
    %c0_389 = arith.constant 0 : index
    %727 = vector.load %arg2[%726, %c0_389] : memref<1000x128xf32, #tpu.memory_space<vmem>>, vector<1x128xf32>
    %c96_i32_390 = arith.constant 96 : i32
    %728 = arith.addi %0, %c96_i32_390 : i32
    %c1_i32_391 = arith.constant 1 : i32
    %729 = arith.addi %728, %c1_i32_391 : i32
    %c383_i32_392 = arith.constant 383 : i32
    %730 = arith.minsi %729, %c383_i32_392 : i32
    %731 = arith.index_cast %730 : i32 to index
    %732 = memref.load %arg1[%731] : memref<384xi32, #tpu.memory_space<smem>>
    %733 = arith.index_cast %732 : i32 to index
    %c0_393 = arith.constant 0 : index
    %734 = vector.load %arg2[%733, %c0_393] : memref<1000x128xf32, #tpu.memory_space<vmem>>, vector<1x128xf32>
    %c96_i32_394 = arith.constant 96 : i32
    %735 = arith.addi %0, %c96_i32_394 : i32
    %c2_i32_395 = arith.constant 2 : i32
    %736 = arith.addi %735, %c2_i32_395 : i32
    %c383_i32_396 = arith.constant 383 : i32
    %737 = arith.minsi %736, %c383_i32_396 : i32
    %738 = arith.index_cast %737 : i32 to index
    %739 = memref.load %arg1[%738] : memref<384xi32, #tpu.memory_space<smem>>
    %740 = arith.index_cast %739 : i32 to index
    %c0_397 = arith.constant 0 : index
    %741 = vector.load %arg2[%740, %c0_397] : memref<1000x128xf32, #tpu.memory_space<vmem>>, vector<1x128xf32>
    %c96_i32_398 = arith.constant 96 : i32
    %742 = arith.addi %0, %c96_i32_398 : i32
    %c3_i32_399 = arith.constant 3 : i32
    %743 = arith.addi %742, %c3_i32_399 : i32
    %c383_i32_400 = arith.constant 383 : i32
    %744 = arith.minsi %743, %c383_i32_400 : i32
    %745 = arith.index_cast %744 : i32 to index
    %746 = memref.load %arg1[%745] : memref<384xi32, #tpu.memory_space<smem>>
    %747 = arith.index_cast %746 : i32 to index
    %c0_401 = arith.constant 0 : index
    %748 = vector.load %arg2[%747, %c0_401] : memref<1000x128xf32, #tpu.memory_space<vmem>>, vector<1x128xf32>
    %c96_i32_402 = arith.constant 96 : i32
    %749 = arith.addi %0, %c96_i32_402 : i32
    %c4_i32_403 = arith.constant 4 : i32
    %750 = arith.addi %749, %c4_i32_403 : i32
    %c383_i32_404 = arith.constant 383 : i32
    %751 = arith.minsi %750, %c383_i32_404 : i32
    %752 = arith.index_cast %751 : i32 to index
    %753 = memref.load %arg1[%752] : memref<384xi32, #tpu.memory_space<smem>>
    %754 = arith.index_cast %753 : i32 to index
    %c0_405 = arith.constant 0 : index
    %755 = vector.load %arg2[%754, %c0_405] : memref<1000x128xf32, #tpu.memory_space<vmem>>, vector<1x128xf32>
    %c96_i32_406 = arith.constant 96 : i32
    %756 = arith.addi %0, %c96_i32_406 : i32
    %c5_i32_407 = arith.constant 5 : i32
    %757 = arith.addi %756, %c5_i32_407 : i32
    %c383_i32_408 = arith.constant 383 : i32
    %758 = arith.minsi %757, %c383_i32_408 : i32
    %759 = arith.index_cast %758 : i32 to index
    %760 = memref.load %arg1[%759] : memref<384xi32, #tpu.memory_space<smem>>
    %761 = arith.index_cast %760 : i32 to index
    %c0_409 = arith.constant 0 : index
    %762 = vector.load %arg2[%761, %c0_409] : memref<1000x128xf32, #tpu.memory_space<vmem>>, vector<1x128xf32>
    %c96_i32_410 = arith.constant 96 : i32
    %763 = arith.addi %0, %c96_i32_410 : i32
    %c6_i32_411 = arith.constant 6 : i32
    %764 = arith.addi %763, %c6_i32_411 : i32
    %c383_i32_412 = arith.constant 383 : i32
    %765 = arith.minsi %764, %c383_i32_412 : i32
    %766 = arith.index_cast %765 : i32 to index
    %767 = memref.load %arg1[%766] : memref<384xi32, #tpu.memory_space<smem>>
    %768 = arith.index_cast %767 : i32 to index
    %c0_413 = arith.constant 0 : index
    %769 = vector.load %arg2[%768, %c0_413] : memref<1000x128xf32, #tpu.memory_space<vmem>>, vector<1x128xf32>
    %c96_i32_414 = arith.constant 96 : i32
    %770 = arith.addi %0, %c96_i32_414 : i32
    %c7_i32_415 = arith.constant 7 : i32
    %771 = arith.addi %770, %c7_i32_415 : i32
    %c383_i32_416 = arith.constant 383 : i32
    %772 = arith.minsi %771, %c383_i32_416 : i32
    %773 = arith.index_cast %772 : i32 to index
    %774 = memref.load %arg1[%773] : memref<384xi32, #tpu.memory_space<smem>>
    %775 = arith.index_cast %774 : i32 to index
    %c0_417 = arith.constant 0 : index
    %776 = vector.load %arg2[%775, %c0_417] : memref<1000x128xf32, #tpu.memory_space<vmem>>, vector<1x128xf32>
    %777 = tpu.concatenate %727, %734, %741, %748, %755, %762, %769, %776 in 0 : vector<1x128xf32>, vector<1x128xf32>, vector<1x128xf32>, vector<1x128xf32>, vector<1x128xf32>, vector<1x128xf32>, vector<1x128xf32>, vector<1x128xf32> -> vector<8x128xf32>
    %cst_418 = arith.constant 11.3137083 : f32
    %778 = vector.broadcast %cst_418 : f32 to vector<8x128xf32>
    %779 = arith.mulf %777, %778 : vector<8x128xf32>
    %c96 = arith.constant 96 : index
    %c0_419 = arith.constant 0 : index
    %780 = vector.load %arg3[%c96, %c0_419] : memref<256x128xf32, #tpu.memory_space<vmem>>, vector<8x128xf32>
    tpu.vector_store %arg3[%c96, %c0_419], %779 {strides = array<i32>} : memref<256x128xf32, #tpu.memory_space<vmem>>, vector<8x128xf32>,
    %c104_i32 = arith.constant 104 : i32
    %781 = arith.addi %0, %c104_i32 : i32
    %c0_i32_420 = arith.constant 0 : i32
    %782 = arith.addi %781, %c0_i32_420 : i32
    %c383_i32_421 = arith.constant 383 : i32
    %783 = arith.minsi %782, %c383_i32_421 : i32
    %784 = arith.index_cast %783 : i32 to index
    %785 = memref.load %arg1[%784] : memref<384xi32, #tpu.memory_space<smem>>
    %786 = arith.index_cast %785 : i32 to index
    %c0_422 = arith.constant 0 : index
    %787 = vector.load %arg2[%786, %c0_422] : memref<1000x128xf32, #tpu.memory_space<vmem>>, vector<1x128xf32>
    %c104_i32_423 = arith.constant 104 : i32
    %788 = arith.addi %0, %c104_i32_423 : i32
    %c1_i32_424 = arith.constant 1 : i32
    %789 = arith.addi %788, %c1_i32_424 : i32
    %c383_i32_425 = arith.constant 383 : i32
    %790 = arith.minsi %789, %c383_i32_425 : i32
    %791 = arith.index_cast %790 : i32 to index
    %792 = memref.load %arg1[%791] : memref<384xi32, #tpu.memory_space<smem>>
    %793 = arith.index_cast %792 : i32 to index
    %c0_426 = arith.constant 0 : index
    %794 = vector.load %arg2[%793, %c0_426] : memref<1000x128xf32, #tpu.memory_space<vmem>>, vector<1x128xf32>
    %c104_i32_427 = arith.constant 104 : i32
    %795 = arith.addi %0, %c104_i32_427 : i32
    %c2_i32_428 = arith.constant 2 : i32
    %796 = arith.addi %795, %c2_i32_428 : i32
    %c383_i32_429 = arith.constant 383 : i32
    %797 = arith.minsi %796, %c383_i32_429 : i32
    %798 = arith.index_cast %797 : i32 to index
    %799 = memref.load %arg1[%798] : memref<384xi32, #tpu.memory_space<smem>>
    %800 = arith.index_cast %799 : i32 to index
    %c0_430 = arith.constant 0 : index
    %801 = vector.load %arg2[%800, %c0_430] : memref<1000x128xf32, #tpu.memory_space<vmem>>, vector<1x128xf32>
    %c104_i32_431 = arith.constant 104 : i32
    %802 = arith.addi %0, %c104_i32_431 : i32
    %c3_i32_432 = arith.constant 3 : i32
    %803 = arith.addi %802, %c3_i32_432 : i32
    %c383_i32_433 = arith.constant 383 : i32
    %804 = arith.minsi %803, %c383_i32_433 : i32
    %805 = arith.index_cast %804 : i32 to index
    %806 = memref.load %arg1[%805] : memref<384xi32, #tpu.memory_space<smem>>
    %807 = arith.index_cast %806 : i32 to index
    %c0_434 = arith.constant 0 : index
    %808 = vector.load %arg2[%807, %c0_434] : memref<1000x128xf32, #tpu.memory_space<vmem>>, vector<1x128xf32>
    %c104_i32_435 = arith.constant 104 : i32
    %809 = arith.addi %0, %c104_i32_435 : i32
    %c4_i32_436 = arith.constant 4 : i32
    %810 = arith.addi %809, %c4_i32_436 : i32
    %c383_i32_437 = arith.constant 383 : i32
    %811 = arith.minsi %810, %c383_i32_437 : i32
    %812 = arith.index_cast %811 : i32 to index
    %813 = memref.load %arg1[%812] : memref<384xi32, #tpu.memory_space<smem>>
    %814 = arith.index_cast %813 : i32 to index
    %c0_438 = arith.constant 0 : index
    %815 = vector.load %arg2[%814, %c0_438] : memref<1000x128xf32, #tpu.memory_space<vmem>>, vector<1x128xf32>
    %c104_i32_439 = arith.constant 104 : i32
    %816 = arith.addi %0, %c104_i32_439 : i32
    %c5_i32_440 = arith.constant 5 : i32
    %817 = arith.addi %816, %c5_i32_440 : i32
    %c383_i32_441 = arith.constant 383 : i32
    %818 = arith.minsi %817, %c383_i32_441 : i32
    %819 = arith.index_cast %818 : i32 to index
    %820 = memref.load %arg1[%819] : memref<384xi32, #tpu.memory_space<smem>>
    %821 = arith.index_cast %820 : i32 to index
    %c0_442 = arith.constant 0 : index
    %822 = vector.load %arg2[%821, %c0_442] : memref<1000x128xf32, #tpu.memory_space<vmem>>, vector<1x128xf32>
    %c104_i32_443 = arith.constant 104 : i32
    %823 = arith.addi %0, %c104_i32_443 : i32
    %c6_i32_444 = arith.constant 6 : i32
    %824 = arith.addi %823, %c6_i32_444 : i32
    %c383_i32_445 = arith.constant 383 : i32
    %825 = arith.minsi %824, %c383_i32_445 : i32
    %826 = arith.index_cast %825 : i32 to index
    %827 = memref.load %arg1[%826] : memref<384xi32, #tpu.memory_space<smem>>
    %828 = arith.index_cast %827 : i32 to index
    %c0_446 = arith.constant 0 : index
    %829 = vector.load %arg2[%828, %c0_446] : memref<1000x128xf32, #tpu.memory_space<vmem>>, vector<1x128xf32>
    %c104_i32_447 = arith.constant 104 : i32
    %830 = arith.addi %0, %c104_i32_447 : i32
    %c7_i32_448 = arith.constant 7 : i32
    %831 = arith.addi %830, %c7_i32_448 : i32
    %c383_i32_449 = arith.constant 383 : i32
    %832 = arith.minsi %831, %c383_i32_449 : i32
    %833 = arith.index_cast %832 : i32 to index
    %834 = memref.load %arg1[%833] : memref<384xi32, #tpu.memory_space<smem>>
    %835 = arith.index_cast %834 : i32 to index
    %c0_450 = arith.constant 0 : index
    %836 = vector.load %arg2[%835, %c0_450] : memref<1000x128xf32, #tpu.memory_space<vmem>>, vector<1x128xf32>
    %837 = tpu.concatenate %787, %794, %801, %808, %815, %822, %829, %836 in 0 : vector<1x128xf32>, vector<1x128xf32>, vector<1x128xf32>, vector<1x128xf32>, vector<1x128xf32>, vector<1x128xf32>, vector<1x128xf32>, vector<1x128xf32> -> vector<8x128xf32>
    %cst_451 = arith.constant 11.3137083 : f32
    %838 = vector.broadcast %cst_451 : f32 to vector<8x128xf32>
    %839 = arith.mulf %837, %838 : vector<8x128xf32>
    %c104 = arith.constant 104 : index
    %c0_452 = arith.constant 0 : index
    %840 = vector.load %arg3[%c104, %c0_452] : memref<256x128xf32, #tpu.memory_space<vmem>>, vector<8x128xf32>
    tpu.vector_store %arg3[%c104, %c0_452], %839 {strides = array<i32>} : memref<256x128xf32, #tpu.memory_space<vmem>>, vector<8x128xf32>,
    %c112_i32 = arith.constant 112 : i32
    %841 = arith.addi %0, %c112_i32 : i32
    %c0_i32_453 = arith.constant 0 : i32
    %842 = arith.addi %841, %c0_i32_453 : i32
    %c383_i32_454 = arith.constant 383 : i32
    %843 = arith.minsi %842, %c383_i32_454 : i32
    %844 = arith.index_cast %843 : i32 to index
    %845 = memref.load %arg1[%844] : memref<384xi32, #tpu.memory_space<smem>>
    %846 = arith.index_cast %845 : i32 to index
    %c0_455 = arith.constant 0 : index
    %847 = vector.load %arg2[%846, %c0_455] : memref<1000x128xf32, #tpu.memory_space<vmem>>, vector<1x128xf32>
    %c112_i32_456 = arith.constant 112 : i32
    %848 = arith.addi %0, %c112_i32_456 : i32
    %c1_i32_457 = arith.constant 1 : i32
    %849 = arith.addi %848, %c1_i32_457 : i32
    %c383_i32_458 = arith.constant 383 : i32
    %850 = arith.minsi %849, %c383_i32_458 : i32
    %851 = arith.index_cast %850 : i32 to index
    %852 = memref.load %arg1[%851] : memref<384xi32, #tpu.memory_space<smem>>
    %853 = arith.index_cast %852 : i32 to index
    %c0_459 = arith.constant 0 : index
    %854 = vector.load %arg2[%853, %c0_459] : memref<1000x128xf32, #tpu.memory_space<vmem>>, vector<1x128xf32>
    %c112_i32_460 = arith.constant 112 : i32
    %855 = arith.addi %0, %c112_i32_460 : i32
    %c2_i32_461 = arith.constant 2 : i32
    %856 = arith.addi %855, %c2_i32_461 : i32
    %c383_i32_462 = arith.constant 383 : i32
    %857 = arith.minsi %856, %c383_i32_462 : i32
    %858 = arith.index_cast %857 : i32 to index
    %859 = memref.load %arg1[%858] : memref<384xi32, #tpu.memory_space<smem>>
    %860 = arith.index_cast %859 : i32 to index
    %c0_463 = arith.constant 0 : index
    %861 = vector.load %arg2[%860, %c0_463] : memref<1000x128xf32, #tpu.memory_space<vmem>>, vector<1x128xf32>
    %c112_i32_464 = arith.constant 112 : i32
    %862 = arith.addi %0, %c112_i32_464 : i32
    %c3_i32_465 = arith.constant 3 : i32
    %863 = arith.addi %862, %c3_i32_465 : i32
    %c383_i32_466 = arith.constant 383 : i32
    %864 = arith.minsi %863, %c383_i32_466 : i32
    %865 = arith.index_cast %864 : i32 to index
    %866 = memref.load %arg1[%865] : memref<384xi32, #tpu.memory_space<smem>>
    %867 = arith.index_cast %866 : i32 to index
    %c0_467 = arith.constant 0 : index
    %868 = vector.load %arg2[%867, %c0_467] : memref<1000x128xf32, #tpu.memory_space<vmem>>, vector<1x128xf32>
    %c112_i32_468 = arith.constant 112 : i32
    %869 = arith.addi %0, %c112_i32_468 : i32
    %c4_i32_469 = arith.constant 4 : i32
    %870 = arith.addi %869, %c4_i32_469 : i32
    %c383_i32_470 = arith.constant 383 : i32
    %871 = arith.minsi %870, %c383_i32_470 : i32
    %872 = arith.index_cast %871 : i32 to index
    %873 = memref.load %arg1[%872] : memref<384xi32, #tpu.memory_space<smem>>
    %874 = arith.index_cast %873 : i32 to index
    %c0_471 = arith.constant 0 : index
    %875 = vector.load %arg2[%874, %c0_471] : memref<1000x128xf32, #tpu.memory_space<vmem>>, vector<1x128xf32>
    %c112_i32_472 = arith.constant 112 : i32
    %876 = arith.addi %0, %c112_i32_472 : i32
    %c5_i32_473 = arith.constant 5 : i32
    %877 = arith.addi %876, %c5_i32_473 : i32
    %c383_i32_474 = arith.constant 383 : i32
    %878 = arith.minsi %877, %c383_i32_474 : i32
    %879 = arith.index_cast %878 : i32 to index
    %880 = memref.load %arg1[%879] : memref<384xi32, #tpu.memory_space<smem>>
    %881 = arith.index_cast %880 : i32 to index
    %c0_475 = arith.constant 0 : index
    %882 = vector.load %arg2[%881, %c0_475] : memref<1000x128xf32, #tpu.memory_space<vmem>>, vector<1x128xf32>
    %c112_i32_476 = arith.constant 112 : i32
    %883 = arith.addi %0, %c112_i32_476 : i32
    %c6_i32_477 = arith.constant 6 : i32
    %884 = arith.addi %883, %c6_i32_477 : i32
    %c383_i32_478 = arith.constant 383 : i32
    %885 = arith.minsi %884, %c383_i32_478 : i32
    %886 = arith.index_cast %885 : i32 to index
    %887 = memref.load %arg1[%886] : memref<384xi32, #tpu.memory_space<smem>>
    %888 = arith.index_cast %887 : i32 to index
    %c0_479 = arith.constant 0 : index
    %889 = vector.load %arg2[%888, %c0_479] : memref<1000x128xf32, #tpu.memory_space<vmem>>, vector<1x128xf32>
    %c112_i32_480 = arith.constant 112 : i32
    %890 = arith.addi %0, %c112_i32_480 : i32
    %c7_i32_481 = arith.constant 7 : i32
    %891 = arith.addi %890, %c7_i32_481 : i32
    %c383_i32_482 = arith.constant 383 : i32
    %892 = arith.minsi %891, %c383_i32_482 : i32
    %893 = arith.index_cast %892 : i32 to index
    %894 = memref.load %arg1[%893] : memref<384xi32, #tpu.memory_space<smem>>
    %895 = arith.index_cast %894 : i32 to index
    %c0_483 = arith.constant 0 : index
    %896 = vector.load %arg2[%895, %c0_483] : memref<1000x128xf32, #tpu.memory_space<vmem>>, vector<1x128xf32>
    %897 = tpu.concatenate %847, %854, %861, %868, %875, %882, %889, %896 in 0 : vector<1x128xf32>, vector<1x128xf32>, vector<1x128xf32>, vector<1x128xf32>, vector<1x128xf32>, vector<1x128xf32>, vector<1x128xf32>, vector<1x128xf32> -> vector<8x128xf32>
    %cst_484 = arith.constant 11.3137083 : f32
    %898 = vector.broadcast %cst_484 : f32 to vector<8x128xf32>
    %899 = arith.mulf %897, %898 : vector<8x128xf32>
    %c112 = arith.constant 112 : index
    %c0_485 = arith.constant 0 : index
    %900 = vector.load %arg3[%c112, %c0_485] : memref<256x128xf32, #tpu.memory_space<vmem>>, vector<8x128xf32>
    tpu.vector_store %arg3[%c112, %c0_485], %899 {strides = array<i32>} : memref<256x128xf32, #tpu.memory_space<vmem>>, vector<8x128xf32>,
    %c120_i32 = arith.constant 120 : i32
    %901 = arith.addi %0, %c120_i32 : i32
    %c0_i32_486 = arith.constant 0 : i32
    %902 = arith.addi %901, %c0_i32_486 : i32
    %c383_i32_487 = arith.constant 383 : i32
    %903 = arith.minsi %902, %c383_i32_487 : i32
    %904 = arith.index_cast %903 : i32 to index
    %905 = memref.load %arg1[%904] : memref<384xi32, #tpu.memory_space<smem>>
    %906 = arith.index_cast %905 : i32 to index
    %c0_488 = arith.constant 0 : index
    %907 = vector.load %arg2[%906, %c0_488] : memref<1000x128xf32, #tpu.memory_space<vmem>>, vector<1x128xf32>
    %c120_i32_489 = arith.constant 120 : i32
    %908 = arith.addi %0, %c120_i32_489 : i32
    %c1_i32_490 = arith.constant 1 : i32
    %909 = arith.addi %908, %c1_i32_490 : i32
    %c383_i32_491 = arith.constant 383 : i32
    %910 = arith.minsi %909, %c383_i32_491 : i32
    %911 = arith.index_cast %910 : i32 to index
    %912 = memref.load %arg1[%911] : memref<384xi32, #tpu.memory_space<smem>>
    %913 = arith.index_cast %912 : i32 to index
    %c0_492 = arith.constant 0 : index
    %914 = vector.load %arg2[%913, %c0_492] : memref<1000x128xf32, #tpu.memory_space<vmem>>, vector<1x128xf32>
    %c120_i32_493 = arith.constant 120 : i32
    %915 = arith.addi %0, %c120_i32_493 : i32
    %c2_i32_494 = arith.constant 2 : i32
    %916 = arith.addi %915, %c2_i32_494 : i32
    %c383_i32_495 = arith.constant 383 : i32
    %917 = arith.minsi %916, %c383_i32_495 : i32
    %918 = arith.index_cast %917 : i32 to index
    %919 = memref.load %arg1[%918] : memref<384xi32, #tpu.memory_space<smem>>
    %920 = arith.index_cast %919 : i32 to index
    %c0_496 = arith.constant 0 : index
    %921 = vector.load %arg2[%920, %c0_496] : memref<1000x128xf32, #tpu.memory_space<vmem>>, vector<1x128xf32>
    %c120_i32_497 = arith.constant 120 : i32
    %922 = arith.addi %0, %c120_i32_497 : i32
    %c3_i32_498 = arith.constant 3 : i32
    %923 = arith.addi %922, %c3_i32_498 : i32
    %c383_i32_499 = arith.constant 383 : i32
    %924 = arith.minsi %923, %c383_i32_499 : i32
    %925 = arith.index_cast %924 : i32 to index
    %926 = memref.load %arg1[%925] : memref<384xi32, #tpu.memory_space<smem>>
    %927 = arith.index_cast %926 : i32 to index
    %c0_500 = arith.constant 0 : index
    %928 = vector.load %arg2[%927, %c0_500] : memref<1000x128xf32, #tpu.memory_space<vmem>>, vector<1x128xf32>
    %c120_i32_501 = arith.constant 120 : i32
    %929 = arith.addi %0, %c120_i32_501 : i32
    %c4_i32_502 = arith.constant 4 : i32
    %930 = arith.addi %929, %c4_i32_502 : i32
    %c383_i32_503 = arith.constant 383 : i32
    %931 = arith.minsi %930, %c383_i32_503 : i32
    %932 = arith.index_cast %931 : i32 to index
    %933 = memref.load %arg1[%932] : memref<384xi32, #tpu.memory_space<smem>>
    %934 = arith.index_cast %933 : i32 to index
    %c0_504 = arith.constant 0 : index
    %935 = vector.load %arg2[%934, %c0_504] : memref<1000x128xf32, #tpu.memory_space<vmem>>, vector<1x128xf32>
    %c120_i32_505 = arith.constant 120 : i32
    %936 = arith.addi %0, %c120_i32_505 : i32
    %c5_i32_506 = arith.constant 5 : i32
    %937 = arith.addi %936, %c5_i32_506 : i32
    %c383_i32_507 = arith.constant 383 : i32
    %938 = arith.minsi %937, %c383_i32_507 : i32
    %939 = arith.index_cast %938 : i32 to index
    %940 = memref.load %arg1[%939] : memref<384xi32, #tpu.memory_space<smem>>
    %941 = arith.index_cast %940 : i32 to index
    %c0_508 = arith.constant 0 : index
    %942 = vector.load %arg2[%941, %c0_508] : memref<1000x128xf32, #tpu.memory_space<vmem>>, vector<1x128xf32>
    %c120_i32_509 = arith.constant 120 : i32
    %943 = arith.addi %0, %c120_i32_509 : i32
    %c6_i32_510 = arith.constant 6 : i32
    %944 = arith.addi %943, %c6_i32_510 : i32
    %c383_i32_511 = arith.constant 383 : i32
    %945 = arith.minsi %944, %c383_i32_511 : i32
    %946 = arith.index_cast %945 : i32 to index
    %947 = memref.load %arg1[%946] : memref<384xi32, #tpu.memory_space<smem>>
    %948 = arith.index_cast %947 : i32 to index
    %c0_512 = arith.constant 0 : index
    %949 = vector.load %arg2[%948, %c0_512] : memref<1000x128xf32, #tpu.memory_space<vmem>>, vector<1x128xf32>
    %c120_i32_513 = arith.constant 120 : i32
    %950 = arith.addi %0, %c120_i32_513 : i32
    %c7_i32_514 = arith.constant 7 : i32
    %951 = arith.addi %950, %c7_i32_514 : i32
    %c383_i32_515 = arith.constant 383 : i32
    %952 = arith.minsi %951, %c383_i32_515 : i32
    %953 = arith.index_cast %952 : i32 to index
    %954 = memref.load %arg1[%953] : memref<384xi32, #tpu.memory_space<smem>>
    %955 = arith.index_cast %954 : i32 to index
    %c0_516 = arith.constant 0 : index
    %956 = vector.load %arg2[%955, %c0_516] : memref<1000x128xf32, #tpu.memory_space<vmem>>, vector<1x128xf32>
    %957 = tpu.concatenate %907, %914, %921, %928, %935, %942, %949, %956 in 0 : vector<1x128xf32>, vector<1x128xf32>, vector<1x128xf32>, vector<1x128xf32>, vector<1x128xf32>, vector<1x128xf32>, vector<1x128xf32>, vector<1x128xf32> -> vector<8x128xf32>
    %cst_517 = arith.constant 11.3137083 : f32
    %958 = vector.broadcast %cst_517 : f32 to vector<8x128xf32>
    %959 = arith.mulf %957, %958 : vector<8x128xf32>
    %c120 = arith.constant 120 : index
    %c0_518 = arith.constant 0 : index
    %960 = vector.load %arg3[%c120, %c0_518] : memref<256x128xf32, #tpu.memory_space<vmem>>, vector<8x128xf32>
    tpu.vector_store %arg3[%c120, %c0_518], %959 {strides = array<i32>} : memref<256x128xf32, #tpu.memory_space<vmem>>, vector<8x128xf32>,
    %c128_i32 = arith.constant 128 : i32
    %961 = arith.addi %0, %c128_i32 : i32
    %c0_i32_519 = arith.constant 0 : i32
    %962 = arith.addi %961, %c0_i32_519 : i32
    %c383_i32_520 = arith.constant 383 : i32
    %963 = arith.minsi %962, %c383_i32_520 : i32
    %964 = arith.index_cast %963 : i32 to index
    %965 = memref.load %arg1[%964] : memref<384xi32, #tpu.memory_space<smem>>
    %966 = arith.index_cast %965 : i32 to index
    %c0_521 = arith.constant 0 : index
    %967 = vector.load %arg2[%966, %c0_521] : memref<1000x128xf32, #tpu.memory_space<vmem>>, vector<1x128xf32>
    %c128_i32_522 = arith.constant 128 : i32
    %968 = arith.addi %0, %c128_i32_522 : i32
    %c1_i32_523 = arith.constant 1 : i32
    %969 = arith.addi %968, %c1_i32_523 : i32
    %c383_i32_524 = arith.constant 383 : i32
    %970 = arith.minsi %969, %c383_i32_524 : i32
    %971 = arith.index_cast %970 : i32 to index
    %972 = memref.load %arg1[%971] : memref<384xi32, #tpu.memory_space<smem>>
    %973 = arith.index_cast %972 : i32 to index
    %c0_525 = arith.constant 0 : index
    %974 = vector.load %arg2[%973, %c0_525] : memref<1000x128xf32, #tpu.memory_space<vmem>>, vector<1x128xf32>
    %c128_i32_526 = arith.constant 128 : i32
    %975 = arith.addi %0, %c128_i32_526 : i32
    %c2_i32_527 = arith.constant 2 : i32
    %976 = arith.addi %975, %c2_i32_527 : i32
    %c383_i32_528 = arith.constant 383 : i32
    %977 = arith.minsi %976, %c383_i32_528 : i32
    %978 = arith.index_cast %977 : i32 to index
    %979 = memref.load %arg1[%978] : memref<384xi32, #tpu.memory_space<smem>>
    %980 = arith.index_cast %979 : i32 to index
    %c0_529 = arith.constant 0 : index
    %981 = vector.load %arg2[%980, %c0_529] : memref<1000x128xf32, #tpu.memory_space<vmem>>, vector<1x128xf32>
    %c128_i32_530 = arith.constant 128 : i32
    %982 = arith.addi %0, %c128_i32_530 : i32
    %c3_i32_531 = arith.constant 3 : i32
    %983 = arith.addi %982, %c3_i32_531 : i32
    %c383_i32_532 = arith.constant 383 : i32
    %984 = arith.minsi %983, %c383_i32_532 : i32
    %985 = arith.index_cast %984 : i32 to index
    %986 = memref.load %arg1[%985] : memref<384xi32, #tpu.memory_space<smem>>
    %987 = arith.index_cast %986 : i32 to index
    %c0_533 = arith.constant 0 : index
    %988 = vector.load %arg2[%987, %c0_533] : memref<1000x128xf32, #tpu.memory_space<vmem>>, vector<1x128xf32>
    %c128_i32_534 = arith.constant 128 : i32
    %989 = arith.addi %0, %c128_i32_534 : i32
    %c4_i32_535 = arith.constant 4 : i32
    %990 = arith.addi %989, %c4_i32_535 : i32
    %c383_i32_536 = arith.constant 383 : i32
    %991 = arith.minsi %990, %c383_i32_536 : i32
    %992 = arith.index_cast %991 : i32 to index
    %993 = memref.load %arg1[%992] : memref<384xi32, #tpu.memory_space<smem>>
    %994 = arith.index_cast %993 : i32 to index
    %c0_537 = arith.constant 0 : index
    %995 = vector.load %arg2[%994, %c0_537] : memref<1000x128xf32, #tpu.memory_space<vmem>>, vector<1x128xf32>
    %c128_i32_538 = arith.constant 128 : i32
    %996 = arith.addi %0, %c128_i32_538 : i32
    %c5_i32_539 = arith.constant 5 : i32
    %997 = arith.addi %996, %c5_i32_539 : i32
    %c383_i32_540 = arith.constant 383 : i32
    %998 = arith.minsi %997, %c383_i32_540 : i32
    %999 = arith.index_cast %998 : i32 to index
    %1000 = memref.load %arg1[%999] : memref<384xi32, #tpu.memory_space<smem>>
    %1001 = arith.index_cast %1000 : i32 to index
    %c0_541 = arith.constant 0 : index
    %1002 = vector.load %arg2[%1001, %c0_541] : memref<1000x128xf32, #tpu.memory_space<vmem>>, vector<1x128xf32>
    %c128_i32_542 = arith.constant 128 : i32
    %1003 = arith.addi %0, %c128_i32_542 : i32
    %c6_i32_543 = arith.constant 6 : i32
    %1004 = arith.addi %1003, %c6_i32_543 : i32
    %c383_i32_544 = arith.constant 383 : i32
    %1005 = arith.minsi %1004, %c383_i32_544 : i32
    %1006 = arith.index_cast %1005 : i32 to index
    %1007 = memref.load %arg1[%1006] : memref<384xi32, #tpu.memory_space<smem>>
    %1008 = arith.index_cast %1007 : i32 to index
    %c0_545 = arith.constant 0 : index
    %1009 = vector.load %arg2[%1008, %c0_545] : memref<1000x128xf32, #tpu.memory_space<vmem>>, vector<1x128xf32>
    %c128_i32_546 = arith.constant 128 : i32
    %1010 = arith.addi %0, %c128_i32_546 : i32
    %c7_i32_547 = arith.constant 7 : i32
    %1011 = arith.addi %1010, %c7_i32_547 : i32
    %c383_i32_548 = arith.constant 383 : i32
    %1012 = arith.minsi %1011, %c383_i32_548 : i32
    %1013 = arith.index_cast %1012 : i32 to index
    %1014 = memref.load %arg1[%1013] : memref<384xi32, #tpu.memory_space<smem>>
    %1015 = arith.index_cast %1014 : i32 to index
    %c0_549 = arith.constant 0 : index
    %1016 = vector.load %arg2[%1015, %c0_549] : memref<1000x128xf32, #tpu.memory_space<vmem>>, vector<1x128xf32>
    %1017 = tpu.concatenate %967, %974, %981, %988, %995, %1002, %1009, %1016 in 0 : vector<1x128xf32>, vector<1x128xf32>, vector<1x128xf32>, vector<1x128xf32>, vector<1x128xf32>, vector<1x128xf32>, vector<1x128xf32>, vector<1x128xf32> -> vector<8x128xf32>
    %cst_550 = arith.constant 11.3137083 : f32
    %1018 = vector.broadcast %cst_550 : f32 to vector<8x128xf32>
    %1019 = arith.mulf %1017, %1018 : vector<8x128xf32>
    %c128 = arith.constant 128 : index
    %c0_551 = arith.constant 0 : index
    %1020 = vector.load %arg3[%c128, %c0_551] : memref<256x128xf32, #tpu.memory_space<vmem>>, vector<8x128xf32>
    tpu.vector_store %arg3[%c128, %c0_551], %1019 {strides = array<i32>} : memref<256x128xf32, #tpu.memory_space<vmem>>, vector<8x128xf32>,
    %c136_i32 = arith.constant 136 : i32
    %1021 = arith.addi %0, %c136_i32 : i32
    %c0_i32_552 = arith.constant 0 : i32
    %1022 = arith.addi %1021, %c0_i32_552 : i32
    %c383_i32_553 = arith.constant 383 : i32
    %1023 = arith.minsi %1022, %c383_i32_553 : i32
    %1024 = arith.index_cast %1023 : i32 to index
    %1025 = memref.load %arg1[%1024] : memref<384xi32, #tpu.memory_space<smem>>
    %1026 = arith.index_cast %1025 : i32 to index
    %c0_554 = arith.constant 0 : index
    %1027 = vector.load %arg2[%1026, %c0_554] : memref<1000x128xf32, #tpu.memory_space<vmem>>, vector<1x128xf32>
    %c136_i32_555 = arith.constant 136 : i32
    %1028 = arith.addi %0, %c136_i32_555 : i32
    %c1_i32_556 = arith.constant 1 : i32
    %1029 = arith.addi %1028, %c1_i32_556 : i32
    %c383_i32_557 = arith.constant 383 : i32
    %1030 = arith.minsi %1029, %c383_i32_557 : i32
    %1031 = arith.index_cast %1030 : i32 to index
    %1032 = memref.load %arg1[%1031] : memref<384xi32, #tpu.memory_space<smem>>
    %1033 = arith.index_cast %1032 : i32 to index
    %c0_558 = arith.constant 0 : index
    %1034 = vector.load %arg2[%1033, %c0_558] : memref<1000x128xf32, #tpu.memory_space<vmem>>, vector<1x128xf32>
    %c136_i32_559 = arith.constant 136 : i32
    %1035 = arith.addi %0, %c136_i32_559 : i32
    %c2_i32_560 = arith.constant 2 : i32
    %1036 = arith.addi %1035, %c2_i32_560 : i32
    %c383_i32_561 = arith.constant 383 : i32
    %1037 = arith.minsi %1036, %c383_i32_561 : i32
    %1038 = arith.index_cast %1037 : i32 to index
    %1039 = memref.load %arg1[%1038] : memref<384xi32, #tpu.memory_space<smem>>
    %1040 = arith.index_cast %1039 : i32 to index
    %c0_562 = arith.constant 0 : index
    %1041 = vector.load %arg2[%1040, %c0_562] : memref<1000x128xf32, #tpu.memory_space<vmem>>, vector<1x128xf32>
    %c136_i32_563 = arith.constant 136 : i32
    %1042 = arith.addi %0, %c136_i32_563 : i32
    %c3_i32_564 = arith.constant 3 : i32
    %1043 = arith.addi %1042, %c3_i32_564 : i32
    %c383_i32_565 = arith.constant 383 : i32
    %1044 = arith.minsi %1043, %c383_i32_565 : i32
    %1045 = arith.index_cast %1044 : i32 to index
    %1046 = memref.load %arg1[%1045] : memref<384xi32, #tpu.memory_space<smem>>
    %1047 = arith.index_cast %1046 : i32 to index
    %c0_566 = arith.constant 0 : index
    %1048 = vector.load %arg2[%1047, %c0_566] : memref<1000x128xf32, #tpu.memory_space<vmem>>, vector<1x128xf32>
    %c136_i32_567 = arith.constant 136 : i32
    %1049 = arith.addi %0, %c136_i32_567 : i32
    %c4_i32_568 = arith.constant 4 : i32
    %1050 = arith.addi %1049, %c4_i32_568 : i32
    %c383_i32_569 = arith.constant 383 : i32
    %1051 = arith.minsi %1050, %c383_i32_569 : i32
    %1052 = arith.index_cast %1051 : i32 to index
    %1053 = memref.load %arg1[%1052] : memref<384xi32, #tpu.memory_space<smem>>
    %1054 = arith.index_cast %1053 : i32 to index
    %c0_570 = arith.constant 0 : index
    %1055 = vector.load %arg2[%1054, %c0_570] : memref<1000x128xf32, #tpu.memory_space<vmem>>, vector<1x128xf32>
    %c136_i32_571 = arith.constant 136 : i32
    %1056 = arith.addi %0, %c136_i32_571 : i32
    %c5_i32_572 = arith.constant 5 : i32
    %1057 = arith.addi %1056, %c5_i32_572 : i32
    %c383_i32_573 = arith.constant 383 : i32
    %1058 = arith.minsi %1057, %c383_i32_573 : i32
    %1059 = arith.index_cast %1058 : i32 to index
    %1060 = memref.load %arg1[%1059] : memref<384xi32, #tpu.memory_space<smem>>
    %1061 = arith.index_cast %1060 : i32 to index
    %c0_574 = arith.constant 0 : index
    %1062 = vector.load %arg2[%1061, %c0_574] : memref<1000x128xf32, #tpu.memory_space<vmem>>, vector<1x128xf32>
    %c136_i32_575 = arith.constant 136 : i32
    %1063 = arith.addi %0, %c136_i32_575 : i32
    %c6_i32_576 = arith.constant 6 : i32
    %1064 = arith.addi %1063, %c6_i32_576 : i32
    %c383_i32_577 = arith.constant 383 : i32
    %1065 = arith.minsi %1064, %c383_i32_577 : i32
    %1066 = arith.index_cast %1065 : i32 to index
    %1067 = memref.load %arg1[%1066] : memref<384xi32, #tpu.memory_space<smem>>
    %1068 = arith.index_cast %1067 : i32 to index
    %c0_578 = arith.constant 0 : index
    %1069 = vector.load %arg2[%1068, %c0_578] : memref<1000x128xf32, #tpu.memory_space<vmem>>, vector<1x128xf32>
    %c136_i32_579 = arith.constant 136 : i32
    %1070 = arith.addi %0, %c136_i32_579 : i32
    %c7_i32_580 = arith.constant 7 : i32
    %1071 = arith.addi %1070, %c7_i32_580 : i32
    %c383_i32_581 = arith.constant 383 : i32
    %1072 = arith.minsi %1071, %c383_i32_581 : i32
    %1073 = arith.index_cast %1072 : i32 to index
    %1074 = memref.load %arg1[%1073] : memref<384xi32, #tpu.memory_space<smem>>
    %1075 = arith.index_cast %1074 : i32 to index
    %c0_582 = arith.constant 0 : index
    %1076 = vector.load %arg2[%1075, %c0_582] : memref<1000x128xf32, #tpu.memory_space<vmem>>, vector<1x128xf32>
    %1077 = tpu.concatenate %1027, %1034, %1041, %1048, %1055, %1062, %1069, %1076 in 0 : vector<1x128xf32>, vector<1x128xf32>, vector<1x128xf32>, vector<1x128xf32>, vector<1x128xf32>, vector<1x128xf32>, vector<1x128xf32>, vector<1x128xf32> -> vector<8x128xf32>
    %cst_583 = arith.constant 11.3137083 : f32
    %1078 = vector.broadcast %cst_583 : f32 to vector<8x128xf32>
    %1079 = arith.mulf %1077, %1078 : vector<8x128xf32>
    %c136 = arith.constant 136 : index
    %c0_584 = arith.constant 0 : index
    %1080 = vector.load %arg3[%c136, %c0_584] : memref<256x128xf32, #tpu.memory_space<vmem>>, vector<8x128xf32>
    tpu.vector_store %arg3[%c136, %c0_584], %1079 {strides = array<i32>} : memref<256x128xf32, #tpu.memory_space<vmem>>, vector<8x128xf32>,
    %c144_i32 = arith.constant 144 : i32
    %1081 = arith.addi %0, %c144_i32 : i32
    %c0_i32_585 = arith.constant 0 : i32
    %1082 = arith.addi %1081, %c0_i32_585 : i32
    %c383_i32_586 = arith.constant 383 : i32
    %1083 = arith.minsi %1082, %c383_i32_586 : i32
    %1084 = arith.index_cast %1083 : i32 to index
    %1085 = memref.load %arg1[%1084] : memref<384xi32, #tpu.memory_space<smem>>
    %1086 = arith.index_cast %1085 : i32 to index
    %c0_587 = arith.constant 0 : index
    %1087 = vector.load %arg2[%1086, %c0_587] : memref<1000x128xf32, #tpu.memory_space<vmem>>, vector<1x128xf32>
    %c144_i32_588 = arith.constant 144 : i32
    %1088 = arith.addi %0, %c144_i32_588 : i32
    %c1_i32_589 = arith.constant 1 : i32
    %1089 = arith.addi %1088, %c1_i32_589 : i32
    %c383_i32_590 = arith.constant 383 : i32
    %1090 = arith.minsi %1089, %c383_i32_590 : i32
    %1091 = arith.index_cast %1090 : i32 to index
    %1092 = memref.load %arg1[%1091] : memref<384xi32, #tpu.memory_space<smem>>
    %1093 = arith.index_cast %1092 : i32 to index
    %c0_591 = arith.constant 0 : index
    %1094 = vector.load %arg2[%1093, %c0_591] : memref<1000x128xf32, #tpu.memory_space<vmem>>, vector<1x128xf32>
    %c144_i32_592 = arith.constant 144 : i32
    %1095 = arith.addi %0, %c144_i32_592 : i32
    %c2_i32_593 = arith.constant 2 : i32
    %1096 = arith.addi %1095, %c2_i32_593 : i32
    %c383_i32_594 = arith.constant 383 : i32
    %1097 = arith.minsi %1096, %c383_i32_594 : i32
    %1098 = arith.index_cast %1097 : i32 to index
    %1099 = memref.load %arg1[%1098] : memref<384xi32, #tpu.memory_space<smem>>
    %1100 = arith.index_cast %1099 : i32 to index
    %c0_595 = arith.constant 0 : index
    %1101 = vector.load %arg2[%1100, %c0_595] : memref<1000x128xf32, #tpu.memory_space<vmem>>, vector<1x128xf32>
    %c144_i32_596 = arith.constant 144 : i32
    %1102 = arith.addi %0, %c144_i32_596 : i32
    %c3_i32_597 = arith.constant 3 : i32
    %1103 = arith.addi %1102, %c3_i32_597 : i32
    %c383_i32_598 = arith.constant 383 : i32
    %1104 = arith.minsi %1103, %c383_i32_598 : i32
    %1105 = arith.index_cast %1104 : i32 to index
    %1106 = memref.load %arg1[%1105] : memref<384xi32, #tpu.memory_space<smem>>
    %1107 = arith.index_cast %1106 : i32 to index
    %c0_599 = arith.constant 0 : index
    %1108 = vector.load %arg2[%1107, %c0_599] : memref<1000x128xf32, #tpu.memory_space<vmem>>, vector<1x128xf32>
    %c144_i32_600 = arith.constant 144 : i32
    %1109 = arith.addi %0, %c144_i32_600 : i32
    %c4_i32_601 = arith.constant 4 : i32
    %1110 = arith.addi %1109, %c4_i32_601 : i32
    %c383_i32_602 = arith.constant 383 : i32
    %1111 = arith.minsi %1110, %c383_i32_602 : i32
    %1112 = arith.index_cast %1111 : i32 to index
    %1113 = memref.load %arg1[%1112] : memref<384xi32, #tpu.memory_space<smem>>
    %1114 = arith.index_cast %1113 : i32 to index
    %c0_603 = arith.constant 0 : index
    %1115 = vector.load %arg2[%1114, %c0_603] : memref<1000x128xf32, #tpu.memory_space<vmem>>, vector<1x128xf32>
    %c144_i32_604 = arith.constant 144 : i32
    %1116 = arith.addi %0, %c144_i32_604 : i32
    %c5_i32_605 = arith.constant 5 : i32
    %1117 = arith.addi %1116, %c5_i32_605 : i32
    %c383_i32_606 = arith.constant 383 : i32
    %1118 = arith.minsi %1117, %c383_i32_606 : i32
    %1119 = arith.index_cast %1118 : i32 to index
    %1120 = memref.load %arg1[%1119] : memref<384xi32, #tpu.memory_space<smem>>
    %1121 = arith.index_cast %1120 : i32 to index
    %c0_607 = arith.constant 0 : index
    %1122 = vector.load %arg2[%1121, %c0_607] : memref<1000x128xf32, #tpu.memory_space<vmem>>, vector<1x128xf32>
    %c144_i32_608 = arith.constant 144 : i32
    %1123 = arith.addi %0, %c144_i32_608 : i32
    %c6_i32_609 = arith.constant 6 : i32
    %1124 = arith.addi %1123, %c6_i32_609 : i32
    %c383_i32_610 = arith.constant 383 : i32
    %1125 = arith.minsi %1124, %c383_i32_610 : i32
    %1126 = arith.index_cast %1125 : i32 to index
    %1127 = memref.load %arg1[%1126] : memref<384xi32, #tpu.memory_space<smem>>
    %1128 = arith.index_cast %1127 : i32 to index
    %c0_611 = arith.constant 0 : index
    %1129 = vector.load %arg2[%1128, %c0_611] : memref<1000x128xf32, #tpu.memory_space<vmem>>, vector<1x128xf32>
    %c144_i32_612 = arith.constant 144 : i32
    %1130 = arith.addi %0, %c144_i32_612 : i32
    %c7_i32_613 = arith.constant 7 : i32
    %1131 = arith.addi %1130, %c7_i32_613 : i32
    %c383_i32_614 = arith.constant 383 : i32
    %1132 = arith.minsi %1131, %c383_i32_614 : i32
    %1133 = arith.index_cast %1132 : i32 to index
    %1134 = memref.load %arg1[%1133] : memref<384xi32, #tpu.memory_space<smem>>
    %1135 = arith.index_cast %1134 : i32 to index
    %c0_615 = arith.constant 0 : index
    %1136 = vector.load %arg2[%1135, %c0_615] : memref<1000x128xf32, #tpu.memory_space<vmem>>, vector<1x128xf32>
    %1137 = tpu.concatenate %1087, %1094, %1101, %1108, %1115, %1122, %1129, %1136 in 0 : vector<1x128xf32>, vector<1x128xf32>, vector<1x128xf32>, vector<1x128xf32>, vector<1x128xf32>, vector<1x128xf32>, vector<1x128xf32>, vector<1x128xf32> -> vector<8x128xf32>
    %cst_616 = arith.constant 11.3137083 : f32
    %1138 = vector.broadcast %cst_616 : f32 to vector<8x128xf32>
    %1139 = arith.mulf %1137, %1138 : vector<8x128xf32>
    %c144 = arith.constant 144 : index
    %c0_617 = arith.constant 0 : index
    %1140 = vector.load %arg3[%c144, %c0_617] : memref<256x128xf32, #tpu.memory_space<vmem>>, vector<8x128xf32>
    tpu.vector_store %arg3[%c144, %c0_617], %1139 {strides = array<i32>} : memref<256x128xf32, #tpu.memory_space<vmem>>, vector<8x128xf32>,
    %c152_i32 = arith.constant 152 : i32
    %1141 = arith.addi %0, %c152_i32 : i32
    %c0_i32_618 = arith.constant 0 : i32
    %1142 = arith.addi %1141, %c0_i32_618 : i32
    %c383_i32_619 = arith.constant 383 : i32
    %1143 = arith.minsi %1142, %c383_i32_619 : i32
    %1144 = arith.index_cast %1143 : i32 to index
    %1145 = memref.load %arg1[%1144] : memref<384xi32, #tpu.memory_space<smem>>
    %1146 = arith.index_cast %1145 : i32 to index
    %c0_620 = arith.constant 0 : index
    %1147 = vector.load %arg2[%1146, %c0_620] : memref<1000x128xf32, #tpu.memory_space<vmem>>, vector<1x128xf32>
    %c152_i32_621 = arith.constant 152 : i32
    %1148 = arith.addi %0, %c152_i32_621 : i32
    %c1_i32_622 = arith.constant 1 : i32
    %1149 = arith.addi %1148, %c1_i32_622 : i32
    %c383_i32_623 = arith.constant 383 : i32
    %1150 = arith.minsi %1149, %c383_i32_623 : i32
    %1151 = arith.index_cast %1150 : i32 to index
    %1152 = memref.load %arg1[%1151] : memref<384xi32, #tpu.memory_space<smem>>
    %1153 = arith.index_cast %1152 : i32 to index
    %c0_624 = arith.constant 0 : index
    %1154 = vector.load %arg2[%1153, %c0_624] : memref<1000x128xf32, #tpu.memory_space<vmem>>, vector<1x128xf32>
    %c152_i32_625 = arith.constant 152 : i32
    %1155 = arith.addi %0, %c152_i32_625 : i32
    %c2_i32_626 = arith.constant 2 : i32
    %1156 = arith.addi %1155, %c2_i32_626 : i32
    %c383_i32_627 = arith.constant 383 : i32
    %1157 = arith.minsi %1156, %c383_i32_627 : i32
    %1158 = arith.index_cast %1157 : i32 to index
    %1159 = memref.load %arg1[%1158] : memref<384xi32, #tpu.memory_space<smem>>
    %1160 = arith.index_cast %1159 : i32 to index
    %c0_628 = arith.constant 0 : index
    %1161 = vector.load %arg2[%1160, %c0_628] : memref<1000x128xf32, #tpu.memory_space<vmem>>, vector<1x128xf32>
    %c152_i32_629 = arith.constant 152 : i32
    %1162 = arith.addi %0, %c152_i32_629 : i32
    %c3_i32_630 = arith.constant 3 : i32
    %1163 = arith.addi %1162, %c3_i32_630 : i32
    %c383_i32_631 = arith.constant 383 : i32
    %1164 = arith.minsi %1163, %c383_i32_631 : i32
    %1165 = arith.index_cast %1164 : i32 to index
    %1166 = memref.load %arg1[%1165] : memref<384xi32, #tpu.memory_space<smem>>
    %1167 = arith.index_cast %1166 : i32 to index
    %c0_632 = arith.constant 0 : index
    %1168 = vector.load %arg2[%1167, %c0_632] : memref<1000x128xf32, #tpu.memory_space<vmem>>, vector<1x128xf32>
    %c152_i32_633 = arith.constant 152 : i32
    %1169 = arith.addi %0, %c152_i32_633 : i32
    %c4_i32_634 = arith.constant 4 : i32
    %1170 = arith.addi %1169, %c4_i32_634 : i32
    %c383_i32_635 = arith.constant 383 : i32
    %1171 = arith.minsi %1170, %c383_i32_635 : i32
    %1172 = arith.index_cast %1171 : i32 to index
    %1173 = memref.load %arg1[%1172] : memref<384xi32, #tpu.memory_space<smem>>
    %1174 = arith.index_cast %1173 : i32 to index
    %c0_636 = arith.constant 0 : index
    %1175 = vector.load %arg2[%1174, %c0_636] : memref<1000x128xf32, #tpu.memory_space<vmem>>, vector<1x128xf32>
    %c152_i32_637 = arith.constant 152 : i32
    %1176 = arith.addi %0, %c152_i32_637 : i32
    %c5_i32_638 = arith.constant 5 : i32
    %1177 = arith.addi %1176, %c5_i32_638 : i32
    %c383_i32_639 = arith.constant 383 : i32
    %1178 = arith.minsi %1177, %c383_i32_639 : i32
    %1179 = arith.index_cast %1178 : i32 to index
    %1180 = memref.load %arg1[%1179] : memref<384xi32, #tpu.memory_space<smem>>
    %1181 = arith.index_cast %1180 : i32 to index
    %c0_640 = arith.constant 0 : index
    %1182 = vector.load %arg2[%1181, %c0_640] : memref<1000x128xf32, #tpu.memory_space<vmem>>, vector<1x128xf32>
    %c152_i32_641 = arith.constant 152 : i32
    %1183 = arith.addi %0, %c152_i32_641 : i32
    %c6_i32_642 = arith.constant 6 : i32
    %1184 = arith.addi %1183, %c6_i32_642 : i32
    %c383_i32_643 = arith.constant 383 : i32
    %1185 = arith.minsi %1184, %c383_i32_643 : i32
    %1186 = arith.index_cast %1185 : i32 to index
    %1187 = memref.load %arg1[%1186] : memref<384xi32, #tpu.memory_space<smem>>
    %1188 = arith.index_cast %1187 : i32 to index
    %c0_644 = arith.constant 0 : index
    %1189 = vector.load %arg2[%1188, %c0_644] : memref<1000x128xf32, #tpu.memory_space<vmem>>, vector<1x128xf32>
    %c152_i32_645 = arith.constant 152 : i32
    %1190 = arith.addi %0, %c152_i32_645 : i32
    %c7_i32_646 = arith.constant 7 : i32
    %1191 = arith.addi %1190, %c7_i32_646 : i32
    %c383_i32_647 = arith.constant 383 : i32
    %1192 = arith.minsi %1191, %c383_i32_647 : i32
    %1193 = arith.index_cast %1192 : i32 to index
    %1194 = memref.load %arg1[%1193] : memref<384xi32, #tpu.memory_space<smem>>
    %1195 = arith.index_cast %1194 : i32 to index
    %c0_648 = arith.constant 0 : index
    %1196 = vector.load %arg2[%1195, %c0_648] : memref<1000x128xf32, #tpu.memory_space<vmem>>, vector<1x128xf32>
    %1197 = tpu.concatenate %1147, %1154, %1161, %1168, %1175, %1182, %1189, %1196 in 0 : vector<1x128xf32>, vector<1x128xf32>, vector<1x128xf32>, vector<1x128xf32>, vector<1x128xf32>, vector<1x128xf32>, vector<1x128xf32>, vector<1x128xf32> -> vector<8x128xf32>
    %cst_649 = arith.constant 11.3137083 : f32
    %1198 = vector.broadcast %cst_649 : f32 to vector<8x128xf32>
    %1199 = arith.mulf %1197, %1198 : vector<8x128xf32>
    %c152 = arith.constant 152 : index
    %c0_650 = arith.constant 0 : index
    %1200 = vector.load %arg3[%c152, %c0_650] : memref<256x128xf32, #tpu.memory_space<vmem>>, vector<8x128xf32>
    tpu.vector_store %arg3[%c152, %c0_650], %1199 {strides = array<i32>} : memref<256x128xf32, #tpu.memory_space<vmem>>, vector<8x128xf32>,
    %c160_i32 = arith.constant 160 : i32
    %1201 = arith.addi %0, %c160_i32 : i32
    %c0_i32_651 = arith.constant 0 : i32
    %1202 = arith.addi %1201, %c0_i32_651 : i32
    %c383_i32_652 = arith.constant 383 : i32
    %1203 = arith.minsi %1202, %c383_i32_652 : i32
    %1204 = arith.index_cast %1203 : i32 to index
    %1205 = memref.load %arg1[%1204] : memref<384xi32, #tpu.memory_space<smem>>
    %1206 = arith.index_cast %1205 : i32 to index
    %c0_653 = arith.constant 0 : index
    %1207 = vector.load %arg2[%1206, %c0_653] : memref<1000x128xf32, #tpu.memory_space<vmem>>, vector<1x128xf32>
    %c160_i32_654 = arith.constant 160 : i32
    %1208 = arith.addi %0, %c160_i32_654 : i32
    %c1_i32_655 = arith.constant 1 : i32
    %1209 = arith.addi %1208, %c1_i32_655 : i32
    %c383_i32_656 = arith.constant 383 : i32
    %1210 = arith.minsi %1209, %c383_i32_656 : i32
    %1211 = arith.index_cast %1210 : i32 to index
    %1212 = memref.load %arg1[%1211] : memref<384xi32, #tpu.memory_space<smem>>
    %1213 = arith.index_cast %1212 : i32 to index
    %c0_657 = arith.constant 0 : index
    %1214 = vector.load %arg2[%1213, %c0_657] : memref<1000x128xf32, #tpu.memory_space<vmem>>, vector<1x128xf32>
    %c160_i32_658 = arith.constant 160 : i32
    %1215 = arith.addi %0, %c160_i32_658 : i32
    %c2_i32_659 = arith.constant 2 : i32
    %1216 = arith.addi %1215, %c2_i32_659 : i32
    %c383_i32_660 = arith.constant 383 : i32
    %1217 = arith.minsi %1216, %c383_i32_660 : i32
    %1218 = arith.index_cast %1217 : i32 to index
    %1219 = memref.load %arg1[%1218] : memref<384xi32, #tpu.memory_space<smem>>
    %1220 = arith.index_cast %1219 : i32 to index
    %c0_661 = arith.constant 0 : index
    %1221 = vector.load %arg2[%1220, %c0_661] : memref<1000x128xf32, #tpu.memory_space<vmem>>, vector<1x128xf32>
    %c160_i32_662 = arith.constant 160 : i32
    %1222 = arith.addi %0, %c160_i32_662 : i32
    %c3_i32_663 = arith.constant 3 : i32
    %1223 = arith.addi %1222, %c3_i32_663 : i32
    %c383_i32_664 = arith.constant 383 : i32
    %1224 = arith.minsi %1223, %c383_i32_664 : i32
    %1225 = arith.index_cast %1224 : i32 to index
    %1226 = memref.load %arg1[%1225] : memref<384xi32, #tpu.memory_space<smem>>
    %1227 = arith.index_cast %1226 : i32 to index
    %c0_665 = arith.constant 0 : index
    %1228 = vector.load %arg2[%1227, %c0_665] : memref<1000x128xf32, #tpu.memory_space<vmem>>, vector<1x128xf32>
    %c160_i32_666 = arith.constant 160 : i32
    %1229 = arith.addi %0, %c160_i32_666 : i32
    %c4_i32_667 = arith.constant 4 : i32
    %1230 = arith.addi %1229, %c4_i32_667 : i32
    %c383_i32_668 = arith.constant 383 : i32
    %1231 = arith.minsi %1230, %c383_i32_668 : i32
    %1232 = arith.index_cast %1231 : i32 to index
    %1233 = memref.load %arg1[%1232] : memref<384xi32, #tpu.memory_space<smem>>
    %1234 = arith.index_cast %1233 : i32 to index
    %c0_669 = arith.constant 0 : index
    %1235 = vector.load %arg2[%1234, %c0_669] : memref<1000x128xf32, #tpu.memory_space<vmem>>, vector<1x128xf32>
    %c160_i32_670 = arith.constant 160 : i32
    %1236 = arith.addi %0, %c160_i32_670 : i32
    %c5_i32_671 = arith.constant 5 : i32
    %1237 = arith.addi %1236, %c5_i32_671 : i32
    %c383_i32_672 = arith.constant 383 : i32
    %1238 = arith.minsi %1237, %c383_i32_672 : i32
    %1239 = arith.index_cast %1238 : i32 to index
    %1240 = memref.load %arg1[%1239] : memref<384xi32, #tpu.memory_space<smem>>
    %1241 = arith.index_cast %1240 : i32 to index
    %c0_673 = arith.constant 0 : index
    %1242 = vector.load %arg2[%1241, %c0_673] : memref<1000x128xf32, #tpu.memory_space<vmem>>, vector<1x128xf32>
    %c160_i32_674 = arith.constant 160 : i32
    %1243 = arith.addi %0, %c160_i32_674 : i32
    %c6_i32_675 = arith.constant 6 : i32
    %1244 = arith.addi %1243, %c6_i32_675 : i32
    %c383_i32_676 = arith.constant 383 : i32
    %1245 = arith.minsi %1244, %c383_i32_676 : i32
    %1246 = arith.index_cast %1245 : i32 to index
    %1247 = memref.load %arg1[%1246] : memref<384xi32, #tpu.memory_space<smem>>
    %1248 = arith.index_cast %1247 : i32 to index
    %c0_677 = arith.constant 0 : index
    %1249 = vector.load %arg2[%1248, %c0_677] : memref<1000x128xf32, #tpu.memory_space<vmem>>, vector<1x128xf32>
    %c160_i32_678 = arith.constant 160 : i32
    %1250 = arith.addi %0, %c160_i32_678 : i32
    %c7_i32_679 = arith.constant 7 : i32
    %1251 = arith.addi %1250, %c7_i32_679 : i32
    %c383_i32_680 = arith.constant 383 : i32
    %1252 = arith.minsi %1251, %c383_i32_680 : i32
    %1253 = arith.index_cast %1252 : i32 to index
    %1254 = memref.load %arg1[%1253] : memref<384xi32, #tpu.memory_space<smem>>
    %1255 = arith.index_cast %1254 : i32 to index
    %c0_681 = arith.constant 0 : index
    %1256 = vector.load %arg2[%1255, %c0_681] : memref<1000x128xf32, #tpu.memory_space<vmem>>, vector<1x128xf32>
    %1257 = tpu.concatenate %1207, %1214, %1221, %1228, %1235, %1242, %1249, %1256 in 0 : vector<1x128xf32>, vector<1x128xf32>, vector<1x128xf32>, vector<1x128xf32>, vector<1x128xf32>, vector<1x128xf32>, vector<1x128xf32>, vector<1x128xf32> -> vector<8x128xf32>
    %cst_682 = arith.constant 11.3137083 : f32
    %1258 = vector.broadcast %cst_682 : f32 to vector<8x128xf32>
    %1259 = arith.mulf %1257, %1258 : vector<8x128xf32>
    %c160 = arith.constant 160 : index
    %c0_683 = arith.constant 0 : index
    %1260 = vector.load %arg3[%c160, %c0_683] : memref<256x128xf32, #tpu.memory_space<vmem>>, vector<8x128xf32>
    tpu.vector_store %arg3[%c160, %c0_683], %1259 {strides = array<i32>} : memref<256x128xf32, #tpu.memory_space<vmem>>, vector<8x128xf32>,
    %c168_i32 = arith.constant 168 : i32
    %1261 = arith.addi %0, %c168_i32 : i32
    %c0_i32_684 = arith.constant 0 : i32
    %1262 = arith.addi %1261, %c0_i32_684 : i32
    %c383_i32_685 = arith.constant 383 : i32
    %1263 = arith.minsi %1262, %c383_i32_685 : i32
    %1264 = arith.index_cast %1263 : i32 to index
    %1265 = memref.load %arg1[%1264] : memref<384xi32, #tpu.memory_space<smem>>
    %1266 = arith.index_cast %1265 : i32 to index
    %c0_686 = arith.constant 0 : index
    %1267 = vector.load %arg2[%1266, %c0_686] : memref<1000x128xf32, #tpu.memory_space<vmem>>, vector<1x128xf32>
    %c168_i32_687 = arith.constant 168 : i32
    %1268 = arith.addi %0, %c168_i32_687 : i32
    %c1_i32_688 = arith.constant 1 : i32
    %1269 = arith.addi %1268, %c1_i32_688 : i32
    %c383_i32_689 = arith.constant 383 : i32
    %1270 = arith.minsi %1269, %c383_i32_689 : i32
    %1271 = arith.index_cast %1270 : i32 to index
    %1272 = memref.load %arg1[%1271] : memref<384xi32, #tpu.memory_space<smem>>
    %1273 = arith.index_cast %1272 : i32 to index
    %c0_690 = arith.constant 0 : index
    %1274 = vector.load %arg2[%1273, %c0_690] : memref<1000x128xf32, #tpu.memory_space<vmem>>, vector<1x128xf32>
    %c168_i32_691 = arith.constant 168 : i32
    %1275 = arith.addi %0, %c168_i32_691 : i32
    %c2_i32_692 = arith.constant 2 : i32
    %1276 = arith.addi %1275, %c2_i32_692 : i32
    %c383_i32_693 = arith.constant 383 : i32
    %1277 = arith.minsi %1276, %c383_i32_693 : i32
    %1278 = arith.index_cast %1277 : i32 to index
    %1279 = memref.load %arg1[%1278] : memref<384xi32, #tpu.memory_space<smem>>
    %1280 = arith.index_cast %1279 : i32 to index
    %c0_694 = arith.constant 0 : index
    %1281 = vector.load %arg2[%1280, %c0_694] : memref<1000x128xf32, #tpu.memory_space<vmem>>, vector<1x128xf32>
    %c168_i32_695 = arith.constant 168 : i32
    %1282 = arith.addi %0, %c168_i32_695 : i32
    %c3_i32_696 = arith.constant 3 : i32
    %1283 = arith.addi %1282, %c3_i32_696 : i32
    %c383_i32_697 = arith.constant 383 : i32
    %1284 = arith.minsi %1283, %c383_i32_697 : i32
    %1285 = arith.index_cast %1284 : i32 to index
    %1286 = memref.load %arg1[%1285] : memref<384xi32, #tpu.memory_space<smem>>
    %1287 = arith.index_cast %1286 : i32 to index
    %c0_698 = arith.constant 0 : index
    %1288 = vector.load %arg2[%1287, %c0_698] : memref<1000x128xf32, #tpu.memory_space<vmem>>, vector<1x128xf32>
    %c168_i32_699 = arith.constant 168 : i32
    %1289 = arith.addi %0, %c168_i32_699 : i32
    %c4_i32_700 = arith.constant 4 : i32
    %1290 = arith.addi %1289, %c4_i32_700 : i32
    %c383_i32_701 = arith.constant 383 : i32
    %1291 = arith.minsi %1290, %c383_i32_701 : i32
    %1292 = arith.index_cast %1291 : i32 to index
    %1293 = memref.load %arg1[%1292] : memref<384xi32, #tpu.memory_space<smem>>
    %1294 = arith.index_cast %1293 : i32 to index
    %c0_702 = arith.constant 0 : index
    %1295 = vector.load %arg2[%1294, %c0_702] : memref<1000x128xf32, #tpu.memory_space<vmem>>, vector<1x128xf32>
    %c168_i32_703 = arith.constant 168 : i32
    %1296 = arith.addi %0, %c168_i32_703 : i32
    %c5_i32_704 = arith.constant 5 : i32
    %1297 = arith.addi %1296, %c5_i32_704 : i32
    %c383_i32_705 = arith.constant 383 : i32
    %1298 = arith.minsi %1297, %c383_i32_705 : i32
    %1299 = arith.index_cast %1298 : i32 to index
    %1300 = memref.load %arg1[%1299] : memref<384xi32, #tpu.memory_space<smem>>
    %1301 = arith.index_cast %1300 : i32 to index
    %c0_706 = arith.constant 0 : index
    %1302 = vector.load %arg2[%1301, %c0_706] : memref<1000x128xf32, #tpu.memory_space<vmem>>, vector<1x128xf32>
    %c168_i32_707 = arith.constant 168 : i32
    %1303 = arith.addi %0, %c168_i32_707 : i32
    %c6_i32_708 = arith.constant 6 : i32
    %1304 = arith.addi %1303, %c6_i32_708 : i32
    %c383_i32_709 = arith.constant 383 : i32
    %1305 = arith.minsi %1304, %c383_i32_709 : i32
    %1306 = arith.index_cast %1305 : i32 to index
    %1307 = memref.load %arg1[%1306] : memref<384xi32, #tpu.memory_space<smem>>
    %1308 = arith.index_cast %1307 : i32 to index
    %c0_710 = arith.constant 0 : index
    %1309 = vector.load %arg2[%1308, %c0_710] : memref<1000x128xf32, #tpu.memory_space<vmem>>, vector<1x128xf32>
    %c168_i32_711 = arith.constant 168 : i32
    %1310 = arith.addi %0, %c168_i32_711 : i32
    %c7_i32_712 = arith.constant 7 : i32
    %1311 = arith.addi %1310, %c7_i32_712 : i32
    %c383_i32_713 = arith.constant 383 : i32
    %1312 = arith.minsi %1311, %c383_i32_713 : i32
    %1313 = arith.index_cast %1312 : i32 to index
    %1314 = memref.load %arg1[%1313] : memref<384xi32, #tpu.memory_space<smem>>
    %1315 = arith.index_cast %1314 : i32 to index
    %c0_714 = arith.constant 0 : index
    %1316 = vector.load %arg2[%1315, %c0_714] : memref<1000x128xf32, #tpu.memory_space<vmem>>, vector<1x128xf32>
    %1317 = tpu.concatenate %1267, %1274, %1281, %1288, %1295, %1302, %1309, %1316 in 0 : vector<1x128xf32>, vector<1x128xf32>, vector<1x128xf32>, vector<1x128xf32>, vector<1x128xf32>, vector<1x128xf32>, vector<1x128xf32>, vector<1x128xf32> -> vector<8x128xf32>
    %cst_715 = arith.constant 11.3137083 : f32
    %1318 = vector.broadcast %cst_715 : f32 to vector<8x128xf32>
    %1319 = arith.mulf %1317, %1318 : vector<8x128xf32>
    %c168 = arith.constant 168 : index
    %c0_716 = arith.constant 0 : index
    %1320 = vector.load %arg3[%c168, %c0_716] : memref<256x128xf32, #tpu.memory_space<vmem>>, vector<8x128xf32>
    tpu.vector_store %arg3[%c168, %c0_716], %1319 {strides = array<i32>} : memref<256x128xf32, #tpu.memory_space<vmem>>, vector<8x128xf32>,
    %c176_i32 = arith.constant 176 : i32
    %1321 = arith.addi %0, %c176_i32 : i32
    %c0_i32_717 = arith.constant 0 : i32
    %1322 = arith.addi %1321, %c0_i32_717 : i32
    %c383_i32_718 = arith.constant 383 : i32
    %1323 = arith.minsi %1322, %c383_i32_718 : i32
    %1324 = arith.index_cast %1323 : i32 to index
    %1325 = memref.load %arg1[%1324] : memref<384xi32, #tpu.memory_space<smem>>
    %1326 = arith.index_cast %1325 : i32 to index
    %c0_719 = arith.constant 0 : index
    %1327 = vector.load %arg2[%1326, %c0_719] : memref<1000x128xf32, #tpu.memory_space<vmem>>, vector<1x128xf32>
    %c176_i32_720 = arith.constant 176 : i32
    %1328 = arith.addi %0, %c176_i32_720 : i32
    %c1_i32_721 = arith.constant 1 : i32
    %1329 = arith.addi %1328, %c1_i32_721 : i32
    %c383_i32_722 = arith.constant 383 : i32
    %1330 = arith.minsi %1329, %c383_i32_722 : i32
    %1331 = arith.index_cast %1330 : i32 to index
    %1332 = memref.load %arg1[%1331] : memref<384xi32, #tpu.memory_space<smem>>
    %1333 = arith.index_cast %1332 : i32 to index
    %c0_723 = arith.constant 0 : index
    %1334 = vector.load %arg2[%1333, %c0_723] : memref<1000x128xf32, #tpu.memory_space<vmem>>, vector<1x128xf32>
    %c176_i32_724 = arith.constant 176 : i32
    %1335 = arith.addi %0, %c176_i32_724 : i32
    %c2_i32_725 = arith.constant 2 : i32
    %1336 = arith.addi %1335, %c2_i32_725 : i32
    %c383_i32_726 = arith.constant 383 : i32
    %1337 = arith.minsi %1336, %c383_i32_726 : i32
    %1338 = arith.index_cast %1337 : i32 to index
    %1339 = memref.load %arg1[%1338] : memref<384xi32, #tpu.memory_space<smem>>
    %1340 = arith.index_cast %1339 : i32 to index
    %c0_727 = arith.constant 0 : index
    %1341 = vector.load %arg2[%1340, %c0_727] : memref<1000x128xf32, #tpu.memory_space<vmem>>, vector<1x128xf32>
    %c176_i32_728 = arith.constant 176 : i32
    %1342 = arith.addi %0, %c176_i32_728 : i32
    %c3_i32_729 = arith.constant 3 : i32
    %1343 = arith.addi %1342, %c3_i32_729 : i32
    %c383_i32_730 = arith.constant 383 : i32
    %1344 = arith.minsi %1343, %c383_i32_730 : i32
    %1345 = arith.index_cast %1344 : i32 to index
    %1346 = memref.load %arg1[%1345] : memref<384xi32, #tpu.memory_space<smem>>
    %1347 = arith.index_cast %1346 : i32 to index
    %c0_731 = arith.constant 0 : index
    %1348 = vector.load %arg2[%1347, %c0_731] : memref<1000x128xf32, #tpu.memory_space<vmem>>, vector<1x128xf32>
    %c176_i32_732 = arith.constant 176 : i32
    %1349 = arith.addi %0, %c176_i32_732 : i32
    %c4_i32_733 = arith.constant 4 : i32
    %1350 = arith.addi %1349, %c4_i32_733 : i32
    %c383_i32_734 = arith.constant 383 : i32
    %1351 = arith.minsi %1350, %c383_i32_734 : i32
    %1352 = arith.index_cast %1351 : i32 to index
    %1353 = memref.load %arg1[%1352] : memref<384xi32, #tpu.memory_space<smem>>
    %1354 = arith.index_cast %1353 : i32 to index
    %c0_735 = arith.constant 0 : index
    %1355 = vector.load %arg2[%1354, %c0_735] : memref<1000x128xf32, #tpu.memory_space<vmem>>, vector<1x128xf32>
    %c176_i32_736 = arith.constant 176 : i32
    %1356 = arith.addi %0, %c176_i32_736 : i32
    %c5_i32_737 = arith.constant 5 : i32
    %1357 = arith.addi %1356, %c5_i32_737 : i32
    %c383_i32_738 = arith.constant 383 : i32
    %1358 = arith.minsi %1357, %c383_i32_738 : i32
    %1359 = arith.index_cast %1358 : i32 to index
    %1360 = memref.load %arg1[%1359] : memref<384xi32, #tpu.memory_space<smem>>
    %1361 = arith.index_cast %1360 : i32 to index
    %c0_739 = arith.constant 0 : index
    %1362 = vector.load %arg2[%1361, %c0_739] : memref<1000x128xf32, #tpu.memory_space<vmem>>, vector<1x128xf32>
    %c176_i32_740 = arith.constant 176 : i32
    %1363 = arith.addi %0, %c176_i32_740 : i32
    %c6_i32_741 = arith.constant 6 : i32
    %1364 = arith.addi %1363, %c6_i32_741 : i32
    %c383_i32_742 = arith.constant 383 : i32
    %1365 = arith.minsi %1364, %c383_i32_742 : i32
    %1366 = arith.index_cast %1365 : i32 to index
    %1367 = memref.load %arg1[%1366] : memref<384xi32, #tpu.memory_space<smem>>
    %1368 = arith.index_cast %1367 : i32 to index
    %c0_743 = arith.constant 0 : index
    %1369 = vector.load %arg2[%1368, %c0_743] : memref<1000x128xf32, #tpu.memory_space<vmem>>, vector<1x128xf32>
    %c176_i32_744 = arith.constant 176 : i32
    %1370 = arith.addi %0, %c176_i32_744 : i32
    %c7_i32_745 = arith.constant 7 : i32
    %1371 = arith.addi %1370, %c7_i32_745 : i32
    %c383_i32_746 = arith.constant 383 : i32
    %1372 = arith.minsi %1371, %c383_i32_746 : i32
    %1373 = arith.index_cast %1372 : i32 to index
    %1374 = memref.load %arg1[%1373] : memref<384xi32, #tpu.memory_space<smem>>
    %1375 = arith.index_cast %1374 : i32 to index
    %c0_747 = arith.constant 0 : index
    %1376 = vector.load %arg2[%1375, %c0_747] : memref<1000x128xf32, #tpu.memory_space<vmem>>, vector<1x128xf32>
    %1377 = tpu.concatenate %1327, %1334, %1341, %1348, %1355, %1362, %1369, %1376 in 0 : vector<1x128xf32>, vector<1x128xf32>, vector<1x128xf32>, vector<1x128xf32>, vector<1x128xf32>, vector<1x128xf32>, vector<1x128xf32>, vector<1x128xf32> -> vector<8x128xf32>
    %cst_748 = arith.constant 11.3137083 : f32
    %1378 = vector.broadcast %cst_748 : f32 to vector<8x128xf32>
    %1379 = arith.mulf %1377, %1378 : vector<8x128xf32>
    %c176 = arith.constant 176 : index
    %c0_749 = arith.constant 0 : index
    %1380 = vector.load %arg3[%c176, %c0_749] : memref<256x128xf32, #tpu.memory_space<vmem>>, vector<8x128xf32>
    tpu.vector_store %arg3[%c176, %c0_749], %1379 {strides = array<i32>} : memref<256x128xf32, #tpu.memory_space<vmem>>, vector<8x128xf32>,
    %c184_i32 = arith.constant 184 : i32
    %1381 = arith.addi %0, %c184_i32 : i32
    %c0_i32_750 = arith.constant 0 : i32
    %1382 = arith.addi %1381, %c0_i32_750 : i32
    %c383_i32_751 = arith.constant 383 : i32
    %1383 = arith.minsi %1382, %c383_i32_751 : i32
    %1384 = arith.index_cast %1383 : i32 to index
    %1385 = memref.load %arg1[%1384] : memref<384xi32, #tpu.memory_space<smem>>
    %1386 = arith.index_cast %1385 : i32 to index
    %c0_752 = arith.constant 0 : index
    %1387 = vector.load %arg2[%1386, %c0_752] : memref<1000x128xf32, #tpu.memory_space<vmem>>, vector<1x128xf32>
    %c184_i32_753 = arith.constant 184 : i32
    %1388 = arith.addi %0, %c184_i32_753 : i32
    %c1_i32_754 = arith.constant 1 : i32
    %1389 = arith.addi %1388, %c1_i32_754 : i32
    %c383_i32_755 = arith.constant 383 : i32
    %1390 = arith.minsi %1389, %c383_i32_755 : i32
    %1391 = arith.index_cast %1390 : i32 to index
    %1392 = memref.load %arg1[%1391] : memref<384xi32, #tpu.memory_space<smem>>
    %1393 = arith.index_cast %1392 : i32 to index
    %c0_756 = arith.constant 0 : index
    %1394 = vector.load %arg2[%1393, %c0_756] : memref<1000x128xf32, #tpu.memory_space<vmem>>, vector<1x128xf32>
    %c184_i32_757 = arith.constant 184 : i32
    %1395 = arith.addi %0, %c184_i32_757 : i32
    %c2_i32_758 = arith.constant 2 : i32
    %1396 = arith.addi %1395, %c2_i32_758 : i32
    %c383_i32_759 = arith.constant 383 : i32
    %1397 = arith.minsi %1396, %c383_i32_759 : i32
    %1398 = arith.index_cast %1397 : i32 to index
    %1399 = memref.load %arg1[%1398] : memref<384xi32, #tpu.memory_space<smem>>
    %1400 = arith.index_cast %1399 : i32 to index
    %c0_760 = arith.constant 0 : index
    %1401 = vector.load %arg2[%1400, %c0_760] : memref<1000x128xf32, #tpu.memory_space<vmem>>, vector<1x128xf32>
    %c184_i32_761 = arith.constant 184 : i32
    %1402 = arith.addi %0, %c184_i32_761 : i32
    %c3_i32_762 = arith.constant 3 : i32
    %1403 = arith.addi %1402, %c3_i32_762 : i32
    %c383_i32_763 = arith.constant 383 : i32
    %1404 = arith.minsi %1403, %c383_i32_763 : i32
    %1405 = arith.index_cast %1404 : i32 to index
    %1406 = memref.load %arg1[%1405] : memref<384xi32, #tpu.memory_space<smem>>
    %1407 = arith.index_cast %1406 : i32 to index
    %c0_764 = arith.constant 0 : index
    %1408 = vector.load %arg2[%1407, %c0_764] : memref<1000x128xf32, #tpu.memory_space<vmem>>, vector<1x128xf32>
    %c184_i32_765 = arith.constant 184 : i32
    %1409 = arith.addi %0, %c184_i32_765 : i32
    %c4_i32_766 = arith.constant 4 : i32
    %1410 = arith.addi %1409, %c4_i32_766 : i32
    %c383_i32_767 = arith.constant 383 : i32
    %1411 = arith.minsi %1410, %c383_i32_767 : i32
    %1412 = arith.index_cast %1411 : i32 to index
    %1413 = memref.load %arg1[%1412] : memref<384xi32, #tpu.memory_space<smem>>
    %1414 = arith.index_cast %1413 : i32 to index
    %c0_768 = arith.constant 0 : index
    %1415 = vector.load %arg2[%1414, %c0_768] : memref<1000x128xf32, #tpu.memory_space<vmem>>, vector<1x128xf32>
    %c184_i32_769 = arith.constant 184 : i32
    %1416 = arith.addi %0, %c184_i32_769 : i32
    %c5_i32_770 = arith.constant 5 : i32
    %1417 = arith.addi %1416, %c5_i32_770 : i32
    %c383_i32_771 = arith.constant 383 : i32
    %1418 = arith.minsi %1417, %c383_i32_771 : i32
    %1419 = arith.index_cast %1418 : i32 to index
    %1420 = memref.load %arg1[%1419] : memref<384xi32, #tpu.memory_space<smem>>
    %1421 = arith.index_cast %1420 : i32 to index
    %c0_772 = arith.constant 0 : index
    %1422 = vector.load %arg2[%1421, %c0_772] : memref<1000x128xf32, #tpu.memory_space<vmem>>, vector<1x128xf32>
    %c184_i32_773 = arith.constant 184 : i32
    %1423 = arith.addi %0, %c184_i32_773 : i32
    %c6_i32_774 = arith.constant 6 : i32
    %1424 = arith.addi %1423, %c6_i32_774 : i32
    %c383_i32_775 = arith.constant 383 : i32
    %1425 = arith.minsi %1424, %c383_i32_775 : i32
    %1426 = arith.index_cast %1425 : i32 to index
    %1427 = memref.load %arg1[%1426] : memref<384xi32, #tpu.memory_space<smem>>
    %1428 = arith.index_cast %1427 : i32 to index
    %c0_776 = arith.constant 0 : index
    %1429 = vector.load %arg2[%1428, %c0_776] : memref<1000x128xf32, #tpu.memory_space<vmem>>, vector<1x128xf32>
    %c184_i32_777 = arith.constant 184 : i32
    %1430 = arith.addi %0, %c184_i32_777 : i32
    %c7_i32_778 = arith.constant 7 : i32
    %1431 = arith.addi %1430, %c7_i32_778 : i32
    %c383_i32_779 = arith.constant 383 : i32
    %1432 = arith.minsi %1431, %c383_i32_779 : i32
    %1433 = arith.index_cast %1432 : i32 to index
    %1434 = memref.load %arg1[%1433] : memref<384xi32, #tpu.memory_space<smem>>
    %1435 = arith.index_cast %1434 : i32 to index
    %c0_780 = arith.constant 0 : index
    %1436 = vector.load %arg2[%1435, %c0_780] : memref<1000x128xf32, #tpu.memory_space<vmem>>, vector<1x128xf32>
    %1437 = tpu.concatenate %1387, %1394, %1401, %1408, %1415, %1422, %1429, %1436 in 0 : vector<1x128xf32>, vector<1x128xf32>, vector<1x128xf32>, vector<1x128xf32>, vector<1x128xf32>, vector<1x128xf32>, vector<1x128xf32>, vector<1x128xf32> -> vector<8x128xf32>
    %cst_781 = arith.constant 11.3137083 : f32
    %1438 = vector.broadcast %cst_781 : f32 to vector<8x128xf32>
    %1439 = arith.mulf %1437, %1438 : vector<8x128xf32>
    %c184 = arith.constant 184 : index
    %c0_782 = arith.constant 0 : index
    %1440 = vector.load %arg3[%c184, %c0_782] : memref<256x128xf32, #tpu.memory_space<vmem>>, vector<8x128xf32>
    tpu.vector_store %arg3[%c184, %c0_782], %1439 {strides = array<i32>} : memref<256x128xf32, #tpu.memory_space<vmem>>, vector<8x128xf32>,
    %c192_i32 = arith.constant 192 : i32
    %1441 = arith.addi %0, %c192_i32 : i32
    %c0_i32_783 = arith.constant 0 : i32
    %1442 = arith.addi %1441, %c0_i32_783 : i32
    %c383_i32_784 = arith.constant 383 : i32
    %1443 = arith.minsi %1442, %c383_i32_784 : i32
    %1444 = arith.index_cast %1443 : i32 to index
    %1445 = memref.load %arg1[%1444] : memref<384xi32, #tpu.memory_space<smem>>
    %1446 = arith.index_cast %1445 : i32 to index
    %c0_785 = arith.constant 0 : index
    %1447 = vector.load %arg2[%1446, %c0_785] : memref<1000x128xf32, #tpu.memory_space<vmem>>, vector<1x128xf32>
    %c192_i32_786 = arith.constant 192 : i32
    %1448 = arith.addi %0, %c192_i32_786 : i32
    %c1_i32_787 = arith.constant 1 : i32
    %1449 = arith.addi %1448, %c1_i32_787 : i32
    %c383_i32_788 = arith.constant 383 : i32
    %1450 = arith.minsi %1449, %c383_i32_788 : i32
    %1451 = arith.index_cast %1450 : i32 to index
    %1452 = memref.load %arg1[%1451] : memref<384xi32, #tpu.memory_space<smem>>
    %1453 = arith.index_cast %1452 : i32 to index
    %c0_789 = arith.constant 0 : index
    %1454 = vector.load %arg2[%1453, %c0_789] : memref<1000x128xf32, #tpu.memory_space<vmem>>, vector<1x128xf32>
    %c192_i32_790 = arith.constant 192 : i32
    %1455 = arith.addi %0, %c192_i32_790 : i32
    %c2_i32_791 = arith.constant 2 : i32
    %1456 = arith.addi %1455, %c2_i32_791 : i32
    %c383_i32_792 = arith.constant 383 : i32
    %1457 = arith.minsi %1456, %c383_i32_792 : i32
    %1458 = arith.index_cast %1457 : i32 to index
    %1459 = memref.load %arg1[%1458] : memref<384xi32, #tpu.memory_space<smem>>
    %1460 = arith.index_cast %1459 : i32 to index
    %c0_793 = arith.constant 0 : index
    %1461 = vector.load %arg2[%1460, %c0_793] : memref<1000x128xf32, #tpu.memory_space<vmem>>, vector<1x128xf32>
    %c192_i32_794 = arith.constant 192 : i32
    %1462 = arith.addi %0, %c192_i32_794 : i32
    %c3_i32_795 = arith.constant 3 : i32
    %1463 = arith.addi %1462, %c3_i32_795 : i32
    %c383_i32_796 = arith.constant 383 : i32
    %1464 = arith.minsi %1463, %c383_i32_796 : i32
    %1465 = arith.index_cast %1464 : i32 to index
    %1466 = memref.load %arg1[%1465] : memref<384xi32, #tpu.memory_space<smem>>
    %1467 = arith.index_cast %1466 : i32 to index
    %c0_797 = arith.constant 0 : index
    %1468 = vector.load %arg2[%1467, %c0_797] : memref<1000x128xf32, #tpu.memory_space<vmem>>, vector<1x128xf32>
    %c192_i32_798 = arith.constant 192 : i32
    %1469 = arith.addi %0, %c192_i32_798 : i32
    %c4_i32_799 = arith.constant 4 : i32
    %1470 = arith.addi %1469, %c4_i32_799 : i32
    %c383_i32_800 = arith.constant 383 : i32
    %1471 = arith.minsi %1470, %c383_i32_800 : i32
    %1472 = arith.index_cast %1471 : i32 to index
    %1473 = memref.load %arg1[%1472] : memref<384xi32, #tpu.memory_space<smem>>
    %1474 = arith.index_cast %1473 : i32 to index
    %c0_801 = arith.constant 0 : index
    %1475 = vector.load %arg2[%1474, %c0_801] : memref<1000x128xf32, #tpu.memory_space<vmem>>, vector<1x128xf32>
    %c192_i32_802 = arith.constant 192 : i32
    %1476 = arith.addi %0, %c192_i32_802 : i32
    %c5_i32_803 = arith.constant 5 : i32
    %1477 = arith.addi %1476, %c5_i32_803 : i32
    %c383_i32_804 = arith.constant 383 : i32
    %1478 = arith.minsi %1477, %c383_i32_804 : i32
    %1479 = arith.index_cast %1478 : i32 to index
    %1480 = memref.load %arg1[%1479] : memref<384xi32, #tpu.memory_space<smem>>
    %1481 = arith.index_cast %1480 : i32 to index
    %c0_805 = arith.constant 0 : index
    %1482 = vector.load %arg2[%1481, %c0_805] : memref<1000x128xf32, #tpu.memory_space<vmem>>, vector<1x128xf32>
    %c192_i32_806 = arith.constant 192 : i32
    %1483 = arith.addi %0, %c192_i32_806 : i32
    %c6_i32_807 = arith.constant 6 : i32
    %1484 = arith.addi %1483, %c6_i32_807 : i32
    %c383_i32_808 = arith.constant 383 : i32
    %1485 = arith.minsi %1484, %c383_i32_808 : i32
    %1486 = arith.index_cast %1485 : i32 to index
    %1487 = memref.load %arg1[%1486] : memref<384xi32, #tpu.memory_space<smem>>
    %1488 = arith.index_cast %1487 : i32 to index
    %c0_809 = arith.constant 0 : index
    %1489 = vector.load %arg2[%1488, %c0_809] : memref<1000x128xf32, #tpu.memory_space<vmem>>, vector<1x128xf32>
    %c192_i32_810 = arith.constant 192 : i32
    %1490 = arith.addi %0, %c192_i32_810 : i32
    %c7_i32_811 = arith.constant 7 : i32
    %1491 = arith.addi %1490, %c7_i32_811 : i32
    %c383_i32_812 = arith.constant 383 : i32
    %1492 = arith.minsi %1491, %c383_i32_812 : i32
    %1493 = arith.index_cast %1492 : i32 to index
    %1494 = memref.load %arg1[%1493] : memref<384xi32, #tpu.memory_space<smem>>
    %1495 = arith.index_cast %1494 : i32 to index
    %c0_813 = arith.constant 0 : index
    %1496 = vector.load %arg2[%1495, %c0_813] : memref<1000x128xf32, #tpu.memory_space<vmem>>, vector<1x128xf32>
    %1497 = tpu.concatenate %1447, %1454, %1461, %1468, %1475, %1482, %1489, %1496 in 0 : vector<1x128xf32>, vector<1x128xf32>, vector<1x128xf32>, vector<1x128xf32>, vector<1x128xf32>, vector<1x128xf32>, vector<1x128xf32>, vector<1x128xf32> -> vector<8x128xf32>
    %cst_814 = arith.constant 11.3137083 : f32
    %1498 = vector.broadcast %cst_814 : f32 to vector<8x128xf32>
    %1499 = arith.mulf %1497, %1498 : vector<8x128xf32>
    %c192 = arith.constant 192 : index
    %c0_815 = arith.constant 0 : index
    %1500 = vector.load %arg3[%c192, %c0_815] : memref<256x128xf32, #tpu.memory_space<vmem>>, vector<8x128xf32>
    tpu.vector_store %arg3[%c192, %c0_815], %1499 {strides = array<i32>} : memref<256x128xf32, #tpu.memory_space<vmem>>, vector<8x128xf32>,
    %c200_i32 = arith.constant 200 : i32
    %1501 = arith.addi %0, %c200_i32 : i32
    %c0_i32_816 = arith.constant 0 : i32
    %1502 = arith.addi %1501, %c0_i32_816 : i32
    %c383_i32_817 = arith.constant 383 : i32
    %1503 = arith.minsi %1502, %c383_i32_817 : i32
    %1504 = arith.index_cast %1503 : i32 to index
    %1505 = memref.load %arg1[%1504] : memref<384xi32, #tpu.memory_space<smem>>
    %1506 = arith.index_cast %1505 : i32 to index
    %c0_818 = arith.constant 0 : index
    %1507 = vector.load %arg2[%1506, %c0_818] : memref<1000x128xf32, #tpu.memory_space<vmem>>, vector<1x128xf32>
    %c200_i32_819 = arith.constant 200 : i32
    %1508 = arith.addi %0, %c200_i32_819 : i32
    %c1_i32_820 = arith.constant 1 : i32
    %1509 = arith.addi %1508, %c1_i32_820 : i32
    %c383_i32_821 = arith.constant 383 : i32
    %1510 = arith.minsi %1509, %c383_i32_821 : i32
    %1511 = arith.index_cast %1510 : i32 to index
    %1512 = memref.load %arg1[%1511] : memref<384xi32, #tpu.memory_space<smem>>
    %1513 = arith.index_cast %1512 : i32 to index
    %c0_822 = arith.constant 0 : index
    %1514 = vector.load %arg2[%1513, %c0_822] : memref<1000x128xf32, #tpu.memory_space<vmem>>, vector<1x128xf32>
    %c200_i32_823 = arith.constant 200 : i32
    %1515 = arith.addi %0, %c200_i32_823 : i32
    %c2_i32_824 = arith.constant 2 : i32
    %1516 = arith.addi %1515, %c2_i32_824 : i32
    %c383_i32_825 = arith.constant 383 : i32
    %1517 = arith.minsi %1516, %c383_i32_825 : i32
    %1518 = arith.index_cast %1517 : i32 to index
    %1519 = memref.load %arg1[%1518] : memref<384xi32, #tpu.memory_space<smem>>
    %1520 = arith.index_cast %1519 : i32 to index
    %c0_826 = arith.constant 0 : index
    %1521 = vector.load %arg2[%1520, %c0_826] : memref<1000x128xf32, #tpu.memory_space<vmem>>, vector<1x128xf32>
    %c200_i32_827 = arith.constant 200 : i32
    %1522 = arith.addi %0, %c200_i32_827 : i32
    %c3_i32_828 = arith.constant 3 : i32
    %1523 = arith.addi %1522, %c3_i32_828 : i32
    %c383_i32_829 = arith.constant 383 : i32
    %1524 = arith.minsi %1523, %c383_i32_829 : i32
    %1525 = arith.index_cast %1524 : i32 to index
    %1526 = memref.load %arg1[%1525] : memref<384xi32, #tpu.memory_space<smem>>
    %1527 = arith.index_cast %1526 : i32 to index
    %c0_830 = arith.constant 0 : index
    %1528 = vector.load %arg2[%1527, %c0_830] : memref<1000x128xf32, #tpu.memory_space<vmem>>, vector<1x128xf32>
    %c200_i32_831 = arith.constant 200 : i32
    %1529 = arith.addi %0, %c200_i32_831 : i32
    %c4_i32_832 = arith.constant 4 : i32
    %1530 = arith.addi %1529, %c4_i32_832 : i32
    %c383_i32_833 = arith.constant 383 : i32
    %1531 = arith.minsi %1530, %c383_i32_833 : i32
    %1532 = arith.index_cast %1531 : i32 to index
    %1533 = memref.load %arg1[%1532] : memref<384xi32, #tpu.memory_space<smem>>
    %1534 = arith.index_cast %1533 : i32 to index
    %c0_834 = arith.constant 0 : index
    %1535 = vector.load %arg2[%1534, %c0_834] : memref<1000x128xf32, #tpu.memory_space<vmem>>, vector<1x128xf32>
    %c200_i32_835 = arith.constant 200 : i32
    %1536 = arith.addi %0, %c200_i32_835 : i32
    %c5_i32_836 = arith.constant 5 : i32
    %1537 = arith.addi %1536, %c5_i32_836 : i32
    %c383_i32_837 = arith.constant 383 : i32
    %1538 = arith.minsi %1537, %c383_i32_837 : i32
    %1539 = arith.index_cast %1538 : i32 to index
    %1540 = memref.load %arg1[%1539] : memref<384xi32, #tpu.memory_space<smem>>
    %1541 = arith.index_cast %1540 : i32 to index
    %c0_838 = arith.constant 0 : index
    %1542 = vector.load %arg2[%1541, %c0_838] : memref<1000x128xf32, #tpu.memory_space<vmem>>, vector<1x128xf32>
    %c200_i32_839 = arith.constant 200 : i32
    %1543 = arith.addi %0, %c200_i32_839 : i32
    %c6_i32_840 = arith.constant 6 : i32
    %1544 = arith.addi %1543, %c6_i32_840 : i32
    %c383_i32_841 = arith.constant 383 : i32
    %1545 = arith.minsi %1544, %c383_i32_841 : i32
    %1546 = arith.index_cast %1545 : i32 to index
    %1547 = memref.load %arg1[%1546] : memref<384xi32, #tpu.memory_space<smem>>
    %1548 = arith.index_cast %1547 : i32 to index
    %c0_842 = arith.constant 0 : index
    %1549 = vector.load %arg2[%1548, %c0_842] : memref<1000x128xf32, #tpu.memory_space<vmem>>, vector<1x128xf32>
    %c200_i32_843 = arith.constant 200 : i32
    %1550 = arith.addi %0, %c200_i32_843 : i32
    %c7_i32_844 = arith.constant 7 : i32
    %1551 = arith.addi %1550, %c7_i32_844 : i32
    %c383_i32_845 = arith.constant 383 : i32
    %1552 = arith.minsi %1551, %c383_i32_845 : i32
    %1553 = arith.index_cast %1552 : i32 to index
    %1554 = memref.load %arg1[%1553] : memref<384xi32, #tpu.memory_space<smem>>
    %1555 = arith.index_cast %1554 : i32 to index
    %c0_846 = arith.constant 0 : index
    %1556 = vector.load %arg2[%1555, %c0_846] : memref<1000x128xf32, #tpu.memory_space<vmem>>, vector<1x128xf32>
    %1557 = tpu.concatenate %1507, %1514, %1521, %1528, %1535, %1542, %1549, %1556 in 0 : vector<1x128xf32>, vector<1x128xf32>, vector<1x128xf32>, vector<1x128xf32>, vector<1x128xf32>, vector<1x128xf32>, vector<1x128xf32>, vector<1x128xf32> -> vector<8x128xf32>
    %cst_847 = arith.constant 11.3137083 : f32
    %1558 = vector.broadcast %cst_847 : f32 to vector<8x128xf32>
    %1559 = arith.mulf %1557, %1558 : vector<8x128xf32>
    %c200 = arith.constant 200 : index
    %c0_848 = arith.constant 0 : index
    %1560 = vector.load %arg3[%c200, %c0_848] : memref<256x128xf32, #tpu.memory_space<vmem>>, vector<8x128xf32>
    tpu.vector_store %arg3[%c200, %c0_848], %1559 {strides = array<i32>} : memref<256x128xf32, #tpu.memory_space<vmem>>, vector<8x128xf32>,
    %c208_i32 = arith.constant 208 : i32
    %1561 = arith.addi %0, %c208_i32 : i32
    %c0_i32_849 = arith.constant 0 : i32
    %1562 = arith.addi %1561, %c0_i32_849 : i32
    %c383_i32_850 = arith.constant 383 : i32
    %1563 = arith.minsi %1562, %c383_i32_850 : i32
    %1564 = arith.index_cast %1563 : i32 to index
    %1565 = memref.load %arg1[%1564] : memref<384xi32, #tpu.memory_space<smem>>
    %1566 = arith.index_cast %1565 : i32 to index
    %c0_851 = arith.constant 0 : index
    %1567 = vector.load %arg2[%1566, %c0_851] : memref<1000x128xf32, #tpu.memory_space<vmem>>, vector<1x128xf32>
    %c208_i32_852 = arith.constant 208 : i32
    %1568 = arith.addi %0, %c208_i32_852 : i32
    %c1_i32_853 = arith.constant 1 : i32
    %1569 = arith.addi %1568, %c1_i32_853 : i32
    %c383_i32_854 = arith.constant 383 : i32
    %1570 = arith.minsi %1569, %c383_i32_854 : i32
    %1571 = arith.index_cast %1570 : i32 to index
    %1572 = memref.load %arg1[%1571] : memref<384xi32, #tpu.memory_space<smem>>
    %1573 = arith.index_cast %1572 : i32 to index
    %c0_855 = arith.constant 0 : index
    %1574 = vector.load %arg2[%1573, %c0_855] : memref<1000x128xf32, #tpu.memory_space<vmem>>, vector<1x128xf32>
    %c208_i32_856 = arith.constant 208 : i32
    %1575 = arith.addi %0, %c208_i32_856 : i32
    %c2_i32_857 = arith.constant 2 : i32
    %1576 = arith.addi %1575, %c2_i32_857 : i32
    %c383_i32_858 = arith.constant 383 : i32
    %1577 = arith.minsi %1576, %c383_i32_858 : i32
    %1578 = arith.index_cast %1577 : i32 to index
    %1579 = memref.load %arg1[%1578] : memref<384xi32, #tpu.memory_space<smem>>
    %1580 = arith.index_cast %1579 : i32 to index
    %c0_859 = arith.constant 0 : index
    %1581 = vector.load %arg2[%1580, %c0_859] : memref<1000x128xf32, #tpu.memory_space<vmem>>, vector<1x128xf32>
    %c208_i32_860 = arith.constant 208 : i32
    %1582 = arith.addi %0, %c208_i32_860 : i32
    %c3_i32_861 = arith.constant 3 : i32
    %1583 = arith.addi %1582, %c3_i32_861 : i32
    %c383_i32_862 = arith.constant 383 : i32
    %1584 = arith.minsi %1583, %c383_i32_862 : i32
    %1585 = arith.index_cast %1584 : i32 to index
    %1586 = memref.load %arg1[%1585] : memref<384xi32, #tpu.memory_space<smem>>
    %1587 = arith.index_cast %1586 : i32 to index
    %c0_863 = arith.constant 0 : index
    %1588 = vector.load %arg2[%1587, %c0_863] : memref<1000x128xf32, #tpu.memory_space<vmem>>, vector<1x128xf32>
    %c208_i32_864 = arith.constant 208 : i32
    %1589 = arith.addi %0, %c208_i32_864 : i32
    %c4_i32_865 = arith.constant 4 : i32
    %1590 = arith.addi %1589, %c4_i32_865 : i32
    %c383_i32_866 = arith.constant 383 : i32
    %1591 = arith.minsi %1590, %c383_i32_866 : i32
    %1592 = arith.index_cast %1591 : i32 to index
    %1593 = memref.load %arg1[%1592] : memref<384xi32, #tpu.memory_space<smem>>
    %1594 = arith.index_cast %1593 : i32 to index
    %c0_867 = arith.constant 0 : index
    %1595 = vector.load %arg2[%1594, %c0_867] : memref<1000x128xf32, #tpu.memory_space<vmem>>, vector<1x128xf32>
    %c208_i32_868 = arith.constant 208 : i32
    %1596 = arith.addi %0, %c208_i32_868 : i32
    %c5_i32_869 = arith.constant 5 : i32
    %1597 = arith.addi %1596, %c5_i32_869 : i32
    %c383_i32_870 = arith.constant 383 : i32
    %1598 = arith.minsi %1597, %c383_i32_870 : i32
    %1599 = arith.index_cast %1598 : i32 to index
    %1600 = memref.load %arg1[%1599] : memref<384xi32, #tpu.memory_space<smem>>
    %1601 = arith.index_cast %1600 : i32 to index
    %c0_871 = arith.constant 0 : index
    %1602 = vector.load %arg2[%1601, %c0_871] : memref<1000x128xf32, #tpu.memory_space<vmem>>, vector<1x128xf32>
    %c208_i32_872 = arith.constant 208 : i32
    %1603 = arith.addi %0, %c208_i32_872 : i32
    %c6_i32_873 = arith.constant 6 : i32
    %1604 = arith.addi %1603, %c6_i32_873 : i32
    %c383_i32_874 = arith.constant 383 : i32
    %1605 = arith.minsi %1604, %c383_i32_874 : i32
    %1606 = arith.index_cast %1605 : i32 to index
    %1607 = memref.load %arg1[%1606] : memref<384xi32, #tpu.memory_space<smem>>
    %1608 = arith.index_cast %1607 : i32 to index
    %c0_875 = arith.constant 0 : index
    %1609 = vector.load %arg2[%1608, %c0_875] : memref<1000x128xf32, #tpu.memory_space<vmem>>, vector<1x128xf32>
    %c208_i32_876 = arith.constant 208 : i32
    %1610 = arith.addi %0, %c208_i32_876 : i32
    %c7_i32_877 = arith.constant 7 : i32
    %1611 = arith.addi %1610, %c7_i32_877 : i32
    %c383_i32_878 = arith.constant 383 : i32
    %1612 = arith.minsi %1611, %c383_i32_878 : i32
    %1613 = arith.index_cast %1612 : i32 to index
    %1614 = memref.load %arg1[%1613] : memref<384xi32, #tpu.memory_space<smem>>
    %1615 = arith.index_cast %1614 : i32 to index
    %c0_879 = arith.constant 0 : index
    %1616 = vector.load %arg2[%1615, %c0_879] : memref<1000x128xf32, #tpu.memory_space<vmem>>, vector<1x128xf32>
    %1617 = tpu.concatenate %1567, %1574, %1581, %1588, %1595, %1602, %1609, %1616 in 0 : vector<1x128xf32>, vector<1x128xf32>, vector<1x128xf32>, vector<1x128xf32>, vector<1x128xf32>, vector<1x128xf32>, vector<1x128xf32>, vector<1x128xf32> -> vector<8x128xf32>
    %cst_880 = arith.constant 11.3137083 : f32
    %1618 = vector.broadcast %cst_880 : f32 to vector<8x128xf32>
    %1619 = arith.mulf %1617, %1618 : vector<8x128xf32>
    %c208 = arith.constant 208 : index
    %c0_881 = arith.constant 0 : index
    %1620 = vector.load %arg3[%c208, %c0_881] : memref<256x128xf32, #tpu.memory_space<vmem>>, vector<8x128xf32>
    tpu.vector_store %arg3[%c208, %c0_881], %1619 {strides = array<i32>} : memref<256x128xf32, #tpu.memory_space<vmem>>, vector<8x128xf32>,
    %c216_i32 = arith.constant 216 : i32
    %1621 = arith.addi %0, %c216_i32 : i32
    %c0_i32_882 = arith.constant 0 : i32
    %1622 = arith.addi %1621, %c0_i32_882 : i32
    %c383_i32_883 = arith.constant 383 : i32
    %1623 = arith.minsi %1622, %c383_i32_883 : i32
    %1624 = arith.index_cast %1623 : i32 to index
    %1625 = memref.load %arg1[%1624] : memref<384xi32, #tpu.memory_space<smem>>
    %1626 = arith.index_cast %1625 : i32 to index
    %c0_884 = arith.constant 0 : index
    %1627 = vector.load %arg2[%1626, %c0_884] : memref<1000x128xf32, #tpu.memory_space<vmem>>, vector<1x128xf32>
    %c216_i32_885 = arith.constant 216 : i32
    %1628 = arith.addi %0, %c216_i32_885 : i32
    %c1_i32_886 = arith.constant 1 : i32
    %1629 = arith.addi %1628, %c1_i32_886 : i32
    %c383_i32_887 = arith.constant 383 : i32
    %1630 = arith.minsi %1629, %c383_i32_887 : i32
    %1631 = arith.index_cast %1630 : i32 to index
    %1632 = memref.load %arg1[%1631] : memref<384xi32, #tpu.memory_space<smem>>
    %1633 = arith.index_cast %1632 : i32 to index
    %c0_888 = arith.constant 0 : index
    %1634 = vector.load %arg2[%1633, %c0_888] : memref<1000x128xf32, #tpu.memory_space<vmem>>, vector<1x128xf32>
    %c216_i32_889 = arith.constant 216 : i32
    %1635 = arith.addi %0, %c216_i32_889 : i32
    %c2_i32_890 = arith.constant 2 : i32
    %1636 = arith.addi %1635, %c2_i32_890 : i32
    %c383_i32_891 = arith.constant 383 : i32
    %1637 = arith.minsi %1636, %c383_i32_891 : i32
    %1638 = arith.index_cast %1637 : i32 to index
    %1639 = memref.load %arg1[%1638] : memref<384xi32, #tpu.memory_space<smem>>
    %1640 = arith.index_cast %1639 : i32 to index
    %c0_892 = arith.constant 0 : index
    %1641 = vector.load %arg2[%1640, %c0_892] : memref<1000x128xf32, #tpu.memory_space<vmem>>, vector<1x128xf32>
    %c216_i32_893 = arith.constant 216 : i32
    %1642 = arith.addi %0, %c216_i32_893 : i32
    %c3_i32_894 = arith.constant 3 : i32
    %1643 = arith.addi %1642, %c3_i32_894 : i32
    %c383_i32_895 = arith.constant 383 : i32
    %1644 = arith.minsi %1643, %c383_i32_895 : i32
    %1645 = arith.index_cast %1644 : i32 to index
    %1646 = memref.load %arg1[%1645] : memref<384xi32, #tpu.memory_space<smem>>
    %1647 = arith.index_cast %1646 : i32 to index
    %c0_896 = arith.constant 0 : index
    %1648 = vector.load %arg2[%1647, %c0_896] : memref<1000x128xf32, #tpu.memory_space<vmem>>, vector<1x128xf32>
    %c216_i32_897 = arith.constant 216 : i32
    %1649 = arith.addi %0, %c216_i32_897 : i32
    %c4_i32_898 = arith.constant 4 : i32
    %1650 = arith.addi %1649, %c4_i32_898 : i32
    %c383_i32_899 = arith.constant 383 : i32
    %1651 = arith.minsi %1650, %c383_i32_899 : i32
    %1652 = arith.index_cast %1651 : i32 to index
    %1653 = memref.load %arg1[%1652] : memref<384xi32, #tpu.memory_space<smem>>
    %1654 = arith.index_cast %1653 : i32 to index
    %c0_900 = arith.constant 0 : index
    %1655 = vector.load %arg2[%1654, %c0_900] : memref<1000x128xf32, #tpu.memory_space<vmem>>, vector<1x128xf32>
    %c216_i32_901 = arith.constant 216 : i32
    %1656 = arith.addi %0, %c216_i32_901 : i32
    %c5_i32_902 = arith.constant 5 : i32
    %1657 = arith.addi %1656, %c5_i32_902 : i32
    %c383_i32_903 = arith.constant 383 : i32
    %1658 = arith.minsi %1657, %c383_i32_903 : i32
    %1659 = arith.index_cast %1658 : i32 to index
    %1660 = memref.load %arg1[%1659] : memref<384xi32, #tpu.memory_space<smem>>
    %1661 = arith.index_cast %1660 : i32 to index
    %c0_904 = arith.constant 0 : index
    %1662 = vector.load %arg2[%1661, %c0_904] : memref<1000x128xf32, #tpu.memory_space<vmem>>, vector<1x128xf32>
    %c216_i32_905 = arith.constant 216 : i32
    %1663 = arith.addi %0, %c216_i32_905 : i32
    %c6_i32_906 = arith.constant 6 : i32
    %1664 = arith.addi %1663, %c6_i32_906 : i32
    %c383_i32_907 = arith.constant 383 : i32
    %1665 = arith.minsi %1664, %c383_i32_907 : i32
    %1666 = arith.index_cast %1665 : i32 to index
    %1667 = memref.load %arg1[%1666] : memref<384xi32, #tpu.memory_space<smem>>
    %1668 = arith.index_cast %1667 : i32 to index
    %c0_908 = arith.constant 0 : index
    %1669 = vector.load %arg2[%1668, %c0_908] : memref<1000x128xf32, #tpu.memory_space<vmem>>, vector<1x128xf32>
    %c216_i32_909 = arith.constant 216 : i32
    %1670 = arith.addi %0, %c216_i32_909 : i32
    %c7_i32_910 = arith.constant 7 : i32
    %1671 = arith.addi %1670, %c7_i32_910 : i32
    %c383_i32_911 = arith.constant 383 : i32
    %1672 = arith.minsi %1671, %c383_i32_911 : i32
    %1673 = arith.index_cast %1672 : i32 to index
    %1674 = memref.load %arg1[%1673] : memref<384xi32, #tpu.memory_space<smem>>
    %1675 = arith.index_cast %1674 : i32 to index
    %c0_912 = arith.constant 0 : index
    %1676 = vector.load %arg2[%1675, %c0_912] : memref<1000x128xf32, #tpu.memory_space<vmem>>, vector<1x128xf32>
    %1677 = tpu.concatenate %1627, %1634, %1641, %1648, %1655, %1662, %1669, %1676 in 0 : vector<1x128xf32>, vector<1x128xf32>, vector<1x128xf32>, vector<1x128xf32>, vector<1x128xf32>, vector<1x128xf32>, vector<1x128xf32>, vector<1x128xf32> -> vector<8x128xf32>
    %cst_913 = arith.constant 11.3137083 : f32
    %1678 = vector.broadcast %cst_913 : f32 to vector<8x128xf32>
    %1679 = arith.mulf %1677, %1678 : vector<8x128xf32>
    %c216 = arith.constant 216 : index
    %c0_914 = arith.constant 0 : index
    %1680 = vector.load %arg3[%c216, %c0_914] : memref<256x128xf32, #tpu.memory_space<vmem>>, vector<8x128xf32>
    tpu.vector_store %arg3[%c216, %c0_914], %1679 {strides = array<i32>} : memref<256x128xf32, #tpu.memory_space<vmem>>, vector<8x128xf32>,
    %c224_i32 = arith.constant 224 : i32
    %1681 = arith.addi %0, %c224_i32 : i32
    %c0_i32_915 = arith.constant 0 : i32
    %1682 = arith.addi %1681, %c0_i32_915 : i32
    %c383_i32_916 = arith.constant 383 : i32
    %1683 = arith.minsi %1682, %c383_i32_916 : i32
    %1684 = arith.index_cast %1683 : i32 to index
    %1685 = memref.load %arg1[%1684] : memref<384xi32, #tpu.memory_space<smem>>
    %1686 = arith.index_cast %1685 : i32 to index
    %c0_917 = arith.constant 0 : index
    %1687 = vector.load %arg2[%1686, %c0_917] : memref<1000x128xf32, #tpu.memory_space<vmem>>, vector<1x128xf32>
    %c224_i32_918 = arith.constant 224 : i32
    %1688 = arith.addi %0, %c224_i32_918 : i32
    %c1_i32_919 = arith.constant 1 : i32
    %1689 = arith.addi %1688, %c1_i32_919 : i32
    %c383_i32_920 = arith.constant 383 : i32
    %1690 = arith.minsi %1689, %c383_i32_920 : i32
    %1691 = arith.index_cast %1690 : i32 to index
    %1692 = memref.load %arg1[%1691] : memref<384xi32, #tpu.memory_space<smem>>
    %1693 = arith.index_cast %1692 : i32 to index
    %c0_921 = arith.constant 0 : index
    %1694 = vector.load %arg2[%1693, %c0_921] : memref<1000x128xf32, #tpu.memory_space<vmem>>, vector<1x128xf32>
    %c224_i32_922 = arith.constant 224 : i32
    %1695 = arith.addi %0, %c224_i32_922 : i32
    %c2_i32_923 = arith.constant 2 : i32
    %1696 = arith.addi %1695, %c2_i32_923 : i32
    %c383_i32_924 = arith.constant 383 : i32
    %1697 = arith.minsi %1696, %c383_i32_924 : i32
    %1698 = arith.index_cast %1697 : i32 to index
    %1699 = memref.load %arg1[%1698] : memref<384xi32, #tpu.memory_space<smem>>
    %1700 = arith.index_cast %1699 : i32 to index
    %c0_925 = arith.constant 0 : index
    %1701 = vector.load %arg2[%1700, %c0_925] : memref<1000x128xf32, #tpu.memory_space<vmem>>, vector<1x128xf32>
    %c224_i32_926 = arith.constant 224 : i32
    %1702 = arith.addi %0, %c224_i32_926 : i32
    %c3_i32_927 = arith.constant 3 : i32
    %1703 = arith.addi %1702, %c3_i32_927 : i32
    %c383_i32_928 = arith.constant 383 : i32
    %1704 = arith.minsi %1703, %c383_i32_928 : i32
    %1705 = arith.index_cast %1704 : i32 to index
    %1706 = memref.load %arg1[%1705] : memref<384xi32, #tpu.memory_space<smem>>
    %1707 = arith.index_cast %1706 : i32 to index
    %c0_929 = arith.constant 0 : index
    %1708 = vector.load %arg2[%1707, %c0_929] : memref<1000x128xf32, #tpu.memory_space<vmem>>, vector<1x128xf32>
    %c224_i32_930 = arith.constant 224 : i32
    %1709 = arith.addi %0, %c224_i32_930 : i32
    %c4_i32_931 = arith.constant 4 : i32
    %1710 = arith.addi %1709, %c4_i32_931 : i32
    %c383_i32_932 = arith.constant 383 : i32
    %1711 = arith.minsi %1710, %c383_i32_932 : i32
    %1712 = arith.index_cast %1711 : i32 to index
    %1713 = memref.load %arg1[%1712] : memref<384xi32, #tpu.memory_space<smem>>
    %1714 = arith.index_cast %1713 : i32 to index
    %c0_933 = arith.constant 0 : index
    %1715 = vector.load %arg2[%1714, %c0_933] : memref<1000x128xf32, #tpu.memory_space<vmem>>, vector<1x128xf32>
    %c224_i32_934 = arith.constant 224 : i32
    %1716 = arith.addi %0, %c224_i32_934 : i32
    %c5_i32_935 = arith.constant 5 : i32
    %1717 = arith.addi %1716, %c5_i32_935 : i32
    %c383_i32_936 = arith.constant 383 : i32
    %1718 = arith.minsi %1717, %c383_i32_936 : i32
    %1719 = arith.index_cast %1718 : i32 to index
    %1720 = memref.load %arg1[%1719] : memref<384xi32, #tpu.memory_space<smem>>
    %1721 = arith.index_cast %1720 : i32 to index
    %c0_937 = arith.constant 0 : index
    %1722 = vector.load %arg2[%1721, %c0_937] : memref<1000x128xf32, #tpu.memory_space<vmem>>, vector<1x128xf32>
    %c224_i32_938 = arith.constant 224 : i32
    %1723 = arith.addi %0, %c224_i32_938 : i32
    %c6_i32_939 = arith.constant 6 : i32
    %1724 = arith.addi %1723, %c6_i32_939 : i32
    %c383_i32_940 = arith.constant 383 : i32
    %1725 = arith.minsi %1724, %c383_i32_940 : i32
    %1726 = arith.index_cast %1725 : i32 to index
    %1727 = memref.load %arg1[%1726] : memref<384xi32, #tpu.memory_space<smem>>
    %1728 = arith.index_cast %1727 : i32 to index
    %c0_941 = arith.constant 0 : index
    %1729 = vector.load %arg2[%1728, %c0_941] : memref<1000x128xf32, #tpu.memory_space<vmem>>, vector<1x128xf32>
    %c224_i32_942 = arith.constant 224 : i32
    %1730 = arith.addi %0, %c224_i32_942 : i32
    %c7_i32_943 = arith.constant 7 : i32
    %1731 = arith.addi %1730, %c7_i32_943 : i32
    %c383_i32_944 = arith.constant 383 : i32
    %1732 = arith.minsi %1731, %c383_i32_944 : i32
    %1733 = arith.index_cast %1732 : i32 to index
    %1734 = memref.load %arg1[%1733] : memref<384xi32, #tpu.memory_space<smem>>
    %1735 = arith.index_cast %1734 : i32 to index
    %c0_945 = arith.constant 0 : index
    %1736 = vector.load %arg2[%1735, %c0_945] : memref<1000x128xf32, #tpu.memory_space<vmem>>, vector<1x128xf32>
    %1737 = tpu.concatenate %1687, %1694, %1701, %1708, %1715, %1722, %1729, %1736 in 0 : vector<1x128xf32>, vector<1x128xf32>, vector<1x128xf32>, vector<1x128xf32>, vector<1x128xf32>, vector<1x128xf32>, vector<1x128xf32>, vector<1x128xf32> -> vector<8x128xf32>
    %cst_946 = arith.constant 11.3137083 : f32
    %1738 = vector.broadcast %cst_946 : f32 to vector<8x128xf32>
    %1739 = arith.mulf %1737, %1738 : vector<8x128xf32>
    %c224 = arith.constant 224 : index
    %c0_947 = arith.constant 0 : index
    %1740 = vector.load %arg3[%c224, %c0_947] : memref<256x128xf32, #tpu.memory_space<vmem>>, vector<8x128xf32>
    tpu.vector_store %arg3[%c224, %c0_947], %1739 {strides = array<i32>} : memref<256x128xf32, #tpu.memory_space<vmem>>, vector<8x128xf32>,
    %c232_i32 = arith.constant 232 : i32
    %1741 = arith.addi %0, %c232_i32 : i32
    %c0_i32_948 = arith.constant 0 : i32
    %1742 = arith.addi %1741, %c0_i32_948 : i32
    %c383_i32_949 = arith.constant 383 : i32
    %1743 = arith.minsi %1742, %c383_i32_949 : i32
    %1744 = arith.index_cast %1743 : i32 to index
    %1745 = memref.load %arg1[%1744] : memref<384xi32, #tpu.memory_space<smem>>
    %1746 = arith.index_cast %1745 : i32 to index
    %c0_950 = arith.constant 0 : index
    %1747 = vector.load %arg2[%1746, %c0_950] : memref<1000x128xf32, #tpu.memory_space<vmem>>, vector<1x128xf32>
    %c232_i32_951 = arith.constant 232 : i32
    %1748 = arith.addi %0, %c232_i32_951 : i32
    %c1_i32_952 = arith.constant 1 : i32
    %1749 = arith.addi %1748, %c1_i32_952 : i32
    %c383_i32_953 = arith.constant 383 : i32
    %1750 = arith.minsi %1749, %c383_i32_953 : i32
    %1751 = arith.index_cast %1750 : i32 to index
    %1752 = memref.load %arg1[%1751] : memref<384xi32, #tpu.memory_space<smem>>
    %1753 = arith.index_cast %1752 : i32 to index
    %c0_954 = arith.constant 0 : index
    %1754 = vector.load %arg2[%1753, %c0_954] : memref<1000x128xf32, #tpu.memory_space<vmem>>, vector<1x128xf32>
    %c232_i32_955 = arith.constant 232 : i32
    %1755 = arith.addi %0, %c232_i32_955 : i32
    %c2_i32_956 = arith.constant 2 : i32
    %1756 = arith.addi %1755, %c2_i32_956 : i32
    %c383_i32_957 = arith.constant 383 : i32
    %1757 = arith.minsi %1756, %c383_i32_957 : i32
    %1758 = arith.index_cast %1757 : i32 to index
    %1759 = memref.load %arg1[%1758] : memref<384xi32, #tpu.memory_space<smem>>
    %1760 = arith.index_cast %1759 : i32 to index
    %c0_958 = arith.constant 0 : index
    %1761 = vector.load %arg2[%1760, %c0_958] : memref<1000x128xf32, #tpu.memory_space<vmem>>, vector<1x128xf32>
    %c232_i32_959 = arith.constant 232 : i32
    %1762 = arith.addi %0, %c232_i32_959 : i32
    %c3_i32_960 = arith.constant 3 : i32
    %1763 = arith.addi %1762, %c3_i32_960 : i32
    %c383_i32_961 = arith.constant 383 : i32
    %1764 = arith.minsi %1763, %c383_i32_961 : i32
    %1765 = arith.index_cast %1764 : i32 to index
    %1766 = memref.load %arg1[%1765] : memref<384xi32, #tpu.memory_space<smem>>
    %1767 = arith.index_cast %1766 : i32 to index
    %c0_962 = arith.constant 0 : index
    %1768 = vector.load %arg2[%1767, %c0_962] : memref<1000x128xf32, #tpu.memory_space<vmem>>, vector<1x128xf32>
    %c232_i32_963 = arith.constant 232 : i32
    %1769 = arith.addi %0, %c232_i32_963 : i32
    %c4_i32_964 = arith.constant 4 : i32
    %1770 = arith.addi %1769, %c4_i32_964 : i32
    %c383_i32_965 = arith.constant 383 : i32
    %1771 = arith.minsi %1770, %c383_i32_965 : i32
    %1772 = arith.index_cast %1771 : i32 to index
    %1773 = memref.load %arg1[%1772] : memref<384xi32, #tpu.memory_space<smem>>
    %1774 = arith.index_cast %1773 : i32 to index
    %c0_966 = arith.constant 0 : index
    %1775 = vector.load %arg2[%1774, %c0_966] : memref<1000x128xf32, #tpu.memory_space<vmem>>, vector<1x128xf32>
    %c232_i32_967 = arith.constant 232 : i32
    %1776 = arith.addi %0, %c232_i32_967 : i32
    %c5_i32_968 = arith.constant 5 : i32
    %1777 = arith.addi %1776, %c5_i32_968 : i32
    %c383_i32_969 = arith.constant 383 : i32
    %1778 = arith.minsi %1777, %c383_i32_969 : i32
    %1779 = arith.index_cast %1778 : i32 to index
    %1780 = memref.load %arg1[%1779] : memref<384xi32, #tpu.memory_space<smem>>
    %1781 = arith.index_cast %1780 : i32 to index
    %c0_970 = arith.constant 0 : index
    %1782 = vector.load %arg2[%1781, %c0_970] : memref<1000x128xf32, #tpu.memory_space<vmem>>, vector<1x128xf32>
    %c232_i32_971 = arith.constant 232 : i32
    %1783 = arith.addi %0, %c232_i32_971 : i32
    %c6_i32_972 = arith.constant 6 : i32
    %1784 = arith.addi %1783, %c6_i32_972 : i32
    %c383_i32_973 = arith.constant 383 : i32
    %1785 = arith.minsi %1784, %c383_i32_973 : i32
    %1786 = arith.index_cast %1785 : i32 to index
    %1787 = memref.load %arg1[%1786] : memref<384xi32, #tpu.memory_space<smem>>
    %1788 = arith.index_cast %1787 : i32 to index
    %c0_974 = arith.constant 0 : index
    %1789 = vector.load %arg2[%1788, %c0_974] : memref<1000x128xf32, #tpu.memory_space<vmem>>, vector<1x128xf32>
    %c232_i32_975 = arith.constant 232 : i32
    %1790 = arith.addi %0, %c232_i32_975 : i32
    %c7_i32_976 = arith.constant 7 : i32
    %1791 = arith.addi %1790, %c7_i32_976 : i32
    %c383_i32_977 = arith.constant 383 : i32
    %1792 = arith.minsi %1791, %c383_i32_977 : i32
    %1793 = arith.index_cast %1792 : i32 to index
    %1794 = memref.load %arg1[%1793] : memref<384xi32, #tpu.memory_space<smem>>
    %1795 = arith.index_cast %1794 : i32 to index
    %c0_978 = arith.constant 0 : index
    %1796 = vector.load %arg2[%1795, %c0_978] : memref<1000x128xf32, #tpu.memory_space<vmem>>, vector<1x128xf32>
    %1797 = tpu.concatenate %1747, %1754, %1761, %1768, %1775, %1782, %1789, %1796 in 0 : vector<1x128xf32>, vector<1x128xf32>, vector<1x128xf32>, vector<1x128xf32>, vector<1x128xf32>, vector<1x128xf32>, vector<1x128xf32>, vector<1x128xf32> -> vector<8x128xf32>
    %cst_979 = arith.constant 11.3137083 : f32
    %1798 = vector.broadcast %cst_979 : f32 to vector<8x128xf32>
    %1799 = arith.mulf %1797, %1798 : vector<8x128xf32>
    %c232 = arith.constant 232 : index
    %c0_980 = arith.constant 0 : index
    %1800 = vector.load %arg3[%c232, %c0_980] : memref<256x128xf32, #tpu.memory_space<vmem>>, vector<8x128xf32>
    tpu.vector_store %arg3[%c232, %c0_980], %1799 {strides = array<i32>} : memref<256x128xf32, #tpu.memory_space<vmem>>, vector<8x128xf32>,
    %c240_i32 = arith.constant 240 : i32
    %1801 = arith.addi %0, %c240_i32 : i32
    %c0_i32_981 = arith.constant 0 : i32
    %1802 = arith.addi %1801, %c0_i32_981 : i32
    %c383_i32_982 = arith.constant 383 : i32
    %1803 = arith.minsi %1802, %c383_i32_982 : i32
    %1804 = arith.index_cast %1803 : i32 to index
    %1805 = memref.load %arg1[%1804] : memref<384xi32, #tpu.memory_space<smem>>
    %1806 = arith.index_cast %1805 : i32 to index
    %c0_983 = arith.constant 0 : index
    %1807 = vector.load %arg2[%1806, %c0_983] : memref<1000x128xf32, #tpu.memory_space<vmem>>, vector<1x128xf32>
    %c240_i32_984 = arith.constant 240 : i32
    %1808 = arith.addi %0, %c240_i32_984 : i32
    %c1_i32_985 = arith.constant 1 : i32
    %1809 = arith.addi %1808, %c1_i32_985 : i32
    %c383_i32_986 = arith.constant 383 : i32
    %1810 = arith.minsi %1809, %c383_i32_986 : i32
    %1811 = arith.index_cast %1810 : i32 to index
    %1812 = memref.load %arg1[%1811] : memref<384xi32, #tpu.memory_space<smem>>
    %1813 = arith.index_cast %1812 : i32 to index
    %c0_987 = arith.constant 0 : index
    %1814 = vector.load %arg2[%1813, %c0_987] : memref<1000x128xf32, #tpu.memory_space<vmem>>, vector<1x128xf32>
    %c240_i32_988 = arith.constant 240 : i32
    %1815 = arith.addi %0, %c240_i32_988 : i32
    %c2_i32_989 = arith.constant 2 : i32
    %1816 = arith.addi %1815, %c2_i32_989 : i32
    %c383_i32_990 = arith.constant 383 : i32
    %1817 = arith.minsi %1816, %c383_i32_990 : i32
    %1818 = arith.index_cast %1817 : i32 to index
    %1819 = memref.load %arg1[%1818] : memref<384xi32, #tpu.memory_space<smem>>
    %1820 = arith.index_cast %1819 : i32 to index
    %c0_991 = arith.constant 0 : index
    %1821 = vector.load %arg2[%1820, %c0_991] : memref<1000x128xf32, #tpu.memory_space<vmem>>, vector<1x128xf32>
    %c240_i32_992 = arith.constant 240 : i32
    %1822 = arith.addi %0, %c240_i32_992 : i32
    %c3_i32_993 = arith.constant 3 : i32
    %1823 = arith.addi %1822, %c3_i32_993 : i32
    %c383_i32_994 = arith.constant 383 : i32
    %1824 = arith.minsi %1823, %c383_i32_994 : i32
    %1825 = arith.index_cast %1824 : i32 to index
    %1826 = memref.load %arg1[%1825] : memref<384xi32, #tpu.memory_space<smem>>
    %1827 = arith.index_cast %1826 : i32 to index
    %c0_995 = arith.constant 0 : index
    %1828 = vector.load %arg2[%1827, %c0_995] : memref<1000x128xf32, #tpu.memory_space<vmem>>, vector<1x128xf32>
    %c240_i32_996 = arith.constant 240 : i32
    %1829 = arith.addi %0, %c240_i32_996 : i32
    %c4_i32_997 = arith.constant 4 : i32
    %1830 = arith.addi %1829, %c4_i32_997 : i32
    %c383_i32_998 = arith.constant 383 : i32
    %1831 = arith.minsi %1830, %c383_i32_998 : i32
    %1832 = arith.index_cast %1831 : i32 to index
    %1833 = memref.load %arg1[%1832] : memref<384xi32, #tpu.memory_space<smem>>
    %1834 = arith.index_cast %1833 : i32 to index
    %c0_999 = arith.constant 0 : index
    %1835 = vector.load %arg2[%1834, %c0_999] : memref<1000x128xf32, #tpu.memory_space<vmem>>, vector<1x128xf32>
    %c240_i32_1000 = arith.constant 240 : i32
    %1836 = arith.addi %0, %c240_i32_1000 : i32
    %c5_i32_1001 = arith.constant 5 : i32
    %1837 = arith.addi %1836, %c5_i32_1001 : i32
    %c383_i32_1002 = arith.constant 383 : i32
    %1838 = arith.minsi %1837, %c383_i32_1002 : i32
    %1839 = arith.index_cast %1838 : i32 to index
    %1840 = memref.load %arg1[%1839] : memref<384xi32, #tpu.memory_space<smem>>
    %1841 = arith.index_cast %1840 : i32 to index
    %c0_1003 = arith.constant 0 : index
    %1842 = vector.load %arg2[%1841, %c0_1003] : memref<1000x128xf32, #tpu.memory_space<vmem>>, vector<1x128xf32>
    %c240_i32_1004 = arith.constant 240 : i32
    %1843 = arith.addi %0, %c240_i32_1004 : i32
    %c6_i32_1005 = arith.constant 6 : i32
    %1844 = arith.addi %1843, %c6_i32_1005 : i32
    %c383_i32_1006 = arith.constant 383 : i32
    %1845 = arith.minsi %1844, %c383_i32_1006 : i32
    %1846 = arith.index_cast %1845 : i32 to index
    %1847 = memref.load %arg1[%1846] : memref<384xi32, #tpu.memory_space<smem>>
    %1848 = arith.index_cast %1847 : i32 to index
    %c0_1007 = arith.constant 0 : index
    %1849 = vector.load %arg2[%1848, %c0_1007] : memref<1000x128xf32, #tpu.memory_space<vmem>>, vector<1x128xf32>
    %c240_i32_1008 = arith.constant 240 : i32
    %1850 = arith.addi %0, %c240_i32_1008 : i32
    %c7_i32_1009 = arith.constant 7 : i32
    %1851 = arith.addi %1850, %c7_i32_1009 : i32
    %c383_i32_1010 = arith.constant 383 : i32
    %1852 = arith.minsi %1851, %c383_i32_1010 : i32
    %1853 = arith.index_cast %1852 : i32 to index
    %1854 = memref.load %arg1[%1853] : memref<384xi32, #tpu.memory_space<smem>>
    %1855 = arith.index_cast %1854 : i32 to index
    %c0_1011 = arith.constant 0 : index
    %1856 = vector.load %arg2[%1855, %c0_1011] : memref<1000x128xf32, #tpu.memory_space<vmem>>, vector<1x128xf32>
    %1857 = tpu.concatenate %1807, %1814, %1821, %1828, %1835, %1842, %1849, %1856 in 0 : vector<1x128xf32>, vector<1x128xf32>, vector<1x128xf32>, vector<1x128xf32>, vector<1x128xf32>, vector<1x128xf32>, vector<1x128xf32>, vector<1x128xf32> -> vector<8x128xf32>
    %cst_1012 = arith.constant 11.3137083 : f32
    %1858 = vector.broadcast %cst_1012 : f32 to vector<8x128xf32>
    %1859 = arith.mulf %1857, %1858 : vector<8x128xf32>
    %c240 = arith.constant 240 : index
    %c0_1013 = arith.constant 0 : index
    %1860 = vector.load %arg3[%c240, %c0_1013] : memref<256x128xf32, #tpu.memory_space<vmem>>, vector<8x128xf32>
    tpu.vector_store %arg3[%c240, %c0_1013], %1859 {strides = array<i32>} : memref<256x128xf32, #tpu.memory_space<vmem>>, vector<8x128xf32>,
    %c248_i32 = arith.constant 248 : i32
    %1861 = arith.addi %0, %c248_i32 : i32
    %c0_i32_1014 = arith.constant 0 : i32
    %1862 = arith.addi %1861, %c0_i32_1014 : i32
    %c383_i32_1015 = arith.constant 383 : i32
    %1863 = arith.minsi %1862, %c383_i32_1015 : i32
    %1864 = arith.index_cast %1863 : i32 to index
    %1865 = memref.load %arg1[%1864] : memref<384xi32, #tpu.memory_space<smem>>
    %1866 = arith.index_cast %1865 : i32 to index
    %c0_1016 = arith.constant 0 : index
    %1867 = vector.load %arg2[%1866, %c0_1016] : memref<1000x128xf32, #tpu.memory_space<vmem>>, vector<1x128xf32>
    %c248_i32_1017 = arith.constant 248 : i32
    %1868 = arith.addi %0, %c248_i32_1017 : i32
    %c1_i32_1018 = arith.constant 1 : i32
    %1869 = arith.addi %1868, %c1_i32_1018 : i32
    %c383_i32_1019 = arith.constant 383 : i32
    %1870 = arith.minsi %1869, %c383_i32_1019 : i32
    %1871 = arith.index_cast %1870 : i32 to index
    %1872 = memref.load %arg1[%1871] : memref<384xi32, #tpu.memory_space<smem>>
    %1873 = arith.index_cast %1872 : i32 to index
    %c0_1020 = arith.constant 0 : index
    %1874 = vector.load %arg2[%1873, %c0_1020] : memref<1000x128xf32, #tpu.memory_space<vmem>>, vector<1x128xf32>
    %c248_i32_1021 = arith.constant 248 : i32
    %1875 = arith.addi %0, %c248_i32_1021 : i32
    %c2_i32_1022 = arith.constant 2 : i32
    %1876 = arith.addi %1875, %c2_i32_1022 : i32
    %c383_i32_1023 = arith.constant 383 : i32
    %1877 = arith.minsi %1876, %c383_i32_1023 : i32
    %1878 = arith.index_cast %1877 : i32 to index
    %1879 = memref.load %arg1[%1878] : memref<384xi32, #tpu.memory_space<smem>>
    %1880 = arith.index_cast %1879 : i32 to index
    %c0_1024 = arith.constant 0 : index
    %1881 = vector.load %arg2[%1880, %c0_1024] : memref<1000x128xf32, #tpu.memory_space<vmem>>, vector<1x128xf32>
    %c248_i32_1025 = arith.constant 248 : i32
    %1882 = arith.addi %0, %c248_i32_1025 : i32
    %c3_i32_1026 = arith.constant 3 : i32
    %1883 = arith.addi %1882, %c3_i32_1026 : i32
    %c383_i32_1027 = arith.constant 383 : i32
    %1884 = arith.minsi %1883, %c383_i32_1027 : i32
    %1885 = arith.index_cast %1884 : i32 to index
    %1886 = memref.load %arg1[%1885] : memref<384xi32, #tpu.memory_space<smem>>
    %1887 = arith.index_cast %1886 : i32 to index
    %c0_1028 = arith.constant 0 : index
    %1888 = vector.load %arg2[%1887, %c0_1028] : memref<1000x128xf32, #tpu.memory_space<vmem>>, vector<1x128xf32>
    %c248_i32_1029 = arith.constant 248 : i32
    %1889 = arith.addi %0, %c248_i32_1029 : i32
    %c4_i32_1030 = arith.constant 4 : i32
    %1890 = arith.addi %1889, %c4_i32_1030 : i32
    %c383_i32_1031 = arith.constant 383 : i32
    %1891 = arith.minsi %1890, %c383_i32_1031 : i32
    %1892 = arith.index_cast %1891 : i32 to index
    %1893 = memref.load %arg1[%1892] : memref<384xi32, #tpu.memory_space<smem>>
    %1894 = arith.index_cast %1893 : i32 to index
    %c0_1032 = arith.constant 0 : index
    %1895 = vector.load %arg2[%1894, %c0_1032] : memref<1000x128xf32, #tpu.memory_space<vmem>>, vector<1x128xf32>
    %c248_i32_1033 = arith.constant 248 : i32
    %1896 = arith.addi %0, %c248_i32_1033 : i32
    %c5_i32_1034 = arith.constant 5 : i32
    %1897 = arith.addi %1896, %c5_i32_1034 : i32
    %c383_i32_1035 = arith.constant 383 : i32
    %1898 = arith.minsi %1897, %c383_i32_1035 : i32
    %1899 = arith.index_cast %1898 : i32 to index
    %1900 = memref.load %arg1[%1899] : memref<384xi32, #tpu.memory_space<smem>>
    %1901 = arith.index_cast %1900 : i32 to index
    %c0_1036 = arith.constant 0 : index
    %1902 = vector.load %arg2[%1901, %c0_1036] : memref<1000x128xf32, #tpu.memory_space<vmem>>, vector<1x128xf32>
    %c248_i32_1037 = arith.constant 248 : i32
    %1903 = arith.addi %0, %c248_i32_1037 : i32
    %c6_i32_1038 = arith.constant 6 : i32
    %1904 = arith.addi %1903, %c6_i32_1038 : i32
    %c383_i32_1039 = arith.constant 383 : i32
    %1905 = arith.minsi %1904, %c383_i32_1039 : i32
    %1906 = arith.index_cast %1905 : i32 to index
    %1907 = memref.load %arg1[%1906] : memref<384xi32, #tpu.memory_space<smem>>
    %1908 = arith.index_cast %1907 : i32 to index
    %c0_1040 = arith.constant 0 : index
    %1909 = vector.load %arg2[%1908, %c0_1040] : memref<1000x128xf32, #tpu.memory_space<vmem>>, vector<1x128xf32>
    %c248_i32_1041 = arith.constant 248 : i32
    %1910 = arith.addi %0, %c248_i32_1041 : i32
    %c7_i32_1042 = arith.constant 7 : i32
    %1911 = arith.addi %1910, %c7_i32_1042 : i32
    %c383_i32_1043 = arith.constant 383 : i32
    %1912 = arith.minsi %1911, %c383_i32_1043 : i32
    %1913 = arith.index_cast %1912 : i32 to index
    %1914 = memref.load %arg1[%1913] : memref<384xi32, #tpu.memory_space<smem>>
    %1915 = arith.index_cast %1914 : i32 to index
    %c0_1044 = arith.constant 0 : index
    %1916 = vector.load %arg2[%1915, %c0_1044] : memref<1000x128xf32, #tpu.memory_space<vmem>>, vector<1x128xf32>
    %1917 = tpu.concatenate %1867, %1874, %1881, %1888, %1895, %1902, %1909, %1916 in 0 : vector<1x128xf32>, vector<1x128xf32>, vector<1x128xf32>, vector<1x128xf32>, vector<1x128xf32>, vector<1x128xf32>, vector<1x128xf32>, vector<1x128xf32> -> vector<8x128xf32>
    %cst_1045 = arith.constant 11.3137083 : f32
    %1918 = vector.broadcast %cst_1045 : f32 to vector<8x128xf32>
    %1919 = arith.mulf %1917, %1918 : vector<8x128xf32>
    %c248 = arith.constant 248 : index
    %c0_1046 = arith.constant 0 : index
    %1920 = vector.load %arg3[%c248, %c0_1046] : memref<256x128xf32, #tpu.memory_space<vmem>>, vector<8x128xf32>
    tpu.vector_store %arg3[%c248, %c0_1046], %1919 {strides = array<i32>} : memref<256x128xf32, #tpu.memory_space<vmem>>, vector<8x128xf32>,
    return
  }
  func.func @transform_0(%arg0: i32, %arg1: memref<384xi32, #tpu.memory_space<smem>>) -> (i32, i32) {
    %c0_i32 = arith.constant 0 : i32
    %c0_i32_0 = arith.constant 0 : i32
    %c0_i32_1 = arith.constant 0 : i32
    return %c0_i32, %c0_i32_0 : i32, i32
  }
  func.func @transform_1(%arg0: i32, %arg1: memref<384xi32, #tpu.memory_space<smem>>) -> (i32, i32) {
    %c0_i32 = arith.constant 0 : i32
    %c0_i32_0 = arith.constant 0 : i32
    return %arg0, %c0_i32 : i32, i32
  }
}

</mosaic_0001>

<bundles_post_ra>
// kernel: input_embeddings.1
= control target key start
LH: loop header
LB: loop body
LE: loop exit
PB: predicated region body
PF: predicated region fallthrough
CT: control target
= control target key end

     0   :  { %s3893_s0 = inlined_call_operand.vmem [shape: s32[384], index: 0, kind: input, shape index: {}]   ;;  %s3894_s1 = inlined_call_operand.hbm [shape: f32[1000,128], index: 1, kind: input, shape index: {}]   ;;  %s3895_s2 = inlined_call_operand.hbm [shape: f32[384,128], index: 2, kind: output, shape index: {}]  }
   0x1   :  { %s7_s11 = sshll.u32 %s3893_s0, 4  ;;  %s8_s11 = int_to_ptr.vmem [resolvable:$true] %s7_s11 }
   0x2   :  { %s3034_s12 = scalar_lea.vmem %s8_s11, 48  ;;  %s3038_s13 = scalar_lea.vmem %s8_s11, 64 }
   0x3   :  { %p3035_p0 = scmp.ne.s32.totalorder %s8_s11, %s3034_s12  ;;  %p3039_p1 = scmp.lt.s32.totalorder %s8_s11, %s8_s11 }
   0x4   :  { %p3040_p2 = scmp.lt.s32.totalorder %s3038_s13, %s3034_s12 }
   0x6   :  { %p3041_p3 = por %p3040_p2, %p3039_p1 }
   0x8   :  { %p3042_p4 = pnand %p3041_p3, %p3035_p0 }
   0xa   :  { %3045 = shalt.err (!%p3042_p4)  }
   0xb   :  { %s3144_s14 = smov [#allocation3]  }
   0xc   :  { %10 = dma.vmem_to_smem %s8_s11, 48, %s3144_s14, [#allocation2] }
   0xd   :  { %3118 = dma.done.wait [#allocation2], 48 }
   0xe   :  { %3119 = vsyncadd [#allocation2], 4294967248 }
   0xf   :  { %12 = sfence }
  0x10   :  { %13 = vsyncpa [#allocation5], 0 }
  0x11   :  { %14 = vsyncpa [#allocation6], 0 }
  0x12   :  { %16 = vsyncpa [#allocation6 + $0x1], 0  ;;  %s3169_s15 = smov 0   ;;  %s3171_s0 = smov 0  }
  0x13   :  { %s3173_s16 = smov 0   ;;  %s3175_s17 = smov 0  }
  0x14 LB: > { %s3190_s18 = sadd.s32 4294967295, %s3142_s17   ;;  %s2963_s19 = sadd.s32 4294967294, %s3142_s17   ;;  %s3142_s17 = sphi %s3175_s17, %s3910_s17   ;;  %s3138_s16 = sphi %s3173_s16, %s3909_s16   ;;  %s3134_s0 = sphi %s3171_s0, %s3908_s0   ;;  %s3130_s15 = sphi %s3169_s15, %s3907_s15  }
  0x15   : > { %s3194_s20 = sadd.s32 1, %s3142_s17   ;;  %s50_s21 = sadd.s32 1, %s3138_s16 }
  0x16   : > { %s47_s22 = ssub.s32 %s3142_s17, %s3194_s20  ;;  %p60_p5 = scmp.ne.s32.totalorder %s3138_s16, %s3134_s0 }
  0x17   : > { %p48_p6 = scmp.eq.s32.totalorder %s47_s22, 0  ;;  %p61_p7 = scmp.eq.s32.totalorder %s3190_s18, 1 }
  0x18   : > { %p66_p8 = scmp.ne.s32.totalorder %s3134_s0, %s3130_s15  ;;  %p67_p9 = scmp.eq.s32.totalorder %s2963_s19, 1 }
  0x19   : > { %s3205_s23 = scalar_select %p48_p6, %s3138_s16, %s50_s21  }
  0x1a   : > { %p3207_p10 = por %p61_p7, %p60_p5  ;;  %p3211_p11 = por %p67_p9, %p66_p8 }
  0x1b   : > { %p2964_p12 = scmp.ge.s32.totalorder %s3142_s17, 1  ;;  %p74_p13 = scmp.lt.s32.totalorder %s3142_s17, 3 }
  0x1c   : > { %s3898_s24 = scalar_select %p3207_p10, 1, 0 }
  0x1d   : > { %s3899_s25 = scalar_select %p3211_p11, 1, 0 }
  0x1e   : > { %p3896_p0 = scmp.eq.s32.totalorder %s3190_s18, 0  ;;  %p3218_p1 = pnand %p2964_p12, %p74_p13 }
  0x1f   : > { %s3145_s27 = smov [#allocation4]   ;;  %s3046_s4 = scalar_lea.hbm %s3894_s1, 16000 }
  0x20   : > { %s3900_s26 = scalar_select %p3218_p1, 1, 0 }
  0x21   : > { %s86_s28 = sshll.u32 %s3145_s27, 4  ;;  %p2985_p2 = pneg %p3218_p1  ;;  %s87_s28 = int_to_ptr.vmem [resolvable:$true] %s86_s28 }
  0x22   : > { %p3047_p4 = scmp.ne.s32.totalorder %s3894_s1, %s3046_s4  ;;  %p3053_p8 = scmp.lt.u32.totalorder %s3046_s4, %s3894_s1 }
  0x23   : > { %p3226_p3 = pnand %p3896_p0, %p2985_p2 }
  0x25   : > { %p3048_p5 = pneg %p3226_p3 }
  0x27   : > { %p3049_p6 = pnand %p3048_p5, %p3047_p4 }
  0x29   : > { %p3050_p7 = pneg %p3049_p6 }
  0x2b   : > { %p3055_p9 = pnand %p3053_p8, %p3050_p7 }
  0x2d   : > { %3058 = shalt.err (!%p3055_p9)
}
  0x2e   : > { %s3059_s9 = scalar_lea.vmem %s87_s28, 16000  ;;  %p3067_p0 = scmp.lt.s32.totalorder %s87_s28, %s87_s28 }
  0x2f   : > { %p3060_p12 = scmp.ne.s32.totalorder %s87_s28, %s3059_s9  ;;  %p3068_p11 = scmp.lt.s32.totalorder %s3059_s9, %s3059_s9 }
  0x31   : > { %p3062_p13 = pnand %p3060_p12, %p3048_p5  ;;  %p3069_p10 = por %p3068_p11, %p3067_p0 }
  0x33   : > { %p3063_p2 = pneg %p3062_p13 }
  0x35   : > { %p3070_p1 = pnand %p3069_p10, %p3063_p2 }
  0x37   : > { %3073 = shalt.err (!%p3070_p1)
}
  0x38   : > { %s3146_s10 = smov 128   ;;  %s3147_s11 = smov 8  }
  0x39   : > { %2988 = dma.hbm_to_vmem [thread:$0]  (!%p3226_p3), %s3894_s1, 16000, %s87_s28, [#allocation5], %s3146_s10, %s3146_s10, %s3147_s11  }
  0x3a   : > { %p3902_p4 = scmp.ne.s32.totalorder %s3900_s26, 0 }
  0x3b   : > { %p3903_p6 = scmp.eq.s32.totalorder (!%p3902_p4), %s3190_s18, 0 }
  0x3c   : > { %102 = sbr.rel (%p3902_p4) target bundleno = 751 (0x2ef), region = 24 }
  0x43   : > { %3121 = dma.done.wait (%p3903_p6), [#allocation5], 16000   ;;  %p3904_p5 = pmov %p3903_p6 }
  0x44   : > { %s114_s14 = sand.u32 1, %s3134_s0   ;;  %s3254_s19 = sshll.u32 %s3190_s18, 8  ;;  %vm191_vm0 = vcmask 1040384   ;;  %vm193_vm1 = vcmask 1041408   ;;  %vm195_vm2 = vcmask 1042432   ;;  %vm197_vm3 = vcmask 1043456  }
  0x45   : > { %3123 = vsyncadd (%p3904_p5), [#allocation5], 4294951296  ;;  %s3258_s21 = sshll.u32 %s114_s14, 8  ;;  %p123_p10 = scmp.lt.s32.totalorder %s3254_s19, 383  ;;  %vm199_vm4 = vcmask 1044480   ;;  %vm201_vm5 = vcmask 1045504  }
  0x46   : > { %s128_s22 = sadd.s32 1, %s3254_s19  ;;  %s134_s27 = sadd.s32 2, %s3254_s19  ;;  %vm203_vm6 = vcmask 1046528  }
  0x47   : > { %s124_s26 = scalar_select %p123_p10, %s3254_s19, 383 }
  0x48   : > { %p129_p11 = scmp.lt.s32.totalorder %s128_s22, 383  ;;  %p135_p0 = scmp.lt.s32.totalorder %s134_s27, 383 }
  0x49   : > { %s125_s28 = sld [smem:[#allocation3 + %s124_s26]]  ;;  %s140_s30 = sadd.s32 3, %s3254_s19 }
  0x4a   : > { %s3912_s22 = smov (!%p129_p11, %s128_s22), 383  ;;  %s3914_s27 = smov (!%p135_p0, %s134_s27), 383 }
  0x4b   : > { %s131_s29 = sld [smem:[#allocation3 + %s3912_s22]]  ;;  %p141_p1 = scmp.lt.s32.totalorder %s140_s30, 383 }
  0x4c   : > { %s137_s3 = sld [smem:[#allocation3 + %s3914_s27]]  ;;  %s146_s4 = sadd.s32 4, %s3254_s19 }
  0x4d   : > { %s152_s5 = sadd.s32 5, %s3254_s19  ;;  %p147_p3 = scmp.lt.s32.totalorder %s146_s4, 383 }
  0x4e   : > { %s3916_s30 = smov (!%p141_p1, %s140_s30), 383  ;;  %p153_p7 = scmp.lt.s32.totalorder %s152_s5, 383 }
  0x4f   : > { %s3918_s4 = smov (!%p147_p3, %s146_s4), 383  ;;  %s143_s6 = sld [smem:[#allocation3 + %s3916_s30]] }
  0x50   : > { %s126_s7 = scalar_lea.vmem [#allocation4], %s125_s28  ;;  %s149_s9 = sld [smem:[#allocation3 + %s3918_s4]] }
  0x51   : > { %v127_v0 = vld [vmem:[%s126_s7] sm:$0x1]  ;;  %s132_s8 = scalar_lea.vmem [#allocation4], %s131_s29  ;;  %s158_s11 = sadd.s32 6, %s3254_s19 }
  0x52   : > { %v133_v1 = vld [vmem:[%s132_s8] sm:$0x1]  ;;  %s138_s10 = scalar_lea.vmem [#allocation4], %s137_s3  ;;  %p159_p8 = scmp.lt.s32.totalorder %s158_s11, 383 }
  0x53   : > { %v139_v2 = vld [vmem:[%s138_s10] sm:$0x1]  ;;  %v171_v3 = vrot.slane %v133_v1, 7  ;;  %s164_s12 = sadd.s32 7, %s3254_s19  ;;  %s3920_s5 = smov (!%p153_p7, %s152_s5), 383 }
  0x54   : > { %v174_v4 = vrot.slane %v139_v2, 6  ;;  %s3922_s11 = smov (!%p159_p8, %s158_s11), 383  ;;  %s155_s13 = sld [smem:[#allocation3 + %s3920_s5]] }
  0x55   : > { %v192_v5 = vsel %vm191_vm0, %v127_v0, %v171_v3  ;;  %s144_s22 = scalar_lea.vmem [#allocation4], %s143_s6  ;;  %s161_s26 = sld [smem:[#allocation3 + %s3922_s11]] }
  0x56   : > { %v145_v6 = vld [vmem:[%s144_s22] sm:$0x1]  ;;  %v194_v7 = vsel %vm193_vm1, %v192_v5, %v174_v4  ;;  %s150_s27 = scalar_lea.vmem [#allocation4], %s149_s9  ;;  %p165_p9 = scmp.lt.s32.totalorder %s164_s12, 383 }
  0x57   : > { %v151_v8 = vld [vmem:[%s150_s27] sm:$0x1]  ;;  %v177_v9 = vrot.slane %v145_v6, 5  ;;  %s207_s28 = sadd.s32 8, %s3254_s19  ;;  %s213_s29 = sadd.s32 9, %s3254_s19 }
  0x58   : > { %v180_v10 = vrot.slane %v151_v8, 4  ;;  %s3924_s12 = smov (!%p165_p9, %s164_s12), 383  ;;  %p208_p12 = scmp.lt.s32.totalorder %s207_s28, 383 }
  0x59   : > { %v196_v11 = vsel %vm195_vm2, %v194_v7, %v177_v9  ;;  %p214_p13 = scmp.lt.s32.totalorder %s213_s29, 383  ;;  %s167_s30 = sld [smem:[#allocation3 + %s3924_s12]] }
  0x5a   : > { %s156_s3 = scalar_lea.vmem [#allocation4], %s155_s13  ;;  %v198_v13 = vsel %vm197_vm3, %v196_v11, %v180_v10  ;;  %s219_s4 = sadd.s32 10, %s3254_s19 }
  0x5b   : > { %v157_v12 = vld [vmem:[%s156_s3] sm:$0x1]  ;;  %s162_s5 = scalar_lea.vmem [#allocation4], %s161_s26  ;;  %s3926_s28 = smov (!%p208_p12, %s207_s28), 383 }
  0x5c   : > { %v163_v14 = vld [vmem:[%s162_s5] sm:$0x1]  ;;  %v183_v15 = vrot.slane %v157_v12, 3  ;;  %s3928_s29 = smov (!%p214_p13, %s213_s29), 383  ;;  %s210_s6 = sld [smem:[#allocation3 + %s3926_s28]] }
  0x5d   : > { %v186_v16 = vrot.slane %v163_v14, 2  ;;  %p220_p2 = scmp.lt.s32.totalorder %s219_s4, 383  ;;  %s216_s7 = sld [smem:[#allocation3 + %s3928_s29]] }
  0x5e   : > { %v200_v17 = vsel %vm199_vm4, %v198_v13, %v183_v15  ;;  %s225_s8 = sadd.s32 11, %s3254_s19  ;;  %s231_s11 = sadd.s32 12, %s3254_s19 }
  0x5f   : > { %p226_p4 = scmp.lt.s32.totalorder %s225_s8, 383  ;;  %s168_s9 = scalar_lea.vmem [#allocation4], %s167_s30  ;;  %v202_v19 = vsel %vm201_vm5, %v200_v17, %v186_v16 }
  0x60   : > { %v169_v18 = vld [vmem:[%s168_s9] sm:$0x1]  ;;  %s3930_s4 = smov (!%p220_p2, %s219_s4), 383  ;;  %p232_p6 = scmp.lt.s32.totalorder %s231_s11, 383 }
  0x61   : > { %v189_v20 = vrot.slane %v169_v18, 1  ;;  %s3932_s8 = smov (!%p226_p4, %s225_s8), 383  ;;  %s222_s10 = sld [smem:[#allocation3 + %s3930_s4]] }
  0x62   : > { %s228_s12 = sld [smem:[#allocation3 + %s3932_s8]]  ;;  %s237_s22 = sadd.s32 13, %s3254_s19 }
  0x63   : > { %v204_v21 = vsel %vm203_vm6, %v202_v19, %v189_v20  ;;  %s217_s13 = scalar_lea.vmem [#allocation4], %s216_s7  ;;  %s243_s26 = sadd.s32 14, %s3254_s19 }
  0x64   : > { %v205_v22 = vmul.f32 11.313708, %v204_v21  ;;  %v218_v23 = vld [vmem:[%s217_s13] sm:$0x1]  ;;  %s3284_s27 = scalar_lea.vmem [#allocation7], %s3258_s21  ;;  %s3934_s11 = smov (!%p232_p6, %s231_s11), 383 }
  0x65   : > { %v256_v24 = vrot.slane %v218_v23, 7  ;;  %s211_s28 = scalar_lea.vmem [#allocation4], %s210_s6  ;;  %p238_p5 = scmp.lt.s32.totalorder %s237_s22, 383 }
  0x66   : > { %206 = vst [vmem:[%s3284_s27] sm:$0xff] %v205_v22  ;;  %v212_v25 = vld [vmem:[%s211_s28] sm:$0x1]  ;;  %p244_p10 = scmp.lt.s32.totalorder %s243_s26, 383  ;;  %s234_s29 = sld [smem:[#allocation3 + %s3934_s11]] }
  0x67   : > { %s223_s30 = scalar_lea.vmem [#allocation4], %s222_s10  ;;  %s249_s3 = sadd.s32 15, %s3254_s19  ;;  %v276_v29 = vsel %vm191_vm0, %v212_v25, %v256_v24 }
  0x68   : > { %v224_v26 = vld [vmem:[%s223_s30] sm:$0x1]  ;;  %s229_s4 = scalar_lea.vmem [#allocation4], %s228_s12  ;;  %s3936_s22 = smov (!%p238_p5, %s237_s22), 383 }
  0x69   : > { %v230_v27 = vld [vmem:[%s229_s4] sm:$0x1]  ;;  %v259_v28 = vrot.slane %v224_v26, 6  ;;  %s3938_s26 = smov (!%p244_p10, %s243_s26), 383  ;;  %s240_s21 = sld [smem:[#allocation3 + %s3936_s22]] }
  0x6a   : > { %p250_p11 = scmp.lt.s32.totalorder %s249_s3, 383  ;;  %v262_v30 = vrot.slane %v230_v27, 5  ;;  %s246_s5 = sld [smem:[#allocation3 + %s3938_s26]] }
  0x6b   : > { %v277_v31 = vsel %vm193_vm1, %v276_v29, %v259_v28  ;;  %s285_s6 = sadd.s32 16, %s3254_s19  ;;  %s291_s9 = sadd.s32 17, %s3254_s19 }
  0x6c   : > { %p286_p0 = scmp.lt.s32.totalorder %s285_s6, 383  ;;  %s235_s7 = scalar_lea.vmem [#allocation4], %s234_s29  ;;  %v278_v34 = vsel %vm195_vm2, %v277_v31, %v262_v30 }
  0x6d   : > { %v236_v32 = vld [vmem:[%s235_s7] sm:$0x1]  ;;  %s3940_s3 = smov (!%p250_p11, %s249_s3), 383  ;;  %p292_p1 = scmp.lt.s32.totalorder %s291_s9, 383 }
  0x6e   : > { %v265_v33 = vrot.slane %v236_v32, 4  ;;  %s3942_s6 = smov (!%p286_p0, %s285_s6), 383  ;;  %s252_s8 = sld [smem:[#allocation3 + %s3940_s3]] }
  0x6f   : > { %s3293_s10 = sld [smem:[#allocation3 + %s3942_s6]]  ;;  %s241_s11 = scalar_lea.vmem [#allocation4], %s240_s21 }
  0x70   : > { %v242_v35 = vld [vmem:[%s241_s11] sm:$0x1]  ;;  %v279_v36 = vsel %vm197_vm3, %v278_v34, %v265_v33  ;;  %s247_s12 = scalar_lea.vmem [#allocation4], %s246_s5  ;;  %s297_s13 = sadd.s32 18, %s3254_s19 }
  0x71   : > { %v248_v37 = vld [vmem:[%s247_s12] sm:$0x1]  ;;  %v268_v38 = vrot.slane %v242_v35, 3  ;;  %s303_s22 = sadd.s32 19, %s3254_s19  ;;  %s3944_s9 = smov (!%p292_p1, %s291_s9), 383 }
  0x72   : > { %v271_v39 = vrot.slane %v248_v37, 2  ;;  %p298_p3 = scmp.lt.s32.totalorder %s297_s13, 383  ;;  %p304_p7 = scmp.lt.s32.totalorder %s303_s22, 383 }
  0x73   : > { %v280_v40 = vsel %vm199_vm4, %v279_v36, %v268_v38  ;;  %s294_s26 = sld [smem:[#allocation3 + %s3944_s9]]  ;;  %s309_s29 = sadd.s32 20, %s3254_s19 }
  0x74   : > { %s253_s28 = scalar_lea.vmem [#allocation4], %s252_s8  ;;  %v281_v42 = vsel %vm201_vm5, %v280_v40, %v271_v39  ;;  %s3946_s13 = smov (!%p298_p3, %s297_s13), 383 }
  0x75   : > { %v254_v41 = vld [vmem:[%s253_s28] sm:$0x1]  ;;  %s3948_s22 = smov (!%p304_p7, %s303_s22), 383  ;;  %s300_s30 = sld [smem:[#allocation3 + %s3946_s13]] }
  0x76   : > { %v274_v43 = vrot.slane %v254_v41, 1  ;;  %p310_p8 = scmp.lt.s32.totalorder %s309_s29, 383  ;;  %s306_s3 = sld [smem:[#allocation3 + %s3948_s22]] }
  0x77   : > { %s315_s4 = sadd.s32 21, %s3254_s19  ;;  %s289_s5 = scalar_lea.vmem [#allocation4], %s3293_s10 }
  0x78   : > { %v282_v44 = vsel %vm203_vm6, %v281_v42, %v274_v43  ;;  %p316_p9 = scmp.lt.s32.totalorder %s315_s4, 383  ;;  %s3950_s29 = smov (!%p310_p8, %s309_s29), 383  ;;  %v290_v47 = vld [vmem:[%s289_s5] sm:$0x1] }
  0x79   : > { %v283_v45 = vmul.f32 11.313708, %v282_v44  ;;  %s295_s21 = scalar_lea.vmem [#allocation4], %s294_s26  ;;  %s312_s6 = sld [smem:[#allocation3 + %s3950_s29]] }
  0x7a   : > { %v296_v46 = vld [vmem:[%s295_s21] sm:$0x1]  ;;  %s3952_s4 = smov (!%p316_p9, %s315_s4), 383  ;;  %s321_s7 = sadd.s32 22, %s3254_s19 }
  0x7b   : > { %284 = vst [vmem:[%s3284_s27 + $0x8] sm:$0xff] %v283_v45  ;;  %v334_v48 = vrot.slane %v296_v46, 7  ;;  %s318_s8 = sld [smem:[#allocation3 + %s3952_s4]]  ;;  %s301_s9 = scalar_lea.vmem [#allocation4], %s300_s30 }
  0x7c   : > { %v302_v49 = vld [vmem:[%s301_s9] sm:$0x1]  ;;  %p322_p12 = scmp.lt.s32.totalorder %s321_s7, 383  ;;  %s307_s11 = scalar_lea.vmem [#allocation4], %s306_s3 }
  0x7d   : > { %v354_v50 = vsel %vm191_vm0, %v290_v47, %v334_v48  ;;  %v308_v51 = vld [vmem:[%s307_s11] sm:$0x1]  ;;  %s327_s12 = sadd.s32 23, %s3254_s19  ;;  %v337_v52 = vrot.slane %v302_v49, 6  ;;  %s363_s13 = sadd.s32 24, %s3254_s19 }
  0x7e   : > { %s3954_s7 = smov (!%p322_p12, %s321_s7), 383  ;;  %v340_v53 = vrot.slane %v308_v51, 5  ;;  %p328_p13 = scmp.lt.s32.totalorder %s327_s12, 383 }
  0x7f   : > { %v355_v54 = vsel %vm193_vm1, %v354_v50, %v337_v52  ;;  %p364_p2 = scmp.lt.s32.totalorder %s363_s13, 383  ;;  %s324_s10 = sld [smem:[#allocation3 + %s3954_s7]] }
  0x80   : > { %s313_s22 = scalar_lea.vmem [#allocation4], %s312_s6  ;;  %s369_s26 = sadd.s32 25, %s3254_s19  ;;  %v356_v58 = vsel %vm195_vm2, %v355_v54, %v340_v53 }
  0x81   : > { %v314_v55 = vld [vmem:[%s313_s22] sm:$0x1]  ;;  %s319_s28 = scalar_lea.vmem [#allocation4], %s318_s8  ;;  %s3956_s12 = smov (!%p328_p13, %s327_s12), 383 }
  0x82   : > { %v320_v56 = vld [vmem:[%s319_s28] sm:$0x1]  ;;  %v343_v57 = vrot.slane %v314_v55, 4  ;;  %s3958_s13 = smov (!%p364_p2, %s363_s13), 383  ;;  %s330_s29 = sld [smem:[#allocation3 + %s3956_s12]] }
  0x83   : > { %v346_v59 = vrot.slane %v320_v56, 3  ;;  %p370_p4 = scmp.lt.s32.totalorder %s369_s26, 383  ;;  %s3313_s30 = sld [smem:[#allocation3 + %s3958_s13]] }
  0x84   : > { %v357_v60 = vsel %vm197_vm3, %v356_v58, %v343_v57  ;;  %s375_s3 = sadd.s32 26, %s3254_s19  ;;  %s381_s5 = sadd.s32 27, %s3254_s19 }
  0x85   : > { %p376_p6 = scmp.lt.s32.totalorder %s375_s3, 383  ;;  %s325_s4 = scalar_lea.vmem [#allocation4], %s324_s10  ;;  %v358_v63 = vsel %vm199_vm4, %v357_v60, %v346_v59 }
  0x86   : > { %v326_v61 = vld [vmem:[%s325_s4] sm:$0x1]  ;;  %s3960_s26 = smov (!%p370_p4, %s369_s26), 383  ;;  %p382_p5 = scmp.lt.s32.totalorder %s381_s5, 383 }
  0x87   : > { %v349_v62 = vrot.slane %v326_v61, 2  ;;  %s3962_s3 = smov (!%p376_p6, %s375_s3), 383  ;;  %s372_s21 = sld [smem:[#allocation3 + %s3960_s26]] }
  0x88   : > { %s378_s6 = sld [smem:[#allocation3 + %s3962_s3]]  ;;  %s331_s7 = scalar_lea.vmem [#allocation4], %s330_s29 }
  0x89   : > { %v332_v0 = vld [vmem:[%s331_s7] sm:$0x1]  ;;  %v359_v1 = vsel %vm201_vm5, %v358_v63, %v349_v62  ;;  %s387_s8 = sadd.s32 28, %s3254_s19  ;;  %s393_s9 = sadd.s32 29, %s3254_s19 }
  0x8a   : > { %v352_v2 = vrot.slane %v332_v0, 1  ;;  %s3964_s5 = smov (!%p382_p5, %s381_s5), 383  ;;  %p388_p10 = scmp.lt.s32.totalorder %s387_s8, 383 }
  0x8b   : > { %p394_p11 = scmp.lt.s32.totalorder %s393_s9, 383  ;;  %s384_s11 = sld [smem:[#allocation3 + %s3964_s5]] }
  0x8c   : > { %v360_v3 = vsel %vm203_vm6, %v359_v1, %v352_v2  ;;  %s399_s13 = sadd.s32 30, %s3254_s19  ;;  %s367_s10 = scalar_lea.vmem [#allocation4], %s3313_s30 }
  0x8d   : > { %v361_v4 = vmul.f32 11.313708, %v360_v3  ;;  %s373_s12 = scalar_lea.vmem [#allocation4], %s372_s21  ;;  %v368_v6 = vld [vmem:[%s367_s10] sm:$0x1]  ;;  %s3966_s8 = smov (!%p388_p10, %s387_s8), 383 }
  0x8e   : > { %v374_v5 = vld [vmem:[%s373_s12] sm:$0x1]  ;;  %s379_s22 = scalar_lea.vmem [#allocation4], %s378_s6  ;;  %s3968_s9 = smov (!%p394_p11, %s393_s9), 383 }
  0x8f   : > { %362 = vst [vmem:[%s3284_s27 + $0x10] sm:$0xff] %v361_v4  ;;  %v380_v7 = vld [vmem:[%s379_s22] sm:$0x1]  ;;  %v412_v8 = vrot.slane %v374_v5, 7  ;;  %s390_s26 = sld [smem:[#allocation3 + %s3966_s8]]  ;;  %p400_p0 = scmp.lt.s32.totalorder %s399_s13, 383 }
  0x90   : > { %v415_v9 = vrot.slane %v380_v7, 6  ;;  %s396_s28 = sld [smem:[#allocation3 + %s3968_s9]]  ;;  %s405_s29 = sadd.s32 31, %s3254_s19 }
  0x91   : > { %v432_v10 = vsel %vm191_vm0, %v368_v6, %v412_v8  ;;  %p406_p1 = scmp.lt.s32.totalorder %s405_s29, 383  ;;  %s385_s3 = scalar_lea.vmem [#allocation4], %s384_s11 }
  0x92   : > { %v386_v11 = vld [vmem:[%s385_s3] sm:$0x1]  ;;  %s3970_s13 = smov (!%p400_p0, %s399_s13), 383  ;;  %v433_v13 = vsel %vm193_vm1, %v432_v10, %v415_v9  ;;  %s441_s4 = sadd.s32 32, %s3254_s19 }
  0x93   : > { %s3972_s29 = smov (!%p406_p1, %s405_s29), 383  ;;  %v418_v12 = vrot.slane %v386_v11, 5  ;;  %s402_s30 = sld [smem:[#allocation3 + %s3970_s13]] }
  0x94   : > { %s408_s21 = sld [smem:[#allocation3 + %s3972_s29]]  ;;  %p442_p3 = scmp.lt.s32.totalorder %s441_s4, 383 }
  0x95   : > { %s391_s5 = scalar_lea.vmem [#allocation4], %s390_s26  ;;  %v434_v15 = vsel %vm195_vm2, %v433_v13, %v418_v12  ;;  %s447_s7 = sadd.s32 33, %s3254_s19 }
  0x96   : > { %v392_v14 = vld [vmem:[%s391_s5] sm:$0x1]  ;;  %s397_s6 = scalar_lea.vmem [#allocation4], %s396_s28  ;;  %s453_s8 = sadd.s32 34, %s3254_s19 }
  0x97   : > { %v398_v16 = vld [vmem:[%s397_s6] sm:$0x1]  ;;  %v421_v17 = vrot.slane %v392_v14, 4  ;;  %s3974_s4 = smov (!%p442_p3, %s441_s4), 383  ;;  %p448_p7 = scmp.lt.s32.totalorder %s447_s7, 383 }
  0x98   : > { %v424_v18 = vrot.slane %v398_v16, 3  ;;  %p454_p8 = scmp.lt.s32.totalorder %s453_s8, 383  ;;  %s444_s9 = sld [smem:[#allocation3 + %s3974_s4]] }
  0x99   : > { %v435_v19 = vsel %vm197_vm3, %v434_v15, %v421_v17  ;;  %s403_s11 = scalar_lea.vmem [#allocation4], %s402_s30  ;;  %s459_s12 = sadd.s32 35, %s3254_s19 }
  0x9a   : > { %v404_v20 = vld [vmem:[%s403_s11] sm:$0x1]  ;;  %v436_v21 = vsel %vm199_vm4, %v435_v19, %v424_v18  ;;  %s409_s13 = scalar_lea.vmem [#allocation4], %s408_s21  ;;  %s3976_s7 = smov (!%p448_p7, %s447_s7), 383 }
  0x9b   : > { %v410_v22 = vld [vmem:[%s409_s13] sm:$0x1]  ;;  %v427_v23 = vrot.slane %v404_v20, 2  ;;  %s3978_s8 = smov (!%p454_p8, %s453_s8), 383  ;;  %s450_s10 = sld [smem:[#allocation3 + %s3976_s7]] }
  0x9c   : > { %v430_v24 = vrot.slane %v410_v22, 1  ;;  %p460_p9 = scmp.lt.s32.totalorder %s459_s12, 383  ;;  %s456_s22 = sld [smem:[#allocation3 + %s3978_s8]] }
  0x9d   : > { %v437_v25 = vsel %vm201_vm5, %v436_v21, %v427_v23  ;;  %s465_s26 = sadd.s32 36, %s3254_s19  ;;  %s471_s29 = sadd.s32 37, %s3254_s19 }
  0x9e   : > { %v438_v26 = vsel %vm203_vm6, %v437_v25, %v430_v24  ;;  %p466_p12 = scmp.lt.s32.totalorder %s465_s26, 383  ;;  %s3980_s12 = smov (!%p460_p9, %s459_s12), 383 }
  0x9f   : > { %v439_v27 = vmul.f32 11.313708, %v438_v26  ;;  %s462_s28 = sld [smem:[#allocation3 + %s3980_s12]]  ;;  %s445_s30 = scalar_lea.vmem [#allocation4], %s444_s9 }
  0xa0   : > { %s3982_s26 = smov (!%p466_p12, %s465_s26), 383  ;;  %v446_v28 = vld [vmem:[%s445_s30] sm:$0x1]  ;;  %p472_p13 = scmp.lt.s32.totalorder %s471_s29, 383 }
  0xa1   : > { %440 = vst [vmem:[%s3284_s27 + $0x18] sm:$0xff] %v439_v27  ;;  %s468_s3 = sld [smem:[#allocation3 + %s3982_s26]]  ;;  %s451_s4 = scalar_lea.vmem [#allocation4], %s450_s10 }
  0xa2   : > { %v452_v29 = vld [vmem:[%s451_s4] sm:$0x1]  ;;  %s457_s21 = scalar_lea.vmem [#allocation4], %s456_s22  ;;  %s477_s5 = sadd.s32 38, %s3254_s19 }
  0xa3   : > { %v458_v30 = vld [vmem:[%s457_s21] sm:$0x1]  ;;  %s483_s6 = sadd.s32 39, %s3254_s19  ;;  %v490_v31 = vrot.slane %v452_v29, 7  ;;  %s3984_s29 = smov (!%p472_p13, %s471_s29), 383 }
  0xa4   : > { %v493_v32 = vrot.slane %v458_v30, 6  ;;  %p478_p2 = scmp.lt.s32.totalorder %s477_s5, 383  ;;  %p484_p4 = scmp.lt.s32.totalorder %s483_s6, 383 }
  0xa5   : > { %v510_v33 = vsel %vm191_vm0, %v446_v28, %v490_v31  ;;  %s474_s7 = sld [smem:[#allocation3 + %s3984_s29]]  ;;  %s463_s8 = scalar_lea.vmem [#allocation4], %s462_s28 }
  0xa6   : > { %v464_v34 = vld [vmem:[%s463_s8] sm:$0x1]  ;;  %s519_s9 = sadd.s32 40, %s3254_s19  ;;  %s3986_s5 = smov (!%p478_p2, %s477_s5), 383  ;;  %v511_v37 = vsel %vm193_vm1, %v510_v33, %v493_v32 }
  0xa7   : > { %s469_s11 = scalar_lea.vmem [#allocation4], %s468_s3  ;;  %v496_v36 = vrot.slane %v464_v34, 5  ;;  %s3988_s6 = smov (!%p484_p4, %s483_s6), 383 }
  0xa8   : > { %v470_v35 = vld [vmem:[%s469_s11] sm:$0x1]  ;;  %s480_s12 = sld [smem:[#allocation3 + %s3986_s5]]  ;;  %p520_p6 = scmp.lt.s32.totalorder %s519_s9, 383 }
  0xa9   : > { %v499_v38 = vrot.slane %v470_v35, 4  ;;  %s486_s13 = sld [smem:[#allocation3 + %s3988_s6]]  ;;  %v512_v39 = vsel %vm195_vm2, %v511_v37, %v496_v36  ;;  %s525_s10 = sadd.s32 41, %s3254_s19 }
  0xaa   : > { %p526_p5 = scmp.lt.s32.totalorder %s525_s10, 383  ;;  %s3990_s9 = smov (!%p520_p6, %s519_s9), 383 }
  0xab   : > { %s475_s22 = scalar_lea.vmem [#allocation4], %s474_s7  ;;  %v513_v42 = vsel %vm197_vm3, %v512_v39, %v499_v38  ;;  %s3348_s26 = sld [smem:[#allocation3 + %s3990_s9]] }
  0xac   : > { %v476_v40 = vld [vmem:[%s475_s22] sm:$0x1]  ;;  %s3992_s10 = smov (!%p526_p5, %s525_s10), 383  ;;  %s531_s28 = sadd.s32 42, %s3254_s19 }
  0xad   : > { %v502_v41 = vrot.slane %v476_v40, 3  ;;  %s528_s29 = sld [smem:[#allocation3 + %s3992_s10]]  ;;  %p532_p10 = scmp.lt.s32.totalorder %s531_s28, 383 }
  0xae   : > { %s481_s3 = scalar_lea.vmem [#allocation4], %s480_s12  ;;  %s537_s4 = sadd.s32 43, %s3254_s19 }
  0xaf   : > { %v482_v43 = vld [vmem:[%s481_s3] sm:$0x1]  ;;  %v514_v44 = vsel %vm199_vm4, %v513_v42, %v502_v41  ;;  %s487_s30 = scalar_lea.vmem [#allocation4], %s486_s13  ;;  %s543_s21 = sadd.s32 44, %s3254_s19 }
  0xb0   : > { %v488_v45 = vld [vmem:[%s487_s30] sm:$0x1]  ;;  %v505_v46 = vrot.slane %v482_v43, 2  ;;  %s3994_s28 = smov (!%p532_p10, %s531_s28), 383  ;;  %p538_p11 = scmp.lt.s32.totalorder %s537_s4, 383 }
  0xb1   : > { %v508_v47 = vrot.slane %v488_v45, 1  ;;  %p544_p0 = scmp.lt.s32.totalorder %s543_s21, 383  ;;  %s534_s5 = sld [smem:[#allocation3 + %s3994_s28]] }
  0xb2   : > { %v515_v48 = vsel %vm201_vm5, %v514_v44, %v505_v46  ;;  %s549_s6 = sadd.s32 45, %s3254_s19  ;;  %s3996_s4 = smov (!%p538_p11, %s537_s4), 383 }
  0xb3   : > { %v516_v49 = vsel %vm203_vm6, %v515_v48, %v508_v47  ;;  %s529_s7 = scalar_lea.vmem [#allocation4], %s528_s29  ;;  %s3998_s21 = smov (!%p544_p0, %s543_s21), 383 }
  0xb4   : > { %v517_v50 = vmul.f32 11.313708, %v516_v49  ;;  %v530_v51 = vld [vmem:[%s529_s7] sm:$0x1]  ;;  %s540_s8 = sld [smem:[#allocation3 + %s3996_s4]]  ;;  %p550_p1 = scmp.lt.s32.totalorder %s549_s6, 383 }
  0xb5   : > { %v568_v52 = vrot.slane %v530_v51, 7  ;;  %s523_s9 = scalar_lea.vmem [#allocation4], %s3348_s26  ;;  %s546_s11 = sld [smem:[#allocation3 + %s3998_s21]] }
  0xb6   : > { %518 = vst [vmem:[%s3284_s27 + $0x20] sm:$0xff] %v517_v50  ;;  %v524_v53 = vld [vmem:[%s523_s9] sm:$0x1]  ;;  %s555_s12 = sadd.s32 46, %s3254_s19  ;;  %s4000_s6 = smov (!%p550_p1, %s549_s6), 383 }
  0xb7   : > { %p556_p3 = scmp.lt.s32.totalorder %s555_s12, 383  ;;  %s535_s13 = scalar_lea.vmem [#allocation4], %s534_s5  ;;  %v588_v56 = vsel %vm191_vm0, %v524_v53, %v568_v52 }
  0xb8   : > { %v536_v54 = vld [vmem:[%s535_s13] sm:$0x1]  ;;  %s552_s10 = sld [smem:[#allocation3 + %s4000_s6]]  ;;  %s561_s22 = sadd.s32 47, %s3254_s19 }
  0xb9   : > { %s4002_s12 = smov (!%p556_p3, %s555_s12), 383  ;;  %v571_v55 = vrot.slane %v536_v54, 6  ;;  %p562_p7 = scmp.lt.s32.totalorder %s561_s22, 383 }
  0xba   : > { %s558_s28 = sld [smem:[#allocation3 + %s4002_s12]]  ;;  %s541_s29 = scalar_lea.vmem [#allocation4], %s540_s8 }
  0xbb   : > { %v542_v57 = vld [vmem:[%s541_s29] sm:$0x1]  ;;  %v589_v58 = vsel %vm193_vm1, %v588_v56, %v571_v55  ;;  %s547_s26 = scalar_lea.vmem [#allocation4], %s546_s11  ;;  %s597_s3 = sadd.s32 48, %s3254_s19 }
  0xbc   : > { %v548_v59 = vld [vmem:[%s547_s26] sm:$0x1]  ;;  %v574_v60 = vrot.slane %v542_v57, 5  ;;  %s603_s30 = sadd.s32 49, %s3254_s19  ;;  %s4004_s22 = smov (!%p562_p7, %s561_s22), 383 }
  0xbd   : > { %v577_v61 = vrot.slane %v548_v59, 4  ;;  %p598_p8 = scmp.lt.s32.totalorder %s597_s3, 383  ;;  %p604_p9 = scmp.lt.s32.totalorder %s603_s30, 383 }
  0xbe   : > { %v590_v62 = vsel %vm195_vm2, %v589_v58, %v574_v60  ;;  %s564_s4 = sld [smem:[#allocation3 + %s4004_s22]]  ;;  %s553_s21 = scalar_lea.vmem [#allocation4], %s552_s10 }
  0xbf   : > { %v554_v63 = vld [vmem:[%s553_s21] sm:$0x1]  ;;  %v591_v0 = vsel %vm197_vm3, %v590_v62, %v577_v61  ;;  %s609_s5 = sadd.s32 50, %s3254_s19  ;;  %s4006_s3 = smov (!%p598_p8, %s597_s3), 383 }
  0xc0   : > { %s559_s6 = scalar_lea.vmem [#allocation4], %s558_s28  ;;  %v580_v2 = vrot.slane %v554_v63, 3  ;;  %s4008_s30 = smov (!%p604_p9, %s603_s30), 383 }
  0xc1   : > { %v560_v1 = vld [vmem:[%s559_s6] sm:$0x1]  ;;  %s600_s7 = sld [smem:[#allocation3 + %s4006_s3]]  ;;  %p610_p12 = scmp.lt.s32.totalorder %s609_s5, 383 }
  0xc2   : > { %v583_v3 = vrot.slane %v560_v1, 2  ;;  %v592_v4 = vsel %vm199_vm4, %v591_v0, %v580_v2  ;;  %s606_s8 = sld [smem:[#allocation3 + %s4008_s30]]  ;;  %s615_s9 = sadd.s32 51, %s3254_s19 }
  0xc3   : > { %p616_p13 = scmp.lt.s32.totalorder %s615_s9, 383  ;;  %s4010_s5 = smov (!%p610_p12, %s609_s5), 383 }
  0xc4   : > { %s565_s11 = scalar_lea.vmem [#allocation4], %s564_s4  ;;  %v593_v6 = vsel %vm201_vm5, %v592_v4, %v583_v3  ;;  %s612_s12 = sld [smem:[#allocation3 + %s4010_s5]] }
  0xc5   : > { %v566_v5 = vld [vmem:[%s565_s11] sm:$0x1]  ;;  %s4012_s9 = smov (!%p616_p13, %s615_s9), 383  ;;  %s621_s13 = sadd.s32 52, %s3254_s19 }
  0xc6   : > { %v586_v7 = vrot.slane %v566_v5, 1  ;;  %s618_s10 = sld [smem:[#allocation3 + %s4012_s9]]  ;;  %p622_p2 = scmp.lt.s32.totalorder %s621_s13, 383 }
  0xc7   : > { %s627_s28 = sadd.s32 53, %s3254_s19  ;;  %s633_s29 = sadd.s32 54, %s3254_s19 }
  0xc8   : > { %v594_v8 = vsel %vm203_vm6, %v593_v6, %v586_v7  ;;  %s607_s22 = scalar_lea.vmem [#allocation4], %s606_s8  ;;  %s4014_s13 = smov (!%p622_p2, %s621_s13), 383 }
  0xc9   : > { %v595_v9 = vmul.f32 11.313708, %v594_v8  ;;  %v608_v10 = vld [vmem:[%s607_s22] sm:$0x1]  ;;  %s601_s26 = scalar_lea.vmem [#allocation4], %s600_s7  ;;  %p628_p4 = scmp.lt.s32.totalorder %s627_s28, 383 }
  0xca   : > { %v646_v11 = vrot.slane %v608_v10, 7  ;;  %v602_v12 = vld [vmem:[%s601_s26] sm:$0x1]  ;;  %p634_p6 = scmp.lt.s32.totalorder %s633_s29, 383  ;;  %s624_s3 = sld [smem:[#allocation3 + %s4014_s13]] }
  0xcb   : > { %596 = vst [vmem:[%s3284_s27 + $0x28] sm:$0xff] %v595_v9  ;;  %s613_s30 = scalar_lea.vmem [#allocation4], %s612_s12  ;;  %s639_s4 = sadd.s32 55, %s3254_s19 }
  0xcc   : > { %v614_v13 = vld [vmem:[%s613_s30] sm:$0x1]  ;;  %s619_s21 = scalar_lea.vmem [#allocation4], %s618_s10  ;;  %s4016_s28 = smov (!%p628_p4, %s627_s28), 383  ;;  %v666_v16 = vsel %vm191_vm0, %v602_v12, %v646_v11 }
  0xcd   : > { %v620_v14 = vld [vmem:[%s619_s21] sm:$0x1]  ;;  %v649_v15 = vrot.slane %v614_v13, 6  ;;  %s4018_s29 = smov (!%p634_p6, %s633_s29), 383  ;;  %s630_s5 = sld [smem:[#allocation3 + %s4016_s28]] }
  0xce   : > { %p640_p5 = scmp.lt.s32.totalorder %s639_s4, 383  ;;  %v652_v17 = vrot.slane %v620_v14, 5  ;;  %s636_s6 = sld [smem:[#allocation3 + %s4018_s29]] }
  0xcf   : > { %v667_v18 = vsel %vm193_vm1, %v666_v16, %v649_v15  ;;  %s675_s7 = sadd.s32 56, %s3254_s19  ;;  %s681_s11 = sadd.s32 57, %s3254_s19 }
  0xd0   : > { %p676_p10 = scmp.lt.s32.totalorder %s675_s7, 383  ;;  %s625_s8 = scalar_lea.vmem [#allocation4], %s624_s3  ;;  %v668_v21 = vsel %vm195_vm2, %v667_v18, %v652_v17 }
  0xd1   : > { %v626_v19 = vld [vmem:[%s625_s8] sm:$0x1]  ;;  %s4020_s4 = smov (!%p640_p5, %s639_s4), 383  ;;  %p682_p11 = scmp.lt.s32.totalorder %s681_s11, 383 }
  0xd2   : > { %v655_v20 = vrot.slane %v626_v19, 4  ;;  %s4022_s7 = smov (!%p676_p10, %s675_s7), 383  ;;  %s642_s9 = sld [smem:[#allocation3 + %s4020_s4]] }
  0xd3   : > { %s3382_s12 = sld [smem:[#allocation3 + %s4022_s7]]  ;;  %s631_s13 = scalar_lea.vmem [#allocation4], %s630_s5 }
  0xd4   : > { %v632_v22 = vld [vmem:[%s631_s13] sm:$0x1]  ;;  %v669_v23 = vsel %vm197_vm3, %v668_v21, %v655_v20  ;;  %s637_s10 = scalar_lea.vmem [#allocation4], %s636_s6  ;;  %s687_s22 = sadd.s32 58, %s3254_s19 }
  0xd5   : > { %v638_v24 = vld [vmem:[%s637_s10] sm:$0x1]  ;;  %v658_v25 = vrot.slane %v632_v22, 3  ;;  %s693_s28 = sadd.s32 59, %s3254_s19  ;;  %s4024_s11 = smov (!%p682_p11, %s681_s11), 383 }
  0xd6   : > { %v661_v26 = vrot.slane %v638_v24, 2  ;;  %p688_p0 = scmp.lt.s32.totalorder %s687_s22, 383  ;;  %p694_p1 = scmp.lt.s32.totalorder %s693_s28, 383 }
  0xd7   : > { %v670_v27 = vsel %vm199_vm4, %v669_v23, %v658_v25  ;;  %s684_s29 = sld [smem:[#allocation3 + %s4024_s11]]  ;;  %s699_s3 = sadd.s32 60, %s3254_s19 }
  0xd8   : > { %s643_s26 = scalar_lea.vmem [#allocation4], %s642_s9  ;;  %v671_v29 = vsel %vm201_vm5, %v670_v27, %v661_v26  ;;  %s4026_s22 = smov (!%p688_p0, %s687_s22), 383 }
  0xd9   : > { %v644_v28 = vld [vmem:[%s643_s26] sm:$0x1]  ;;  %s4028_s28 = smov (!%p694_p1, %s693_s28), 383  ;;  %s690_s30 = sld [smem:[#allocation3 + %s4026_s22]] }
  0xda   : > { %v664_v30 = vrot.slane %v644_v28, 1  ;;  %p700_p3 = scmp.lt.s32.totalorder %s699_s3, 383  ;;  %s696_s4 = sld [smem:[#allocation3 + %s4028_s28]] }
  0xdb   : > { %s705_s21 = sadd.s32 61, %s3254_s19  ;;  %s679_s6 = scalar_lea.vmem [#allocation4], %s3382_s12 }
  0xdc   : > { %v672_v31 = vsel %vm203_vm6, %v671_v29, %v664_v30  ;;  %p706_p7 = scmp.lt.s32.totalorder %s705_s21, 383  ;;  %s4030_s3 = smov (!%p700_p3, %s699_s3), 383  ;;  %v680_v34 = vld [vmem:[%s679_s6] sm:$0x1] }
  0xdd   : > { %v673_v32 = vmul.f32 11.313708, %v672_v31  ;;  %s685_s5 = scalar_lea.vmem [#allocation4], %s684_s29  ;;  %s702_s7 = sld [smem:[#allocation3 + %s4030_s3]] }
  0xde   : > { %v686_v33 = vld [vmem:[%s685_s5] sm:$0x1]  ;;  %s4032_s21 = smov (!%p706_p7, %s705_s21), 383  ;;  %s711_s8 = sadd.s32 62, %s3254_s19 }
  0xdf   : > { %674 = vst [vmem:[%s3284_s27 + $0x30] sm:$0xff] %v673_v32  ;;  %v724_v35 = vrot.slane %v686_v33, 7  ;;  %s708_s9 = sld [smem:[#allocation3 + %s4032_s21]]  ;;  %s691_s11 = scalar_lea.vmem [#allocation4], %s690_s30 }
  0xe0   : > { %v692_v36 = vld [vmem:[%s691_s11] sm:$0x1]  ;;  %p712_p8 = scmp.lt.s32.totalorder %s711_s8, 383  ;;  %s697_s13 = scalar_lea.vmem [#allocation4], %s696_s4 }
  0xe1   : > { %v744_v37 = vsel %vm191_vm0, %v680_v34, %v724_v35  ;;  %v698_v38 = vld [vmem:[%s697_s13] sm:$0x1]  ;;  %s717_s10 = sadd.s32 63, %s3254_s19  ;;  %v727_v39 = vrot.slane %v692_v36, 6  ;;  %s753_s22 = sadd.s32 64, %s3254_s19 }
  0xe2   : > { %s4034_s8 = smov (!%p712_p8, %s711_s8), 383  ;;  %v730_v40 = vrot.slane %v698_v38, 5  ;;  %p718_p9 = scmp.lt.s32.totalorder %s717_s10, 383 }
  0xe3   : > { %v745_v41 = vsel %vm193_vm1, %v744_v37, %v727_v39  ;;  %p754_p12 = scmp.lt.s32.totalorder %s753_s22, 383  ;;  %s714_s12 = sld [smem:[#allocation3 + %s4034_s8]] }
  0xe4   : > { %s703_s28 = scalar_lea.vmem [#allocation4], %s702_s7  ;;  %s759_s29 = sadd.s32 65, %s3254_s19  ;;  %v746_v45 = vsel %vm195_vm2, %v745_v41, %v730_v40 }
  0xe5   : > { %v704_v42 = vld [vmem:[%s703_s28] sm:$0x1]  ;;  %s709_s26 = scalar_lea.vmem [#allocation4], %s708_s9  ;;  %s4036_s10 = smov (!%p718_p9, %s717_s10), 383 }
  0xe6   : > { %v710_v43 = vld [vmem:[%s709_s26] sm:$0x1]  ;;  %v733_v44 = vrot.slane %v704_v42, 4  ;;  %s4038_s22 = smov (!%p754_p12, %s753_s22), 383  ;;  %s720_s3 = sld [smem:[#allocation3 + %s4036_s10]] }
  0xe7   : > { %v736_v46 = vrot.slane %v710_v43, 3  ;;  %p760_p13 = scmp.lt.s32.totalorder %s759_s29, 383  ;;  %s3402_s30 = sld [smem:[#allocation3 + %s4038_s22]] }
  0xe8   : > { %v747_v47 = vsel %vm197_vm3, %v746_v45, %v733_v44  ;;  %s765_s4 = sadd.s32 66, %s3254_s19  ;;  %s771_s6 = sadd.s32 67, %s3254_s19 }
  0xe9   : > { %p766_p2 = scmp.lt.s32.totalorder %s765_s4, 383  ;;  %s715_s21 = scalar_lea.vmem [#allocation4], %s714_s12  ;;  %v748_v50 = vsel %vm199_vm4, %v747_v47, %v736_v46 }
  0xea   : > { %v716_v48 = vld [vmem:[%s715_s21] sm:$0x1]  ;;  %s4040_s29 = smov (!%p760_p13, %s759_s29), 383  ;;  %p772_p4 = scmp.lt.s32.totalorder %s771_s6, 383 }
  0xeb   : > { %v739_v49 = vrot.slane %v716_v48, 2  ;;  %s4042_s4 = smov (!%p766_p2, %s765_s4), 383  ;;  %s762_s5 = sld [smem:[#allocation3 + %s4040_s29]] }
  0xec   : > { %s768_s7 = sld [smem:[#allocation3 + %s4042_s4]]  ;;  %s721_s8 = scalar_lea.vmem [#allocation4], %s720_s3 }
  0xed   : > { %v722_v51 = vld [vmem:[%s721_s8] sm:$0x1]  ;;  %v749_v52 = vsel %vm201_vm5, %v748_v50, %v739_v49  ;;  %s777_s9 = sadd.s32 68, %s3254_s19  ;;  %s783_s11 = sadd.s32 69, %s3254_s19 }
  0xee   : > { %v742_v53 = vrot.slane %v722_v51, 1  ;;  %s4044_s6 = smov (!%p772_p4, %s771_s6), 383  ;;  %p778_p6 = scmp.lt.s32.totalorder %s777_s9, 383 }
  0xef   : > { %p784_p5 = scmp.lt.s32.totalorder %s783_s11, 383  ;;  %s774_s13 = sld [smem:[#allocation3 + %s4044_s6]] }
  0xf0   : > { %v750_v54 = vsel %vm203_vm6, %v749_v52, %v742_v53  ;;  %s789_s22 = sadd.s32 70, %s3254_s19  ;;  %s757_s12 = scalar_lea.vmem [#allocation4], %s3402_s30 }
  0xf1   : > { %v751_v55 = vmul.f32 11.313708, %v750_v54  ;;  %s763_s10 = scalar_lea.vmem [#allocation4], %s762_s5  ;;  %v758_v57 = vld [vmem:[%s757_s12] sm:$0x1]  ;;  %s4046_s9 = smov (!%p778_p6, %s777_s9), 383 }
  0xf2   : > { %v764_v56 = vld [vmem:[%s763_s10] sm:$0x1]  ;;  %s769_s28 = scalar_lea.vmem [#allocation4], %s768_s7  ;;  %s4048_s11 = smov (!%p784_p5, %s783_s11), 383 }
  0xf3   : > { %752 = vst [vmem:[%s3284_s27 + $0x38] sm:$0xff] %v751_v55  ;;  %v770_v58 = vld [vmem:[%s769_s28] sm:$0x1]  ;;  %v802_v59 = vrot.slane %v764_v56, 7  ;;  %s780_s29 = sld [smem:[#allocation3 + %s4046_s9]]  ;;  %p790_p10 = scmp.lt.s32.totalorder %s789_s22, 383 }
  0xf4   : > { %v805_v60 = vrot.slane %v770_v58, 6  ;;  %s786_s26 = sld [smem:[#allocation3 + %s4048_s11]]  ;;  %s795_s3 = sadd.s32 71, %s3254_s19 }
  0xf5   : > { %v822_v61 = vsel %vm191_vm0, %v758_v57, %v802_v59  ;;  %p796_p11 = scmp.lt.s32.totalorder %s795_s3, 383  ;;  %s775_s4 = scalar_lea.vmem [#allocation4], %s774_s13 }
  0xf6   : > { %v776_v62 = vld [vmem:[%s775_s4] sm:$0x1]  ;;  %s4050_s22 = smov (!%p790_p10, %s789_s22), 383  ;;  %v823_v0 = vsel %vm193_vm1, %v822_v61, %v805_v60  ;;  %s831_s21 = sadd.s32 72, %s3254_s19 }
  0xf7   : > { %s4052_s3 = smov (!%p796_p11, %s795_s3), 383  ;;  %v808_v63 = vrot.slane %v776_v62, 5  ;;  %s792_s30 = sld [smem:[#allocation3 + %s4050_s22]] }
  0xf8   : > { %s798_s5 = sld [smem:[#allocation3 + %s4052_s3]]  ;;  %p832_p0 = scmp.lt.s32.totalorder %s831_s21, 383 }
  0xf9   : > { %s781_s6 = scalar_lea.vmem [#allocation4], %s780_s29  ;;  %v824_v2 = vsel %vm195_vm2, %v823_v0, %v808_v63  ;;  %s837_s8 = sadd.s32 73, %s3254_s19 }
  0xfa   : > { %v782_v1 = vld [vmem:[%s781_s6] sm:$0x1]  ;;  %s787_s7 = scalar_lea.vmem [#allocation4], %s786_s26  ;;  %s843_s9 = sadd.s32 74, %s3254_s19 }
  0xfb   : > { %v788_v3 = vld [vmem:[%s787_s7] sm:$0x1]  ;;  %v811_v4 = vrot.slane %v782_v1, 4  ;;  %s4054_s21 = smov (!%p832_p0, %s831_s21), 383  ;;  %p838_p1 = scmp.lt.s32.totalorder %s837_s8, 383 }
  0xfc   : > { %v814_v5 = vrot.slane %v788_v3, 3  ;;  %p844_p3 = scmp.lt.s32.totalorder %s843_s9, 383  ;;  %s834_s11 = sld [smem:[#allocation3 + %s4054_s21]] }
  0xfd   : > { %v825_v6 = vsel %vm197_vm3, %v824_v2, %v811_v4  ;;  %s793_s13 = scalar_lea.vmem [#allocation4], %s792_s30  ;;  %s849_s10 = sadd.s32 75, %s3254_s19 }
  0xfe   : > { %v794_v7 = vld [vmem:[%s793_s13] sm:$0x1]  ;;  %v826_v8 = vsel %vm199_vm4, %v825_v6, %v814_v5  ;;  %s799_s22 = scalar_lea.vmem [#allocation4], %s798_s5  ;;  %s4056_s8 = smov (!%p838_p1, %s837_s8), 383 }
  0xff   : > { %v800_v9 = vld [vmem:[%s799_s22] sm:$0x1]  ;;  %v817_v10 = vrot.slane %v794_v7, 2  ;;  %s4058_s9 = smov (!%p844_p3, %s843_s9), 383  ;;  %s840_s12 = sld [smem:[#allocation3 + %s4056_s8]] }
 0x100   : > { %v820_v11 = vrot.slane %v800_v9, 1  ;;  %p850_p7 = scmp.lt.s32.totalorder %s849_s10, 383  ;;  %s846_s28 = sld [smem:[#allocation3 + %s4058_s9]] }
 0x101   : > { %v827_v12 = vsel %vm201_vm5, %v826_v8, %v817_v10  ;;  %s855_s29 = sadd.s32 76, %s3254_s19  ;;  %s861_s3 = sadd.s32 77, %s3254_s19 }
 0x102   : > { %v828_v13 = vsel %vm203_vm6, %v827_v12, %v820_v11  ;;  %p856_p8 = scmp.lt.s32.totalorder %s855_s29, 383  ;;  %s4060_s10 = smov (!%p850_p7, %s849_s10), 383 }
 0x103   : > { %v829_v14 = vmul.f32 11.313708, %v828_v13  ;;  %s852_s26 = sld [smem:[#allocation3 + %s4060_s10]]  ;;  %s835_s30 = scalar_lea.vmem [#allocation4], %s834_s11 }
 0x104   : > { %s4062_s29 = smov (!%p856_p8, %s855_s29), 383  ;;  %v836_v15 = vld [vmem:[%s835_s30] sm:$0x1]  ;;  %p862_p9 = scmp.lt.s32.totalorder %s861_s3, 383 }
 0x105   : > { %830 = vst [vmem:[%s3284_s27 + $0x40] sm:$0xff] %v829_v14  ;;  %s858_s4 = sld [smem:[#allocation3 + %s4062_s29]]  ;;  %s841_s21 = scalar_lea.vmem [#allocation4], %s840_s12 }
 0x106   : > { %v842_v16 = vld [vmem:[%s841_s21] sm:$0x1]  ;;  %s847_s5 = scalar_lea.vmem [#allocation4], %s846_s28  ;;  %s867_s6 = sadd.s32 78, %s3254_s19 }
 0x107   : > { %v848_v17 = vld [vmem:[%s847_s5] sm:$0x1]  ;;  %s873_s7 = sadd.s32 79, %s3254_s19  ;;  %v880_v18 = vrot.slane %v842_v16, 7  ;;  %s4064_s3 = smov (!%p862_p9, %s861_s3), 383 }
 0x108   : > { %v883_v19 = vrot.slane %v848_v17, 6  ;;  %p868_p12 = scmp.lt.s32.totalorder %s867_s6, 383  ;;  %p874_p13 = scmp.lt.s32.totalorder %s873_s7, 383 }
 0x109   : > { %v900_v20 = vsel %vm191_vm0, %v836_v15, %v880_v18  ;;  %s864_s8 = sld [smem:[#allocation3 + %s4064_s3]]  ;;  %s853_s9 = scalar_lea.vmem [#allocation4], %s852_s26 }
 0x10a   : > { %v854_v21 = vld [vmem:[%s853_s9] sm:$0x1]  ;;  %s909_s11 = sadd.s32 80, %s3254_s19  ;;  %s4066_s6 = smov (!%p868_p12, %s867_s6), 383  ;;  %v901_v24 = vsel %vm193_vm1, %v900_v20, %v883_v19 }
 0x10b   : > { %s859_s13 = scalar_lea.vmem [#allocation4], %s858_s4  ;;  %v886_v23 = vrot.slane %v854_v21, 5  ;;  %s4068_s7 = smov (!%p874_p13, %s873_s7), 383 }
 0x10c   : > { %v860_v22 = vld [vmem:[%s859_s13] sm:$0x1]  ;;  %s870_s10 = sld [smem:[#allocation3 + %s4066_s6]]  ;;  %p910_p2 = scmp.lt.s32.totalorder %s909_s11, 383 }
 0x10d   : > { %v889_v25 = vrot.slane %v860_v22, 4  ;;  %s876_s22 = sld [smem:[#allocation3 + %s4068_s7]]  ;;  %v902_v26 = vsel %vm195_vm2, %v901_v24, %v886_v23  ;;  %s915_s12 = sadd.s32 81, %s3254_s19 }
 0x10e   : > { %p916_p4 = scmp.lt.s32.totalorder %s915_s12, 383  ;;  %s4070_s11 = smov (!%p910_p2, %s909_s11), 383 }
 0x10f   : > { %s865_s28 = scalar_lea.vmem [#allocation4], %s864_s8  ;;  %v903_v29 = vsel %vm197_vm3, %v902_v26, %v889_v25  ;;  %s3437_s29 = sld [smem:[#allocation3 + %s4070_s11]] }
 0x110   : > { %v866_v27 = vld [vmem:[%s865_s28] sm:$0x1]  ;;  %s4072_s12 = smov (!%p916_p4, %s915_s12), 383  ;;  %s921_s26 = sadd.s32 82, %s3254_s19 }
 0x111   : > { %v892_v28 = vrot.slane %v866_v27, 3  ;;  %s918_s3 = sld [smem:[#allocation3 + %s4072_s12]]  ;;  %p922_p6 = scmp.lt.s32.totalorder %s921_s26, 383 }
 0x112   : > { %s871_s4 = scalar_lea.vmem [#allocation4], %s870_s10  ;;  %s927_s21 = sadd.s32 83, %s3254_s19 }
 0x113   : > { %v872_v30 = vld [vmem:[%s871_s4] sm:$0x1]  ;;  %v904_v31 = vsel %vm199_vm4, %v903_v29, %v892_v28  ;;  %s877_s30 = scalar_lea.vmem [#allocation4], %s876_s22  ;;  %s933_s5 = sadd.s32 84, %s3254_s19 }
 0x114   : > { %v878_v32 = vld [vmem:[%s877_s30] sm:$0x1]  ;;  %v895_v33 = vrot.slane %v872_v30, 2  ;;  %s4074_s26 = smov (!%p922_p6, %s921_s26), 383  ;;  %p928_p5 = scmp.lt.s32.totalorder %s927_s21, 383 }
 0x115   : > { %v898_v34 = vrot.slane %v878_v32, 1  ;;  %p934_p10 = scmp.lt.s32.totalorder %s933_s5, 383  ;;  %s924_s6 = sld [smem:[#allocation3 + %s4074_s26]] }
 0x116   : > { %v905_v35 = vsel %vm201_vm5, %v904_v31, %v895_v33  ;;  %s939_s7 = sadd.s32 85, %s3254_s19  ;;  %s4076_s21 = smov (!%p928_p5, %s927_s21), 383 }
 0x117   : > { %v906_v36 = vsel %vm203_vm6, %v905_v35, %v898_v34  ;;  %s919_s8 = scalar_lea.vmem [#allocation4], %s918_s3  ;;  %s4078_s5 = smov (!%p934_p10, %s933_s5), 383 }
 0x118   : > { %v907_v37 = vmul.f32 11.313708, %v906_v36  ;;  %v920_v38 = vld [vmem:[%s919_s8] sm:$0x1]  ;;  %s930_s9 = sld [smem:[#allocation3 + %s4076_s21]]  ;;  %p940_p11 = scmp.lt.s32.totalorder %s939_s7, 383 }
 0x119   : > { %v958_v39 = vrot.slane %v920_v38, 7  ;;  %s913_s11 = scalar_lea.vmem [#allocation4], %s3437_s29  ;;  %s936_s13 = sld [smem:[#allocation3 + %s4078_s5]] }
 0x11a   : > { %908 = vst [vmem:[%s3284_s27 + $0x48] sm:$0xff] %v907_v37  ;;  %v914_v40 = vld [vmem:[%s913_s11] sm:$0x1]  ;;  %s945_s10 = sadd.s32 86, %s3254_s19  ;;  %s4080_s7 = smov (!%p940_p11, %s939_s7), 383 }
 0x11b   : > { %p946_p0 = scmp.lt.s32.totalorder %s945_s10, 383  ;;  %s925_s22 = scalar_lea.vmem [#allocation4], %s924_s6  ;;  %v978_v43 = vsel %vm191_vm0, %v914_v40, %v958_v39 }
 0x11c   : > { %v926_v41 = vld [vmem:[%s925_s22] sm:$0x1]  ;;  %s942_s12 = sld [smem:[#allocation3 + %s4080_s7]]  ;;  %s951_s28 = sadd.s32 87, %s3254_s19 }
 0x11d   : > { %s4082_s10 = smov (!%p946_p0, %s945_s10), 383  ;;  %v961_v42 = vrot.slane %v926_v41, 6  ;;  %p952_p1 = scmp.lt.s32.totalorder %s951_s28, 383 }
 0x11e   : > { %s948_s26 = sld [smem:[#allocation3 + %s4082_s10]]  ;;  %s931_s3 = scalar_lea.vmem [#allocation4], %s930_s9 }
 0x11f   : > { %v932_v44 = vld [vmem:[%s931_s3] sm:$0x1]  ;;  %v979_v45 = vsel %vm193_vm1, %v978_v43, %v961_v42  ;;  %s937_s29 = scalar_lea.vmem [#allocation4], %s936_s13  ;;  %s987_s4 = sadd.s32 88, %s3254_s19 }
 0x120   : > { %v938_v46 = vld [vmem:[%s937_s29] sm:$0x1]  ;;  %v964_v47 = vrot.slane %v932_v44, 5  ;;  %s993_s30 = sadd.s32 89, %s3254_s19  ;;  %s4084_s28 = smov (!%p952_p1, %s951_s28), 383 }
 0x121   : > { %v967_v48 = vrot.slane %v938_v46, 4  ;;  %p988_p3 = scmp.lt.s32.totalorder %s987_s4, 383  ;;  %p994_p7 = scmp.lt.s32.totalorder %s993_s30, 383 }
 0x122   : > { %v980_v49 = vsel %vm195_vm2, %v979_v45, %v964_v47  ;;  %s954_s21 = sld [smem:[#allocation3 + %s4084_s28]]  ;;  %s943_s5 = scalar_lea.vmem [#allocation4], %s942_s12 }
 0x123   : > { %v944_v50 = vld [vmem:[%s943_s5] sm:$0x1]  ;;  %v981_v51 = vsel %vm197_vm3, %v980_v49, %v967_v48  ;;  %s999_s6 = sadd.s32 90, %s3254_s19  ;;  %s4086_s4 = smov (!%p988_p3, %s987_s4), 383 }
 0x124   : > { %s949_s7 = scalar_lea.vmem [#allocation4], %s948_s26  ;;  %v970_v53 = vrot.slane %v944_v50, 3  ;;  %s4088_s30 = smov (!%p994_p7, %s993_s30), 383 }
 0x125   : > { %v950_v52 = vld [vmem:[%s949_s7] sm:$0x1]  ;;  %s990_s8 = sld [smem:[#allocation3 + %s4086_s4]]  ;;  %p1000_p8 = scmp.lt.s32.totalorder %s999_s6, 383 }
 0x126   : > { %v973_v54 = vrot.slane %v950_v52, 2  ;;  %v982_v55 = vsel %vm199_vm4, %v981_v51, %v970_v53  ;;  %s996_s9 = sld [smem:[#allocation3 + %s4088_s30]]  ;;  %s1005_s11 = sadd.s32 91, %s3254_s19 }
 0x127   : > { %p1006_p9 = scmp.lt.s32.totalorder %s1005_s11, 383  ;;  %s4090_s6 = smov (!%p1000_p8, %s999_s6), 383 }
 0x128   : > { %s955_s13 = scalar_lea.vmem [#allocation4], %s954_s21  ;;  %v983_v57 = vsel %vm201_vm5, %v982_v55, %v973_v54  ;;  %s1002_s10 = sld [smem:[#allocation3 + %s4090_s6]] }
 0x129   : > { %v956_v56 = vld [vmem:[%s955_s13] sm:$0x1]  ;;  %s4092_s11 = smov (!%p1006_p9, %s1005_s11), 383  ;;  %s1011_s22 = sadd.s32 92, %s3254_s19 }
 0x12a   : > { %v976_v58 = vrot.slane %v956_v56, 1  ;;  %s1008_s12 = sld [smem:[#allocation3 + %s4092_s11]]  ;;  %p1012_p12 = scmp.lt.s32.totalorder %s1011_s22, 383 }
 0x12b   : > { %s1017_s26 = sadd.s32 93, %s3254_s19  ;;  %s1023_s3 = sadd.s32 94, %s3254_s19 }
 0x12c   : > { %v984_v59 = vsel %vm203_vm6, %v983_v57, %v976_v58  ;;  %s997_s28 = scalar_lea.vmem [#allocation4], %s996_s9  ;;  %s4094_s22 = smov (!%p1012_p12, %s1011_s22), 383 }
 0x12d   : > { %v985_v60 = vmul.f32 11.313708, %v984_v59  ;;  %v998_v61 = vld [vmem:[%s997_s28] sm:$0x1]  ;;  %s991_s29 = scalar_lea.vmem [#allocation4], %s990_s8  ;;  %p1018_p13 = scmp.lt.s32.totalorder %s1017_s26, 383 }
 0x12e   : > { %v1036_v62 = vrot.slane %v998_v61, 7  ;;  %v992_v63 = vld [vmem:[%s991_s29] sm:$0x1]  ;;  %p1024_p2 = scmp.lt.s32.totalorder %s1023_s3, 383  ;;  %s1014_s4 = sld [smem:[#allocation3 + %s4094_s22]] }
 0x12f   : > { %986 = vst [vmem:[%s3284_s27 + $0x50] sm:$0xff] %v985_v60  ;;  %s1003_s30 = scalar_lea.vmem [#allocation4], %s1002_s10  ;;  %s1029_s21 = sadd.s32 95, %s3254_s19 }
 0x130   : > { %v1004_v0 = vld [vmem:[%s1003_s30] sm:$0x1]  ;;  %s1009_s5 = scalar_lea.vmem [#allocation4], %s1008_s12  ;;  %s4096_s26 = smov (!%p1018_p13, %s1017_s26), 383  ;;  %v1056_v3 = vsel %vm191_vm0, %v992_v63, %v1036_v62 }
 0x131   : > { %v1010_v1 = vld [vmem:[%s1009_s5] sm:$0x1]  ;;  %v1039_v2 = vrot.slane %v1004_v0, 6  ;;  %s4098_s3 = smov (!%p1024_p2, %s1023_s3), 383  ;;  %s1020_s6 = sld [smem:[#allocation3 + %s4096_s26]] }
 0x132   : > { %p1030_p4 = scmp.lt.s32.totalorder %s1029_s21, 383  ;;  %v1042_v4 = vrot.slane %v1010_v1, 5  ;;  %s1026_s7 = sld [smem:[#allocation3 + %s4098_s3]] }
 0x133   : > { %v1057_v5 = vsel %vm193_vm1, %v1056_v3, %v1039_v2  ;;  %s1065_s8 = sadd.s32 96, %s3254_s19  ;;  %s1071_s13 = sadd.s32 97, %s3254_s19 }
 0x134   : > { %p1066_p6 = scmp.lt.s32.totalorder %s1065_s8, 383  ;;  %s1015_s9 = scalar_lea.vmem [#allocation4], %s1014_s4  ;;  %v1058_v8 = vsel %vm195_vm2, %v1057_v5, %v1042_v4 }
 0x135   : > { %v1016_v6 = vld [vmem:[%s1015_s9] sm:$0x1]  ;;  %s4100_s21 = smov (!%p1030_p4, %s1029_s21), 383  ;;  %p1072_p5 = scmp.lt.s32.totalorder %s1071_s13, 383 }
 0x136   : > { %v1045_v7 = vrot.slane %v1016_v6, 4  ;;  %s4102_s8 = smov (!%p1066_p6, %s1065_s8), 383  ;;  %s1032_s11 = sld [smem:[#allocation3 + %s4100_s21]] }
 0x137   : > { %s3471_s10 = sld [smem:[#allocation3 + %s4102_s8]]  ;;  %s1021_s22 = scalar_lea.vmem [#allocation4], %s1020_s6 }
 0x138   : > { %v1022_v9 = vld [vmem:[%s1021_s22] sm:$0x1]  ;;  %v1059_v10 = vsel %vm197_vm3, %v1058_v8, %v1045_v7  ;;  %s1027_s12 = scalar_lea.vmem [#allocation4], %s1026_s7  ;;  %s1077_s28 = sadd.s32 98, %s3254_s19 }
 0x139   : > { %v1028_v11 = vld [vmem:[%s1027_s12] sm:$0x1]  ;;  %v1048_v12 = vrot.slane %v1022_v9, 3  ;;  %s1083_s26 = sadd.s32 99, %s3254_s19  ;;  %s4104_s13 = smov (!%p1072_p5, %s1071_s13), 383 }
 0x13a   : > { %v1051_v13 = vrot.slane %v1028_v11, 2  ;;  %p1078_p10 = scmp.lt.s32.totalorder %s1077_s28, 383  ;;  %p1084_p11 = scmp.lt.s32.totalorder %s1083_s26, 383 }
 0x13b   : > { %v1060_v14 = vsel %vm199_vm4, %v1059_v10, %v1048_v12  ;;  %s1074_s3 = sld [smem:[#allocation3 + %s4104_s13]]  ;;  %s1089_s4 = sadd.s32 100, %s3254_s19 }
 0x13c   : > { %s1033_s29 = scalar_lea.vmem [#allocation4], %s1032_s11  ;;  %v1061_v16 = vsel %vm201_vm5, %v1060_v14, %v1051_v13  ;;  %s4106_s28 = smov (!%p1078_p10, %s1077_s28), 383 }
 0x13d   : > { %v1034_v15 = vld [vmem:[%s1033_s29] sm:$0x1]  ;;  %s4108_s26 = smov (!%p1084_p11, %s1083_s26), 383  ;;  %s1080_s30 = sld [smem:[#allocation3 + %s4106_s28]] }
 0x13e   : > { %v1054_v17 = vrot.slane %v1034_v15, 1  ;;  %p1090_p0 = scmp.lt.s32.totalorder %s1089_s4, 383  ;;  %s1086_s21 = sld [smem:[#allocation3 + %s4108_s26]] }
 0x13f   : > { %s1095_s5 = sadd.s32 101, %s3254_s19  ;;  %s1069_s7 = scalar_lea.vmem [#allocation4], %s3471_s10 }
 0x140   : > { %v1062_v18 = vsel %vm203_vm6, %v1061_v16, %v1054_v17  ;;  %p1096_p1 = scmp.lt.s32.totalorder %s1095_s5, 383  ;;  %s4110_s4 = smov (!%p1090_p0, %s1089_s4), 383  ;;  %v1070_v21 = vld [vmem:[%s1069_s7] sm:$0x1] }
 0x141   : > { %v1063_v19 = vmul.f32 11.313708, %v1062_v18  ;;  %s1075_s6 = scalar_lea.vmem [#allocation4], %s1074_s3  ;;  %s1092_s8 = sld [smem:[#allocation3 + %s4110_s4]] }
 0x142   : > { %v1076_v20 = vld [vmem:[%s1075_s6] sm:$0x1]  ;;  %s4112_s5 = smov (!%p1096_p1, %s1095_s5), 383  ;;  %s1101_s9 = sadd.s32 102, %s3254_s19 }
 0x143   : > { %1064 = vst [vmem:[%s3284_s27 + $0x58] sm:$0xff] %v1063_v19  ;;  %v1114_v22 = vrot.slane %v1076_v20, 7  ;;  %s1098_s11 = sld [smem:[#allocation3 + %s4112_s5]]  ;;  %s1081_s13 = scalar_lea.vmem [#allocation4], %s1080_s30 }
 0x144   : > { %v1082_v23 = vld [vmem:[%s1081_s13] sm:$0x1]  ;;  %p1102_p3 = scmp.lt.s32.totalorder %s1101_s9, 383  ;;  %s1087_s22 = scalar_lea.vmem [#allocation4], %s1086_s21 }
 0x145   : > { %v1134_v24 = vsel %vm191_vm0, %v1070_v21, %v1114_v22  ;;  %v1088_v25 = vld [vmem:[%s1087_s22] sm:$0x1]  ;;  %s1107_s12 = sadd.s32 103, %s3254_s19  ;;  %v1117_v26 = vrot.slane %v1082_v23, 6  ;;  %s1143_s28 = sadd.s32 104, %s3254_s19 }
 0x146   : > { %s4114_s9 = smov (!%p1102_p3, %s1101_s9), 383  ;;  %v1120_v27 = vrot.slane %v1088_v25, 5  ;;  %p1108_p7 = scmp.lt.s32.totalorder %s1107_s12, 383 }
 0x147   : > { %v1135_v28 = vsel %vm193_vm1, %v1134_v24, %v1117_v26  ;;  %p1144_p8 = scmp.lt.s32.totalorder %s1143_s28, 383  ;;  %s1104_s10 = sld [smem:[#allocation3 + %s4114_s9]] }
 0x148   : > { %s1093_s26 = scalar_lea.vmem [#allocation4], %s1092_s8  ;;  %s1149_s3 = sadd.s32 105, %s3254_s19  ;;  %v1136_v32 = vsel %vm195_vm2, %v1135_v28, %v1120_v27 }
 0x149   : > { %v1094_v29 = vld [vmem:[%s1093_s26] sm:$0x1]  ;;  %s1099_s29 = scalar_lea.vmem [#allocation4], %s1098_s11  ;;  %s4116_s12 = smov (!%p1108_p7, %s1107_s12), 383 }
 0x14a   : > { %v1100_v30 = vld [vmem:[%s1099_s29] sm:$0x1]  ;;  %v1123_v31 = vrot.slane %v1094_v29, 4  ;;  %s4118_s28 = smov (!%p1144_p8, %s1143_s28), 383  ;;  %s1110_s4 = sld [smem:[#allocation3 + %s4116_s12]] }
 0x14b   : > { %v1126_v33 = vrot.slane %v1100_v30, 3  ;;  %p1150_p9 = scmp.lt.s32.totalorder %s1149_s3, 383  ;;  %s3491_s30 = sld [smem:[#allocation3 + %s4118_s28]] }
 0x14c   : > { %v1137_v34 = vsel %vm197_vm3, %v1136_v32, %v1123_v31  ;;  %s1155_s21 = sadd.s32 106, %s3254_s19  ;;  %s1161_s7 = sadd.s32 107, %s3254_s19 }
 0x14d   : > { %p1156_p12 = scmp.lt.s32.totalorder %s1155_s21, 383  ;;  %s1105_s5 = scalar_lea.vmem [#allocation4], %s1104_s10  ;;  %v1138_v37 = vsel %vm199_vm4, %v1137_v34, %v1126_v33 }
 0x14e   : > { %v1106_v35 = vld [vmem:[%s1105_s5] sm:$0x1]  ;;  %s4120_s3 = smov (!%p1150_p9, %s1149_s3), 383  ;;  %p1162_p13 = scmp.lt.s32.totalorder %s1161_s7, 383 }
 0x14f   : > { %v1129_v36 = vrot.slane %v1106_v35, 2  ;;  %s4122_s21 = smov (!%p1156_p12, %s1155_s21), 383  ;;  %s1152_s6 = sld [smem:[#allocation3 + %s4120_s3]] }
 0x150   : > { %s1158_s8 = sld [smem:[#allocation3 + %s4122_s21]]  ;;  %s1111_s9 = scalar_lea.vmem [#allocation4], %s1110_s4 }
 0x151   : > { %v1112_v38 = vld [vmem:[%s1111_s9] sm:$0x1]  ;;  %v1139_v39 = vsel %vm201_vm5, %v1138_v37, %v1129_v36  ;;  %s1167_s11 = sadd.s32 108, %s3254_s19  ;;  %s1173_s13 = sadd.s32 109, %s3254_s19 }
 0x152   : > { %v1132_v40 = vrot.slane %v1112_v38, 1  ;;  %s4124_s7 = smov (!%p1162_p13, %s1161_s7), 383  ;;  %p1168_p2 = scmp.lt.s32.totalorder %s1167_s11, 383 }
 0x153   : > { %p1174_p4 = scmp.lt.s32.totalorder %s1173_s13, 383  ;;  %s1164_s22 = sld [smem:[#allocation3 + %s4124_s7]] }
 0x154   : > { %v1140_v41 = vsel %vm203_vm6, %v1139_v39, %v1132_v40  ;;  %s1179_s28 = sadd.s32 110, %s3254_s19  ;;  %s1147_s10 = scalar_lea.vmem [#allocation4], %s3491_s30 }
 0x155   : > { %v1141_v42 = vmul.f32 11.313708, %v1140_v41  ;;  %s1153_s12 = scalar_lea.vmem [#allocation4], %s1152_s6  ;;  %v1148_v44 = vld [vmem:[%s1147_s10] sm:$0x1]  ;;  %s4126_s11 = smov (!%p1168_p2, %s1167_s11), 383 }
 0x156   : > { %v1154_v43 = vld [vmem:[%s1153_s12] sm:$0x1]  ;;  %s1159_s26 = scalar_lea.vmem [#allocation4], %s1158_s8  ;;  %s4128_s13 = smov (!%p1174_p4, %s1173_s13), 383 }
 0x157   : > { %1142 = vst [vmem:[%s3284_s27 + $0x60] sm:$0xff] %v1141_v42  ;;  %v1160_v45 = vld [vmem:[%s1159_s26] sm:$0x1]  ;;  %v1192_v46 = vrot.slane %v1154_v43, 7  ;;  %s1170_s3 = sld [smem:[#allocation3 + %s4126_s11]]  ;;  %p1180_p6 = scmp.lt.s32.totalorder %s1179_s28, 383 }
 0x158   : > { %v1195_v47 = vrot.slane %v1160_v45, 6  ;;  %s1176_s29 = sld [smem:[#allocation3 + %s4128_s13]]  ;;  %s1185_s4 = sadd.s32 111, %s3254_s19 }
 0x159   : > { %v1212_v48 = vsel %vm191_vm0, %v1148_v44, %v1192_v46  ;;  %p1186_p5 = scmp.lt.s32.totalorder %s1185_s4, 383  ;;  %s1165_s21 = scalar_lea.vmem [#allocation4], %s1164_s22 }
 0x15a   : > { %v1166_v49 = vld [vmem:[%s1165_s21] sm:$0x1]  ;;  %s4130_s28 = smov (!%p1180_p6, %s1179_s28), 383  ;;  %v1213_v51 = vsel %vm193_vm1, %v1212_v48, %v1195_v47  ;;  %s1221_s5 = sadd.s32 112, %s3254_s19 }
 0x15b   : > { %s4132_s4 = smov (!%p1186_p5, %s1185_s4), 383  ;;  %v1198_v50 = vrot.slane %v1166_v49, 5  ;;  %s1182_s30 = sld [smem:[#allocation3 + %s4130_s28]] }
 0x15c   : > { %s1188_s6 = sld [smem:[#allocation3 + %s4132_s4]]  ;;  %p1222_p10 = scmp.lt.s32.totalorder %s1221_s5, 383 }
 0x15d   : > { %s1171_s7 = scalar_lea.vmem [#allocation4], %s1170_s3  ;;  %v1214_v53 = vsel %vm195_vm2, %v1213_v51, %v1198_v50  ;;  %s1227_s9 = sadd.s32 113, %s3254_s19 }
 0x15e   : > { %v1172_v52 = vld [vmem:[%s1171_s7] sm:$0x1]  ;;  %s1177_s8 = scalar_lea.vmem [#allocation4], %s1176_s29  ;;  %s1233_s11 = sadd.s32 114, %s3254_s19 }
 0x15f   : > { %v1178_v54 = vld [vmem:[%s1177_s8] sm:$0x1]  ;;  %v1201_v55 = vrot.slane %v1172_v52, 4  ;;  %s4134_s5 = smov (!%p1222_p10, %s1221_s5), 383  ;;  %p1228_p11 = scmp.lt.s32.totalorder %s1227_s9, 383 }
 0x160   : > { %v1204_v56 = vrot.slane %v1178_v54, 3  ;;  %p1234_p0 = scmp.lt.s32.totalorder %s1233_s11, 383  ;;  %s1224_s13 = sld [smem:[#allocation3 + %s4134_s5]] }
 0x161   : > { %v1215_v57 = vsel %vm197_vm3, %v1214_v53, %v1201_v55  ;;  %s1183_s22 = scalar_lea.vmem [#allocation4], %s1182_s30  ;;  %s1239_s12 = sadd.s32 115, %s3254_s19 }
 0x162   : > { %v1184_v58 = vld [vmem:[%s1183_s22] sm:$0x1]  ;;  %v1216_v59 = vsel %vm199_vm4, %v1215_v57, %v1204_v56  ;;  %s1189_s28 = scalar_lea.vmem [#allocation4], %s1188_s6  ;;  %s4136_s9 = smov (!%p1228_p11, %s1227_s9), 383 }
 0x163   : > { %v1190_v60 = vld [vmem:[%s1189_s28] sm:$0x1]  ;;  %v1207_v61 = vrot.slane %v1184_v58, 2  ;;  %s4138_s11 = smov (!%p1234_p0, %s1233_s11), 383  ;;  %s1230_s10 = sld [smem:[#allocation3 + %s4136_s9]] }
 0x164   : > { %v1210_v62 = vrot.slane %v1190_v60, 1  ;;  %p1240_p1 = scmp.lt.s32.totalorder %s1239_s12, 383  ;;  %s1236_s26 = sld [smem:[#allocation3 + %s4138_s11]] }
 0x165   : > { %v1217_v63 = vsel %vm201_vm5, %v1216_v59, %v1207_v61  ;;  %s1245_s3 = sadd.s32 116, %s3254_s19  ;;  %s1251_s4 = sadd.s32 117, %s3254_s19 }
 0x166   : > { %v1218_v0 = vsel %vm203_vm6, %v1217_v63, %v1210_v62  ;;  %p1246_p3 = scmp.lt.s32.totalorder %s1245_s3, 383  ;;  %s4140_s12 = smov (!%p1240_p1, %s1239_s12), 383 }
 0x167   : > { %v1219_v1 = vmul.f32 11.313708, %v1218_v0  ;;  %s1242_s29 = sld [smem:[#allocation3 + %s4140_s12]]  ;;  %s1225_s30 = scalar_lea.vmem [#allocation4], %s1224_s13 }
 0x168   : > { %s4142_s3 = smov (!%p1246_p3, %s1245_s3), 383  ;;  %v1226_v2 = vld [vmem:[%s1225_s30] sm:$0x1]  ;;  %p1252_p7 = scmp.lt.s32.totalorder %s1251_s4, 383 }
 0x169   : > { %1220 = vst [vmem:[%s3284_s27 + $0x68] sm:$0xff] %v1219_v1  ;;  %s1248_s21 = sld [smem:[#allocation3 + %s4142_s3]]  ;;  %s1231_s5 = scalar_lea.vmem [#allocation4], %s1230_s10 }
 0x16a   : > { %v1232_v3 = vld [vmem:[%s1231_s5] sm:$0x1]  ;;  %s1237_s6 = scalar_lea.vmem [#allocation4], %s1236_s26  ;;  %s1257_s7 = sadd.s32 118, %s3254_s19 }
 0x16b   : > { %v1238_v4 = vld [vmem:[%s1237_s6] sm:$0x1]  ;;  %s1263_s8 = sadd.s32 119, %s3254_s19  ;;  %v1270_v5 = vrot.slane %v1232_v3, 7  ;;  %s4144_s4 = smov (!%p1252_p7, %s1251_s4), 383 }
 0x16c   : > { %v1273_v6 = vrot.slane %v1238_v4, 6  ;;  %p1258_p8 = scmp.lt.s32.totalorder %s1257_s7, 383  ;;  %p1264_p9 = scmp.lt.s32.totalorder %s1263_s8, 383 }
 0x16d   : > { %v1290_v7 = vsel %vm191_vm0, %v1226_v2, %v1270_v5  ;;  %s1254_s9 = sld [smem:[#allocation3 + %s4144_s4]]  ;;  %s1243_s11 = scalar_lea.vmem [#allocation4], %s1242_s29 }
 0x16e   : > { %v1244_v8 = vld [vmem:[%s1243_s11] sm:$0x1]  ;;  %s1299_s13 = sadd.s32 120, %s3254_s19  ;;  %s4146_s7 = smov (!%p1258_p8, %s1257_s7), 383  ;;  %v1291_v11 = vsel %vm193_vm1, %v1290_v7, %v1273_v6 }
 0x16f   : > { %s1249_s22 = scalar_lea.vmem [#allocation4], %s1248_s21  ;;  %v1276_v10 = vrot.slane %v1244_v8, 5  ;;  %s4148_s8 = smov (!%p1264_p9, %s1263_s8), 383 }
 0x170   : > { %v1250_v9 = vld [vmem:[%s1249_s22] sm:$0x1]  ;;  %s1260_s12 = sld [smem:[#allocation3 + %s4146_s7]]  ;;  %p1300_p12 = scmp.lt.s32.totalorder %s1299_s13, 383 }
 0x171   : > { %v1279_v12 = vrot.slane %v1250_v9, 4  ;;  %s1266_s28 = sld [smem:[#allocation3 + %s4148_s8]]  ;;  %v1292_v13 = vsel %vm195_vm2, %v1291_v11, %v1276_v10  ;;  %s1305_s10 = sadd.s32 121, %s3254_s19 }
 0x172   : > { %p1306_p13 = scmp.lt.s32.totalorder %s1305_s10, 383  ;;  %s4150_s13 = smov (!%p1300_p12, %s1299_s13), 383 }
 0x173   : > { %s1255_s26 = scalar_lea.vmem [#allocation4], %s1254_s9  ;;  %v1293_v16 = vsel %vm197_vm3, %v1292_v13, %v1279_v12  ;;  %s3526_s3 = sld [smem:[#allocation3 + %s4150_s13]] }
 0x174   : > { %v1256_v14 = vld [vmem:[%s1255_s26] sm:$0x1]  ;;  %s4152_s10 = smov (!%p1306_p13, %s1305_s10), 383  ;;  %s1311_s29 = sadd.s32 122, %s3254_s19 }
 0x175   : > { %v1282_v15 = vrot.slane %v1256_v14, 3  ;;  %s1308_s4 = sld [smem:[#allocation3 + %s4152_s10]]  ;;  %p1312_p2 = scmp.lt.s32.totalorder %s1311_s29, 383 }
 0x176   : > { %s1261_s21 = scalar_lea.vmem [#allocation4], %s1260_s12  ;;  %s1317_s5 = sadd.s32 123, %s3254_s19 }
 0x177   : > { %v1262_v17 = vld [vmem:[%s1261_s21] sm:$0x1]  ;;  %v1294_v18 = vsel %vm199_vm4, %v1293_v16, %v1282_v15  ;;  %s1267_s30 = scalar_lea.vmem [#allocation4], %s1266_s28  ;;  %s1323_s6 = sadd.s32 124, %s3254_s19 }
 0x178   : > { %v1268_v19 = vld [vmem:[%s1267_s30] sm:$0x1]  ;;  %v1285_v20 = vrot.slane %v1262_v17, 2  ;;  %s4154_s29 = smov (!%p1312_p2, %s1311_s29), 383  ;;  %p1318_p4 = scmp.lt.s32.totalorder %s1317_s5, 383 }
 0x179   : > { %v1288_v21 = vrot.slane %v1268_v19, 1  ;;  %p1324_p6 = scmp.lt.s32.totalorder %s1323_s6, 383  ;;  %s1314_s7 = sld [smem:[#allocation3 + %s4154_s29]] }
 0x17a   : > { %v1295_v22 = vsel %vm201_vm5, %v1294_v18, %v1285_v20  ;;  %s1329_s8 = sadd.s32 125, %s3254_s19  ;;  %s4156_s5 = smov (!%p1318_p4, %s1317_s5), 383 }
 0x17b   : > { %v1296_v23 = vsel %vm203_vm6, %v1295_v22, %v1288_v21  ;;  %s1309_s9 = scalar_lea.vmem [#allocation4], %s1308_s4  ;;  %s4158_s6 = smov (!%p1324_p6, %s1323_s6), 383 }
 0x17c   : > { %v1297_v24 = vmul.f32 11.313708, %v1296_v23  ;;  %v1310_v25 = vld [vmem:[%s1309_s9] sm:$0x1]  ;;  %s1320_s11 = sld [smem:[#allocation3 + %s4156_s5]]  ;;  %p1330_p5 = scmp.lt.s32.totalorder %s1329_s8, 383 }
 0x17d   : > { %v1348_v26 = vrot.slane %v1310_v25, 7  ;;  %s1303_s13 = scalar_lea.vmem [#allocation4], %s3526_s3  ;;  %s1326_s22 = sld [smem:[#allocation3 + %s4158_s6]] }
 0x17e   : > { %1298 = vst [vmem:[%s3284_s27 + $0x70] sm:$0xff] %v1297_v24  ;;  %v1304_v27 = vld [vmem:[%s1303_s13] sm:$0x1]  ;;  %s1335_s12 = sadd.s32 126, %s3254_s19  ;;  %s4160_s8 = smov (!%p1330_p5, %s1329_s8), 383 }
 0x17f   : > { %p1336_p10 = scmp.lt.s32.totalorder %s1335_s12, 383  ;;  %s1315_s28 = scalar_lea.vmem [#allocation4], %s1314_s7  ;;  %v1368_v30 = vsel %vm191_vm0, %v1304_v27, %v1348_v26 }
 0x180   : > { %v1316_v28 = vld [vmem:[%s1315_s28] sm:$0x1]  ;;  %s1332_s10 = sld [smem:[#allocation3 + %s4160_s8]]  ;;  %s1341_s26 = sadd.s32 127, %s3254_s19 }
 0x181   : > { %s4162_s12 = smov (!%p1336_p10, %s1335_s12), 383  ;;  %v1351_v29 = vrot.slane %v1316_v28, 6  ;;  %p1342_p11 = scmp.lt.s32.totalorder %s1341_s26, 383 }
 0x182   : > { %s1338_s29 = sld [smem:[#allocation3 + %s4162_s12]]  ;;  %s1321_s4 = scalar_lea.vmem [#allocation4], %s1320_s11 }
 0x183   : > { %v1322_v31 = vld [vmem:[%s1321_s4] sm:$0x1]  ;;  %v1369_v32 = vsel %vm193_vm1, %v1368_v30, %v1351_v29  ;;  %s1327_s3 = scalar_lea.vmem [#allocation4], %s1326_s22  ;;  %s1377_s21 = sadd.s32 128, %s3254_s19 }
 0x184   : > { %v1328_v33 = vld [vmem:[%s1327_s3] sm:$0x1]  ;;  %v1354_v34 = vrot.slane %v1322_v31, 5  ;;  %s1383_s30 = sadd.s32 129, %s3254_s19  ;;  %s4164_s26 = smov (!%p1342_p11, %s1341_s26), 383 }
 0x185   : > { %v1357_v35 = vrot.slane %v1328_v33, 4  ;;  %p1378_p0 = scmp.lt.s32.totalorder %s1377_s21, 383  ;;  %p1384_p1 = scmp.lt.s32.totalorder %s1383_s30, 383 }
 0x186   : > { %v1370_v36 = vsel %vm195_vm2, %v1369_v32, %v1354_v34  ;;  %s1344_s5 = sld [smem:[#allocation3 + %s4164_s26]]  ;;  %s1333_s6 = scalar_lea.vmem [#allocation4], %s1332_s10 }
 0x187   : > { %v1334_v37 = vld [vmem:[%s1333_s6] sm:$0x1]  ;;  %v1371_v38 = vsel %vm197_vm3, %v1370_v36, %v1357_v35  ;;  %s1389_s7 = sadd.s32 130, %s3254_s19  ;;  %s4166_s21 = smov (!%p1378_p0, %s1377_s21), 383 }
 0x188   : > { %s1339_s8 = scalar_lea.vmem [#allocation4], %s1338_s29  ;;  %v1360_v40 = vrot.slane %v1334_v37, 3  ;;  %s4168_s30 = smov (!%p1384_p1, %s1383_s30), 383 }
 0x189   : > { %v1340_v39 = vld [vmem:[%s1339_s8] sm:$0x1]  ;;  %s1380_s9 = sld [smem:[#allocation3 + %s4166_s21]]  ;;  %p1390_p3 = scmp.lt.s32.totalorder %s1389_s7, 383 }
 0x18a   : > { %v1363_v41 = vrot.slane %v1340_v39, 2  ;;  %v1372_v42 = vsel %vm199_vm4, %v1371_v38, %v1360_v40  ;;  %s1386_s11 = sld [smem:[#allocation3 + %s4168_s30]]  ;;  %s1395_s13 = sadd.s32 131, %s3254_s19 }
 0x18b   : > { %p1396_p7 = scmp.lt.s32.totalorder %s1395_s13, 383  ;;  %s4170_s7 = smov (!%p1390_p3, %s1389_s7), 383 }
 0x18c   : > { %s1345_s22 = scalar_lea.vmem [#allocation4], %s1344_s5  ;;  %v1373_v44 = vsel %vm201_vm5, %v1372_v42, %v1363_v41  ;;  %s1392_s12 = sld [smem:[#allocation3 + %s4170_s7]] }
 0x18d   : > { %v1346_v43 = vld [vmem:[%s1345_s22] sm:$0x1]  ;;  %s4172_s13 = smov (!%p1396_p7, %s1395_s13), 383  ;;  %s1401_s28 = sadd.s32 132, %s3254_s19 }
 0x18e   : > { %v1366_v45 = vrot.slane %v1346_v43, 1  ;;  %s1398_s10 = sld [smem:[#allocation3 + %s4172_s13]]  ;;  %p1402_p8 = scmp.lt.s32.totalorder %s1401_s28, 383 }
 0x18f   : > { %s1407_s29 = sadd.s32 133, %s3254_s19  ;;  %s1413_s4 = sadd.s32 134, %s3254_s19 }
 0x190   : > { %v1374_v46 = vsel %vm203_vm6, %v1373_v44, %v1366_v45  ;;  %s1387_s26 = scalar_lea.vmem [#allocation4], %s1386_s11  ;;  %s4174_s28 = smov (!%p1402_p8, %s1401_s28), 383 }
 0x191   : > { %v1375_v47 = vmul.f32 11.313708, %v1374_v46  ;;  %v1388_v48 = vld [vmem:[%s1387_s26] sm:$0x1]  ;;  %s1381_s3 = scalar_lea.vmem [#allocation4], %s1380_s9  ;;  %p1408_p9 = scmp.lt.s32.totalorder %s1407_s29, 383 }
 0x192   : > { %v1426_v49 = vrot.slane %v1388_v48, 7  ;;  %v1382_v50 = vld [vmem:[%s1381_s3] sm:$0x1]  ;;  %p1414_p12 = scmp.lt.s32.totalorder %s1413_s4, 383  ;;  %s1404_s21 = sld [smem:[#allocation3 + %s4174_s28]] }
 0x193   : > { %1376 = vst [vmem:[%s3284_s27 + $0x78] sm:$0xff] %v1375_v47  ;;  %s1393_s30 = scalar_lea.vmem [#allocation4], %s1392_s12  ;;  %s1419_s5 = sadd.s32 135, %s3254_s19 }
 0x194   : > { %v1394_v51 = vld [vmem:[%s1393_s30] sm:$0x1]  ;;  %s1399_s6 = scalar_lea.vmem [#allocation4], %s1398_s10  ;;  %s4176_s29 = smov (!%p1408_p9, %s1407_s29), 383  ;;  %v1446_v54 = vsel %vm191_vm0, %v1382_v50, %v1426_v49 }
 0x195   : > { %v1400_v52 = vld [vmem:[%s1399_s6] sm:$0x1]  ;;  %v1429_v53 = vrot.slane %v1394_v51, 6  ;;  %s4178_s4 = smov (!%p1414_p12, %s1413_s4), 383  ;;  %s1410_s7 = sld [smem:[#allocation3 + %s4176_s29]] }
 0x196   : > { %p1420_p13 = scmp.lt.s32.totalorder %s1419_s5, 383  ;;  %v1432_v55 = vrot.slane %v1400_v52, 5  ;;  %s1416_s8 = sld [smem:[#allocation3 + %s4178_s4]] }
 0x197   : > { %v1447_v56 = vsel %vm193_vm1, %v1446_v54, %v1429_v53  ;;  %s1455_s9 = sadd.s32 136, %s3254_s19  ;;  %s1461_s22 = sadd.s32 137, %s3254_s19 }
 0x198   : > { %p1456_p2 = scmp.lt.s32.totalorder %s1455_s9, 383  ;;  %s1405_s11 = scalar_lea.vmem [#allocation4], %s1404_s21  ;;  %v1448_v59 = vsel %vm195_vm2, %v1447_v56, %v1432_v55 }
 0x199   : > { %v1406_v57 = vld [vmem:[%s1405_s11] sm:$0x1]  ;;  %s4180_s5 = smov (!%p1420_p13, %s1419_s5), 383  ;;  %p1462_p4 = scmp.lt.s32.totalorder %s1461_s22, 383 }
 0x19a   : > { %v1435_v58 = vrot.slane %v1406_v57, 4  ;;  %s4182_s9 = smov (!%p1456_p2, %s1455_s9), 383  ;;  %s1422_s13 = sld [smem:[#allocation3 + %s4180_s5]] }
 0x19b   : > { %s3560_s12 = sld [smem:[#allocation3 + %s4182_s9]]  ;;  %s1411_s28 = scalar_lea.vmem [#allocation4], %s1410_s7 }
 0x19c   : > { %v1412_v60 = vld [vmem:[%s1411_s28] sm:$0x1]  ;;  %v1449_v61 = vsel %vm197_vm3, %v1448_v59, %v1435_v58  ;;  %s1417_s10 = scalar_lea.vmem [#allocation4], %s1416_s8  ;;  %s1467_s26 = sadd.s32 138, %s3254_s19 }
 0x19d   : > { %v1418_v62 = vld [vmem:[%s1417_s10] sm:$0x1]  ;;  %v1438_v63 = vrot.slane %v1412_v60, 3  ;;  %s1473_s29 = sadd.s32 139, %s3254_s19  ;;  %s4184_s22 = smov (!%p1462_p4, %s1461_s22), 383 }
 0x19e   : > { %v1441_v0 = vrot.slane %v1418_v62, 2  ;;  %p1468_p6 = scmp.lt.s32.totalorder %s1467_s26, 383  ;;  %p1474_p5 = scmp.lt.s32.totalorder %s1473_s29, 383 }
 0x19f   : > { %v1450_v1 = vsel %vm199_vm4, %v1449_v61, %v1438_v63  ;;  %s1464_s4 = sld [smem:[#allocation3 + %s4184_s22]]  ;;  %s1479_s21 = sadd.s32 140, %s3254_s19 }
 0x1a0   : > { %s1423_s3 = scalar_lea.vmem [#allocation4], %s1422_s13  ;;  %v1451_v3 = vsel %vm201_vm5, %v1450_v1, %v1441_v0  ;;  %s4186_s26 = smov (!%p1468_p6, %s1467_s26), 383 }
 0x1a1   : > { %v1424_v2 = vld [vmem:[%s1423_s3] sm:$0x1]  ;;  %s4188_s29 = smov (!%p1474_p5, %s1473_s29), 383  ;;  %s1470_s30 = sld [smem:[#allocation3 + %s4186_s26]] }
 0x1a2   : > { %v1444_v4 = vrot.slane %v1424_v2, 1  ;;  %p1480_p10 = scmp.lt.s32.totalorder %s1479_s21, 383  ;;  %s1476_s5 = sld [smem:[#allocation3 + %s4188_s29]] }
 0x1a3   : > { %s1485_s6 = sadd.s32 141, %s3254_s19  ;;  %s1459_s8 = scalar_lea.vmem [#allocation4], %s3560_s12 }
 0x1a4   : > { %v1452_v5 = vsel %vm203_vm6, %v1451_v3, %v1444_v4  ;;  %p1486_p11 = scmp.lt.s32.totalorder %s1485_s6, 383  ;;  %s4190_s21 = smov (!%p1480_p10, %s1479_s21), 383  ;;  %v1460_v8 = vld [vmem:[%s1459_s8] sm:$0x1] }
 0x1a5   : > { %v1453_v6 = vmul.f32 11.313708, %v1452_v5  ;;  %s1465_s7 = scalar_lea.vmem [#allocation4], %s1464_s4  ;;  %s1482_s9 = sld [smem:[#allocation3 + %s4190_s21]] }
 0x1a6   : > { %v1466_v7 = vld [vmem:[%s1465_s7] sm:$0x1]  ;;  %s4192_s6 = smov (!%p1486_p11, %s1485_s6), 383  ;;  %s1491_s11 = sadd.s32 142, %s3254_s19 }
 0x1a7   : > { %1454 = vst [vmem:[%s3284_s27 + $0x80] sm:$0xff] %v1453_v6  ;;  %v1504_v9 = vrot.slane %v1466_v7, 7  ;;  %s1488_s13 = sld [smem:[#allocation3 + %s4192_s6]]  ;;  %s1471_s22 = scalar_lea.vmem [#allocation4], %s1470_s30 }
 0x1a8   : > { %v1472_v10 = vld [vmem:[%s1471_s22] sm:$0x1]  ;;  %p1492_p0 = scmp.lt.s32.totalorder %s1491_s11, 383  ;;  %s1477_s28 = scalar_lea.vmem [#allocation4], %s1476_s5 }
 0x1a9   : > { %v1524_v11 = vsel %vm191_vm0, %v1460_v8, %v1504_v9  ;;  %v1478_v12 = vld [vmem:[%s1477_s28] sm:$0x1]  ;;  %s1497_s10 = sadd.s32 143, %s3254_s19  ;;  %v1507_v13 = vrot.slane %v1472_v10, 6  ;;  %s1533_s26 = sadd.s32 144, %s3254_s19 }
 0x1aa   : > { %s4194_s11 = smov (!%p1492_p0, %s1491_s11), 383  ;;  %v1510_v14 = vrot.slane %v1478_v12, 5  ;;  %p1498_p1 = scmp.lt.s32.totalorder %s1497_s10, 383 }
 0x1ab   : > { %v1525_v15 = vsel %vm193_vm1, %v1524_v11, %v1507_v13  ;;  %p1534_p3 = scmp.lt.s32.totalorder %s1533_s26, 383  ;;  %s1494_s12 = sld [smem:[#allocation3 + %s4194_s11]] }
 0x1ac   : > { %s1483_s29 = scalar_lea.vmem [#allocation4], %s1482_s9  ;;  %s1539_s4 = sadd.s32 145, %s3254_s19  ;;  %v1526_v19 = vsel %vm195_vm2, %v1525_v15, %v1510_v14 }
 0x1ad   : > { %v1484_v16 = vld [vmem:[%s1483_s29] sm:$0x1]  ;;  %s1489_s3 = scalar_lea.vmem [#allocation4], %s1488_s13  ;;  %s4196_s10 = smov (!%p1498_p1, %s1497_s10), 383 }
 0x1ae   : > { %v1490_v17 = vld [vmem:[%s1489_s3] sm:$0x1]  ;;  %v1513_v18 = vrot.slane %v1484_v16, 4  ;;  %s4198_s26 = smov (!%p1534_p3, %s1533_s26), 383  ;;  %s1500_s21 = sld [smem:[#allocation3 + %s4196_s10]] }
 0x1af   : > { %v1516_v20 = vrot.slane %v1490_v17, 3  ;;  %p1540_p7 = scmp.lt.s32.totalorder %s1539_s4, 383  ;;  %s3580_s30 = sld [smem:[#allocation3 + %s4198_s26]] }
 0x1b0   : > { %v1527_v21 = vsel %vm197_vm3, %v1526_v19, %v1513_v18  ;;  %s1545_s5 = sadd.s32 146, %s3254_s19  ;;  %s1551_s8 = sadd.s32 147, %s3254_s19 }
 0x1b1   : > { %p1546_p8 = scmp.lt.s32.totalorder %s1545_s5, 383  ;;  %s1495_s6 = scalar_lea.vmem [#allocation4], %s1494_s12  ;;  %v1528_v24 = vsel %vm199_vm4, %v1527_v21, %v1516_v20 }
 0x1b2   : > { %v1496_v22 = vld [vmem:[%s1495_s6] sm:$0x1]  ;;  %s4200_s4 = smov (!%p1540_p7, %s1539_s4), 383  ;;  %p1552_p9 = scmp.lt.s32.totalorder %s1551_s8, 383 }
 0x1b3   : > { %v1519_v23 = vrot.slane %v1496_v22, 2  ;;  %s4202_s5 = smov (!%p1546_p8, %s1545_s5), 383  ;;  %s1542_s7 = sld [smem:[#allocation3 + %s4200_s4]] }
 0x1b4   : > { %s1548_s9 = sld [smem:[#allocation3 + %s4202_s5]]  ;;  %s1501_s11 = scalar_lea.vmem [#allocation4], %s1500_s21 }
 0x1b5   : > { %v1502_v25 = vld [vmem:[%s1501_s11] sm:$0x1]  ;;  %v1529_v26 = vsel %vm201_vm5, %v1528_v24, %v1519_v23  ;;  %s1557_s13 = sadd.s32 148, %s3254_s19  ;;  %s1563_s22 = sadd.s32 149, %s3254_s19 }
 0x1b6   : > { %v1522_v27 = vrot.slane %v1502_v25, 1  ;;  %s4204_s8 = smov (!%p1552_p9, %s1551_s8), 383  ;;  %p1558_p12 = scmp.lt.s32.totalorder %s1557_s13, 383 }
 0x1b7   : > { %p1564_p13 = scmp.lt.s32.totalorder %s1563_s22, 383  ;;  %s1554_s28 = sld [smem:[#allocation3 + %s4204_s8]] }
 0x1b8   : > { %v1530_v28 = vsel %vm203_vm6, %v1529_v26, %v1522_v27  ;;  %s1569_s26 = sadd.s32 150, %s3254_s19  ;;  %s1537_s12 = scalar_lea.vmem [#allocation4], %s3580_s30 }
 0x1b9   : > { %v1531_v29 = vmul.f32 11.313708, %v1530_v28  ;;  %s1543_s10 = scalar_lea.vmem [#allocation4], %s1542_s7  ;;  %v1538_v31 = vld [vmem:[%s1537_s12] sm:$0x1]  ;;  %s4206_s13 = smov (!%p1558_p12, %s1557_s13), 383 }
 0x1ba   : > { %v1544_v30 = vld [vmem:[%s1543_s10] sm:$0x1]  ;;  %s1549_s29 = scalar_lea.vmem [#allocation4], %s1548_s9  ;;  %s4208_s22 = smov (!%p1564_p13, %s1563_s22), 383 }
 0x1bb   : > { %1532 = vst [vmem:[%s3284_s27 + $0x88] sm:$0xff] %v1531_v29  ;;  %v1550_v32 = vld [vmem:[%s1549_s29] sm:$0x1]  ;;  %v1582_v33 = vrot.slane %v1544_v30, 7  ;;  %s1560_s4 = sld [smem:[#allocation3 + %s4206_s13]]  ;;  %p1570_p2 = scmp.lt.s32.totalorder %s1569_s26, 383 }
 0x1bc   : > { %v1585_v34 = vrot.slane %v1550_v32, 6  ;;  %s1566_s3 = sld [smem:[#allocation3 + %s4208_s22]]  ;;  %s1575_s21 = sadd.s32 151, %s3254_s19 }
 0x1bd   : > { %v1602_v35 = vsel %vm191_vm0, %v1538_v31, %v1582_v33  ;;  %p1576_p4 = scmp.lt.s32.totalorder %s1575_s21, 383  ;;  %s1555_s5 = scalar_lea.vmem [#allocation4], %s1554_s28 }
 0x1be   : > { %v1556_v36 = vld [vmem:[%s1555_s5] sm:$0x1]  ;;  %s4210_s26 = smov (!%p1570_p2, %s1569_s26), 383  ;;  %v1603_v38 = vsel %vm193_vm1, %v1602_v35, %v1585_v34  ;;  %s1611_s6 = sadd.s32 152, %s3254_s19 }
 0x1bf   : > { %s4212_s21 = smov (!%p1576_p4, %s1575_s21), 383  ;;  %v1588_v37 = vrot.slane %v1556_v36, 5  ;;  %s1572_s30 = sld [smem:[#allocation3 + %s4210_s26]] }
 0x1c0   : > { %s1578_s7 = sld [smem:[#allocation3 + %s4212_s21]]  ;;  %p1612_p6 = scmp.lt.s32.totalorder %s1611_s6, 383 }
 0x1c1   : > { %s1561_s8 = scalar_lea.vmem [#allocation4], %s1560_s4  ;;  %v1604_v40 = vsel %vm195_vm2, %v1603_v38, %v1588_v37  ;;  %s1617_s11 = sadd.s32 153, %s3254_s19 }
 0x1c2   : > { %v1562_v39 = vld [vmem:[%s1561_s8] sm:$0x1]  ;;  %s1567_s9 = scalar_lea.vmem [#allocation4], %s1566_s3  ;;  %s1623_s13 = sadd.s32 154, %s3254_s19 }
 0x1c3   : > { %v1568_v41 = vld [vmem:[%s1567_s9] sm:$0x1]  ;;  %v1591_v42 = vrot.slane %v1562_v39, 4  ;;  %s4214_s6 = smov (!%p1612_p6, %s1611_s6), 383  ;;  %p1618_p5 = scmp.lt.s32.totalorder %s1617_s11, 383 }
 0x1c4   : > { %v1594_v43 = vrot.slane %v1568_v41, 3  ;;  %p1624_p10 = scmp.lt.s32.totalorder %s1623_s13, 383  ;;  %s1614_s22 = sld [smem:[#allocation3 + %s4214_s6]] }
 0x1c5   : > { %v1605_v44 = vsel %vm197_vm3, %v1604_v40, %v1591_v42  ;;  %s1573_s28 = scalar_lea.vmem [#allocation4], %s1572_s30  ;;  %s1629_s10 = sadd.s32 155, %s3254_s19 }
 0x1c6   : > { %v1574_v45 = vld [vmem:[%s1573_s28] sm:$0x1]  ;;  %v1606_v46 = vsel %vm199_vm4, %v1605_v44, %v1594_v43  ;;  %s1579_s26 = scalar_lea.vmem [#allocation4], %s1578_s7  ;;  %s4216_s11 = smov (!%p1618_p5, %s1617_s11), 383 }
 0x1c7   : > { %v1580_v47 = vld [vmem:[%s1579_s26] sm:$0x1]  ;;  %v1597_v48 = vrot.slane %v1574_v45, 2  ;;  %s4218_s13 = smov (!%p1624_p10, %s1623_s13), 383  ;;  %s1620_s12 = sld [smem:[#allocation3 + %s4216_s11]] }
 0x1c8   : > { %v1600_v49 = vrot.slane %v1580_v47, 1  ;;  %p1630_p11 = scmp.lt.s32.totalorder %s1629_s10, 383  ;;  %s1626_s29 = sld [smem:[#allocation3 + %s4218_s13]] }
 0x1c9   : > { %v1607_v50 = vsel %vm201_vm5, %v1606_v46, %v1597_v48  ;;  %s1635_s4 = sadd.s32 156, %s3254_s19  ;;  %s1641_s21 = sadd.s32 157, %s3254_s19 }
 0x1ca   : > { %v1608_v51 = vsel %vm203_vm6, %v1607_v50, %v1600_v49  ;;  %p1636_p0 = scmp.lt.s32.totalorder %s1635_s4, 383  ;;  %s4220_s10 = smov (!%p1630_p11, %s1629_s10), 383 }
 0x1cb   : > { %v1609_v52 = vmul.f32 11.313708, %v1608_v51  ;;  %s1632_s3 = sld [smem:[#allocation3 + %s4220_s10]]  ;;  %s1615_s30 = scalar_lea.vmem [#allocation4], %s1614_s22 }
 0x1cc   : > { %s4222_s4 = smov (!%p1636_p0, %s1635_s4), 383  ;;  %v1616_v53 = vld [vmem:[%s1615_s30] sm:$0x1]  ;;  %p1642_p1 = scmp.lt.s32.totalorder %s1641_s21, 383 }
 0x1cd   : > { %1610 = vst [vmem:[%s3284_s27 + $0x90] sm:$0xff] %v1609_v52  ;;  %s1638_s5 = sld [smem:[#allocation3 + %s4222_s4]]  ;;  %s1621_s6 = scalar_lea.vmem [#allocation4], %s1620_s12 }
 0x1ce   : > { %v1622_v54 = vld [vmem:[%s1621_s6] sm:$0x1]  ;;  %s1627_s7 = scalar_lea.vmem [#allocation4], %s1626_s29  ;;  %s1647_s8 = sadd.s32 158, %s3254_s19 }
 0x1cf   : > { %v1628_v55 = vld [vmem:[%s1627_s7] sm:$0x1]  ;;  %s1653_s9 = sadd.s32 159, %s3254_s19  ;;  %v1660_v56 = vrot.slane %v1622_v54, 7  ;;  %s4224_s21 = smov (!%p1642_p1, %s1641_s21), 383 }
 0x1d0   : > { %v1663_v57 = vrot.slane %v1628_v55, 6  ;;  %p1648_p3 = scmp.lt.s32.totalorder %s1647_s8, 383  ;;  %p1654_p7 = scmp.lt.s32.totalorder %s1653_s9, 383 }
 0x1d1   : > { %v1680_v58 = vsel %vm191_vm0, %v1616_v53, %v1660_v56  ;;  %s1644_s11 = sld [smem:[#allocation3 + %s4224_s21]]  ;;  %s1633_s13 = scalar_lea.vmem [#allocation4], %s1632_s3 }
 0x1d2   : > { %v1634_v59 = vld [vmem:[%s1633_s13] sm:$0x1]  ;;  %s1689_s22 = sadd.s32 160, %s3254_s19  ;;  %s4226_s8 = smov (!%p1648_p3, %s1647_s8), 383  ;;  %v1681_v62 = vsel %vm193_vm1, %v1680_v58, %v1663_v57 }
 0x1d3   : > { %s1639_s28 = scalar_lea.vmem [#allocation4], %s1638_s5  ;;  %v1666_v61 = vrot.slane %v1634_v59, 5  ;;  %s4228_s9 = smov (!%p1654_p7, %s1653_s9), 383 }
 0x1d4   : > { %v1640_v60 = vld [vmem:[%s1639_s28] sm:$0x1]  ;;  %s1650_s10 = sld [smem:[#allocation3 + %s4226_s8]]  ;;  %p1690_p8 = scmp.lt.s32.totalorder %s1689_s22, 383 }
 0x1d5   : > { %v1669_v63 = vrot.slane %v1640_v60, 4  ;;  %s1656_s26 = sld [smem:[#allocation3 + %s4228_s9]]  ;;  %v1682_v0 = vsel %vm195_vm2, %v1681_v62, %v1666_v61  ;;  %s1695_s12 = sadd.s32 161, %s3254_s19 }
 0x1d6   : > { %p1696_p9 = scmp.lt.s32.totalorder %s1695_s12, 383  ;;  %s4230_s22 = smov (!%p1690_p8, %s1689_s22), 383 }
 0x1d7   : > { %s1645_s29 = scalar_lea.vmem [#allocation4], %s1644_s11  ;;  %v1683_v3 = vsel %vm197_vm3, %v1682_v0, %v1669_v63  ;;  %s3615_s4 = sld [smem:[#allocation3 + %s4230_s22]] }
 0x1d8   : > { %v1646_v1 = vld [vmem:[%s1645_s29] sm:$0x1]  ;;  %s4232_s12 = smov (!%p1696_p9, %s1695_s12), 383  ;;  %s1701_s3 = sadd.s32 162, %s3254_s19 }
 0x1d9   : > { %v1672_v2 = vrot.slane %v1646_v1, 3  ;;  %s1698_s21 = sld [smem:[#allocation3 + %s4232_s12]]  ;;  %p1702_p12 = scmp.lt.s32.totalorder %s1701_s3, 383 }
 0x1da   : > { %s1651_s5 = scalar_lea.vmem [#allocation4], %s1650_s10  ;;  %s1707_s6 = sadd.s32 163, %s3254_s19 }
 0x1db   : > { %v1652_v4 = vld [vmem:[%s1651_s5] sm:$0x1]  ;;  %v1684_v5 = vsel %vm199_vm4, %v1683_v3, %v1672_v2  ;;  %s1657_s30 = scalar_lea.vmem [#allocation4], %s1656_s26  ;;  %s1713_s7 = sadd.s32 164, %s3254_s19 }
 0x1dc   : > { %v1658_v6 = vld [vmem:[%s1657_s30] sm:$0x1]  ;;  %v1675_v7 = vrot.slane %v1652_v4, 2  ;;  %s4234_s3 = smov (!%p1702_p12, %s1701_s3), 383  ;;  %p1708_p13 = scmp.lt.s32.totalorder %s1707_s6, 383 }
 0x1dd   : > { %v1678_v8 = vrot.slane %v1658_v6, 1  ;;  %p1714_p2 = scmp.lt.s32.totalorder %s1713_s7, 383  ;;  %s1704_s8 = sld [smem:[#allocation3 + %s4234_s3]] }
 0x1de   : > { %v1685_v9 = vsel %vm201_vm5, %v1684_v5, %v1675_v7  ;;  %s1719_s9 = sadd.s32 165, %s3254_s19  ;;  %s4236_s6 = smov (!%p1708_p13, %s1707_s6), 383 }
 0x1df   : > { %v1686_v10 = vsel %vm203_vm6, %v1685_v9, %v1678_v8  ;;  %s1699_s11 = scalar_lea.vmem [#allocation4], %s1698_s21  ;;  %s4238_s7 = smov (!%p1714_p2, %s1713_s7), 383 }
 0x1e0   : > { %v1687_v11 = vmul.f32 11.313708, %v1686_v10  ;;  %v1700_v12 = vld [vmem:[%s1699_s11] sm:$0x1]  ;;  %s1710_s13 = sld [smem:[#allocation3 + %s4236_s6]]  ;;  %p1720_p4 = scmp.lt.s32.totalorder %s1719_s9, 383 }
 0x1e1   : > { %v1738_v13 = vrot.slane %v1700_v12, 7  ;;  %s1693_s22 = scalar_lea.vmem [#allocation4], %s3615_s4  ;;  %s1716_s28 = sld [smem:[#allocation3 + %s4238_s7]] }
 0x1e2   : > { %1688 = vst [vmem:[%s3284_s27 + $0x98] sm:$0xff] %v1687_v11  ;;  %v1694_v14 = vld [vmem:[%s1693_s22] sm:$0x1]  ;;  %s1725_s10 = sadd.s32 166, %s3254_s19  ;;  %s4240_s9 = smov (!%p1720_p4, %s1719_s9), 383 }
 0x1e3   : > { %p1726_p6 = scmp.lt.s32.totalorder %s1725_s10, 383  ;;  %s1705_s26 = scalar_lea.vmem [#allocation4], %s1704_s8  ;;  %v1758_v17 = vsel %vm191_vm0, %v1694_v14, %v1738_v13 }
 0x1e4   : > { %v1706_v15 = vld [vmem:[%s1705_s26] sm:$0x1]  ;;  %s1722_s12 = sld [smem:[#allocation3 + %s4240_s9]]  ;;  %s1731_s29 = sadd.s32 167, %s3254_s19 }
 0x1e5   : > { %s4242_s10 = smov (!%p1726_p6, %s1725_s10), 383  ;;  %v1741_v16 = vrot.slane %v1706_v15, 6  ;;  %p1732_p5 = scmp.lt.s32.totalorder %s1731_s29, 383 }
 0x1e6   : > { %s1728_s3 = sld [smem:[#allocation3 + %s4242_s10]]  ;;  %s1711_s21 = scalar_lea.vmem [#allocation4], %s1710_s13 }
 0x1e7   : > { %v1712_v18 = vld [vmem:[%s1711_s21] sm:$0x1]  ;;  %v1759_v19 = vsel %vm193_vm1, %v1758_v17, %v1741_v16  ;;  %s1717_s4 = scalar_lea.vmem [#allocation4], %s1716_s28  ;;  %s1767_s5 = sadd.s32 168, %s3254_s19 }
 0x1e8   : > { %v1718_v20 = vld [vmem:[%s1717_s4] sm:$0x1]  ;;  %v1744_v21 = vrot.slane %v1712_v18, 5  ;;  %s1773_s30 = sadd.s32 169, %s3254_s19  ;;  %s4244_s29 = smov (!%p1732_p5, %s1731_s29), 383 }
 0x1e9   : > { %v1747_v22 = vrot.slane %v1718_v20, 4  ;;  %p1768_p10 = scmp.lt.s32.totalorder %s1767_s5, 383  ;;  %p1774_p11 = scmp.lt.s32.totalorder %s1773_s30, 383 }
 0x1ea   : > { %v1760_v23 = vsel %vm195_vm2, %v1759_v19, %v1744_v21  ;;  %s1734_s6 = sld [smem:[#allocation3 + %s4244_s29]]  ;;  %s1723_s7 = scalar_lea.vmem [#allocation4], %s1722_s12 }
 0x1eb   : > { %v1724_v24 = vld [vmem:[%s1723_s7] sm:$0x1]  ;;  %v1761_v25 = vsel %vm197_vm3, %v1760_v23, %v1747_v22  ;;  %s1779_s8 = sadd.s32 170, %s3254_s19  ;;  %s4246_s5 = smov (!%p1768_p10, %s1767_s5), 383 }
 0x1ec   : > { %s1729_s9 = scalar_lea.vmem [#allocation4], %s1728_s3  ;;  %v1750_v27 = vrot.slane %v1724_v24, 3  ;;  %s4248_s30 = smov (!%p1774_p11, %s1773_s30), 383 }
 0x1ed   : > { %v1730_v26 = vld [vmem:[%s1729_s9] sm:$0x1]  ;;  %s1770_s11 = sld [smem:[#allocation3 + %s4246_s5]]  ;;  %p1780_p0 = scmp.lt.s32.totalorder %s1779_s8, 383 }
 0x1ee   : > { %v1753_v28 = vrot.slane %v1730_v26, 2  ;;  %v1762_v29 = vsel %vm199_vm4, %v1761_v25, %v1750_v27  ;;  %s1776_s13 = sld [smem:[#allocation3 + %s4248_s30]]  ;;  %s1785_s22 = sadd.s32 171, %s3254_s19 }
 0x1ef   : > { %p1786_p1 = scmp.lt.s32.totalorder %s1785_s22, 383  ;;  %s4250_s8 = smov (!%p1780_p0, %s1779_s8), 383 }
 0x1f0   : > { %s1735_s28 = scalar_lea.vmem [#allocation4], %s1734_s6  ;;  %v1763_v31 = vsel %vm201_vm5, %v1762_v29, %v1753_v28  ;;  %s1782_s10 = sld [smem:[#allocation3 + %s4250_s8]] }
 0x1f1   : > { %v1736_v30 = vld [vmem:[%s1735_s28] sm:$0x1]  ;;  %s4252_s22 = smov (!%p1786_p1, %s1785_s22), 383  ;;  %s1791_s26 = sadd.s32 172, %s3254_s19 }
 0x1f2   : > { %v1756_v32 = vrot.slane %v1736_v30, 1  ;;  %s1788_s12 = sld [smem:[#allocation3 + %s4252_s22]]  ;;  %p1792_p3 = scmp.lt.s32.totalorder %s1791_s26, 383 }
 0x1f3   : > { %s1797_s3 = sadd.s32 173, %s3254_s19  ;;  %s1803_s21 = sadd.s32 174, %s3254_s19 }
 0x1f4   : > { %v1764_v33 = vsel %vm203_vm6, %v1763_v31, %v1756_v32  ;;  %s1777_s29 = scalar_lea.vmem [#allocation4], %s1776_s13  ;;  %s4254_s26 = smov (!%p1792_p3, %s1791_s26), 383 }
 0x1f5   : > { %v1765_v34 = vmul.f32 11.313708, %v1764_v33  ;;  %v1778_v35 = vld [vmem:[%s1777_s29] sm:$0x1]  ;;  %s1771_s4 = scalar_lea.vmem [#allocation4], %s1770_s11  ;;  %p1798_p7 = scmp.lt.s32.totalorder %s1797_s3, 383 }
 0x1f6   : > { %v1816_v36 = vrot.slane %v1778_v35, 7  ;;  %v1772_v37 = vld [vmem:[%s1771_s4] sm:$0x1]  ;;  %p1804_p8 = scmp.lt.s32.totalorder %s1803_s21, 383  ;;  %s1794_s5 = sld [smem:[#allocation3 + %s4254_s26]] }
 0x1f7   : > { %1766 = vst [vmem:[%s3284_s27 + $0xa0] sm:$0xff] %v1765_v34  ;;  %s1783_s30 = scalar_lea.vmem [#allocation4], %s1782_s10  ;;  %s1809_s6 = sadd.s32 175, %s3254_s19 }
 0x1f8   : > { %v1784_v38 = vld [vmem:[%s1783_s30] sm:$0x1]  ;;  %s1789_s7 = scalar_lea.vmem [#allocation4], %s1788_s12  ;;  %s4256_s3 = smov (!%p1798_p7, %s1797_s3), 383  ;;  %v1836_v41 = vsel %vm191_vm0, %v1772_v37, %v1816_v36 }
 0x1f9   : > { %v1790_v39 = vld [vmem:[%s1789_s7] sm:$0x1]  ;;  %v1819_v40 = vrot.slane %v1784_v38, 6  ;;  %s4258_s21 = smov (!%p1804_p8, %s1803_s21), 383  ;;  %s1800_s8 = sld [smem:[#allocation3 + %s4256_s3]] }
 0x1fa   : > { %p1810_p9 = scmp.lt.s32.totalorder %s1809_s6, 383  ;;  %v1822_v42 = vrot.slane %v1790_v39, 5  ;;  %s1806_s9 = sld [smem:[#allocation3 + %s4258_s21]] }
 0x1fb   : > { %v1837_v43 = vsel %vm193_vm1, %v1836_v41, %v1819_v40  ;;  %s1845_s11 = sadd.s32 176, %s3254_s19  ;;  %s1851_s28 = sadd.s32 177, %s3254_s19 }
 0x1fc   : > { %p1846_p12 = scmp.lt.s32.totalorder %s1845_s11, 383  ;;  %s1795_s13 = scalar_lea.vmem [#allocation4], %s1794_s5  ;;  %v1838_v46 = vsel %vm195_vm2, %v1837_v43, %v1822_v42 }
 0x1fd   : > { %v1796_v44 = vld [vmem:[%s1795_s13] sm:$0x1]  ;;  %s4260_s6 = smov (!%p1810_p9, %s1809_s6), 383  ;;  %p1852_p13 = scmp.lt.s32.totalorder %s1851_s28, 383 }
 0x1fe   : > { %v1825_v45 = vrot.slane %v1796_v44, 4  ;;  %s4262_s11 = smov (!%p1846_p12, %s1845_s11), 383  ;;  %s1812_s22 = sld [smem:[#allocation3 + %s4260_s6]] }
 0x1ff   : > { %s3649_s10 = sld [smem:[#allocation3 + %s4262_s11]]  ;;  %s1801_s26 = scalar_lea.vmem [#allocation4], %s1800_s8 }
 0x200   : > { %v1802_v47 = vld [vmem:[%s1801_s26] sm:$0x1]  ;;  %v1839_v48 = vsel %vm197_vm3, %v1838_v46, %v1825_v45  ;;  %s1807_s12 = scalar_lea.vmem [#allocation4], %s1806_s9  ;;  %s1857_s29 = sadd.s32 178, %s3254_s19 }
 0x201   : > { %v1808_v49 = vld [vmem:[%s1807_s12] sm:$0x1]  ;;  %v1828_v50 = vrot.slane %v1802_v47, 3  ;;  %s1863_s3 = sadd.s32 179, %s3254_s19  ;;  %s4264_s28 = smov (!%p1852_p13, %s1851_s28), 383 }
 0x202   : > { %v1831_v51 = vrot.slane %v1808_v49, 2  ;;  %p1858_p2 = scmp.lt.s32.totalorder %s1857_s29, 383  ;;  %p1864_p4 = scmp.lt.s32.totalorder %s1863_s3, 383 }
 0x203   : > { %v1840_v52 = vsel %vm199_vm4, %v1839_v48, %v1828_v50  ;;  %s1854_s21 = sld [smem:[#allocation3 + %s4264_s28]]  ;;  %s1869_s5 = sadd.s32 180, %s3254_s19 }
 0x204   : > { %s1813_s4 = scalar_lea.vmem [#allocation4], %s1812_s22  ;;  %v1841_v54 = vsel %vm201_vm5, %v1840_v52, %v1831_v51  ;;  %s4266_s29 = smov (!%p1858_p2, %s1857_s29), 383 }
 0x205   : > { %v1814_v53 = vld [vmem:[%s1813_s4] sm:$0x1]  ;;  %s4268_s3 = smov (!%p1864_p4, %s1863_s3), 383  ;;  %s1860_s30 = sld [smem:[#allocation3 + %s4266_s29]] }
 0x206   : > { %v1834_v55 = vrot.slane %v1814_v53, 1  ;;  %p1870_p6 = scmp.lt.s32.totalorder %s1869_s5, 383  ;;  %s1866_s6 = sld [smem:[#allocation3 + %s4268_s3]] }
 0x207   : > { %s1875_s7 = sadd.s32 181, %s3254_s19  ;;  %s1849_s9 = scalar_lea.vmem [#allocation4], %s3649_s10 }
 0x208   : > { %v1842_v56 = vsel %vm203_vm6, %v1841_v54, %v1834_v55  ;;  %p1876_p5 = scmp.lt.s32.totalorder %s1875_s7, 383  ;;  %s4270_s5 = smov (!%p1870_p6, %s1869_s5), 383  ;;  %v1850_v59 = vld [vmem:[%s1849_s9] sm:$0x1] }
 0x209   : > { %v1843_v57 = vmul.f32 11.313708, %v1842_v56  ;;  %s1855_s8 = scalar_lea.vmem [#allocation4], %s1854_s21  ;;  %s1872_s11 = sld [smem:[#allocation3 + %s4270_s5]] }
 0x20a   : > { %v1856_v58 = vld [vmem:[%s1855_s8] sm:$0x1]  ;;  %s4272_s7 = smov (!%p1876_p5, %s1875_s7), 383  ;;  %s1881_s13 = sadd.s32 182, %s3254_s19 }
 0x20b   : > { %1844 = vst [vmem:[%s3284_s27 + $0xa8] sm:$0xff] %v1843_v57  ;;  %v1894_v60 = vrot.slane %v1856_v58, 7  ;;  %s1878_s22 = sld [smem:[#allocation3 + %s4272_s7]]  ;;  %s1861_s28 = scalar_lea.vmem [#allocation4], %s1860_s30 }
 0x20c   : > { %v1862_v61 = vld [vmem:[%s1861_s28] sm:$0x1]  ;;  %p1882_p10 = scmp.lt.s32.totalorder %s1881_s13, 383  ;;  %s1867_s26 = scalar_lea.vmem [#allocation4], %s1866_s6 }
 0x20d   : > { %v1914_v62 = vsel %vm191_vm0, %v1850_v59, %v1894_v60  ;;  %v1868_v63 = vld [vmem:[%s1867_s26] sm:$0x1]  ;;  %s1887_s12 = sadd.s32 183, %s3254_s19  ;;  %v1897_v0 = vrot.slane %v1862_v61, 6  ;;  %s1923_s29 = sadd.s32 184, %s3254_s19 }
 0x20e   : > { %s4274_s13 = smov (!%p1882_p10, %s1881_s13), 383  ;;  %v1900_v1 = vrot.slane %v1868_v63, 5  ;;  %p1888_p11 = scmp.lt.s32.totalorder %s1887_s12, 383 }
 0x20f   : > { %v1915_v2 = vsel %vm193_vm1, %v1914_v62, %v1897_v0  ;;  %p1924_p0 = scmp.lt.s32.totalorder %s1923_s29, 383  ;;  %s1884_s10 = sld [smem:[#allocation3 + %s4274_s13]] }
 0x210   : > { %s1873_s3 = scalar_lea.vmem [#allocation4], %s1872_s11  ;;  %s1929_s21 = sadd.s32 185, %s3254_s19  ;;  %v1916_v6 = vsel %vm195_vm2, %v1915_v2, %v1900_v1 }
 0x211   : > { %v1874_v3 = vld [vmem:[%s1873_s3] sm:$0x1]  ;;  %s1879_s4 = scalar_lea.vmem [#allocation4], %s1878_s22  ;;  %s4276_s12 = smov (!%p1888_p11, %s1887_s12), 383 }
 0x212   : > { %v1880_v4 = vld [vmem:[%s1879_s4] sm:$0x1]  ;;  %v1903_v5 = vrot.slane %v1874_v3, 4  ;;  %s4278_s29 = smov (!%p1924_p0, %s1923_s29), 383  ;;  %s1890_s5 = sld [smem:[#allocation3 + %s4276_s12]] }
 0x213   : > { %v1906_v7 = vrot.slane %v1880_v4, 3  ;;  %p1930_p1 = scmp.lt.s32.totalorder %s1929_s21, 383  ;;  %s3669_s30 = sld [smem:[#allocation3 + %s4278_s29]] }
 0x214   : > { %v1917_v8 = vsel %vm197_vm3, %v1916_v6, %v1903_v5  ;;  %s1935_s6 = sadd.s32 186, %s3254_s19  ;;  %s1941_s9 = sadd.s32 187, %s3254_s19 }
 0x215   : > { %p1936_p3 = scmp.lt.s32.totalorder %s1935_s6, 383  ;;  %s1885_s7 = scalar_lea.vmem [#allocation4], %s1884_s10  ;;  %v1918_v11 = vsel %vm199_vm4, %v1917_v8, %v1906_v7 }
 0x216   : > { %v1886_v9 = vld [vmem:[%s1885_s7] sm:$0x1]  ;;  %s4280_s21 = smov (!%p1930_p1, %s1929_s21), 383  ;;  %p1942_p7 = scmp.lt.s32.totalorder %s1941_s9, 383 }
 0x217   : > { %v1909_v10 = vrot.slane %v1886_v9, 2  ;;  %s4282_s6 = smov (!%p1936_p3, %s1935_s6), 383  ;;  %s1932_s8 = sld [smem:[#allocation3 + %s4280_s21]] }
 0x218   : > { %s1938_s11 = sld [smem:[#allocation3 + %s4282_s6]]  ;;  %s1891_s13 = scalar_lea.vmem [#allocation4], %s1890_s5 }
 0x219   : > { %v1892_v12 = vld [vmem:[%s1891_s13] sm:$0x1]  ;;  %v1919_v13 = vsel %vm201_vm5, %v1918_v11, %v1909_v10  ;;  %s1947_s22 = sadd.s32 188, %s3254_s19  ;;  %s1953_s28 = sadd.s32 189, %s3254_s19 }
 0x21a   : > { %v1912_v14 = vrot.slane %v1892_v12, 1  ;;  %s4284_s9 = smov (!%p1942_p7, %s1941_s9), 383  ;;  %p1948_p8 = scmp.lt.s32.totalorder %s1947_s22, 383 }
 0x21b   : > { %p1954_p9 = scmp.lt.s32.totalorder %s1953_s28, 383  ;;  %s1944_s26 = sld [smem:[#allocation3 + %s4284_s9]] }
 0x21c   : > { %v1920_v15 = vsel %vm203_vm6, %v1919_v13, %v1912_v14  ;;  %s1959_s29 = sadd.s32 190, %s3254_s19  ;;  %s1927_s10 = scalar_lea.vmem [#allocation4], %s3669_s30 }
 0x21d   : > { %v1921_v16 = vmul.f32 11.313708, %v1920_v15  ;;  %s1933_s12 = scalar_lea.vmem [#allocation4], %s1932_s8  ;;  %v1928_v18 = vld [vmem:[%s1927_s10] sm:$0x1]  ;;  %s4286_s22 = smov (!%p1948_p8, %s1947_s22), 383 }
 0x21e   : > { %v1934_v17 = vld [vmem:[%s1933_s12] sm:$0x1]  ;;  %s1939_s3 = scalar_lea.vmem [#allocation4], %s1938_s11  ;;  %s4288_s28 = smov (!%p1954_p9, %s1953_s28), 383 }
 0x21f   : > { %1922 = vst [vmem:[%s3284_s27 + $0xb0] sm:$0xff] %v1921_v16  ;;  %v1940_v19 = vld [vmem:[%s1939_s3] sm:$0x1]  ;;  %v1972_v20 = vrot.slane %v1934_v17, 7  ;;  %s1950_s21 = sld [smem:[#allocation3 + %s4286_s22]]  ;;  %p1960_p12 = scmp.lt.s32.totalorder %s1959_s29, 383 }
 0x220   : > { %v1975_v21 = vrot.slane %v1940_v19, 6  ;;  %s1956_s4 = sld [smem:[#allocation3 + %s4288_s28]]  ;;  %s1965_s5 = sadd.s32 191, %s3254_s19 }
 0x221   : > { %v1992_v22 = vsel %vm191_vm0, %v1928_v18, %v1972_v20  ;;  %p1966_p13 = scmp.lt.s32.totalorder %s1965_s5, 383  ;;  %s1945_s6 = scalar_lea.vmem [#allocation4], %s1944_s26 }
 0x222   : > { %v1946_v23 = vld [vmem:[%s1945_s6] sm:$0x1]  ;;  %s4290_s29 = smov (!%p1960_p12, %s1959_s29), 383  ;;  %v1993_v25 = vsel %vm193_vm1, %v1992_v22, %v1975_v21  ;;  %s2001_s7 = sadd.s32 192, %s3254_s19 }
 0x223   : > { %s4292_s5 = smov (!%p1966_p13, %s1965_s5), 383  ;;  %v1978_v24 = vrot.slane %v1946_v23, 5  ;;  %s1962_s30 = sld [smem:[#allocation3 + %s4290_s29]] }
 0x224   : > { %s1968_s8 = sld [smem:[#allocation3 + %s4292_s5]]  ;;  %p2002_p2 = scmp.lt.s32.totalorder %s2001_s7, 383 }
 0x225   : > { %s1951_s9 = scalar_lea.vmem [#allocation4], %s1950_s21  ;;  %v1994_v27 = vsel %vm195_vm2, %v1993_v25, %v1978_v24  ;;  %s2007_s13 = sadd.s32 193, %s3254_s19 }
 0x226   : > { %v1952_v26 = vld [vmem:[%s1951_s9] sm:$0x1]  ;;  %s1957_s11 = scalar_lea.vmem [#allocation4], %s1956_s4  ;;  %s2013_s22 = sadd.s32 194, %s3254_s19 }
 0x227   : > { %v1958_v28 = vld [vmem:[%s1957_s11] sm:$0x1]  ;;  %v1981_v29 = vrot.slane %v1952_v26, 4  ;;  %s4294_s7 = smov (!%p2002_p2, %s2001_s7), 383  ;;  %p2008_p4 = scmp.lt.s32.totalorder %s2007_s13, 383 }
 0x228   : > { %v1984_v30 = vrot.slane %v1958_v28, 3  ;;  %p2014_p6 = scmp.lt.s32.totalorder %s2013_s22, 383  ;;  %s2004_s28 = sld [smem:[#allocation3 + %s4294_s7]] }
 0x229   : > { %v1995_v31 = vsel %vm197_vm3, %v1994_v27, %v1981_v29  ;;  %s1963_s26 = scalar_lea.vmem [#allocation4], %s1962_s30  ;;  %s2019_s12 = sadd.s32 195, %s3254_s19 }
 0x22a   : > { %v1964_v32 = vld [vmem:[%s1963_s26] sm:$0x1]  ;;  %v1996_v33 = vsel %vm199_vm4, %v1995_v31, %v1984_v30  ;;  %s1969_s29 = scalar_lea.vmem [#allocation4], %s1968_s8  ;;  %s4296_s13 = smov (!%p2008_p4, %s2007_s13), 383 }
 0x22b   : > { %v1970_v34 = vld [vmem:[%s1969_s29] sm:$0x1]  ;;  %v1987_v35 = vrot.slane %v1964_v32, 2  ;;  %s4298_s22 = smov (!%p2014_p6, %s2013_s22), 383  ;;  %s2010_s10 = sld [smem:[#allocation3 + %s4296_s13]] }
 0x22c   : > { %v1990_v36 = vrot.slane %v1970_v34, 1  ;;  %p2020_p5 = scmp.lt.s32.totalorder %s2019_s12, 383  ;;  %s2016_s3 = sld [smem:[#allocation3 + %s4298_s22]] }
 0x22d   : > { %v1997_v37 = vsel %vm201_vm5, %v1996_v33, %v1987_v35  ;;  %s2025_s21 = sadd.s32 196, %s3254_s19  ;;  %s2031_s5 = sadd.s32 197, %s3254_s19 }
 0x22e   : > { %v1998_v38 = vsel %vm203_vm6, %v1997_v37, %v1990_v36  ;;  %p2026_p10 = scmp.lt.s32.totalorder %s2025_s21, 383  ;;  %s4300_s12 = smov (!%p2020_p5, %s2019_s12), 383 }
 0x22f   : > { %v1999_v39 = vmul.f32 11.313708, %v1998_v38  ;;  %s2022_s4 = sld [smem:[#allocation3 + %s4300_s12]]  ;;  %s2005_s30 = scalar_lea.vmem [#allocation4], %s2004_s28 }
 0x230   : > { %s4302_s21 = smov (!%p2026_p10, %s2025_s21), 383  ;;  %v2006_v40 = vld [vmem:[%s2005_s30] sm:$0x1]  ;;  %p2032_p11 = scmp.lt.s32.totalorder %s2031_s5, 383 }
 0x231   : > { %2000 = vst [vmem:[%s3284_s27 + $0xb8] sm:$0xff] %v1999_v39  ;;  %s2028_s6 = sld [smem:[#allocation3 + %s4302_s21]]  ;;  %s2011_s7 = scalar_lea.vmem [#allocation4], %s2010_s10 }
 0x232   : > { %v2012_v41 = vld [vmem:[%s2011_s7] sm:$0x1]  ;;  %s2017_s8 = scalar_lea.vmem [#allocation4], %s2016_s3  ;;  %s2037_s9 = sadd.s32 198, %s3254_s19 }
 0x233   : > { %v2018_v42 = vld [vmem:[%s2017_s8] sm:$0x1]  ;;  %s2043_s11 = sadd.s32 199, %s3254_s19  ;;  %v2050_v43 = vrot.slane %v2012_v41, 7  ;;  %s4304_s5 = smov (!%p2032_p11, %s2031_s5), 383 }
 0x234   : > { %v2053_v44 = vrot.slane %v2018_v42, 6  ;;  %p2038_p0 = scmp.lt.s32.totalorder %s2037_s9, 383  ;;  %p2044_p1 = scmp.lt.s32.totalorder %s2043_s11, 383 }
 0x235   : > { %v2070_v45 = vsel %vm191_vm0, %v2006_v40, %v2050_v43  ;;  %s2034_s13 = sld [smem:[#allocation3 + %s4304_s5]]  ;;  %s2023_s22 = scalar_lea.vmem [#allocation4], %s2022_s4 }
 0x236   : > { %v2024_v46 = vld [vmem:[%s2023_s22] sm:$0x1]  ;;  %s2079_s28 = sadd.s32 200, %s3254_s19  ;;  %s4306_s9 = smov (!%p2038_p0, %s2037_s9), 383  ;;  %v2071_v49 = vsel %vm193_vm1, %v2070_v45, %v2053_v44 }
 0x237   : > { %s2029_s26 = scalar_lea.vmem [#allocation4], %s2028_s6  ;;  %v2056_v48 = vrot.slane %v2024_v46, 5  ;;  %s4308_s11 = smov (!%p2044_p1, %s2043_s11), 383 }
 0x238   : > { %v2030_v47 = vld [vmem:[%s2029_s26] sm:$0x1]  ;;  %s2040_s12 = sld [smem:[#allocation3 + %s4306_s9]]  ;;  %p2080_p3 = scmp.lt.s32.totalorder %s2079_s28, 383 }
 0x239   : > { %v2059_v50 = vrot.slane %v2030_v47, 4  ;;  %s2046_s29 = sld [smem:[#allocation3 + %s4308_s11]]  ;;  %v2072_v51 = vsel %vm195_vm2, %v2071_v49, %v2056_v48  ;;  %s2085_s10 = sadd.s32 201, %s3254_s19 }
 0x23a   : > { %p2086_p7 = scmp.lt.s32.totalorder %s2085_s10, 383  ;;  %s4310_s28 = smov (!%p2080_p3, %s2079_s28), 383 }
 0x23b   : > { %s2035_s3 = scalar_lea.vmem [#allocation4], %s2034_s13  ;;  %v2073_v54 = vsel %vm197_vm3, %v2072_v51, %v2059_v50  ;;  %s3704_s21 = sld [smem:[#allocation3 + %s4310_s28]] }
 0x23c   : > { %v2036_v52 = vld [vmem:[%s2035_s3] sm:$0x1]  ;;  %s4312_s10 = smov (!%p2086_p7, %s2085_s10), 383  ;;  %s2091_s4 = sadd.s32 202, %s3254_s19 }
 0x23d   : > { %v2062_v53 = vrot.slane %v2036_v52, 3  ;;  %s2088_s5 = sld [smem:[#allocation3 + %s4312_s10]]  ;;  %p2092_p8 = scmp.lt.s32.totalorder %s2091_s4, 383 }
 0x23e   : > { %s2041_s6 = scalar_lea.vmem [#allocation4], %s2040_s12  ;;  %s2097_s7 = sadd.s32 203, %s3254_s19 }
 0x23f   : > { %v2042_v55 = vld [vmem:[%s2041_s6] sm:$0x1]  ;;  %v2074_v56 = vsel %vm199_vm4, %v2073_v54, %v2062_v53  ;;  %s2047_s30 = scalar_lea.vmem [#allocation4], %s2046_s29  ;;  %s2103_s8 = sadd.s32 204, %s3254_s19 }
 0x240   : > { %v2048_v57 = vld [vmem:[%s2047_s30] sm:$0x1]  ;;  %v2065_v58 = vrot.slane %v2042_v55, 2  ;;  %s4314_s4 = smov (!%p2092_p8, %s2091_s4), 383  ;;  %p2098_p9 = scmp.lt.s32.totalorder %s2097_s7, 383 }
 0x241   : > { %v2068_v59 = vrot.slane %v2048_v57, 1  ;;  %p2104_p12 = scmp.lt.s32.totalorder %s2103_s8, 383  ;;  %s2094_s9 = sld [smem:[#allocation3 + %s4314_s4]] }
 0x242   : > { %v2075_v60 = vsel %vm201_vm5, %v2074_v56, %v2065_v58  ;;  %s2109_s11 = sadd.s32 205, %s3254_s19  ;;  %s4316_s7 = smov (!%p2098_p9, %s2097_s7), 383 }
 0x243   : > { %v2076_v61 = vsel %vm203_vm6, %v2075_v60, %v2068_v59  ;;  %s2089_s13 = scalar_lea.vmem [#allocation4], %s2088_s5  ;;  %s4318_s8 = smov (!%p2104_p12, %s2103_s8), 383 }
 0x244   : > { %v2077_v62 = vmul.f32 11.313708, %v2076_v61  ;;  %v2090_v63 = vld [vmem:[%s2089_s13] sm:$0x1]  ;;  %s2100_s22 = sld [smem:[#allocation3 + %s4316_s7]]  ;;  %p2110_p13 = scmp.lt.s32.totalorder %s2109_s11, 383 }
 0x245   : > { %v2128_v0 = vrot.slane %v2090_v63, 7  ;;  %s2083_s28 = scalar_lea.vmem [#allocation4], %s3704_s21  ;;  %s2106_s26 = sld [smem:[#allocation3 + %s4318_s8]] }
 0x246   : > { %2078 = vst [vmem:[%s3284_s27 + $0xc0] sm:$0xff] %v2077_v62  ;;  %v2084_v1 = vld [vmem:[%s2083_s28] sm:$0x1]  ;;  %s2115_s12 = sadd.s32 206, %s3254_s19  ;;  %s4320_s11 = smov (!%p2110_p13, %s2109_s11), 383 }
 0x247   : > { %p2116_p2 = scmp.lt.s32.totalorder %s2115_s12, 383  ;;  %s2095_s29 = scalar_lea.vmem [#allocation4], %s2094_s9  ;;  %v2148_v4 = vsel %vm191_vm0, %v2084_v1, %v2128_v0 }
 0x248   : > { %v2096_v2 = vld [vmem:[%s2095_s29] sm:$0x1]  ;;  %s2112_s10 = sld [smem:[#allocation3 + %s4320_s11]]  ;;  %s2121_s3 = sadd.s32 207, %s3254_s19 }
 0x249   : > { %s4322_s12 = smov (!%p2116_p2, %s2115_s12), 383  ;;  %v2131_v3 = vrot.slane %v2096_v2, 6  ;;  %p2122_p4 = scmp.lt.s32.totalorder %s2121_s3, 383 }
 0x24a   : > { %s2118_s4 = sld [smem:[#allocation3 + %s4322_s12]]  ;;  %s2101_s5 = scalar_lea.vmem [#allocation4], %s2100_s22 }
 0x24b   : > { %v2102_v5 = vld [vmem:[%s2101_s5] sm:$0x1]  ;;  %v2149_v6 = vsel %vm193_vm1, %v2148_v4, %v2131_v3  ;;  %s2107_s21 = scalar_lea.vmem [#allocation4], %s2106_s26  ;;  %s2157_s6 = sadd.s32 208, %s3254_s19 }
 0x24c   : > { %v2108_v7 = vld [vmem:[%s2107_s21] sm:$0x1]  ;;  %v2134_v8 = vrot.slane %v2102_v5, 5  ;;  %s2163_s30 = sadd.s32 209, %s3254_s19  ;;  %s4324_s3 = smov (!%p2122_p4, %s2121_s3), 383 }
 0x24d   : > { %v2137_v9 = vrot.slane %v2108_v7, 4  ;;  %p2158_p6 = scmp.lt.s32.totalorder %s2157_s6, 383  ;;  %p2164_p5 = scmp.lt.s32.totalorder %s2163_s30, 383 }
 0x24e   : > { %v2150_v10 = vsel %vm195_vm2, %v2149_v6, %v2134_v8  ;;  %s2124_s7 = sld [smem:[#allocation3 + %s4324_s3]]  ;;  %s2113_s8 = scalar_lea.vmem [#allocation4], %s2112_s10 }
 0x24f   : > { %v2114_v11 = vld [vmem:[%s2113_s8] sm:$0x1]  ;;  %v2151_v12 = vsel %vm197_vm3, %v2150_v10, %v2137_v9  ;;  %s2169_s9 = sadd.s32 210, %s3254_s19  ;;  %s4326_s6 = smov (!%p2158_p6, %s2157_s6), 383 }
 0x250   : > { %s2119_s11 = scalar_lea.vmem [#allocation4], %s2118_s4  ;;  %v2140_v14 = vrot.slane %v2114_v11, 3  ;;  %s4328_s30 = smov (!%p2164_p5, %s2163_s30), 383 }
 0x251   : > { %v2120_v13 = vld [vmem:[%s2119_s11] sm:$0x1]  ;;  %s2160_s13 = sld [smem:[#allocation3 + %s4326_s6]]  ;;  %p2170_p10 = scmp.lt.s32.totalorder %s2169_s9, 383 }
 0x252   : > { %v2143_v15 = vrot.slane %v2120_v13, 2  ;;  %v2152_v16 = vsel %vm199_vm4, %v2151_v12, %v2140_v14  ;;  %s2166_s22 = sld [smem:[#allocation3 + %s4328_s30]]  ;;  %s2175_s28 = sadd.s32 211, %s3254_s19 }
 0x253   : > { %p2176_p11 = scmp.lt.s32.totalorder %s2175_s28, 383  ;;  %s4330_s9 = smov (!%p2170_p10, %s2169_s9), 383 }
 0x254   : > { %s2125_s26 = scalar_lea.vmem [#allocation4], %s2124_s7  ;;  %v2153_v18 = vsel %vm201_vm5, %v2152_v16, %v2143_v15  ;;  %s2172_s12 = sld [smem:[#allocation3 + %s4330_s9]] }
 0x255   : > { %v2126_v17 = vld [vmem:[%s2125_s26] sm:$0x1]  ;;  %s4332_s28 = smov (!%p2176_p11, %s2175_s28), 383  ;;  %s2181_s29 = sadd.s32 212, %s3254_s19 }
 0x256   : > { %v2146_v19 = vrot.slane %v2126_v17, 1  ;;  %s2178_s10 = sld [smem:[#allocation3 + %s4332_s28]]  ;;  %p2182_p0 = scmp.lt.s32.totalorder %s2181_s29, 383 }
 0x257   : > { %s2187_s4 = sadd.s32 213, %s3254_s19  ;;  %s2193_s5 = sadd.s32 214, %s3254_s19 }
 0x258   : > { %v2154_v20 = vsel %vm203_vm6, %v2153_v18, %v2146_v19  ;;  %s2167_s3 = scalar_lea.vmem [#allocation4], %s2166_s22  ;;  %s4334_s29 = smov (!%p2182_p0, %s2181_s29), 383 }
 0x259   : > { %v2155_v21 = vmul.f32 11.313708, %v2154_v20  ;;  %v2168_v22 = vld [vmem:[%s2167_s3] sm:$0x1]  ;;  %s2161_s21 = scalar_lea.vmem [#allocation4], %s2160_s13  ;;  %p2188_p1 = scmp.lt.s32.totalorder %s2187_s4, 383 }
 0x25a   : > { %v2206_v23 = vrot.slane %v2168_v22, 7  ;;  %v2162_v24 = vld [vmem:[%s2161_s21] sm:$0x1]  ;;  %p2194_p3 = scmp.lt.s32.totalorder %s2193_s5, 383  ;;  %s2184_s6 = sld [smem:[#allocation3 + %s4334_s29]] }
 0x25b   : > { %2156 = vst [vmem:[%s3284_s27 + $0xc8] sm:$0xff] %v2155_v21  ;;  %s2173_s30 = scalar_lea.vmem [#allocation4], %s2172_s12  ;;  %s2199_s7 = sadd.s32 215, %s3254_s19 }
 0x25c   : > { %v2174_v25 = vld [vmem:[%s2173_s30] sm:$0x1]  ;;  %s2179_s8 = scalar_lea.vmem [#allocation4], %s2178_s10  ;;  %s4336_s4 = smov (!%p2188_p1, %s2187_s4), 383  ;;  %v2226_v28 = vsel %vm191_vm0, %v2162_v24, %v2206_v23 }
 0x25d   : > { %v2180_v26 = vld [vmem:[%s2179_s8] sm:$0x1]  ;;  %v2209_v27 = vrot.slane %v2174_v25, 6  ;;  %s4338_s5 = smov (!%p2194_p3, %s2193_s5), 383  ;;  %s2190_s9 = sld [smem:[#allocation3 + %s4336_s4]] }
 0x25e   : > { %p2200_p7 = scmp.lt.s32.totalorder %s2199_s7, 383  ;;  %v2212_v29 = vrot.slane %v2180_v26, 5  ;;  %s2196_s11 = sld [smem:[#allocation3 + %s4338_s5]] }
 0x25f   : > { %v2227_v30 = vsel %vm193_vm1, %v2226_v28, %v2209_v27  ;;  %s2235_s13 = sadd.s32 216, %s3254_s19  ;;  %s2241_s26 = sadd.s32 217, %s3254_s19 }
 0x260   : > { %p2236_p8 = scmp.lt.s32.totalorder %s2235_s13, 383  ;;  %s2185_s22 = scalar_lea.vmem [#allocation4], %s2184_s6  ;;  %v2228_v33 = vsel %vm195_vm2, %v2227_v30, %v2212_v29 }
 0x261   : > { %v2186_v31 = vld [vmem:[%s2185_s22] sm:$0x1]  ;;  %s4340_s7 = smov (!%p2200_p7, %s2199_s7), 383  ;;  %p2242_p9 = scmp.lt.s32.totalorder %s2241_s26, 383 }
 0x262   : > { %v2215_v32 = vrot.slane %v2186_v31, 4  ;;  %s4342_s13 = smov (!%p2236_p8, %s2235_s13), 383  ;;  %s2202_s28 = sld [smem:[#allocation3 + %s4340_s7]] }
 0x263   : > { %s3738_s12 = sld [smem:[#allocation3 + %s4342_s13]]  ;;  %s2191_s29 = scalar_lea.vmem [#allocation4], %s2190_s9 }
 0x264   : > { %v2192_v34 = vld [vmem:[%s2191_s29] sm:$0x1]  ;;  %v2229_v35 = vsel %vm197_vm3, %v2228_v33, %v2215_v32  ;;  %s2197_s10 = scalar_lea.vmem [#allocation4], %s2196_s11  ;;  %s2247_s3 = sadd.s32 218, %s3254_s19 }
 0x265   : > { %v2198_v36 = vld [vmem:[%s2197_s10] sm:$0x1]  ;;  %v2218_v37 = vrot.slane %v2192_v34, 3  ;;  %s2253_s4 = sadd.s32 219, %s3254_s19  ;;  %s4344_s26 = smov (!%p2242_p9, %s2241_s26), 383 }
 0x266   : > { %v2221_v38 = vrot.slane %v2198_v36, 2  ;;  %p2248_p12 = scmp.lt.s32.totalorder %s2247_s3, 383  ;;  %p2254_p13 = scmp.lt.s32.totalorder %s2253_s4, 383 }
 0x267   : > { %v2230_v39 = vsel %vm199_vm4, %v2229_v35, %v2218_v37  ;;  %s2244_s5 = sld [smem:[#allocation3 + %s4344_s26]]  ;;  %s2259_s6 = sadd.s32 220, %s3254_s19 }
 0x268   : > { %s2203_s21 = scalar_lea.vmem [#allocation4], %s2202_s28  ;;  %v2231_v41 = vsel %vm201_vm5, %v2230_v39, %v2221_v38  ;;  %s4346_s3 = smov (!%p2248_p12, %s2247_s3), 383 }
 0x269   : > { %v2204_v40 = vld [vmem:[%s2203_s21] sm:$0x1]  ;;  %s4348_s4 = smov (!%p2254_p13, %s2253_s4), 383  ;;  %s2250_s30 = sld [smem:[#allocation3 + %s4346_s3]] }
 0x26a   : > { %v2224_v42 = vrot.slane %v2204_v40, 1  ;;  %p2260_p2 = scmp.lt.s32.totalorder %s2259_s6, 383  ;;  %s2256_s7 = sld [smem:[#allocation3 + %s4348_s4]] }
 0x26b   : > { %s2265_s8 = sadd.s32 221, %s3254_s19  ;;  %s2239_s11 = scalar_lea.vmem [#allocation4], %s3738_s12 }
 0x26c   : > { %v2232_v43 = vsel %vm203_vm6, %v2231_v41, %v2224_v42  ;;  %p2266_p4 = scmp.lt.s32.totalorder %s2265_s8, 383  ;;  %s4350_s6 = smov (!%p2260_p2, %s2259_s6), 383  ;;  %v2240_v46 = vld [vmem:[%s2239_s11] sm:$0x1] }
 0x26d   : > { %v2233_v44 = vmul.f32 11.313708, %v2232_v43  ;;  %s2245_s9 = scalar_lea.vmem [#allocation4], %s2244_s5  ;;  %s2262_s13 = sld [smem:[#allocation3 + %s4350_s6]] }
 0x26e   : > { %v2246_v45 = vld [vmem:[%s2245_s9] sm:$0x1]  ;;  %s4352_s8 = smov (!%p2266_p4, %s2265_s8), 383  ;;  %s2271_s22 = sadd.s32 222, %s3254_s19 }
 0x26f   : > { %2234 = vst [vmem:[%s3284_s27 + $0xd0] sm:$0xff] %v2233_v44  ;;  %v2284_v47 = vrot.slane %v2246_v45, 7  ;;  %s2268_s28 = sld [smem:[#allocation3 + %s4352_s8]]  ;;  %s2251_s26 = scalar_lea.vmem [#allocation4], %s2250_s30 }
 0x270   : > { %v2252_v48 = vld [vmem:[%s2251_s26] sm:$0x1]  ;;  %p2272_p6 = scmp.lt.s32.totalorder %s2271_s22, 383  ;;  %s2257_s29 = scalar_lea.vmem [#allocation4], %s2256_s7 }
 0x271   : > { %v2304_v49 = vsel %vm191_vm0, %v2240_v46, %v2284_v47  ;;  %v2258_v50 = vld [vmem:[%s2257_s29] sm:$0x1]  ;;  %s2277_s10 = sadd.s32 223, %s3254_s19  ;;  %v2287_v51 = vrot.slane %v2252_v48, 6  ;;  %s2313_s3 = sadd.s32 224, %s3254_s19 }
 0x272   : > { %s4354_s22 = smov (!%p2272_p6, %s2271_s22), 383  ;;  %v2290_v52 = vrot.slane %v2258_v50, 5  ;;  %p2278_p5 = scmp.lt.s32.totalorder %s2277_s10, 383 }
 0x273   : > { %v2305_v53 = vsel %vm193_vm1, %v2304_v49, %v2287_v51  ;;  %p2314_p10 = scmp.lt.s32.totalorder %s2313_s3, 383  ;;  %s2274_s12 = sld [smem:[#allocation3 + %s4354_s22]] }
 0x274   : > { %s2263_s4 = scalar_lea.vmem [#allocation4], %s2262_s13  ;;  %s2319_s5 = sadd.s32 225, %s3254_s19  ;;  %v2306_v57 = vsel %vm195_vm2, %v2305_v53, %v2290_v52 }
 0x275   : > { %v2264_v54 = vld [vmem:[%s2263_s4] sm:$0x1]  ;;  %s2269_s21 = scalar_lea.vmem [#allocation4], %s2268_s28  ;;  %s4356_s10 = smov (!%p2278_p5, %s2277_s10), 383 }
 0x276   : > { %v2270_v55 = vld [vmem:[%s2269_s21] sm:$0x1]  ;;  %v2293_v56 = vrot.slane %v2264_v54, 4  ;;  %s4358_s3 = smov (!%p2314_p10, %s2313_s3), 383  ;;  %s2280_s6 = sld [smem:[#allocation3 + %s4356_s10]] }
 0x277   : > { %v2296_v58 = vrot.slane %v2270_v55, 3  ;;  %p2320_p11 = scmp.lt.s32.totalorder %s2319_s5, 383  ;;  %s3758_s30 = sld [smem:[#allocation3 + %s4358_s3]] }
 0x278   : > { %v2307_v59 = vsel %vm197_vm3, %v2306_v57, %v2293_v56  ;;  %s2325_s7 = sadd.s32 226, %s3254_s19  ;;  %s2331_s11 = sadd.s32 227, %s3254_s19 }
 0x279   : > { %p2326_p0 = scmp.lt.s32.totalorder %s2325_s7, 383  ;;  %s2275_s8 = scalar_lea.vmem [#allocation4], %s2274_s12  ;;  %v2308_v62 = vsel %vm199_vm4, %v2307_v59, %v2296_v58 }
 0x27a   : > { %v2276_v60 = vld [vmem:[%s2275_s8] sm:$0x1]  ;;  %s4360_s5 = smov (!%p2320_p11, %s2319_s5), 383  ;;  %p2332_p1 = scmp.lt.s32.totalorder %s2331_s11, 383 }
 0x27b   : > { %v2299_v61 = vrot.slane %v2276_v60, 2  ;;  %s4362_s7 = smov (!%p2326_p0, %s2325_s7), 383  ;;  %s2322_s9 = sld [smem:[#allocation3 + %s4360_s5]] }
 0x27c   : > { %s2328_s13 = sld [smem:[#allocation3 + %s4362_s7]]  ;;  %s2281_s22 = scalar_lea.vmem [#allocation4], %s2280_s6 }
 0x27d   : > { %v2282_v63 = vld [vmem:[%s2281_s22] sm:$0x1]  ;;  %v2309_v0 = vsel %vm201_vm5, %v2308_v62, %v2299_v61  ;;  %s2337_s28 = sadd.s32 228, %s3254_s19  ;;  %s2343_s26 = sadd.s32 229, %s3254_s19 }
 0x27e   : > { %v2302_v1 = vrot.slane %v2282_v63, 1  ;;  %s4364_s11 = smov (!%p2332_p1, %s2331_s11), 383  ;;  %p2338_p3 = scmp.lt.s32.totalorder %s2337_s28, 383 }
 0x27f   : > { %p2344_p7 = scmp.lt.s32.totalorder %s2343_s26, 383  ;;  %s2334_s29 = sld [smem:[#allocation3 + %s4364_s11]] }
 0x280   : > { %v2310_v2 = vsel %vm203_vm6, %v2309_v0, %v2302_v1  ;;  %s2349_s3 = sadd.s32 230, %s3254_s19  ;;  %s2317_s12 = scalar_lea.vmem [#allocation4], %s3758_s30 }
 0x281   : > { %v2311_v3 = vmul.f32 11.313708, %v2310_v2  ;;  %s2323_s10 = scalar_lea.vmem [#allocation4], %s2322_s9  ;;  %v2318_v5 = vld [vmem:[%s2317_s12] sm:$0x1]  ;;  %s4366_s28 = smov (!%p2338_p3, %s2337_s28), 383 }
 0x282   : > { %v2324_v4 = vld [vmem:[%s2323_s10] sm:$0x1]  ;;  %s2329_s4 = scalar_lea.vmem [#allocation4], %s2328_s13  ;;  %s4368_s26 = smov (!%p2344_p7, %s2343_s26), 383 }
 0x283   : > { %2312 = vst [vmem:[%s3284_s27 + $0xd8] sm:$0xff] %v2311_v3  ;;  %v2330_v6 = vld [vmem:[%s2329_s4] sm:$0x1]  ;;  %v2362_v7 = vrot.slane %v2324_v4, 7  ;;  %s2340_s5 = sld [smem:[#allocation3 + %s4366_s28]]  ;;  %p2350_p8 = scmp.lt.s32.totalorder %s2349_s3, 383 }
 0x284   : > { %v2365_v8 = vrot.slane %v2330_v6, 6  ;;  %s2346_s21 = sld [smem:[#allocation3 + %s4368_s26]]  ;;  %s2355_s6 = sadd.s32 231, %s3254_s19 }
 0x285   : > { %v2382_v9 = vsel %vm191_vm0, %v2318_v5, %v2362_v7  ;;  %p2356_p9 = scmp.lt.s32.totalorder %s2355_s6, 383  ;;  %s2335_s7 = scalar_lea.vmem [#allocation4], %s2334_s29 }
 0x286   : > { %v2336_v10 = vld [vmem:[%s2335_s7] sm:$0x1]  ;;  %s4370_s3 = smov (!%p2350_p8, %s2349_s3), 383  ;;  %v2383_v12 = vsel %vm193_vm1, %v2382_v9, %v2365_v8  ;;  %s2391_s8 = sadd.s32 232, %s3254_s19 }
 0x287   : > { %s4372_s6 = smov (!%p2356_p9, %s2355_s6), 383  ;;  %v2368_v11 = vrot.slane %v2336_v10, 5  ;;  %s2352_s30 = sld [smem:[#allocation3 + %s4370_s3]] }
 0x288   : > { %s2358_s9 = sld [smem:[#allocation3 + %s4372_s6]]  ;;  %p2392_p12 = scmp.lt.s32.totalorder %s2391_s8, 383 }
 0x289   : > { %s2341_s11 = scalar_lea.vmem [#allocation4], %s2340_s5  ;;  %v2384_v14 = vsel %vm195_vm2, %v2383_v12, %v2368_v11  ;;  %s2397_s22 = sadd.s32 233, %s3254_s19 }
 0x28a   : > { %v2342_v13 = vld [vmem:[%s2341_s11] sm:$0x1]  ;;  %s2347_s13 = scalar_lea.vmem [#allocation4], %s2346_s21  ;;  %s2403_s28 = sadd.s32 234, %s3254_s19 }
 0x28b   : > { %v2348_v15 = vld [vmem:[%s2347_s13] sm:$0x1]  ;;  %v2371_v16 = vrot.slane %v2342_v13, 4  ;;  %s4374_s8 = smov (!%p2392_p12, %s2391_s8), 383  ;;  %p2398_p13 = scmp.lt.s32.totalorder %s2397_s22, 383 }
 0x28c   : > { %v2374_v17 = vrot.slane %v2348_v15, 3  ;;  %p2404_p2 = scmp.lt.s32.totalorder %s2403_s28, 383  ;;  %s2394_s26 = sld [smem:[#allocation3 + %s4374_s8]] }
 0x28d   : > { %v2385_v18 = vsel %vm197_vm3, %v2384_v14, %v2371_v16  ;;  %s2353_s29 = scalar_lea.vmem [#allocation4], %s2352_s30  ;;  %s2409_s10 = sadd.s32 235, %s3254_s19 }
 0x28e   : > { %v2354_v19 = vld [vmem:[%s2353_s29] sm:$0x1]  ;;  %v2386_v20 = vsel %vm199_vm4, %v2385_v18, %v2374_v17  ;;  %s2359_s3 = scalar_lea.vmem [#allocation4], %s2358_s9  ;;  %s4376_s22 = smov (!%p2398_p13, %s2397_s22), 383 }
 0x28f   : > { %v2360_v21 = vld [vmem:[%s2359_s3] sm:$0x1]  ;;  %v2377_v22 = vrot.slane %v2354_v19, 2  ;;  %s4378_s28 = smov (!%p2404_p2, %s2403_s28), 383  ;;  %s2400_s12 = sld [smem:[#allocation3 + %s4376_s22]] }
 0x290   : > { %v2380_v23 = vrot.slane %v2360_v21, 1  ;;  %p2410_p4 = scmp.lt.s32.totalorder %s2409_s10, 383  ;;  %s2406_s4 = sld [smem:[#allocation3 + %s4378_s28]] }
 0x291   : > { %v2387_v24 = vsel %vm201_vm5, %v2386_v20, %v2377_v22  ;;  %s2415_s5 = sadd.s32 236, %s3254_s19  ;;  %s2421_s6 = sadd.s32 237, %s3254_s19 }
 0x292   : > { %v2388_v25 = vsel %vm203_vm6, %v2387_v24, %v2380_v23  ;;  %p2416_p6 = scmp.lt.s32.totalorder %s2415_s5, 383  ;;  %s4380_s10 = smov (!%p2410_p4, %s2409_s10), 383 }
 0x293   : > { %v2389_v26 = vmul.f32 11.313708, %v2388_v25  ;;  %s2412_s21 = sld [smem:[#allocation3 + %s4380_s10]]  ;;  %s2395_s30 = scalar_lea.vmem [#allocation4], %s2394_s26 }
 0x294   : > { %s4382_s5 = smov (!%p2416_p6, %s2415_s5), 383  ;;  %v2396_v27 = vld [vmem:[%s2395_s30] sm:$0x1]  ;;  %p2422_p5 = scmp.lt.s32.totalorder %s2421_s6, 383 }
 0x295   : > { %2390 = vst [vmem:[%s3284_s27 + $0xe0] sm:$0xff] %v2389_v26  ;;  %s2418_s7 = sld [smem:[#allocation3 + %s4382_s5]]  ;;  %s2401_s8 = scalar_lea.vmem [#allocation4], %s2400_s12 }
 0x296   : > { %v2402_v28 = vld [vmem:[%s2401_s8] sm:$0x1]  ;;  %s2407_s9 = scalar_lea.vmem [#allocation4], %s2406_s4  ;;  %s2427_s11 = sadd.s32 238, %s3254_s19 }
 0x297   : > { %v2408_v29 = vld [vmem:[%s2407_s9] sm:$0x1]  ;;  %s2433_s13 = sadd.s32 239, %s3254_s19  ;;  %v2440_v30 = vrot.slane %v2402_v28, 7  ;;  %s4384_s6 = smov (!%p2422_p5, %s2421_s6), 383 }
 0x298   : > { %v2443_v31 = vrot.slane %v2408_v29, 6  ;;  %p2428_p10 = scmp.lt.s32.totalorder %s2427_s11, 383  ;;  %p2434_p11 = scmp.lt.s32.totalorder %s2433_s13, 383 }
 0x299   : > { %v2460_v32 = vsel %vm191_vm0, %v2396_v27, %v2440_v30  ;;  %s2424_s22 = sld [smem:[#allocation3 + %s4384_s6]]  ;;  %s2413_s28 = scalar_lea.vmem [#allocation4], %s2412_s21 }
 0x29a   : > { %v2414_v33 = vld [vmem:[%s2413_s28] sm:$0x1]  ;;  %s2469_s26 = sadd.s32 240, %s3254_s19  ;;  %s4386_s11 = smov (!%p2428_p10, %s2427_s11), 383  ;;  %v2461_v36 = vsel %vm193_vm1, %v2460_v32, %v2443_v31 }
 0x29b   : > { %s2419_s29 = scalar_lea.vmem [#allocation4], %s2418_s7  ;;  %v2446_v35 = vrot.slane %v2414_v33, 5  ;;  %s4388_s13 = smov (!%p2434_p11, %s2433_s13), 383 }
 0x29c   : > { %v2420_v34 = vld [vmem:[%s2419_s29] sm:$0x1]  ;;  %s2430_s10 = sld [smem:[#allocation3 + %s4386_s11]]  ;;  %p2470_p0 = scmp.lt.s32.totalorder %s2469_s26, 383 }
 0x29d   : > { %v2449_v37 = vrot.slane %v2420_v34, 4  ;;  %s2436_s3 = sld [smem:[#allocation3 + %s4388_s13]]  ;;  %v2462_v38 = vsel %vm195_vm2, %v2461_v36, %v2446_v35  ;;  %s2475_s12 = sadd.s32 241, %s3254_s19 }
 0x29e   : > { %p2476_p1 = scmp.lt.s32.totalorder %s2475_s12, 383  ;;  %s4390_s26 = smov (!%p2470_p0, %s2469_s26), 383 }
 0x29f   : > { %s2425_s4 = scalar_lea.vmem [#allocation4], %s2424_s22  ;;  %v2463_v41 = vsel %vm197_vm3, %v2462_v38, %v2449_v37  ;;  %s3793_s5 = sld [smem:[#allocation3 + %s4390_s26]] }
 0x2a0   : > { %v2426_v39 = vld [vmem:[%s2425_s4] sm:$0x1]  ;;  %s4392_s12 = smov (!%p2476_p1, %s2475_s12), 383  ;;  %s2481_s21 = sadd.s32 242, %s3254_s19 }
 0x2a1   : > { %v2452_v40 = vrot.slane %v2426_v39, 3  ;;  %s2478_s6 = sld [smem:[#allocation3 + %s4392_s12]]  ;;  %p2482_p3 = scmp.lt.s32.totalorder %s2481_s21, 383 }
 0x2a2   : > { %s2431_s7 = scalar_lea.vmem [#allocation4], %s2430_s10  ;;  %s2487_s8 = sadd.s32 243, %s3254_s19 }
 0x2a3   : > { %v2432_v42 = vld [vmem:[%s2431_s7] sm:$0x1]  ;;  %v2464_v43 = vsel %vm199_vm4, %v2463_v41, %v2452_v40  ;;  %s2437_s30 = scalar_lea.vmem [#allocation4], %s2436_s3  ;;  %s2493_s9 = sadd.s32 244, %s3254_s19 }
 0x2a4   : > { %v2438_v44 = vld [vmem:[%s2437_s30] sm:$0x1]  ;;  %v2455_v45 = vrot.slane %v2432_v42, 2  ;;  %s4394_s21 = smov (!%p2482_p3, %s2481_s21), 383  ;;  %p2488_p7 = scmp.lt.s32.totalorder %s2487_s8, 383 }
 0x2a5   : > { %v2458_v46 = vrot.slane %v2438_v44, 1  ;;  %p2494_p8 = scmp.lt.s32.totalorder %s2493_s9, 383  ;;  %s2484_s11 = sld [smem:[#allocation3 + %s4394_s21]] }
 0x2a6   : > { %v2465_v47 = vsel %vm201_vm5, %v2464_v43, %v2455_v45  ;;  %s2499_s13 = sadd.s32 245, %s3254_s19  ;;  %s4396_s8 = smov (!%p2488_p7, %s2487_s8), 383 }
 0x2a7   : > { %v2466_v48 = vsel %vm203_vm6, %v2465_v47, %v2458_v46  ;;  %s2479_s22 = scalar_lea.vmem [#allocation4], %s2478_s6  ;;  %s4398_s9 = smov (!%p2494_p8, %s2493_s9), 383 }
 0x2a8   : > { %v2467_v49 = vmul.f32 11.313708, %v2466_v48  ;;  %v2480_v50 = vld [vmem:[%s2479_s22] sm:$0x1]  ;;  %s2490_s28 = sld [smem:[#allocation3 + %s4396_s8]]  ;;  %p2500_p9 = scmp.lt.s32.totalorder %s2499_s13, 383 }
 0x2a9   : > { %v2518_v51 = vrot.slane %v2480_v50, 7  ;;  %s2473_s26 = scalar_lea.vmem [#allocation4], %s3793_s5  ;;  %s2496_s29 = sld [smem:[#allocation3 + %s4398_s9]] }
 0x2aa   : > { %2468 = vst [vmem:[%s3284_s27 + $0xe8] sm:$0xff] %v2467_v49  ;;  %v2474_v52 = vld [vmem:[%s2473_s26] sm:$0x1]  ;;  %s2505_s10 = sadd.s32 246, %s3254_s19  ;;  %s4400_s13 = smov (!%p2500_p9, %s2499_s13), 383 }
 0x2ab   : > { %p2506_p12 = scmp.lt.s32.totalorder %s2505_s10, 383  ;;  %s2485_s3 = scalar_lea.vmem [#allocation4], %s2484_s11  ;;  %v2538_v55 = vsel %vm191_vm0, %v2474_v52, %v2518_v51 }
 0x2ac   : > { %v2486_v53 = vld [vmem:[%s2485_s3] sm:$0x1]  ;;  %s2502_s12 = sld [smem:[#allocation3 + %s4400_s13]]  ;;  %s2511_s4 = sadd.s32 247, %s3254_s19 }
 0x2ad   : > { %s4402_s10 = smov (!%p2506_p12, %s2505_s10), 383  ;;  %v2521_v54 = vrot.slane %v2486_v53, 6  ;;  %p2512_p13 = scmp.lt.s32.totalorder %s2511_s4, 383 }
 0x2ae   : > { %s2508_s21 = sld [smem:[#allocation3 + %s4402_s10]]  ;;  %s2491_s6 = scalar_lea.vmem [#allocation4], %s2490_s28 }
 0x2af   : > { %v2492_v56 = vld [vmem:[%s2491_s6] sm:$0x1]  ;;  %v2539_v57 = vsel %vm193_vm1, %v2538_v55, %v2521_v54  ;;  %s2497_s5 = scalar_lea.vmem [#allocation4], %s2496_s29  ;;  %s2547_s7 = sadd.s32 248, %s3254_s19 }
 0x2b0   : > { %v2498_v58 = vld [vmem:[%s2497_s5] sm:$0x1]  ;;  %v2524_v59 = vrot.slane %v2492_v56, 5  ;;  %s2553_s30 = sadd.s32 249, %s3254_s19  ;;  %s4404_s4 = smov (!%p2512_p13, %s2511_s4), 383 }
 0x2b1   : > { %v2527_v60 = vrot.slane %v2498_v58, 4  ;;  %p2548_p2 = scmp.lt.s32.totalorder %s2547_s7, 383  ;;  %p2554_p4 = scmp.lt.s32.totalorder %s2553_s30, 383 }
 0x2b2   : > { %v2540_v61 = vsel %vm195_vm2, %v2539_v57, %v2524_v59  ;;  %s2514_s8 = sld [smem:[#allocation3 + %s4404_s4]]  ;;  %s2503_s9 = scalar_lea.vmem [#allocation4], %s2502_s12 }
 0x2b3   : > { %v2504_v62 = vld [vmem:[%s2503_s9] sm:$0x1]  ;;  %v2541_v63 = vsel %vm197_vm3, %v2540_v61, %v2527_v60  ;;  %s2559_s11 = sadd.s32 250, %s3254_s19  ;;  %s4406_s7 = smov (!%p2548_p2, %s2547_s7), 383 }
 0x2b4   : > { %s2509_s13 = scalar_lea.vmem [#allocation4], %s2508_s21  ;;  %v2530_v1 = vrot.slane %v2504_v62, 3  ;;  %s4408_s30 = smov (!%p2554_p4, %s2553_s30), 383 }
 0x2b5   : > { %v2510_v0 = vld [vmem:[%s2509_s13] sm:$0x1]  ;;  %s2550_s22 = sld [smem:[#allocation3 + %s4406_s7]]  ;;  %p2560_p6 = scmp.lt.s32.totalorder %s2559_s11, 383 }
 0x2b6   : > { %v2533_v2 = vrot.slane %v2510_v0, 2  ;;  %v2542_v3 = vsel %vm199_vm4, %v2541_v63, %v2530_v1  ;;  %s2556_s28 = sld [smem:[#allocation3 + %s4408_s30]]  ;;  %s2565_s26 = sadd.s32 251, %s3254_s19 }
 0x2b7   : > { %p2566_p5 = scmp.lt.s32.totalorder %s2565_s26, 383  ;;  %s4410_s11 = smov (!%p2560_p6, %s2559_s11), 383 }
 0x2b8   : > { %s2515_s29 = scalar_lea.vmem [#allocation4], %s2514_s8  ;;  %v2543_v5 = vsel %vm201_vm5, %v2542_v3, %v2533_v2  ;;  %s2562_s10 = sld [smem:[#allocation3 + %s4410_s11]] }
 0x2b9   : > { %v2516_v4 = vld [vmem:[%s2515_s29] sm:$0x1]  ;;  %s4412_s26 = smov (!%p2566_p5, %s2565_s26), 383  ;;  %s2571_s3 = sadd.s32 252, %s3254_s19 }
 0x2ba   : > { %v2536_v6 = vrot.slane %v2516_v4, 1  ;;  %s2568_s12 = sld [smem:[#allocation3 + %s4412_s26]]  ;;  %p2572_p10 = scmp.lt.s32.totalorder %s2571_s3, 383 }
 0x2bb   : > { %s2577_s21 = sadd.s32 253, %s3254_s19  ;;  %s2583_s6 = sadd.s32 254, %s3254_s19 }
 0x2bc   : > { %v2544_v7 = vsel %vm203_vm6, %v2543_v5, %v2536_v6  ;;  %s2557_s4 = scalar_lea.vmem [#allocation4], %s2556_s28  ;;  %s4414_s3 = smov (!%p2572_p10, %s2571_s3), 383 }
 0x2bd   : > { %v2545_v8 = vmul.f32 11.313708, %v2544_v7  ;;  %v2558_v9 = vld [vmem:[%s2557_s4] sm:$0x1]  ;;  %s2551_s5 = scalar_lea.vmem [#allocation4], %s2550_s22  ;;  %p2578_p11 = scmp.lt.s32.totalorder %s2577_s21, 383 }
 0x2be   : > { %v2596_v10 = vrot.slane %v2558_v9, 7  ;;  %v2552_v11 = vld [vmem:[%s2551_s5] sm:$0x1]  ;;  %p2584_p0 = scmp.lt.s32.totalorder %s2583_s6, 383  ;;  %s2574_s7 = sld [smem:[#allocation3 + %s4414_s3]] }
 0x2bf   : > { %2546 = vst [vmem:[%s3284_s27 + $0xf0] sm:$0xff] %v2545_v8  ;;  %s2563_s30 = scalar_lea.vmem [#allocation4], %s2562_s10  ;;  %s2589_s8 = sadd.s32 255, %s3254_s19 }
 0x2c0   : > { %v2564_v12 = vld [vmem:[%s2563_s30] sm:$0x1]  ;;  %s2569_s9 = scalar_lea.vmem [#allocation4], %s2568_s12  ;;  %s4416_s21 = smov (!%p2578_p11, %s2577_s21), 383  ;;  %v2616_v15 = vsel %vm191_vm0, %v2552_v11, %v2596_v10 }
 0x2c1   : > { %v2570_v13 = vld [vmem:[%s2569_s9] sm:$0x1]  ;;  %v2599_v14 = vrot.slane %v2564_v12, 6  ;;  %s4418_s6 = smov (!%p2584_p0, %s2583_s6), 383  ;;  %s2580_s11 = sld [smem:[#allocation3 + %s4416_s21]] }
 0x2c2   : > { %p2590_p1 = scmp.lt.s32.totalorder %s2589_s8, 383  ;;  %v2602_v16 = vrot.slane %v2570_v13, 5  ;;  %s2586_s13 = sld [smem:[#allocation3 + %s4418_s6]] }
 0x2c3   : > { %v2617_v17 = vsel %vm193_vm1, %v2616_v15, %v2599_v14  ;;  %s3832_s10 = scalar_lea.sflag [#allocation6], %s114_s14  ;;  %p3905_p3 = scmp.ne.s32.totalorder %s3898_s24, 0 }
 0x2c4   : > { %s2575_s22 = scalar_lea.vmem [#allocation4], %s2574_s7  ;;  %s4420_s8 = smov (!%p2590_p1, %s2589_s8), 383  ;;  %v2618_v20 = vsel %vm195_vm2, %v2617_v17, %v2602_v16 }
 0x2c5   : > { %v2576_v18 = vld [vmem:[%s2575_s22] sm:$0x1]  ;;  %s2592_s19 = sld [smem:[#allocation3 + %s4420_s8]]  ;;  %s2971_s3 = sshll.u32 (%p3905_p3), %s3190_s18, 5 }
 0x2c6   : > { %v2605_v19 = vrot.slane %v2576_v18, 4  ;;  %s2634_s12 = ssub.s32 (%p3905_p3), 48, %s2971_s3 }
 0x2c7   : > { %s2581_s28 = scalar_lea.vmem [#allocation4], %s2580_s11  ;;  %p2635_p7 = scmp.lt.s32.totalorder (%p3905_p3), %s2634_s12, 32 }
 0x2c8   : > { %v2582_v21 = vld [vmem:[%s2581_s28] sm:$0x1]  ;;  %v2619_v22 = vsel %vm197_vm3, %v2618_v20, %v2605_v19  ;;  %s2587_s26 = scalar_lea.vmem [#allocation4], %s2586_s13 }
 0x2c9   : > { %v2588_v23 = vld [vmem:[%s2587_s26] sm:$0x1]  ;;  %v2608_v24 = vrot.slane %v2582_v21, 3 }
 0x2ca   : > { %v2611_v25 = vrot.slane %v2588_v23, 2 }
 0x2cb   : > { %v2620_v26 = vsel %vm199_vm4, %v2619_v22, %v2608_v24  ;;  %s2593_s29 = scalar_lea.vmem [#allocation4], %s2592_s19 }
 0x2cc   : > { %v2594_v27 = vld [vmem:[%s2593_s29] sm:$0x1]  ;;  %v2621_v28 = vsel %vm201_vm5, %v2620_v26, %v2611_v25  ;;  %2632 = sbr.rel (!%p3905_p3) target bundleno = 751 (0x2ef), region = 32 }
 0x2cd   : > { %v2614_v29 = vrot.slane %v2594_v27, 1 }
 0x2cf   : > { %v2622_v30 = vsel %vm203_vm6, %v2621_v28, %v2614_v29 }
 0x2d0   : > { %v2623_v31 = vmul.f32 11.313708, %v2622_v30 }
 0x2d2   : > { %2624 = vst [vmem:[%s3284_s27 + $0xf8] sm:$0xff] %v2623_v31 }
 0x2d3   : > { %s4422_s12 = smov (!%p2635_p7, %s2634_s12), 32 }
 0x2d4   : > { %s3837_s4 = sshll.u32 %s4422_s12, 7 }
 0x2d5   : > { %s2639_s21 = ssub.s32 4096, %s3837_s4 }
 0x2d6   : > { %2640 = vsyncadd %s3832_s10, %s2639_s21  ;;  %p2973_p8 = scmp.ne.s32.totalorder %s3837_s4, 0  ;;  %s2979_s14 = sshll.u32 %s3190_s18, 12 }
 0x2d7   : > { %s3846_s5 = scalar_lea.hbm %s3895_s2, %s2979_s14  ;;  %s2645_s7 = sshll.u32 %s3284_s27, 4  ;;  %s3849_s7 = int_to_ptr.vmem [resolvable:$true] %s2645_s7 }
 0x2d8   : > { %s3074_s30 = scalar_lea.vmem %s3849_s7, %s3837_s4  ;;  %s3148_s8 = smov [#allocation7]  }
 0x2d9   : > { %p3075_p9 = scmp.ne.s32.totalorder %s3849_s7, %s3074_s30  ;;  %s3078_s9 = sshll.u32 %s3148_s8, 4  ;;  %s3079_s9 = int_to_ptr.vmem [resolvable:$false] %s3078_s9 }
 0x2da   : > { %s3080_s18 = scalar_lea.vmem %s3079_s9, 8192  ;;  %p3081_p2 = scmp.lt.s32.totalorder %s3849_s7, %s3079_s9 }
 0x2db   : > { %p3076_p12 = pnand %p3075_p9, %p2973_p8  ;;  %p3082_p4 = scmp.lt.s32.totalorder %s3080_s18, %s3074_s30 }
 0x2dd   : > { %p3077_p13 = pneg %p3076_p12  ;;  %p3083_p6 = por %p3082_p4, %p3081_p2 }
 0x2df   : > { %p3084_p5 = pnand %p3083_p6, %p3077_p13 }
 0x2e1   : > { %3087 = shalt.err (!%p3084_p5)
}
 0x2e2   : > { %s3088_s27 = scalar_lea.hbm %s3846_s5, %s3837_s4  ;;  %s3092_s22 = scalar_lea.hbm %s3895_s2, 6144 }
 0x2e3   : > { %p3089_p10 = scmp.ne.s32.totalorder %s3846_s5, %s3088_s27  ;;  %p3093_p1 = scmp.lt.u32.totalorder %s3846_s5, %s3895_s2 }
 0x2e4   : > { %p3094_p3 = scmp.lt.u32.totalorder %s3092_s22, %s3088_s27  ;;  %p3096_p9 = scmp.lt.u32.totalorder %s3088_s27, %s3846_s5 }
 0x2e5   : > { %p3090_p11 = pnand %p3089_p10, %p2973_p8 }
 0x2e6   : > { %p3095_p7 = por %p3094_p3, %p3093_p1 }
 0x2e7   : > { %p3091_p0 = pneg %p3090_p11 }
 0x2e8   : > { %p3097_p12 = por %p3096_p9, %p3095_p7 }
 0x2ea   : > { %p3098_p13 = pnand %p3097_p12, %p3091_p0 }
 0x2ec   : > { %3101 = shalt.err (!%p3098_p13)
}
 0x2ed   : > { %s3149_s26 = smov 128   ;;  %s3150_s29 = smov 8  }
 0x2ee   : > { %2651 = dma.vmem_to_hbm [thread:$0]  (%p2973_p8), %s3849_s7, %s3837_s4, %s3846_s5, %s3832_s10, %s3149_s26, %s3149_s26, %s3150_s29  }
 0x2ef PF: > { %p2995_p2 = scmp.ge.s32.totalorder %s3142_s17, 2  ;;  %s2660_s3 = sand.u32 1, %s3130_s15  }
 0x2f0   : > { %p3906_p4 = scmp.ne.s32.totalorder %s3899_s25, 0  ;;  %s2661_s12 = scalar_lea.sflag [#allocation6], %s2660_s3 }
 0x2f2   : > { %p2990_p6 = pnand %p2995_p2, %p3906_p4 }
 0x2f4   : > { %3125 = dma.done.wait (!%p2990_p6), %s2661_s12, 4096  }
 0x2f5   : > { %3127 = vsyncadd (!%p2990_p6), %s2661_s12, 4294963200  ;;  %p19_p5 = scmp.ge.s32.totalorder %s3194_s20, 4   ;;  %s3907_s15 = smov %s3134_s0 }
 0x2f6   : > { %s3908_s0 = smov %s3138_s16  ;;  %s3909_s16 = smov %s3205_s23 }
 0x2f7   : > { %s3910_s17 = smov %s3194_s20  ;;  %21 = sbr.rel (!%p19_p5) target bundleno = 20 (0x14), region = 317 }
 0x2fe   :  { %2666 = vsyncpa [#allocation5], 1 }
 0x2ff   :  { %2668 = vsyncpa [#allocation5 + $0x1], 1 }
 0x300   :  { %2669 = vsyncpa [#allocation6], 1 }
 0x301   :  { %2671 = vsyncpa [#allocation6 + $0x1], 1 }

</bundles_post_ra>
